<compile_context>
chip_gen: v7x
topology: tpu7x:2x2x1
jax: 0.10.0
libtpu: 0.0.40
codegen_flags: <defaults>
</compile_context>

<pallas_src>
import numpy as np
import jax
import jax.numpy as jnp
from jax import lax
from jax.experimental import pallas as pl
from jax.experimental.pallas import tpu as pltpu

EMBED_DIM = 128
HIDDEN = 128
NUM_EMBEDDINGS = 10000
NUM_CLASSES = 35
NUM_LAYERS = 2
BIDIRECTIONAL = True
CPAD = 128         # lane-dense padded class dimension for the final head
GATHER_SEMS = 8    # round-robin DMA semaphores shared by the embedding gather


# ---------------------------------------------------------------------------
# Fully fused kernel: embedding gather + 2x biLSTM + Linear + softmax.
# ---------------------------------------------------------------------------
def _make_fused_kernel(B, S):
    T = B            # LSTM time axis  (dim 0 of the (B, S, E) tensor)
    N = S            # LSTM batch axis (dim 1)
    H = HIDDEN
    H4 = 4 * H

    def kernel(ids_ref, emb_ref,
               wih0_ref, whh0f_ref, whh0b_ref, b0_ref,
               wih1_ref, whh1f_ref, whh1b_ref, b1_ref,
               fcw_ref, fcb_ref,
               out_ref,
               x_scr, proj_scr, act1_scr, act2_scr,
               wih0_v, whh0f_v, whh0b_v, wih1_v, whh1f_v, whh1b_v, fcw_v,
               gsem, wsem):
        # ---- 1. embedding gather: T*N overlapped row DMAs HBM -> VMEM ------
        # Issued first: these random 512 B reads are latency-critical.  All
        # SMEM id reads happen before any .wait() (keeps sst->sld forwarding).
        gathers = []
        for i in range(T * N):
            cp = pltpu.make_async_copy(
                emb_ref.at[pl.ds(ids_ref[i], 1), :],   # (1, E) row in HBM
                x_scr.at[pl.ds(i, 1), :],              # (1, E) row in VMEM
                gsem.at[i % GATHER_SEMS])
            cp.start()
            gathers.append(cp)

        # ---- 2. weight HBM -> VMEM copies, hidden behind gather/compute ----
        wcopies = []
        for j, (src, dst) in enumerate((
                (wih0_ref, wih0_v), (whh0f_ref, whh0f_v), (whh0b_ref, whh0b_v),
                (wih1_ref, wih1_v), (whh1f_ref, whh1f_v), (whh1b_ref, whh1b_v),
                (fcw_ref, fcw_v))):
            cp = pltpu.make_async_copy(src, dst, wsem.at[j])
            cp.start()
            wcopies.append(cp)

        for cp in gathers:
            cp.wait()
        for cp in wcopies[:3]:      # layer-0 weights only
            cp.wait()

        # ---- 3. one bidirectional LSTM layer (both directions fused) -------
        def run_layer(wih_v, whhf_v, whhb_v, b_ref, x_bf16, act_ref):
            # Hoisted input projection for all timesteps & both directions:
            #   (T*N, I) @ (I, 8H) + bias  -> proj_scr
            proj_scr[...] = (
                jnp.dot(x_bf16, wih_v[...],
                        preferred_element_type=jnp.float32) + b_ref[...])

            # rows [0:N) = forward state, rows [N:2N) = backward state
            h = jnp.zeros((2 * N, H), jnp.float32)
            c = jnp.zeros((2 * N, H), jnp.float32)

            # Fully unrolled recurrence (T is small & static).
            for t in range(T):
                tb = T - 1 - t
                # forward direction, input time t
                g_f = proj_scr[t * N:(t + 1) * N, 0:H4] + jnp.dot(
                    h[0:N].astype(jnp.bfloat16), whhf_v[...],
                    preferred_element_type=jnp.float32)
                # backward direction, input time T-1-t
                g_b = proj_scr[tb * N:(tb + 1) * N, H4:2 * H4] + jnp.dot(
                    h[N:2 * N].astype(jnp.bfloat16), whhb_v[...],
                    preferred_element_type=jnp.float32)
                # fused fwd+bwd nonlinearities; PyTorch gate order: i, f, g, o
                gates = jnp.concatenate([g_f, g_b], axis=0)      # (2N, 4H)
                i_g = jax.nn.sigmoid(gates[:, 0 * H:1 * H])
                f_g = jax.nn.sigmoid(gates[:, 1 * H:2 * H])
                g_g = jnp.tanh(gates[:, 2 * H:3 * H])
                o_g = jax.nn.sigmoid(gates[:, 3 * H:4 * H])
                c = f_g * c + i_g * g_g
                h = o_g * jnp.tanh(c)
                # layer output, row = t*N + s, cols [0:H]=fwd, [H:2H]=bwd
                act_ref[t * N:(t + 1) * N, 0:H] = h[0:N]
                act_ref[tb * N:(tb + 1) * N, H:2 * H] = h[N:2 * N]

        # layer 0: input = gathered embeddings
        run_layer(wih0_v, whh0f_v, whh0b_v, b0_ref,
                  x_scr[...].astype(jnp.bfloat16), act1_scr)

        for cp in wcopies[3:6]:     # layer-1 weights (long since landed)
            cp.wait()
        # layer 1: input = layer-0 output, written to its own scratch
        run_layer(wih1_v, whh1f_v, whh1b_v, b1_ref,
                  act1_scr[...].astype(jnp.bfloat16), act2_scr)

        # ---- 4. flatten + Linear + softmax epilogue (lane-dense head) ------
        wcopies[6].wait()           # FC weight
        # logits[b, c] = sum_s act2[b, s, :] @ fcw[s]   (fcw pre-rearranged)
        act3 = act2_scr[...].reshape(T, N, 2 * H)
        acc = jnp.zeros((T, CPAD), jnp.float32)
        for s in range(N):
            acc = acc + jnp.dot(act3[:, s, :].astype(jnp.bfloat16), fcw_v[s],
                                preferred_element_type=jnp.float32)
        logits = acc + fcb_ref[...]

        # mask padded class columns, then softmax over dim 1
        col = lax.broadcasted_iota(jnp.int32, (T, CPAD), 1)
        logits = jnp.where(col < NUM_CLASSES, logits, -1e30)
        m = jnp.max(logits, axis=1, keepdims=True)
        e = jnp.exp(logits - m)
        out_ref[...] = e / jnp.sum(e, axis=1, keepdims=True)

    return kernel


def net_forward(token_ids, params):
    B, S = token_ids.shape
    T, N, H = B, S, HIDDEN
    kernel = _make_fused_kernel(B, S)

    vmem = pl.BlockSpec(memory_space=pltpu.MemorySpace.VMEM)
    smem = pl.BlockSpec(memory_space=pltpu.MemorySpace.SMEM)
    hbm = pl.BlockSpec(memory_space=pl.ANY)

    out = pl.pallas_call(
        kernel,
        out_shape=jax.ShapeDtypeStruct((B, CPAD), jnp.float32),
        in_specs=[smem,             # token ids (scalars)
                  hbm,              # embedding table, gathered in-kernel
                  hbm, hbm, hbm,    # layer-0 weights, manual DMA
                  vmem,             # layer-0 bias (tiny)
                  hbm, hbm, hbm,    # layer-1 weights, manual DMA
                  vmem,             # layer-1 bias (tiny)
                  hbm,              # FC weight, manual DMA
                  vmem],            # FC bias (tiny)
        out_specs=vmem,
        scratch_shapes=[
            pltpu.VMEM((T * N, EMBED_DIM), jnp.float32),    # gathered embeds
            pltpu.VMEM((T * N, 8 * H), jnp.float32),        # hoisted projection
            pltpu.VMEM((T * N, 2 * H), jnp.float32),        # layer-0 output
            pltpu.VMEM((T * N, 2 * H), jnp.float32),        # layer-1 output
            pltpu.VMEM((EMBED_DIM, 8 * H), jnp.bfloat16),   # wih0
            pltpu.VMEM((H, 4 * H), jnp.bfloat16),           # whh0 fwd
            pltpu.VMEM((H, 4 * H), jnp.bfloat16),           # whh0 bwd
            pltpu.VMEM((2 * H, 8 * H), jnp.bfloat16),       # wih1
            pltpu.VMEM((H, 4 * H), jnp.bfloat16),           # whh1 fwd
            pltpu.VMEM((H, 4 * H), jnp.bfloat16),           # whh1 bwd
            pltpu.VMEM((S, 2 * H, CPAD), jnp.bfloat16),     # fc weight
            pltpu.SemaphoreType.DMA((GATHER_SEMS,)),        # gather semaphores
            pltpu.SemaphoreType.DMA((7,)),                  # weight semaphores
        ],
    )(
        token_ids.reshape(-1).astype(jnp.int32),
        params["embedding"],
        params["wih0"], params["whhf0"], params["whhb0"], params["b0"],
        params["wih1"], params["whhf1"], params["whhb1"], params["b1"],
        params["fcw"], params["fcb"],
    )
    return out[:, :NUM_CLASSES]


# ---------------------------------------------------------------------------
# Deterministic parameter initialization (same shapes as the PyTorch module),
# pre-packed into the kernel-friendly layout.
# ---------------------------------------------------------------------------
def _init_lstm_dir(key, input_size, hidden):
    k = 1.0 / np.sqrt(hidden)
    k0, k1, k2, k3 = jax.random.split(key, 4)
    w_ih = jax.random.uniform(k0, (4 * hidden, input_size), minval=-k, maxval=k)
    w_hh = jax.random.uniform(k1, (4 * hidden, hidden), minval=-k, maxval=k)
    b_ih = jax.random.uniform(k2, (4 * hidden,), minval=-k, maxval=k)
    b_hh = jax.random.uniform(k3, (4 * hidden,), minval=-k, maxval=k)
    return w_ih, w_hh, b_ih, b_hh


def init_params(key, seq_size):
    H = HIDDEN
    keys = jax.random.split(key, 5)
    params = {}

    emb = 0.02 * jax.random.normal(keys[0], (NUM_EMBEDDINGS, EMBED_DIM),
                                   dtype=jnp.float32)
    params["embedding"] = emb.at[0].set(0.0)     # padding_idx=0

    in_size = EMBED_DIM
    for layer in range(NUM_LAYERS):
        kf, kb = jax.random.split(keys[1 + layer], 2)
        wif, whf, bif, bhf = _init_lstm_dir(kf, in_size, H)
        wib, whb, bib, bhb = _init_lstm_dir(kb, in_size, H)
        # kernel layout:  x @ [W_ih_fwd.T | W_ih_bwd.T]  ->  (in_size, 8H)
        params[f"wih{layer}"] = jnp.concatenate([wif.T, wib.T],
                                                axis=1).astype(jnp.bfloat16)
        params[f"whhf{layer}"] = whf.T.astype(jnp.bfloat16)   # (H, 4H)
        params[f"whhb{layer}"] = whb.T.astype(jnp.bfloat16)   # (H, 4H)
        params[f"b{layer}"] = jnp.concatenate(
            [bif + bhf, bib + bhb])[None, :].astype(jnp.float32)  # (1, 8H)
        in_size = 2 * H

    fc_in = seq_size * 2 * H
    kfc = 1.0 / np.sqrt(fc_in)
    fc_w = jax.random.uniform(keys[3], (NUM_CLASSES, fc_in),
                              minval=-kfc, maxval=kfc)
    fc_b = jax.random.uniform(keys[4], (NUM_CLASSES,), minval=-kfc, maxval=kfc)
    # (C, S*2H) -> (S, 2H, C), pad classes to lane-dense CPAD
    fc_w_r = fc_w.reshape(NUM_CLASSES, seq_size, 2 * H).transpose(1, 2, 0)
    fc_w_r = jnp.pad(fc_w_r, ((0, 0), (0, 0), (0, CPAD - NUM_CLASSES)))
    params["fcw"] = fc_w_r.astype(jnp.bfloat16)               # (S, 2H, CPAD)
    params["fcb"] = jnp.pad(fc_b,
                            (0, CPAD - NUM_CLASSES))[None, :].astype(jnp.float32)
    return params


if __name__ == "__main__":
    B, S = 4, 8   # small shapes: batch=4, seq_size=8
    key = jax.random.PRNGKey(0)
    k_ids, k_params = jax.random.split(key)

    token_ids = jax.random.randint(k_ids, (B, S), 0, NUM_EMBEDDINGS,
                                   dtype=jnp.int32)
    params = init_params(k_params, seq_size=S)

    fwd = jax.jit(net_forward)
    out = jax.block_until_ready(fwd(token_ids, params))

    assert out.shape == (B, NUM_CLASSES)
    assert out.dtype == jnp.float32
    o = np.asarray(out)
    assert np.all(np.isfinite(o)) and np.all(o >= 0.0)
    # rows of the softmax output must sum to 1
    assert np.allclose(o.sum(axis=1), 1.0, atol=1e-5)
    print("KERNEL_OK")
</pallas_src>

<mosaic_0001>
module attributes {stable_mosaic.version = 11 : i64} {
  func.func @kernel(%arg0: memref<32xi32, #tpu.memory_space<smem>>, %arg1: memref<10000x128xf32, #tpu.memory_space<any>>, %arg2: memref<128x1024xbf16, #tpu.memory_space<any>>, %arg3: memref<128x512xbf16, #tpu.memory_space<any>>, %arg4: memref<128x512xbf16, #tpu.memory_space<any>>, %arg5: memref<1x1024xf32, #tpu.memory_space<vmem>>, %arg6: memref<256x1024xbf16, #tpu.memory_space<any>>, %arg7: memref<128x512xbf16, #tpu.memory_space<any>>, %arg8: memref<128x512xbf16, #tpu.memory_space<any>>, %arg9: memref<1x1024xf32, #tpu.memory_space<vmem>>, %arg10: memref<8x256x128xbf16, #tpu.memory_space<any>>, %arg11: memref<1x128xf32, #tpu.memory_space<vmem>>, %arg12: memref<4x128xf32, #tpu.memory_space<vmem>>, %arg13: memref<32x128xf32, #tpu.memory_space<vmem>>, %arg14: memref<32x1024xf32, #tpu.memory_space<vmem>>, %arg15: memref<32x256xf32, #tpu.memory_space<vmem>>, %arg16: memref<32x256xf32, #tpu.memory_space<vmem>>, %arg17: memref<128x1024xbf16, #tpu.memory_space<vmem>>, %arg18: memref<128x512xbf16, #tpu.memory_space<vmem>>, %arg19: memref<128x512xbf16, #tpu.memory_space<vmem>>, %arg20: memref<256x1024xbf16, #tpu.memory_space<vmem>>, %arg21: memref<128x512xbf16, #tpu.memory_space<vmem>>, %arg22: memref<128x512xbf16, #tpu.memory_space<vmem>>, %arg23: memref<8x256x128xbf16, #tpu.memory_space<vmem>>, %arg24: memref<8x!tpu.dma_semaphore, #tpu.memory_space<semaphore_mem>>, %arg25: memref<7x!tpu.dma_semaphore, #tpu.memory_space<semaphore_mem>>) attributes {dimension_semantics = [], scalar_prefetch = 0 : i64, scratch_operands = 13 : i64, tpu.core_type = #tpu.core_type<tc>} {
    %c0 = arith.constant 0 : index
    %0 = memref.load %arg0[%c0] : memref<32xi32, #tpu.memory_space<smem>>
    %c0_i32 = arith.constant 0 : i32
    %c0_i32_0 = arith.constant 0 : i32
    %1 = tpu.memref_slice %arg1[%0, %c0_i32_0] : memref<10000x128xf32, #tpu.memory_space<any>> -> memref<1x128xf32, #tpu.memory_space<any>>
    %c0_i32_1 = arith.constant 0 : i32
    %c0_i32_2 = arith.constant 0 : i32
    %2 = tpu.memref_slice %arg13[%c0_i32_1, %c0_i32_2] : memref<32x128xf32, #tpu.memory_space<vmem>> -> memref<1x128xf32, #tpu.memory_space<vmem>>
    %3 = tpu.memref_slice %arg24[%c0_i32] : memref<8x!tpu.dma_semaphore, #tpu.memory_space<semaphore_mem>> -> memref<1x!tpu.dma_semaphore, #tpu.memory_space<semaphore_mem>>
    %4 = tpu.memref_squeeze %3 : memref<1x!tpu.dma_semaphore, #tpu.memory_space<semaphore_mem>> -> memref<!tpu.dma_semaphore, #tpu.memory_space<semaphore_mem>>
    tpu.enqueue_dma source(%1 : memref<1x128xf32, #tpu.memory_space<any>>) target(%2 : memref<1x128xf32, #tpu.memory_space<vmem>>) target_semaphore(%4 : memref<!tpu.dma_semaphore, #tpu.memory_space<semaphore_mem>>)
    %c1 = arith.constant 1 : index
    %5 = memref.load %arg0[%c1] : memref<32xi32, #tpu.memory_space<smem>>
    %c1_i32 = arith.constant 1 : i32
    %c0_i32_3 = arith.constant 0 : i32
    %6 = tpu.memref_slice %arg1[%5, %c0_i32_3] : memref<10000x128xf32, #tpu.memory_space<any>> -> memref<1x128xf32, #tpu.memory_space<any>>
    %c1_i32_4 = arith.constant 1 : i32
    %c0_i32_5 = arith.constant 0 : i32
    %7 = tpu.memref_slice %arg13[%c1_i32_4, %c0_i32_5] : memref<32x128xf32, #tpu.memory_space<vmem>> -> memref<1x128xf32, #tpu.memory_space<vmem>>
    %8 = tpu.memref_slice %arg24[%c1_i32] : memref<8x!tpu.dma_semaphore, #tpu.memory_space<semaphore_mem>> -> memref<1x!tpu.dma_semaphore, #tpu.memory_space<semaphore_mem>>
    %9 = tpu.memref_squeeze %8 : memref<1x!tpu.dma_semaphore, #tpu.memory_space<semaphore_mem>> -> memref<!tpu.dma_semaphore, #tpu.memory_space<semaphore_mem>>
    tpu.enqueue_dma source(%6 : memref<1x128xf32, #tpu.memory_space<any>>) target(%7 : memref<1x128xf32, #tpu.memory_space<vmem>>) target_semaphore(%9 : memref<!tpu.dma_semaphore, #tpu.memory_space<semaphore_mem>>)
    %c2 = arith.constant 2 : index
    %10 = memref.load %arg0[%c2] : memref<32xi32, #tpu.memory_space<smem>>
    %c2_i32 = arith.constant 2 : i32
    %c0_i32_6 = arith.constant 0 : i32
    %11 = tpu.memref_slice %arg1[%10, %c0_i32_6] : memref<10000x128xf32, #tpu.memory_space<any>> -> memref<1x128xf32, #tpu.memory_space<any>>
    %c2_i32_7 = arith.constant 2 : i32
    %c0_i32_8 = arith.constant 0 : i32
    %12 = tpu.memref_slice %arg13[%c2_i32_7, %c0_i32_8] : memref<32x128xf32, #tpu.memory_space<vmem>> -> memref<1x128xf32, #tpu.memory_space<vmem>>
    %13 = tpu.memref_slice %arg24[%c2_i32] : memref<8x!tpu.dma_semaphore, #tpu.memory_space<semaphore_mem>> -> memref<1x!tpu.dma_semaphore, #tpu.memory_space<semaphore_mem>>
    %14 = tpu.memref_squeeze %13 : memref<1x!tpu.dma_semaphore, #tpu.memory_space<semaphore_mem>> -> memref<!tpu.dma_semaphore, #tpu.memory_space<semaphore_mem>>
    tpu.enqueue_dma source(%11 : memref<1x128xf32, #tpu.memory_space<any>>) target(%12 : memref<1x128xf32, #tpu.memory_space<vmem>>) target_semaphore(%14 : memref<!tpu.dma_semaphore, #tpu.memory_space<semaphore_mem>>)
    %c3 = arith.constant 3 : index
    %15 = memref.load %arg0[%c3] : memref<32xi32, #tpu.memory_space<smem>>
    %c3_i32 = arith.constant 3 : i32
    %c0_i32_9 = arith.constant 0 : i32
    %16 = tpu.memref_slice %arg1[%15, %c0_i32_9] : memref<10000x128xf32, #tpu.memory_space<any>> -> memref<1x128xf32, #tpu.memory_space<any>>
    %c3_i32_10 = arith.constant 3 : i32
    %c0_i32_11 = arith.constant 0 : i32
    %17 = tpu.memref_slice %arg13[%c3_i32_10, %c0_i32_11] : memref<32x128xf32, #tpu.memory_space<vmem>> -> memref<1x128xf32, #tpu.memory_space<vmem>>
    %18 = tpu.memref_slice %arg24[%c3_i32] : memref<8x!tpu.dma_semaphore, #tpu.memory_space<semaphore_mem>> -> memref<1x!tpu.dma_semaphore, #tpu.memory_space<semaphore_mem>>
    %19 = tpu.memref_squeeze %18 : memref<1x!tpu.dma_semaphore, #tpu.memory_space<semaphore_mem>> -> memref<!tpu.dma_semaphore, #tpu.memory_space<semaphore_mem>>
    tpu.enqueue_dma source(%16 : memref<1x128xf32, #tpu.memory_space<any>>) target(%17 : memref<1x128xf32, #tpu.memory_space<vmem>>) target_semaphore(%19 : memref<!tpu.dma_semaphore, #tpu.memory_space<semaphore_mem>>)
    %c4 = arith.constant 4 : index
    %20 = memref.load %arg0[%c4] : memref<32xi32, #tpu.memory_space<smem>>
    %c4_i32 = arith.constant 4 : i32
    %c0_i32_12 = arith.constant 0 : i32
    %21 = tpu.memref_slice %arg1[%20, %c0_i32_12] : memref<10000x128xf32, #tpu.memory_space<any>> -> memref<1x128xf32, #tpu.memory_space<any>>
    %c4_i32_13 = arith.constant 4 : i32
    %c0_i32_14 = arith.constant 0 : i32
    %22 = tpu.memref_slice %arg13[%c4_i32_13, %c0_i32_14] : memref<32x128xf32, #tpu.memory_space<vmem>> -> memref<1x128xf32, #tpu.memory_space<vmem>>
    %23 = tpu.memref_slice %arg24[%c4_i32] : memref<8x!tpu.dma_semaphore, #tpu.memory_space<semaphore_mem>> -> memref<1x!tpu.dma_semaphore, #tpu.memory_space<semaphore_mem>>
    %24 = tpu.memref_squeeze %23 : memref<1x!tpu.dma_semaphore, #tpu.memory_space<semaphore_mem>> -> memref<!tpu.dma_semaphore, #tpu.memory_space<semaphore_mem>>
    tpu.enqueue_dma source(%21 : memref<1x128xf32, #tpu.memory_space<any>>) target(%22 : memref<1x128xf32, #tpu.memory_space<vmem>>) target_semaphore(%24 : memref<!tpu.dma_semaphore, #tpu.memory_space<semaphore_mem>>)
    %c5 = arith.constant 5 : index
    %25 = memref.load %arg0[%c5] : memref<32xi32, #tpu.memory_space<smem>>
    %c5_i32 = arith.constant 5 : i32
    %c0_i32_15 = arith.constant 0 : i32
    %26 = tpu.memref_slice %arg1[%25, %c0_i32_15] : memref<10000x128xf32, #tpu.memory_space<any>> -> memref<1x128xf32, #tpu.memory_space<any>>
    %c5_i32_16 = arith.constant 5 : i32
    %c0_i32_17 = arith.constant 0 : i32
    %27 = tpu.memref_slice %arg13[%c5_i32_16, %c0_i32_17] : memref<32x128xf32, #tpu.memory_space<vmem>> -> memref<1x128xf32, #tpu.memory_space<vmem>>
    %28 = tpu.memref_slice %arg24[%c5_i32] : memref<8x!tpu.dma_semaphore, #tpu.memory_space<semaphore_mem>> -> memref<1x!tpu.dma_semaphore, #tpu.memory_space<semaphore_mem>>
    %29 = tpu.memref_squeeze %28 : memref<1x!tpu.dma_semaphore, #tpu.memory_space<semaphore_mem>> -> memref<!tpu.dma_semaphore, #tpu.memory_space<semaphore_mem>>
    tpu.enqueue_dma source(%26 : memref<1x128xf32, #tpu.memory_space<any>>) target(%27 : memref<1x128xf32, #tpu.memory_space<vmem>>) target_semaphore(%29 : memref<!tpu.dma_semaphore, #tpu.memory_space<semaphore_mem>>)
    %c6 = arith.constant 6 : index
    %30 = memref.load %arg0[%c6] : memref<32xi32, #tpu.memory_space<smem>>
    %c6_i32 = arith.constant 6 : i32
    %c0_i32_18 = arith.constant 0 : i32
    %31 = tpu.memref_slice %arg1[%30, %c0_i32_18] : memref<10000x128xf32, #tpu.memory_space<any>> -> memref<1x128xf32, #tpu.memory_space<any>>
    %c6_i32_19 = arith.constant 6 : i32
    %c0_i32_20 = arith.constant 0 : i32
    %32 = tpu.memref_slice %arg13[%c6_i32_19, %c0_i32_20] : memref<32x128xf32, #tpu.memory_space<vmem>> -> memref<1x128xf32, #tpu.memory_space<vmem>>
    %33 = tpu.memref_slice %arg24[%c6_i32] : memref<8x!tpu.dma_semaphore, #tpu.memory_space<semaphore_mem>> -> memref<1x!tpu.dma_semaphore, #tpu.memory_space<semaphore_mem>>
    %34 = tpu.memref_squeeze %33 : memref<1x!tpu.dma_semaphore, #tpu.memory_space<semaphore_mem>> -> memref<!tpu.dma_semaphore, #tpu.memory_space<semaphore_mem>>
    tpu.enqueue_dma source(%31 : memref<1x128xf32, #tpu.memory_space<any>>) target(%32 : memref<1x128xf32, #tpu.memory_space<vmem>>) target_semaphore(%34 : memref<!tpu.dma_semaphore, #tpu.memory_space<semaphore_mem>>)
    %c7 = arith.constant 7 : index
    %35 = memref.load %arg0[%c7] : memref<32xi32, #tpu.memory_space<smem>>
    %c7_i32 = arith.constant 7 : i32
    %c0_i32_21 = arith.constant 0 : i32
    %36 = tpu.memref_slice %arg1[%35, %c0_i32_21] : memref<10000x128xf32, #tpu.memory_space<any>> -> memref<1x128xf32, #tpu.memory_space<any>>
    %c7_i32_22 = arith.constant 7 : i32
    %c0_i32_23 = arith.constant 0 : i32
    %37 = tpu.memref_slice %arg13[%c7_i32_22, %c0_i32_23] : memref<32x128xf32, #tpu.memory_space<vmem>> -> memref<1x128xf32, #tpu.memory_space<vmem>>
    %38 = tpu.memref_slice %arg24[%c7_i32] : memref<8x!tpu.dma_semaphore, #tpu.memory_space<semaphore_mem>> -> memref<1x!tpu.dma_semaphore, #tpu.memory_space<semaphore_mem>>
    %39 = tpu.memref_squeeze %38 : memref<1x!tpu.dma_semaphore, #tpu.memory_space<semaphore_mem>> -> memref<!tpu.dma_semaphore, #tpu.memory_space<semaphore_mem>>
    tpu.enqueue_dma source(%36 : memref<1x128xf32, #tpu.memory_space<any>>) target(%37 : memref<1x128xf32, #tpu.memory_space<vmem>>) target_semaphore(%39 : memref<!tpu.dma_semaphore, #tpu.memory_space<semaphore_mem>>)
    %c8 = arith.constant 8 : index
    %40 = memref.load %arg0[%c8] : memref<32xi32, #tpu.memory_space<smem>>
    %c0_i32_24 = arith.constant 0 : i32
    %c0_i32_25 = arith.constant 0 : i32
    %41 = tpu.memref_slice %arg1[%40, %c0_i32_25] : memref<10000x128xf32, #tpu.memory_space<any>> -> memref<1x128xf32, #tpu.memory_space<any>>
    %c8_i32 = arith.constant 8 : i32
    %c0_i32_26 = arith.constant 0 : i32
    %42 = tpu.memref_slice %arg13[%c8_i32, %c0_i32_26] : memref<32x128xf32, #tpu.memory_space<vmem>> -> memref<1x128xf32, #tpu.memory_space<vmem>>
    %43 = tpu.memref_slice %arg24[%c0_i32_24] : memref<8x!tpu.dma_semaphore, #tpu.memory_space<semaphore_mem>> -> memref<1x!tpu.dma_semaphore, #tpu.memory_space<semaphore_mem>>
    %44 = tpu.memref_squeeze %43 : memref<1x!tpu.dma_semaphore, #tpu.memory_space<semaphore_mem>> -> memref<!tpu.dma_semaphore, #tpu.memory_space<semaphore_mem>>
    tpu.enqueue_dma source(%41 : memref<1x128xf32, #tpu.memory_space<any>>) target(%42 : memref<1x128xf32, #tpu.memory_space<vmem>>) target_semaphore(%44 : memref<!tpu.dma_semaphore, #tpu.memory_space<semaphore_mem>>)
    %c9 = arith.constant 9 : index
    %45 = memref.load %arg0[%c9] : memref<32xi32, #tpu.memory_space<smem>>
    %c1_i32_27 = arith.constant 1 : i32
    %c0_i32_28 = arith.constant 0 : i32
    %46 = tpu.memref_slice %arg1[%45, %c0_i32_28] : memref<10000x128xf32, #tpu.memory_space<any>> -> memref<1x128xf32, #tpu.memory_space<any>>
    %c9_i32 = arith.constant 9 : i32
    %c0_i32_29 = arith.constant 0 : i32
    %47 = tpu.memref_slice %arg13[%c9_i32, %c0_i32_29] : memref<32x128xf32, #tpu.memory_space<vmem>> -> memref<1x128xf32, #tpu.memory_space<vmem>>
    %48 = tpu.memref_slice %arg24[%c1_i32_27] : memref<8x!tpu.dma_semaphore, #tpu.memory_space<semaphore_mem>> -> memref<1x!tpu.dma_semaphore, #tpu.memory_space<semaphore_mem>>
    %49 = tpu.memref_squeeze %48 : memref<1x!tpu.dma_semaphore, #tpu.memory_space<semaphore_mem>> -> memref<!tpu.dma_semaphore, #tpu.memory_space<semaphore_mem>>
    tpu.enqueue_dma source(%46 : memref<1x128xf32, #tpu.memory_space<any>>) target(%47 : memref<1x128xf32, #tpu.memory_space<vmem>>) target_semaphore(%49 : memref<!tpu.dma_semaphore, #tpu.memory_space<semaphore_mem>>)
    %c10 = arith.constant 10 : index
    %50 = memref.load %arg0[%c10] : memref<32xi32, #tpu.memory_space<smem>>
    %c2_i32_30 = arith.constant 2 : i32
    %c0_i32_31 = arith.constant 0 : i32
    %51 = tpu.memref_slice %arg1[%50, %c0_i32_31] : memref<10000x128xf32, #tpu.memory_space<any>> -> memref<1x128xf32, #tpu.memory_space<any>>
    %c10_i32 = arith.constant 10 : i32
    %c0_i32_32 = arith.constant 0 : i32
    %52 = tpu.memref_slice %arg13[%c10_i32, %c0_i32_32] : memref<32x128xf32, #tpu.memory_space<vmem>> -> memref<1x128xf32, #tpu.memory_space<vmem>>
    %53 = tpu.memref_slice %arg24[%c2_i32_30] : memref<8x!tpu.dma_semaphore, #tpu.memory_space<semaphore_mem>> -> memref<1x!tpu.dma_semaphore, #tpu.memory_space<semaphore_mem>>
    %54 = tpu.memref_squeeze %53 : memref<1x!tpu.dma_semaphore, #tpu.memory_space<semaphore_mem>> -> memref<!tpu.dma_semaphore, #tpu.memory_space<semaphore_mem>>
    tpu.enqueue_dma source(%51 : memref<1x128xf32, #tpu.memory_space<any>>) target(%52 : memref<1x128xf32, #tpu.memory_space<vmem>>) target_semaphore(%54 : memref<!tpu.dma_semaphore, #tpu.memory_space<semaphore_mem>>)
    %c11 = arith.constant 11 : index
    %55 = memref.load %arg0[%c11] : memref<32xi32, #tpu.memory_space<smem>>
    %c3_i32_33 = arith.constant 3 : i32
    %c0_i32_34 = arith.constant 0 : i32
    %56 = tpu.memref_slice %arg1[%55, %c0_i32_34] : memref<10000x128xf32, #tpu.memory_space<any>> -> memref<1x128xf32, #tpu.memory_space<any>>
    %c11_i32 = arith.constant 11 : i32
    %c0_i32_35 = arith.constant 0 : i32
    %57 = tpu.memref_slice %arg13[%c11_i32, %c0_i32_35] : memref<32x128xf32, #tpu.memory_space<vmem>> -> memref<1x128xf32, #tpu.memory_space<vmem>>
    %58 = tpu.memref_slice %arg24[%c3_i32_33] : memref<8x!tpu.dma_semaphore, #tpu.memory_space<semaphore_mem>> -> memref<1x!tpu.dma_semaphore, #tpu.memory_space<semaphore_mem>>
    %59 = tpu.memref_squeeze %58 : memref<1x!tpu.dma_semaphore, #tpu.memory_space<semaphore_mem>> -> memref<!tpu.dma_semaphore, #tpu.memory_space<semaphore_mem>>
    tpu.enqueue_dma source(%56 : memref<1x128xf32, #tpu.memory_space<any>>) target(%57 : memref<1x128xf32, #tpu.memory_space<vmem>>) target_semaphore(%59 : memref<!tpu.dma_semaphore, #tpu.memory_space<semaphore_mem>>)
    %c12 = arith.constant 12 : index
    %60 = memref.load %arg0[%c12] : memref<32xi32, #tpu.memory_space<smem>>
    %c4_i32_36 = arith.constant 4 : i32
    %c0_i32_37 = arith.constant 0 : i32
    %61 = tpu.memref_slice %arg1[%60, %c0_i32_37] : memref<10000x128xf32, #tpu.memory_space<any>> -> memref<1x128xf32, #tpu.memory_space<any>>
    %c12_i32 = arith.constant 12 : i32
    %c0_i32_38 = arith.constant 0 : i32
    %62 = tpu.memref_slice %arg13[%c12_i32, %c0_i32_38] : memref<32x128xf32, #tpu.memory_space<vmem>> -> memref<1x128xf32, #tpu.memory_space<vmem>>
    %63 = tpu.memref_slice %arg24[%c4_i32_36] : memref<8x!tpu.dma_semaphore, #tpu.memory_space<semaphore_mem>> -> memref<1x!tpu.dma_semaphore, #tpu.memory_space<semaphore_mem>>
    %64 = tpu.memref_squeeze %63 : memref<1x!tpu.dma_semaphore, #tpu.memory_space<semaphore_mem>> -> memref<!tpu.dma_semaphore, #tpu.memory_space<semaphore_mem>>
    tpu.enqueue_dma source(%61 : memref<1x128xf32, #tpu.memory_space<any>>) target(%62 : memref<1x128xf32, #tpu.memory_space<vmem>>) target_semaphore(%64 : memref<!tpu.dma_semaphore, #tpu.memory_space<semaphore_mem>>)
    %c13 = arith.constant 13 : index
    %65 = memref.load %arg0[%c13] : memref<32xi32, #tpu.memory_space<smem>>
    %c5_i32_39 = arith.constant 5 : i32
    %c0_i32_40 = arith.constant 0 : i32
    %66 = tpu.memref_slice %arg1[%65, %c0_i32_40] : memref<10000x128xf32, #tpu.memory_space<any>> -> memref<1x128xf32, #tpu.memory_space<any>>
    %c13_i32 = arith.constant 13 : i32
    %c0_i32_41 = arith.constant 0 : i32
    %67 = tpu.memref_slice %arg13[%c13_i32, %c0_i32_41] : memref<32x128xf32, #tpu.memory_space<vmem>> -> memref<1x128xf32, #tpu.memory_space<vmem>>
    %68 = tpu.memref_slice %arg24[%c5_i32_39] : memref<8x!tpu.dma_semaphore, #tpu.memory_space<semaphore_mem>> -> memref<1x!tpu.dma_semaphore, #tpu.memory_space<semaphore_mem>>
    %69 = tpu.memref_squeeze %68 : memref<1x!tpu.dma_semaphore, #tpu.memory_space<semaphore_mem>> -> memref<!tpu.dma_semaphore, #tpu.memory_space<semaphore_mem>>
    tpu.enqueue_dma source(%66 : memref<1x128xf32, #tpu.memory_space<any>>) target(%67 : memref<1x128xf32, #tpu.memory_space<vmem>>) target_semaphore(%69 : memref<!tpu.dma_semaphore, #tpu.memory_space<semaphore_mem>>)
    %c14 = arith.constant 14 : index
    %70 = memref.load %arg0[%c14] : memref<32xi32, #tpu.memory_space<smem>>
    %c6_i32_42 = arith.constant 6 : i32
    %c0_i32_43 = arith.constant 0 : i32
    %71 = tpu.memref_slice %arg1[%70, %c0_i32_43] : memref<10000x128xf32, #tpu.memory_space<any>> -> memref<1x128xf32, #tpu.memory_space<any>>
    %c14_i32 = arith.constant 14 : i32
    %c0_i32_44 = arith.constant 0 : i32
    %72 = tpu.memref_slice %arg13[%c14_i32, %c0_i32_44] : memref<32x128xf32, #tpu.memory_space<vmem>> -> memref<1x128xf32, #tpu.memory_space<vmem>>
    %73 = tpu.memref_slice %arg24[%c6_i32_42] : memref<8x!tpu.dma_semaphore, #tpu.memory_space<semaphore_mem>> -> memref<1x!tpu.dma_semaphore, #tpu.memory_space<semaphore_mem>>
    %74 = tpu.memref_squeeze %73 : memref<1x!tpu.dma_semaphore, #tpu.memory_space<semaphore_mem>> -> memref<!tpu.dma_semaphore, #tpu.memory_space<semaphore_mem>>
    tpu.enqueue_dma source(%71 : memref<1x128xf32, #tpu.memory_space<any>>) target(%72 : memref<1x128xf32, #tpu.memory_space<vmem>>) target_semaphore(%74 : memref<!tpu.dma_semaphore, #tpu.memory_space<semaphore_mem>>)
    %c15 = arith.constant 15 : index
    %75 = memref.load %arg0[%c15] : memref<32xi32, #tpu.memory_space<smem>>
    %c7_i32_45 = arith.constant 7 : i32
    %c0_i32_46 = arith.constant 0 : i32
    %76 = tpu.memref_slice %arg1[%75, %c0_i32_46] : memref<10000x128xf32, #tpu.memory_space<any>> -> memref<1x128xf32, #tpu.memory_space<any>>
    %c15_i32 = arith.constant 15 : i32
    %c0_i32_47 = arith.constant 0 : i32
    %77 = tpu.memref_slice %arg13[%c15_i32, %c0_i32_47] : memref<32x128xf32, #tpu.memory_space<vmem>> -> memref<1x128xf32, #tpu.memory_space<vmem>>
    %78 = tpu.memref_slice %arg24[%c7_i32_45] : memref<8x!tpu.dma_semaphore, #tpu.memory_space<semaphore_mem>> -> memref<1x!tpu.dma_semaphore, #tpu.memory_space<semaphore_mem>>
    %79 = tpu.memref_squeeze %78 : memref<1x!tpu.dma_semaphore, #tpu.memory_space<semaphore_mem>> -> memref<!tpu.dma_semaphore, #tpu.memory_space<semaphore_mem>>
    tpu.enqueue_dma source(%76 : memref<1x128xf32, #tpu.memory_space<any>>) target(%77 : memref<1x128xf32, #tpu.memory_space<vmem>>) target_semaphore(%79 : memref<!tpu.dma_semaphore, #tpu.memory_space<semaphore_mem>>)
    %c16 = arith.constant 16 : index
    %80 = memref.load %arg0[%c16] : memref<32xi32, #tpu.memory_space<smem>>
    %c0_i32_48 = arith.constant 0 : i32
    %c0_i32_49 = arith.constant 0 : i32
    %81 = tpu.memref_slice %arg1[%80, %c0_i32_49] : memref<10000x128xf32, #tpu.memory_space<any>> -> memref<1x128xf32, #tpu.memory_space<any>>
    %c16_i32 = arith.constant 16 : i32
    %c0_i32_50 = arith.constant 0 : i32
    %82 = tpu.memref_slice %arg13[%c16_i32, %c0_i32_50] : memref<32x128xf32, #tpu.memory_space<vmem>> -> memref<1x128xf32, #tpu.memory_space<vmem>>
    %83 = tpu.memref_slice %arg24[%c0_i32_48] : memref<8x!tpu.dma_semaphore, #tpu.memory_space<semaphore_mem>> -> memref<1x!tpu.dma_semaphore, #tpu.memory_space<semaphore_mem>>
    %84 = tpu.memref_squeeze %83 : memref<1x!tpu.dma_semaphore, #tpu.memory_space<semaphore_mem>> -> memref<!tpu.dma_semaphore, #tpu.memory_space<semaphore_mem>>
    tpu.enqueue_dma source(%81 : memref<1x128xf32, #tpu.memory_space<any>>) target(%82 : memref<1x128xf32, #tpu.memory_space<vmem>>) target_semaphore(%84 : memref<!tpu.dma_semaphore, #tpu.memory_space<semaphore_mem>>)
    %c17 = arith.constant 17 : index
    %85 = memref.load %arg0[%c17] : memref<32xi32, #tpu.memory_space<smem>>
    %c1_i32_51 = arith.constant 1 : i32
    %c0_i32_52 = arith.constant 0 : i32
    %86 = tpu.memref_slice %arg1[%85, %c0_i32_52] : memref<10000x128xf32, #tpu.memory_space<any>> -> memref<1x128xf32, #tpu.memory_space<any>>
    %c17_i32 = arith.constant 17 : i32
    %c0_i32_53 = arith.constant 0 : i32
    %87 = tpu.memref_slice %arg13[%c17_i32, %c0_i32_53] : memref<32x128xf32, #tpu.memory_space<vmem>> -> memref<1x128xf32, #tpu.memory_space<vmem>>
    %88 = tpu.memref_slice %arg24[%c1_i32_51] : memref<8x!tpu.dma_semaphore, #tpu.memory_space<semaphore_mem>> -> memref<1x!tpu.dma_semaphore, #tpu.memory_space<semaphore_mem>>
    %89 = tpu.memref_squeeze %88 : memref<1x!tpu.dma_semaphore, #tpu.memory_space<semaphore_mem>> -> memref<!tpu.dma_semaphore, #tpu.memory_space<semaphore_mem>>
    tpu.enqueue_dma source(%86 : memref<1x128xf32, #tpu.memory_space<any>>) target(%87 : memref<1x128xf32, #tpu.memory_space<vmem>>) target_semaphore(%89 : memref<!tpu.dma_semaphore, #tpu.memory_space<semaphore_mem>>)
    %c18 = arith.constant 18 : index
    %90 = memref.load %arg0[%c18] : memref<32xi32, #tpu.memory_space<smem>>
    %c2_i32_54 = arith.constant 2 : i32
    %c0_i32_55 = arith.constant 0 : i32
    %91 = tpu.memref_slice %arg1[%90, %c0_i32_55] : memref<10000x128xf32, #tpu.memory_space<any>> -> memref<1x128xf32, #tpu.memory_space<any>>
    %c18_i32 = arith.constant 18 : i32
    %c0_i32_56 = arith.constant 0 : i32
    %92 = tpu.memref_slice %arg13[%c18_i32, %c0_i32_56] : memref<32x128xf32, #tpu.memory_space<vmem>> -> memref<1x128xf32, #tpu.memory_space<vmem>>
    %93 = tpu.memref_slice %arg24[%c2_i32_54] : memref<8x!tpu.dma_semaphore, #tpu.memory_space<semaphore_mem>> -> memref<1x!tpu.dma_semaphore, #tpu.memory_space<semaphore_mem>>
    %94 = tpu.memref_squeeze %93 : memref<1x!tpu.dma_semaphore, #tpu.memory_space<semaphore_mem>> -> memref<!tpu.dma_semaphore, #tpu.memory_space<semaphore_mem>>
    tpu.enqueue_dma source(%91 : memref<1x128xf32, #tpu.memory_space<any>>) target(%92 : memref<1x128xf32, #tpu.memory_space<vmem>>) target_semaphore(%94 : memref<!tpu.dma_semaphore, #tpu.memory_space<semaphore_mem>>)
    %c19 = arith.constant 19 : index
    %95 = memref.load %arg0[%c19] : memref<32xi32, #tpu.memory_space<smem>>
    %c3_i32_57 = arith.constant 3 : i32
    %c0_i32_58 = arith.constant 0 : i32
    %96 = tpu.memref_slice %arg1[%95, %c0_i32_58] : memref<10000x128xf32, #tpu.memory_space<any>> -> memref<1x128xf32, #tpu.memory_space<any>>
    %c19_i32 = arith.constant 19 : i32
    %c0_i32_59 = arith.constant 0 : i32
    %97 = tpu.memref_slice %arg13[%c19_i32, %c0_i32_59] : memref<32x128xf32, #tpu.memory_space<vmem>> -> memref<1x128xf32, #tpu.memory_space<vmem>>
    %98 = tpu.memref_slice %arg24[%c3_i32_57] : memref<8x!tpu.dma_semaphore, #tpu.memory_space<semaphore_mem>> -> memref<1x!tpu.dma_semaphore, #tpu.memory_space<semaphore_mem>>
    %99 = tpu.memref_squeeze %98 : memref<1x!tpu.dma_semaphore, #tpu.memory_space<semaphore_mem>> -> memref<!tpu.dma_semaphore, #tpu.memory_space<semaphore_mem>>
    tpu.enqueue_dma source(%96 : memref<1x128xf32, #tpu.memory_space<any>>) target(%97 : memref<1x128xf32, #tpu.memory_space<vmem>>) target_semaphore(%99 : memref<!tpu.dma_semaphore, #tpu.memory_space<semaphore_mem>>)
    %c20 = arith.constant 20 : index
    %100 = memref.load %arg0[%c20] : memref<32xi32, #tpu.memory_space<smem>>
    %c4_i32_60 = arith.constant 4 : i32
    %c0_i32_61 = arith.constant 0 : i32
    %101 = tpu.memref_slice %arg1[%100, %c0_i32_61] : memref<10000x128xf32, #tpu.memory_space<any>> -> memref<1x128xf32, #tpu.memory_space<any>>
    %c20_i32 = arith.constant 20 : i32
    %c0_i32_62 = arith.constant 0 : i32
    %102 = tpu.memref_slice %arg13[%c20_i32, %c0_i32_62] : memref<32x128xf32, #tpu.memory_space<vmem>> -> memref<1x128xf32, #tpu.memory_space<vmem>>
    %103 = tpu.memref_slice %arg24[%c4_i32_60] : memref<8x!tpu.dma_semaphore, #tpu.memory_space<semaphore_mem>> -> memref<1x!tpu.dma_semaphore, #tpu.memory_space<semaphore_mem>>
    %104 = tpu.memref_squeeze %103 : memref<1x!tpu.dma_semaphore, #tpu.memory_space<semaphore_mem>> -> memref<!tpu.dma_semaphore, #tpu.memory_space<semaphore_mem>>
    tpu.enqueue_dma source(%101 : memref<1x128xf32, #tpu.memory_space<any>>) target(%102 : memref<1x128xf32, #tpu.memory_space<vmem>>) target_semaphore(%104 : memref<!tpu.dma_semaphore, #tpu.memory_space<semaphore_mem>>)
    %c21 = arith.constant 21 : index
    %105 = memref.load %arg0[%c21] : memref<32xi32, #tpu.memory_space<smem>>
    %c5_i32_63 = arith.constant 5 : i32
    %c0_i32_64 = arith.constant 0 : i32
    %106 = tpu.memref_slice %arg1[%105, %c0_i32_64] : memref<10000x128xf32, #tpu.memory_space<any>> -> memref<1x128xf32, #tpu.memory_space<any>>
    %c21_i32 = arith.constant 21 : i32
    %c0_i32_65 = arith.constant 0 : i32
    %107 = tpu.memref_slice %arg13[%c21_i32, %c0_i32_65] : memref<32x128xf32, #tpu.memory_space<vmem>> -> memref<1x128xf32, #tpu.memory_space<vmem>>
    %108 = tpu.memref_slice %arg24[%c5_i32_63] : memref<8x!tpu.dma_semaphore, #tpu.memory_space<semaphore_mem>> -> memref<1x!tpu.dma_semaphore, #tpu.memory_space<semaphore_mem>>
    %109 = tpu.memref_squeeze %108 : memref<1x!tpu.dma_semaphore, #tpu.memory_space<semaphore_mem>> -> memref<!tpu.dma_semaphore, #tpu.memory_space<semaphore_mem>>
    tpu.enqueue_dma source(%106 : memref<1x128xf32, #tpu.memory_space<any>>) target(%107 : memref<1x128xf32, #tpu.memory_space<vmem>>) target_semaphore(%109 : memref<!tpu.dma_semaphore, #tpu.memory_space<semaphore_mem>>)
    %c22 = arith.constant 22 : index
    %110 = memref.load %arg0[%c22] : memref<32xi32, #tpu.memory_space<smem>>
    %c6_i32_66 = arith.constant 6 : i32
    %c0_i32_67 = arith.constant 0 : i32
    %111 = tpu.memref_slice %arg1[%110, %c0_i32_67] : memref<10000x128xf32, #tpu.memory_space<any>> -> memref<1x128xf32, #tpu.memory_space<any>>
    %c22_i32 = arith.constant 22 : i32
    %c0_i32_68 = arith.constant 0 : i32
    %112 = tpu.memref_slice %arg13[%c22_i32, %c0_i32_68] : memref<32x128xf32, #tpu.memory_space<vmem>> -> memref<1x128xf32, #tpu.memory_space<vmem>>
    %113 = tpu.memref_slice %arg24[%c6_i32_66] : memref<8x!tpu.dma_semaphore, #tpu.memory_space<semaphore_mem>> -> memref<1x!tpu.dma_semaphore, #tpu.memory_space<semaphore_mem>>
    %114 = tpu.memref_squeeze %113 : memref<1x!tpu.dma_semaphore, #tpu.memory_space<semaphore_mem>> -> memref<!tpu.dma_semaphore, #tpu.memory_space<semaphore_mem>>
    tpu.enqueue_dma source(%111 : memref<1x128xf32, #tpu.memory_space<any>>) target(%112 : memref<1x128xf32, #tpu.memory_space<vmem>>) target_semaphore(%114 : memref<!tpu.dma_semaphore, #tpu.memory_space<semaphore_mem>>)
    %c23 = arith.constant 23 : index
    %115 = memref.load %arg0[%c23] : memref<32xi32, #tpu.memory_space<smem>>
    %c7_i32_69 = arith.constant 7 : i32
    %c0_i32_70 = arith.constant 0 : i32
    %116 = tpu.memref_slice %arg1[%115, %c0_i32_70] : memref<10000x128xf32, #tpu.memory_space<any>> -> memref<1x128xf32, #tpu.memory_space<any>>
    %c23_i32 = arith.constant 23 : i32
    %c0_i32_71 = arith.constant 0 : i32
    %117 = tpu.memref_slice %arg13[%c23_i32, %c0_i32_71] : memref<32x128xf32, #tpu.memory_space<vmem>> -> memref<1x128xf32, #tpu.memory_space<vmem>>
    %118 = tpu.memref_slice %arg24[%c7_i32_69] : memref<8x!tpu.dma_semaphore, #tpu.memory_space<semaphore_mem>> -> memref<1x!tpu.dma_semaphore, #tpu.memory_space<semaphore_mem>>
    %119 = tpu.memref_squeeze %118 : memref<1x!tpu.dma_semaphore, #tpu.memory_space<semaphore_mem>> -> memref<!tpu.dma_semaphore, #tpu.memory_space<semaphore_mem>>
    tpu.enqueue_dma source(%116 : memref<1x128xf32, #tpu.memory_space<any>>) target(%117 : memref<1x128xf32, #tpu.memory_space<vmem>>) target_semaphore(%119 : memref<!tpu.dma_semaphore, #tpu.memory_space<semaphore_mem>>)
    %c24 = arith.constant 24 : index
    %120 = memref.load %arg0[%c24] : memref<32xi32, #tpu.memory_space<smem>>
    %c0_i32_72 = arith.constant 0 : i32
    %c0_i32_73 = arith.constant 0 : i32
    %121 = tpu.memref_slice %arg1[%120, %c0_i32_73] : memref<10000x128xf32, #tpu.memory_space<any>> -> memref<1x128xf32, #tpu.memory_space<any>>
    %c24_i32 = arith.constant 24 : i32
    %c0_i32_74 = arith.constant 0 : i32
    %122 = tpu.memref_slice %arg13[%c24_i32, %c0_i32_74] : memref<32x128xf32, #tpu.memory_space<vmem>> -> memref<1x128xf32, #tpu.memory_space<vmem>>
    %123 = tpu.memref_slice %arg24[%c0_i32_72] : memref<8x!tpu.dma_semaphore, #tpu.memory_space<semaphore_mem>> -> memref<1x!tpu.dma_semaphore, #tpu.memory_space<semaphore_mem>>
    %124 = tpu.memref_squeeze %123 : memref<1x!tpu.dma_semaphore, #tpu.memory_space<semaphore_mem>> -> memref<!tpu.dma_semaphore, #tpu.memory_space<semaphore_mem>>
    tpu.enqueue_dma source(%121 : memref<1x128xf32, #tpu.memory_space<any>>) target(%122 : memref<1x128xf32, #tpu.memory_space<vmem>>) target_semaphore(%124 : memref<!tpu.dma_semaphore, #tpu.memory_space<semaphore_mem>>)
    %c25 = arith.constant 25 : index
    %125 = memref.load %arg0[%c25] : memref<32xi32, #tpu.memory_space<smem>>
    %c1_i32_75 = arith.constant 1 : i32
    %c0_i32_76 = arith.constant 0 : i32
    %126 = tpu.memref_slice %arg1[%125, %c0_i32_76] : memref<10000x128xf32, #tpu.memory_space<any>> -> memref<1x128xf32, #tpu.memory_space<any>>
    %c25_i32 = arith.constant 25 : i32
    %c0_i32_77 = arith.constant 0 : i32
    %127 = tpu.memref_slice %arg13[%c25_i32, %c0_i32_77] : memref<32x128xf32, #tpu.memory_space<vmem>> -> memref<1x128xf32, #tpu.memory_space<vmem>>
    %128 = tpu.memref_slice %arg24[%c1_i32_75] : memref<8x!tpu.dma_semaphore, #tpu.memory_space<semaphore_mem>> -> memref<1x!tpu.dma_semaphore, #tpu.memory_space<semaphore_mem>>
    %129 = tpu.memref_squeeze %128 : memref<1x!tpu.dma_semaphore, #tpu.memory_space<semaphore_mem>> -> memref<!tpu.dma_semaphore, #tpu.memory_space<semaphore_mem>>
    tpu.enqueue_dma source(%126 : memref<1x128xf32, #tpu.memory_space<any>>) target(%127 : memref<1x128xf32, #tpu.memory_space<vmem>>) target_semaphore(%129 : memref<!tpu.dma_semaphore, #tpu.memory_space<semaphore_mem>>)
    %c26 = arith.constant 26 : index
    %130 = memref.load %arg0[%c26] : memref<32xi32, #tpu.memory_space<smem>>
    %c2_i32_78 = arith.constant 2 : i32
    %c0_i32_79 = arith.constant 0 : i32
    %131 = tpu.memref_slice %arg1[%130, %c0_i32_79] : memref<10000x128xf32, #tpu.memory_space<any>> -> memref<1x128xf32, #tpu.memory_space<any>>
    %c26_i32 = arith.constant 26 : i32
    %c0_i32_80 = arith.constant 0 : i32
    %132 = tpu.memref_slice %arg13[%c26_i32, %c0_i32_80] : memref<32x128xf32, #tpu.memory_space<vmem>> -> memref<1x128xf32, #tpu.memory_space<vmem>>
    %133 = tpu.memref_slice %arg24[%c2_i32_78] : memref<8x!tpu.dma_semaphore, #tpu.memory_space<semaphore_mem>> -> memref<1x!tpu.dma_semaphore, #tpu.memory_space<semaphore_mem>>
    %134 = tpu.memref_squeeze %133 : memref<1x!tpu.dma_semaphore, #tpu.memory_space<semaphore_mem>> -> memref<!tpu.dma_semaphore, #tpu.memory_space<semaphore_mem>>
    tpu.enqueue_dma source(%131 : memref<1x128xf32, #tpu.memory_space<any>>) target(%132 : memref<1x128xf32, #tpu.memory_space<vmem>>) target_semaphore(%134 : memref<!tpu.dma_semaphore, #tpu.memory_space<semaphore_mem>>)
    %c27 = arith.constant 27 : index
    %135 = memref.load %arg0[%c27] : memref<32xi32, #tpu.memory_space<smem>>
    %c3_i32_81 = arith.constant 3 : i32
    %c0_i32_82 = arith.constant 0 : i32
    %136 = tpu.memref_slice %arg1[%135, %c0_i32_82] : memref<10000x128xf32, #tpu.memory_space<any>> -> memref<1x128xf32, #tpu.memory_space<any>>
    %c27_i32 = arith.constant 27 : i32
    %c0_i32_83 = arith.constant 0 : i32
    %137 = tpu.memref_slice %arg13[%c27_i32, %c0_i32_83] : memref<32x128xf32, #tpu.memory_space<vmem>> -> memref<1x128xf32, #tpu.memory_space<vmem>>
    %138 = tpu.memref_slice %arg24[%c3_i32_81] : memref<8x!tpu.dma_semaphore, #tpu.memory_space<semaphore_mem>> -> memref<1x!tpu.dma_semaphore, #tpu.memory_space<semaphore_mem>>
    %139 = tpu.memref_squeeze %138 : memref<1x!tpu.dma_semaphore, #tpu.memory_space<semaphore_mem>> -> memref<!tpu.dma_semaphore, #tpu.memory_space<semaphore_mem>>
    tpu.enqueue_dma source(%136 : memref<1x128xf32, #tpu.memory_space<any>>) target(%137 : memref<1x128xf32, #tpu.memory_space<vmem>>) target_semaphore(%139 : memref<!tpu.dma_semaphore, #tpu.memory_space<semaphore_mem>>)
    %c28 = arith.constant 28 : index
    %140 = memref.load %arg0[%c28] : memref<32xi32, #tpu.memory_space<smem>>
    %c4_i32_84 = arith.constant 4 : i32
    %c0_i32_85 = arith.constant 0 : i32
    %141 = tpu.memref_slice %arg1[%140, %c0_i32_85] : memref<10000x128xf32, #tpu.memory_space<any>> -> memref<1x128xf32, #tpu.memory_space<any>>
    %c28_i32 = arith.constant 28 : i32
    %c0_i32_86 = arith.constant 0 : i32
    %142 = tpu.memref_slice %arg13[%c28_i32, %c0_i32_86] : memref<32x128xf32, #tpu.memory_space<vmem>> -> memref<1x128xf32, #tpu.memory_space<vmem>>
    %143 = tpu.memref_slice %arg24[%c4_i32_84] : memref<8x!tpu.dma_semaphore, #tpu.memory_space<semaphore_mem>> -> memref<1x!tpu.dma_semaphore, #tpu.memory_space<semaphore_mem>>
    %144 = tpu.memref_squeeze %143 : memref<1x!tpu.dma_semaphore, #tpu.memory_space<semaphore_mem>> -> memref<!tpu.dma_semaphore, #tpu.memory_space<semaphore_mem>>
    tpu.enqueue_dma source(%141 : memref<1x128xf32, #tpu.memory_space<any>>) target(%142 : memref<1x128xf32, #tpu.memory_space<vmem>>) target_semaphore(%144 : memref<!tpu.dma_semaphore, #tpu.memory_space<semaphore_mem>>)
    %c29 = arith.constant 29 : index
    %145 = memref.load %arg0[%c29] : memref<32xi32, #tpu.memory_space<smem>>
    %c5_i32_87 = arith.constant 5 : i32
    %c0_i32_88 = arith.constant 0 : i32
    %146 = tpu.memref_slice %arg1[%145, %c0_i32_88] : memref<10000x128xf32, #tpu.memory_space<any>> -> memref<1x128xf32, #tpu.memory_space<any>>
    %c29_i32 = arith.constant 29 : i32
    %c0_i32_89 = arith.constant 0 : i32
    %147 = tpu.memref_slice %arg13[%c29_i32, %c0_i32_89] : memref<32x128xf32, #tpu.memory_space<vmem>> -> memref<1x128xf32, #tpu.memory_space<vmem>>
    %148 = tpu.memref_slice %arg24[%c5_i32_87] : memref<8x!tpu.dma_semaphore, #tpu.memory_space<semaphore_mem>> -> memref<1x!tpu.dma_semaphore, #tpu.memory_space<semaphore_mem>>
    %149 = tpu.memref_squeeze %148 : memref<1x!tpu.dma_semaphore, #tpu.memory_space<semaphore_mem>> -> memref<!tpu.dma_semaphore, #tpu.memory_space<semaphore_mem>>
    tpu.enqueue_dma source(%146 : memref<1x128xf32, #tpu.memory_space<any>>) target(%147 : memref<1x128xf32, #tpu.memory_space<vmem>>) target_semaphore(%149 : memref<!tpu.dma_semaphore, #tpu.memory_space<semaphore_mem>>)
    %c30 = arith.constant 30 : index
    %150 = memref.load %arg0[%c30] : memref<32xi32, #tpu.memory_space<smem>>
    %c6_i32_90 = arith.constant 6 : i32
    %c0_i32_91 = arith.constant 0 : i32
    %151 = tpu.memref_slice %arg1[%150, %c0_i32_91] : memref<10000x128xf32, #tpu.memory_space<any>> -> memref<1x128xf32, #tpu.memory_space<any>>
    %c30_i32 = arith.constant 30 : i32
    %c0_i32_92 = arith.constant 0 : i32
    %152 = tpu.memref_slice %arg13[%c30_i32, %c0_i32_92] : memref<32x128xf32, #tpu.memory_space<vmem>> -> memref<1x128xf32, #tpu.memory_space<vmem>>
    %153 = tpu.memref_slice %arg24[%c6_i32_90] : memref<8x!tpu.dma_semaphore, #tpu.memory_space<semaphore_mem>> -> memref<1x!tpu.dma_semaphore, #tpu.memory_space<semaphore_mem>>
    %154 = tpu.memref_squeeze %153 : memref<1x!tpu.dma_semaphore, #tpu.memory_space<semaphore_mem>> -> memref<!tpu.dma_semaphore, #tpu.memory_space<semaphore_mem>>
    tpu.enqueue_dma source(%151 : memref<1x128xf32, #tpu.memory_space<any>>) target(%152 : memref<1x128xf32, #tpu.memory_space<vmem>>) target_semaphore(%154 : memref<!tpu.dma_semaphore, #tpu.memory_space<semaphore_mem>>)
    %c31 = arith.constant 31 : index
    %155 = memref.load %arg0[%c31] : memref<32xi32, #tpu.memory_space<smem>>
    %c7_i32_93 = arith.constant 7 : i32
    %c0_i32_94 = arith.constant 0 : i32
    %156 = tpu.memref_slice %arg1[%155, %c0_i32_94] : memref<10000x128xf32, #tpu.memory_space<any>> -> memref<1x128xf32, #tpu.memory_space<any>>
    %c31_i32 = arith.constant 31 : i32
    %c0_i32_95 = arith.constant 0 : i32
    %157 = tpu.memref_slice %arg13[%c31_i32, %c0_i32_95] : memref<32x128xf32, #tpu.memory_space<vmem>> -> memref<1x128xf32, #tpu.memory_space<vmem>>
    %158 = tpu.memref_slice %arg24[%c7_i32_93] : memref<8x!tpu.dma_semaphore, #tpu.memory_space<semaphore_mem>> -> memref<1x!tpu.dma_semaphore, #tpu.memory_space<semaphore_mem>>
    %159 = tpu.memref_squeeze %158 : memref<1x!tpu.dma_semaphore, #tpu.memory_space<semaphore_mem>> -> memref<!tpu.dma_semaphore, #tpu.memory_space<semaphore_mem>>
    tpu.enqueue_dma source(%156 : memref<1x128xf32, #tpu.memory_space<any>>) target(%157 : memref<1x128xf32, #tpu.memory_space<vmem>>) target_semaphore(%159 : memref<!tpu.dma_semaphore, #tpu.memory_space<semaphore_mem>>)
    %c0_i32_96 = arith.constant 0 : i32
    %160 = tpu.memref_slice %arg25[%c0_i32_96] : memref<7x!tpu.dma_semaphore, #tpu.memory_space<semaphore_mem>> -> memref<1x!tpu.dma_semaphore, #tpu.memory_space<semaphore_mem>>
    %161 = tpu.memref_squeeze %160 : memref<1x!tpu.dma_semaphore, #tpu.memory_space<semaphore_mem>> -> memref<!tpu.dma_semaphore, #tpu.memory_space<semaphore_mem>>
    tpu.enqueue_dma source(%arg2 : memref<128x1024xbf16, #tpu.memory_space<any>>) target(%arg17 : memref<128x1024xbf16, #tpu.memory_space<vmem>>) target_semaphore(%161 : memref<!tpu.dma_semaphore, #tpu.memory_space<semaphore_mem>>)
    %c1_i32_97 = arith.constant 1 : i32
    %162 = tpu.memref_slice %arg25[%c1_i32_97] : memref<7x!tpu.dma_semaphore, #tpu.memory_space<semaphore_mem>> -> memref<1x!tpu.dma_semaphore, #tpu.memory_space<semaphore_mem>>
    %163 = tpu.memref_squeeze %162 : memref<1x!tpu.dma_semaphore, #tpu.memory_space<semaphore_mem>> -> memref<!tpu.dma_semaphore, #tpu.memory_space<semaphore_mem>>
    tpu.enqueue_dma source(%arg3 : memref<128x512xbf16, #tpu.memory_space<any>>) target(%arg18 : memref<128x512xbf16, #tpu.memory_space<vmem>>) target_semaphore(%163 : memref<!tpu.dma_semaphore, #tpu.memory_space<semaphore_mem>>)
    %c2_i32_98 = arith.constant 2 : i32
    %164 = tpu.memref_slice %arg25[%c2_i32_98] : memref<7x!tpu.dma_semaphore, #tpu.memory_space<semaphore_mem>> -> memref<1x!tpu.dma_semaphore, #tpu.memory_space<semaphore_mem>>
    %165 = tpu.memref_squeeze %164 : memref<1x!tpu.dma_semaphore, #tpu.memory_space<semaphore_mem>> -> memref<!tpu.dma_semaphore, #tpu.memory_space<semaphore_mem>>
    tpu.enqueue_dma source(%arg4 : memref<128x512xbf16, #tpu.memory_space<any>>) target(%arg19 : memref<128x512xbf16, #tpu.memory_space<vmem>>) target_semaphore(%165 : memref<!tpu.dma_semaphore, #tpu.memory_space<semaphore_mem>>)
    %c3_i32_99 = arith.constant 3 : i32
    %166 = tpu.memref_slice %arg25[%c3_i32_99] : memref<7x!tpu.dma_semaphore, #tpu.memory_space<semaphore_mem>> -> memref<1x!tpu.dma_semaphore, #tpu.memory_space<semaphore_mem>>
    %167 = tpu.memref_squeeze %166 : memref<1x!tpu.dma_semaphore, #tpu.memory_space<semaphore_mem>> -> memref<!tpu.dma_semaphore, #tpu.memory_space<semaphore_mem>>
    tpu.enqueue_dma source(%arg6 : memref<256x1024xbf16, #tpu.memory_space<any>>) target(%arg20 : memref<256x1024xbf16, #tpu.memory_space<vmem>>) target_semaphore(%167 : memref<!tpu.dma_semaphore, #tpu.memory_space<semaphore_mem>>)
    %c4_i32_100 = arith.constant 4 : i32
    %168 = tpu.memref_slice %arg25[%c4_i32_100] : memref<7x!tpu.dma_semaphore, #tpu.memory_space<semaphore_mem>> -> memref<1x!tpu.dma_semaphore, #tpu.memory_space<semaphore_mem>>
    %169 = tpu.memref_squeeze %168 : memref<1x!tpu.dma_semaphore, #tpu.memory_space<semaphore_mem>> -> memref<!tpu.dma_semaphore, #tpu.memory_space<semaphore_mem>>
    tpu.enqueue_dma source(%arg7 : memref<128x512xbf16, #tpu.memory_space<any>>) target(%arg21 : memref<128x512xbf16, #tpu.memory_space<vmem>>) target_semaphore(%169 : memref<!tpu.dma_semaphore, #tpu.memory_space<semaphore_mem>>)
    %c5_i32_101 = arith.constant 5 : i32
    %170 = tpu.memref_slice %arg25[%c5_i32_101] : memref<7x!tpu.dma_semaphore, #tpu.memory_space<semaphore_mem>> -> memref<1x!tpu.dma_semaphore, #tpu.memory_space<semaphore_mem>>
    %171 = tpu.memref_squeeze %170 : memref<1x!tpu.dma_semaphore, #tpu.memory_space<semaphore_mem>> -> memref<!tpu.dma_semaphore, #tpu.memory_space<semaphore_mem>>
    tpu.enqueue_dma source(%arg8 : memref<128x512xbf16, #tpu.memory_space<any>>) target(%arg22 : memref<128x512xbf16, #tpu.memory_space<vmem>>) target_semaphore(%171 : memref<!tpu.dma_semaphore, #tpu.memory_space<semaphore_mem>>)
    %c6_i32_102 = arith.constant 6 : i32
    %172 = tpu.memref_slice %arg25[%c6_i32_102] : memref<7x!tpu.dma_semaphore, #tpu.memory_space<semaphore_mem>> -> memref<1x!tpu.dma_semaphore, #tpu.memory_space<semaphore_mem>>
    %173 = tpu.memref_squeeze %172 : memref<1x!tpu.dma_semaphore, #tpu.memory_space<semaphore_mem>> -> memref<!tpu.dma_semaphore, #tpu.memory_space<semaphore_mem>>
    tpu.enqueue_dma source(%arg10 : memref<8x256x128xbf16, #tpu.memory_space<any>>) target(%arg23 : memref<8x256x128xbf16, #tpu.memory_space<vmem>>) target_semaphore(%173 : memref<!tpu.dma_semaphore, #tpu.memory_space<semaphore_mem>>)
    %c0_i32_103 = arith.constant 0 : i32
    %c0_i32_104 = arith.constant 0 : i32
    %174 = tpu.memref_slice %arg1[%0, %c0_i32_104] : memref<10000x128xf32, #tpu.memory_space<any>> -> memref<1x128xf32, #tpu.memory_space<any>>
    %c0_i32_105 = arith.constant 0 : i32
    %c0_i32_106 = arith.constant 0 : i32
    %175 = tpu.memref_slice %arg13[%c0_i32_105, %c0_i32_106] : memref<32x128xf32, #tpu.memory_space<vmem>> -> memref<1x128xf32, #tpu.memory_space<vmem>>
    %176 = tpu.memref_slice %arg24[%c0_i32_103] : memref<8x!tpu.dma_semaphore, #tpu.memory_space<semaphore_mem>> -> memref<1x!tpu.dma_semaphore, #tpu.memory_space<semaphore_mem>>
    %177 = tpu.memref_squeeze %176 : memref<1x!tpu.dma_semaphore, #tpu.memory_space<semaphore_mem>> -> memref<!tpu.dma_semaphore, #tpu.memory_space<semaphore_mem>>
    tpu.wait_dma2 semaphore(%177 : memref<!tpu.dma_semaphore, #tpu.memory_space<semaphore_mem>>) src(%174 : memref<1x128xf32, #tpu.memory_space<any>>) dst(%175 : memref<1x128xf32, #tpu.memory_space<vmem>>)
    %c1_i32_107 = arith.constant 1 : i32
    %c0_i32_108 = arith.constant 0 : i32
    %178 = tpu.memref_slice %arg1[%5, %c0_i32_108] : memref<10000x128xf32, #tpu.memory_space<any>> -> memref<1x128xf32, #tpu.memory_space<any>>
    %c1_i32_109 = arith.constant 1 : i32
    %c0_i32_110 = arith.constant 0 : i32
    %179 = tpu.memref_slice %arg13[%c1_i32_109, %c0_i32_110] : memref<32x128xf32, #tpu.memory_space<vmem>> -> memref<1x128xf32, #tpu.memory_space<vmem>>
    %180 = tpu.memref_slice %arg24[%c1_i32_107] : memref<8x!tpu.dma_semaphore, #tpu.memory_space<semaphore_mem>> -> memref<1x!tpu.dma_semaphore, #tpu.memory_space<semaphore_mem>>
    %181 = tpu.memref_squeeze %180 : memref<1x!tpu.dma_semaphore, #tpu.memory_space<semaphore_mem>> -> memref<!tpu.dma_semaphore, #tpu.memory_space<semaphore_mem>>
    tpu.wait_dma2 semaphore(%181 : memref<!tpu.dma_semaphore, #tpu.memory_space<semaphore_mem>>) src(%178 : memref<1x128xf32, #tpu.memory_space<any>>) dst(%179 : memref<1x128xf32, #tpu.memory_space<vmem>>)
    %c2_i32_111 = arith.constant 2 : i32
    %c0_i32_112 = arith.constant 0 : i32
    %182 = tpu.memref_slice %arg1[%10, %c0_i32_112] : memref<10000x128xf32, #tpu.memory_space<any>> -> memref<1x128xf32, #tpu.memory_space<any>>
    %c2_i32_113 = arith.constant 2 : i32
    %c0_i32_114 = arith.constant 0 : i32
    %183 = tpu.memref_slice %arg13[%c2_i32_113, %c0_i32_114] : memref<32x128xf32, #tpu.memory_space<vmem>> -> memref<1x128xf32, #tpu.memory_space<vmem>>
    %184 = tpu.memref_slice %arg24[%c2_i32_111] : memref<8x!tpu.dma_semaphore, #tpu.memory_space<semaphore_mem>> -> memref<1x!tpu.dma_semaphore, #tpu.memory_space<semaphore_mem>>
    %185 = tpu.memref_squeeze %184 : memref<1x!tpu.dma_semaphore, #tpu.memory_space<semaphore_mem>> -> memref<!tpu.dma_semaphore, #tpu.memory_space<semaphore_mem>>
    tpu.wait_dma2 semaphore(%185 : memref<!tpu.dma_semaphore, #tpu.memory_space<semaphore_mem>>) src(%182 : memref<1x128xf32, #tpu.memory_space<any>>) dst(%183 : memref<1x128xf32, #tpu.memory_space<vmem>>)
    %c3_i32_115 = arith.constant 3 : i32
    %c0_i32_116 = arith.constant 0 : i32
    %186 = tpu.memref_slice %arg1[%15, %c0_i32_116] : memref<10000x128xf32, #tpu.memory_space<any>> -> memref<1x128xf32, #tpu.memory_space<any>>
    %c3_i32_117 = arith.constant 3 : i32
    %c0_i32_118 = arith.constant 0 : i32
    %187 = tpu.memref_slice %arg13[%c3_i32_117, %c0_i32_118] : memref<32x128xf32, #tpu.memory_space<vmem>> -> memref<1x128xf32, #tpu.memory_space<vmem>>
    %188 = tpu.memref_slice %arg24[%c3_i32_115] : memref<8x!tpu.dma_semaphore, #tpu.memory_space<semaphore_mem>> -> memref<1x!tpu.dma_semaphore, #tpu.memory_space<semaphore_mem>>
    %189 = tpu.memref_squeeze %188 : memref<1x!tpu.dma_semaphore, #tpu.memory_space<semaphore_mem>> -> memref<!tpu.dma_semaphore, #tpu.memory_space<semaphore_mem>>
    tpu.wait_dma2 semaphore(%189 : memref<!tpu.dma_semaphore, #tpu.memory_space<semaphore_mem>>) src(%186 : memref<1x128xf32, #tpu.memory_space<any>>) dst(%187 : memref<1x128xf32, #tpu.memory_space<vmem>>)
    %c4_i32_119 = arith.constant 4 : i32
    %c0_i32_120 = arith.constant 0 : i32
    %190 = tpu.memref_slice %arg1[%20, %c0_i32_120] : memref<10000x128xf32, #tpu.memory_space<any>> -> memref<1x128xf32, #tpu.memory_space<any>>
    %c4_i32_121 = arith.constant 4 : i32
    %c0_i32_122 = arith.constant 0 : i32
    %191 = tpu.memref_slice %arg13[%c4_i32_121, %c0_i32_122] : memref<32x128xf32, #tpu.memory_space<vmem>> -> memref<1x128xf32, #tpu.memory_space<vmem>>
    %192 = tpu.memref_slice %arg24[%c4_i32_119] : memref<8x!tpu.dma_semaphore, #tpu.memory_space<semaphore_mem>> -> memref<1x!tpu.dma_semaphore, #tpu.memory_space<semaphore_mem>>
    %193 = tpu.memref_squeeze %192 : memref<1x!tpu.dma_semaphore, #tpu.memory_space<semaphore_mem>> -> memref<!tpu.dma_semaphore, #tpu.memory_space<semaphore_mem>>
    tpu.wait_dma2 semaphore(%193 : memref<!tpu.dma_semaphore, #tpu.memory_space<semaphore_mem>>) src(%190 : memref<1x128xf32, #tpu.memory_space<any>>) dst(%191 : memref<1x128xf32, #tpu.memory_space<vmem>>)
    %c5_i32_123 = arith.constant 5 : i32
    %c0_i32_124 = arith.constant 0 : i32
    %194 = tpu.memref_slice %arg1[%25, %c0_i32_124] : memref<10000x128xf32, #tpu.memory_space<any>> -> memref<1x128xf32, #tpu.memory_space<any>>
    %c5_i32_125 = arith.constant 5 : i32
    %c0_i32_126 = arith.constant 0 : i32
    %195 = tpu.memref_slice %arg13[%c5_i32_125, %c0_i32_126] : memref<32x128xf32, #tpu.memory_space<vmem>> -> memref<1x128xf32, #tpu.memory_space<vmem>>
    %196 = tpu.memref_slice %arg24[%c5_i32_123] : memref<8x!tpu.dma_semaphore, #tpu.memory_space<semaphore_mem>> -> memref<1x!tpu.dma_semaphore, #tpu.memory_space<semaphore_mem>>
    %197 = tpu.memref_squeeze %196 : memref<1x!tpu.dma_semaphore, #tpu.memory_space<semaphore_mem>> -> memref<!tpu.dma_semaphore, #tpu.memory_space<semaphore_mem>>
    tpu.wait_dma2 semaphore(%197 : memref<!tpu.dma_semaphore, #tpu.memory_space<semaphore_mem>>) src(%194 : memref<1x128xf32, #tpu.memory_space<any>>) dst(%195 : memref<1x128xf32, #tpu.memory_space<vmem>>)
    %c6_i32_127 = arith.constant 6 : i32
    %c0_i32_128 = arith.constant 0 : i32
    %198 = tpu.memref_slice %arg1[%30, %c0_i32_128] : memref<10000x128xf32, #tpu.memory_space<any>> -> memref<1x128xf32, #tpu.memory_space<any>>
    %c6_i32_129 = arith.constant 6 : i32
    %c0_i32_130 = arith.constant 0 : i32
    %199 = tpu.memref_slice %arg13[%c6_i32_129, %c0_i32_130] : memref<32x128xf32, #tpu.memory_space<vmem>> -> memref<1x128xf32, #tpu.memory_space<vmem>>
    %200 = tpu.memref_slice %arg24[%c6_i32_127] : memref<8x!tpu.dma_semaphore, #tpu.memory_space<semaphore_mem>> -> memref<1x!tpu.dma_semaphore, #tpu.memory_space<semaphore_mem>>
    %201 = tpu.memref_squeeze %200 : memref<1x!tpu.dma_semaphore, #tpu.memory_space<semaphore_mem>> -> memref<!tpu.dma_semaphore, #tpu.memory_space<semaphore_mem>>
    tpu.wait_dma2 semaphore(%201 : memref<!tpu.dma_semaphore, #tpu.memory_space<semaphore_mem>>) src(%198 : memref<1x128xf32, #tpu.memory_space<any>>) dst(%199 : memref<1x128xf32, #tpu.memory_space<vmem>>)
    %c7_i32_131 = arith.constant 7 : i32
    %c0_i32_132 = arith.constant 0 : i32
    %202 = tpu.memref_slice %arg1[%35, %c0_i32_132] : memref<10000x128xf32, #tpu.memory_space<any>> -> memref<1x128xf32, #tpu.memory_space<any>>
    %c7_i32_133 = arith.constant 7 : i32
    %c0_i32_134 = arith.constant 0 : i32
    %203 = tpu.memref_slice %arg13[%c7_i32_133, %c0_i32_134] : memref<32x128xf32, #tpu.memory_space<vmem>> -> memref<1x128xf32, #tpu.memory_space<vmem>>
    %204 = tpu.memref_slice %arg24[%c7_i32_131] : memref<8x!tpu.dma_semaphore, #tpu.memory_space<semaphore_mem>> -> memref<1x!tpu.dma_semaphore, #tpu.memory_space<semaphore_mem>>
    %205 = tpu.memref_squeeze %204 : memref<1x!tpu.dma_semaphore, #tpu.memory_space<semaphore_mem>> -> memref<!tpu.dma_semaphore, #tpu.memory_space<semaphore_mem>>
    tpu.wait_dma2 semaphore(%205 : memref<!tpu.dma_semaphore, #tpu.memory_space<semaphore_mem>>) src(%202 : memref<1x128xf32, #tpu.memory_space<any>>) dst(%203 : memref<1x128xf32, #tpu.memory_space<vmem>>)
    %c0_i32_135 = arith.constant 0 : i32
    %c0_i32_136 = arith.constant 0 : i32
    %206 = tpu.memref_slice %arg1[%40, %c0_i32_136] : memref<10000x128xf32, #tpu.memory_space<any>> -> memref<1x128xf32, #tpu.memory_space<any>>
    %c8_i32_137 = arith.constant 8 : i32
    %c0_i32_138 = arith.constant 0 : i32
    %207 = tpu.memref_slice %arg13[%c8_i32_137, %c0_i32_138] : memref<32x128xf32, #tpu.memory_space<vmem>> -> memref<1x128xf32, #tpu.memory_space<vmem>>
    %208 = tpu.memref_slice %arg24[%c0_i32_135] : memref<8x!tpu.dma_semaphore, #tpu.memory_space<semaphore_mem>> -> memref<1x!tpu.dma_semaphore, #tpu.memory_space<semaphore_mem>>
    %209 = tpu.memref_squeeze %208 : memref<1x!tpu.dma_semaphore, #tpu.memory_space<semaphore_mem>> -> memref<!tpu.dma_semaphore, #tpu.memory_space<semaphore_mem>>
    tpu.wait_dma2 semaphore(%209 : memref<!tpu.dma_semaphore, #tpu.memory_space<semaphore_mem>>) src(%206 : memref<1x128xf32, #tpu.memory_space<any>>) dst(%207 : memref<1x128xf32, #tpu.memory_space<vmem>>)
    %c1_i32_139 = arith.constant 1 : i32
    %c0_i32_140 = arith.constant 0 : i32
    %210 = tpu.memref_slice %arg1[%45, %c0_i32_140] : memref<10000x128xf32, #tpu.memory_space<any>> -> memref<1x128xf32, #tpu.memory_space<any>>
    %c9_i32_141 = arith.constant 9 : i32
    %c0_i32_142 = arith.constant 0 : i32
    %211 = tpu.memref_slice %arg13[%c9_i32_141, %c0_i32_142] : memref<32x128xf32, #tpu.memory_space<vmem>> -> memref<1x128xf32, #tpu.memory_space<vmem>>
    %212 = tpu.memref_slice %arg24[%c1_i32_139] : memref<8x!tpu.dma_semaphore, #tpu.memory_space<semaphore_mem>> -> memref<1x!tpu.dma_semaphore, #tpu.memory_space<semaphore_mem>>
    %213 = tpu.memref_squeeze %212 : memref<1x!tpu.dma_semaphore, #tpu.memory_space<semaphore_mem>> -> memref<!tpu.dma_semaphore, #tpu.memory_space<semaphore_mem>>
    tpu.wait_dma2 semaphore(%213 : memref<!tpu.dma_semaphore, #tpu.memory_space<semaphore_mem>>) src(%210 : memref<1x128xf32, #tpu.memory_space<any>>) dst(%211 : memref<1x128xf32, #tpu.memory_space<vmem>>)
    %c2_i32_143 = arith.constant 2 : i32
    %c0_i32_144 = arith.constant 0 : i32
    %214 = tpu.memref_slice %arg1[%50, %c0_i32_144] : memref<10000x128xf32, #tpu.memory_space<any>> -> memref<1x128xf32, #tpu.memory_space<any>>
    %c10_i32_145 = arith.constant 10 : i32
    %c0_i32_146 = arith.constant 0 : i32
    %215 = tpu.memref_slice %arg13[%c10_i32_145, %c0_i32_146] : memref<32x128xf32, #tpu.memory_space<vmem>> -> memref<1x128xf32, #tpu.memory_space<vmem>>
    %216 = tpu.memref_slice %arg24[%c2_i32_143] : memref<8x!tpu.dma_semaphore, #tpu.memory_space<semaphore_mem>> -> memref<1x!tpu.dma_semaphore, #tpu.memory_space<semaphore_mem>>
    %217 = tpu.memref_squeeze %216 : memref<1x!tpu.dma_semaphore, #tpu.memory_space<semaphore_mem>> -> memref<!tpu.dma_semaphore, #tpu.memory_space<semaphore_mem>>
    tpu.wait_dma2 semaphore(%217 : memref<!tpu.dma_semaphore, #tpu.memory_space<semaphore_mem>>) src(%214 : memref<1x128xf32, #tpu.memory_space<any>>) dst(%215 : memref<1x128xf32, #tpu.memory_space<vmem>>)
    %c3_i32_147 = arith.constant 3 : i32
    %c0_i32_148 = arith.constant 0 : i32
    %218 = tpu.memref_slice %arg1[%55, %c0_i32_148] : memref<10000x128xf32, #tpu.memory_space<any>> -> memref<1x128xf32, #tpu.memory_space<any>>
    %c11_i32_149 = arith.constant 11 : i32
    %c0_i32_150 = arith.constant 0 : i32
    %219 = tpu.memref_slice %arg13[%c11_i32_149, %c0_i32_150] : memref<32x128xf32, #tpu.memory_space<vmem>> -> memref<1x128xf32, #tpu.memory_space<vmem>>
    %220 = tpu.memref_slice %arg24[%c3_i32_147] : memref<8x!tpu.dma_semaphore, #tpu.memory_space<semaphore_mem>> -> memref<1x!tpu.dma_semaphore, #tpu.memory_space<semaphore_mem>>
    %221 = tpu.memref_squeeze %220 : memref<1x!tpu.dma_semaphore, #tpu.memory_space<semaphore_mem>> -> memref<!tpu.dma_semaphore, #tpu.memory_space<semaphore_mem>>
    tpu.wait_dma2 semaphore(%221 : memref<!tpu.dma_semaphore, #tpu.memory_space<semaphore_mem>>) src(%218 : memref<1x128xf32, #tpu.memory_space<any>>) dst(%219 : memref<1x128xf32, #tpu.memory_space<vmem>>)
    %c4_i32_151 = arith.constant 4 : i32
    %c0_i32_152 = arith.constant 0 : i32
    %222 = tpu.memref_slice %arg1[%60, %c0_i32_152] : memref<10000x128xf32, #tpu.memory_space<any>> -> memref<1x128xf32, #tpu.memory_space<any>>
    %c12_i32_153 = arith.constant 12 : i32
    %c0_i32_154 = arith.constant 0 : i32
    %223 = tpu.memref_slice %arg13[%c12_i32_153, %c0_i32_154] : memref<32x128xf32, #tpu.memory_space<vmem>> -> memref<1x128xf32, #tpu.memory_space<vmem>>
    %224 = tpu.memref_slice %arg24[%c4_i32_151] : memref<8x!tpu.dma_semaphore, #tpu.memory_space<semaphore_mem>> -> memref<1x!tpu.dma_semaphore, #tpu.memory_space<semaphore_mem>>
    %225 = tpu.memref_squeeze %224 : memref<1x!tpu.dma_semaphore, #tpu.memory_space<semaphore_mem>> -> memref<!tpu.dma_semaphore, #tpu.memory_space<semaphore_mem>>
    tpu.wait_dma2 semaphore(%225 : memref<!tpu.dma_semaphore, #tpu.memory_space<semaphore_mem>>) src(%222 : memref<1x128xf32, #tpu.memory_space<any>>) dst(%223 : memref<1x128xf32, #tpu.memory_space<vmem>>)
    %c5_i32_155 = arith.constant 5 : i32
    %c0_i32_156 = arith.constant 0 : i32
    %226 = tpu.memref_slice %arg1[%65, %c0_i32_156] : memref<10000x128xf32, #tpu.memory_space<any>> -> memref<1x128xf32, #tpu.memory_space<any>>
    %c13_i32_157 = arith.constant 13 : i32
    %c0_i32_158 = arith.constant 0 : i32
    %227 = tpu.memref_slice %arg13[%c13_i32_157, %c0_i32_158] : memref<32x128xf32, #tpu.memory_space<vmem>> -> memref<1x128xf32, #tpu.memory_space<vmem>>
    %228 = tpu.memref_slice %arg24[%c5_i32_155] : memref<8x!tpu.dma_semaphore, #tpu.memory_space<semaphore_mem>> -> memref<1x!tpu.dma_semaphore, #tpu.memory_space<semaphore_mem>>
    %229 = tpu.memref_squeeze %228 : memref<1x!tpu.dma_semaphore, #tpu.memory_space<semaphore_mem>> -> memref<!tpu.dma_semaphore, #tpu.memory_space<semaphore_mem>>
    tpu.wait_dma2 semaphore(%229 : memref<!tpu.dma_semaphore, #tpu.memory_space<semaphore_mem>>) src(%226 : memref<1x128xf32, #tpu.memory_space<any>>) dst(%227 : memref<1x128xf32, #tpu.memory_space<vmem>>)
    %c6_i32_159 = arith.constant 6 : i32
    %c0_i32_160 = arith.constant 0 : i32
    %230 = tpu.memref_slice %arg1[%70, %c0_i32_160] : memref<10000x128xf32, #tpu.memory_space<any>> -> memref<1x128xf32, #tpu.memory_space<any>>
    %c14_i32_161 = arith.constant 14 : i32
    %c0_i32_162 = arith.constant 0 : i32
    %231 = tpu.memref_slice %arg13[%c14_i32_161, %c0_i32_162] : memref<32x128xf32, #tpu.memory_space<vmem>> -> memref<1x128xf32, #tpu.memory_space<vmem>>
    %232 = tpu.memref_slice %arg24[%c6_i32_159] : memref<8x!tpu.dma_semaphore, #tpu.memory_space<semaphore_mem>> -> memref<1x!tpu.dma_semaphore, #tpu.memory_space<semaphore_mem>>
    %233 = tpu.memref_squeeze %232 : memref<1x!tpu.dma_semaphore, #tpu.memory_space<semaphore_mem>> -> memref<!tpu.dma_semaphore, #tpu.memory_space<semaphore_mem>>
    tpu.wait_dma2 semaphore(%233 : memref<!tpu.dma_semaphore, #tpu.memory_space<semaphore_mem>>) src(%230 : memref<1x128xf32, #tpu.memory_space<any>>) dst(%231 : memref<1x128xf32, #tpu.memory_space<vmem>>)
    %c7_i32_163 = arith.constant 7 : i32
    %c0_i32_164 = arith.constant 0 : i32
    %234 = tpu.memref_slice %arg1[%75, %c0_i32_164] : memref<10000x128xf32, #tpu.memory_space<any>> -> memref<1x128xf32, #tpu.memory_space<any>>
    %c15_i32_165 = arith.constant 15 : i32
    %c0_i32_166 = arith.constant 0 : i32
    %235 = tpu.memref_slice %arg13[%c15_i32_165, %c0_i32_166] : memref<32x128xf32, #tpu.memory_space<vmem>> -> memref<1x128xf32, #tpu.memory_space<vmem>>
    %236 = tpu.memref_slice %arg24[%c7_i32_163] : memref<8x!tpu.dma_semaphore, #tpu.memory_space<semaphore_mem>> -> memref<1x!tpu.dma_semaphore, #tpu.memory_space<semaphore_mem>>
    %237 = tpu.memref_squeeze %236 : memref<1x!tpu.dma_semaphore, #tpu.memory_space<semaphore_mem>> -> memref<!tpu.dma_semaphore, #tpu.memory_space<semaphore_mem>>
    tpu.wait_dma2 semaphore(%237 : memref<!tpu.dma_semaphore, #tpu.memory_space<semaphore_mem>>) src(%234 : memref<1x128xf32, #tpu.memory_space<any>>) dst(%235 : memref<1x128xf32, #tpu.memory_space<vmem>>)
    %c0_i32_167 = arith.constant 0 : i32
    %c0_i32_168 = arith.constant 0 : i32
    %238 = tpu.memref_slice %arg1[%80, %c0_i32_168] : memref<10000x128xf32, #tpu.memory_space<any>> -> memref<1x128xf32, #tpu.memory_space<any>>
    %c16_i32_169 = arith.constant 16 : i32
    %c0_i32_170 = arith.constant 0 : i32
    %239 = tpu.memref_slice %arg13[%c16_i32_169, %c0_i32_170] : memref<32x128xf32, #tpu.memory_space<vmem>> -> memref<1x128xf32, #tpu.memory_space<vmem>>
    %240 = tpu.memref_slice %arg24[%c0_i32_167] : memref<8x!tpu.dma_semaphore, #tpu.memory_space<semaphore_mem>> -> memref<1x!tpu.dma_semaphore, #tpu.memory_space<semaphore_mem>>
    %241 = tpu.memref_squeeze %240 : memref<1x!tpu.dma_semaphore, #tpu.memory_space<semaphore_mem>> -> memref<!tpu.dma_semaphore, #tpu.memory_space<semaphore_mem>>
    tpu.wait_dma2 semaphore(%241 : memref<!tpu.dma_semaphore, #tpu.memory_space<semaphore_mem>>) src(%238 : memref<1x128xf32, #tpu.memory_space<any>>) dst(%239 : memref<1x128xf32, #tpu.memory_space<vmem>>)
    %c1_i32_171 = arith.constant 1 : i32
    %c0_i32_172 = arith.constant 0 : i32
    %242 = tpu.memref_slice %arg1[%85, %c0_i32_172] : memref<10000x128xf32, #tpu.memory_space<any>> -> memref<1x128xf32, #tpu.memory_space<any>>
    %c17_i32_173 = arith.constant 17 : i32
    %c0_i32_174 = arith.constant 0 : i32
    %243 = tpu.memref_slice %arg13[%c17_i32_173, %c0_i32_174] : memref<32x128xf32, #tpu.memory_space<vmem>> -> memref<1x128xf32, #tpu.memory_space<vmem>>
    %244 = tpu.memref_slice %arg24[%c1_i32_171] : memref<8x!tpu.dma_semaphore, #tpu.memory_space<semaphore_mem>> -> memref<1x!tpu.dma_semaphore, #tpu.memory_space<semaphore_mem>>
    %245 = tpu.memref_squeeze %244 : memref<1x!tpu.dma_semaphore, #tpu.memory_space<semaphore_mem>> -> memref<!tpu.dma_semaphore, #tpu.memory_space<semaphore_mem>>
    tpu.wait_dma2 semaphore(%245 : memref<!tpu.dma_semaphore, #tpu.memory_space<semaphore_mem>>) src(%242 : memref<1x128xf32, #tpu.memory_space<any>>) dst(%243 : memref<1x128xf32, #tpu.memory_space<vmem>>)
    %c2_i32_175 = arith.constant 2 : i32
    %c0_i32_176 = arith.constant 0 : i32
    %246 = tpu.memref_slice %arg1[%90, %c0_i32_176] : memref<10000x128xf32, #tpu.memory_space<any>> -> memref<1x128xf32, #tpu.memory_space<any>>
    %c18_i32_177 = arith.constant 18 : i32
    %c0_i32_178 = arith.constant 0 : i32
    %247 = tpu.memref_slice %arg13[%c18_i32_177, %c0_i32_178] : memref<32x128xf32, #tpu.memory_space<vmem>> -> memref<1x128xf32, #tpu.memory_space<vmem>>
    %248 = tpu.memref_slice %arg24[%c2_i32_175] : memref<8x!tpu.dma_semaphore, #tpu.memory_space<semaphore_mem>> -> memref<1x!tpu.dma_semaphore, #tpu.memory_space<semaphore_mem>>
    %249 = tpu.memref_squeeze %248 : memref<1x!tpu.dma_semaphore, #tpu.memory_space<semaphore_mem>> -> memref<!tpu.dma_semaphore, #tpu.memory_space<semaphore_mem>>
    tpu.wait_dma2 semaphore(%249 : memref<!tpu.dma_semaphore, #tpu.memory_space<semaphore_mem>>) src(%246 : memref<1x128xf32, #tpu.memory_space<any>>) dst(%247 : memref<1x128xf32, #tpu.memory_space<vmem>>)
    %c3_i32_179 = arith.constant 3 : i32
    %c0_i32_180 = arith.constant 0 : i32
    %250 = tpu.memref_slice %arg1[%95, %c0_i32_180] : memref<10000x128xf32, #tpu.memory_space<any>> -> memref<1x128xf32, #tpu.memory_space<any>>
    %c19_i32_181 = arith.constant 19 : i32
    %c0_i32_182 = arith.constant 0 : i32
    %251 = tpu.memref_slice %arg13[%c19_i32_181, %c0_i32_182] : memref<32x128xf32, #tpu.memory_space<vmem>> -> memref<1x128xf32, #tpu.memory_space<vmem>>
    %252 = tpu.memref_slice %arg24[%c3_i32_179] : memref<8x!tpu.dma_semaphore, #tpu.memory_space<semaphore_mem>> -> memref<1x!tpu.dma_semaphore, #tpu.memory_space<semaphore_mem>>
    %253 = tpu.memref_squeeze %252 : memref<1x!tpu.dma_semaphore, #tpu.memory_space<semaphore_mem>> -> memref<!tpu.dma_semaphore, #tpu.memory_space<semaphore_mem>>
    tpu.wait_dma2 semaphore(%253 : memref<!tpu.dma_semaphore, #tpu.memory_space<semaphore_mem>>) src(%250 : memref<1x128xf32, #tpu.memory_space<any>>) dst(%251 : memref<1x128xf32, #tpu.memory_space<vmem>>)
    %c4_i32_183 = arith.constant 4 : i32
    %c0_i32_184 = arith.constant 0 : i32
    %254 = tpu.memref_slice %arg1[%100, %c0_i32_184] : memref<10000x128xf32, #tpu.memory_space<any>> -> memref<1x128xf32, #tpu.memory_space<any>>
    %c20_i32_185 = arith.constant 20 : i32
    %c0_i32_186 = arith.constant 0 : i32
    %255 = tpu.memref_slice %arg13[%c20_i32_185, %c0_i32_186] : memref<32x128xf32, #tpu.memory_space<vmem>> -> memref<1x128xf32, #tpu.memory_space<vmem>>
    %256 = tpu.memref_slice %arg24[%c4_i32_183] : memref<8x!tpu.dma_semaphore, #tpu.memory_space<semaphore_mem>> -> memref<1x!tpu.dma_semaphore, #tpu.memory_space<semaphore_mem>>
    %257 = tpu.memref_squeeze %256 : memref<1x!tpu.dma_semaphore, #tpu.memory_space<semaphore_mem>> -> memref<!tpu.dma_semaphore, #tpu.memory_space<semaphore_mem>>
    tpu.wait_dma2 semaphore(%257 : memref<!tpu.dma_semaphore, #tpu.memory_space<semaphore_mem>>) src(%254 : memref<1x128xf32, #tpu.memory_space<any>>) dst(%255 : memref<1x128xf32, #tpu.memory_space<vmem>>)
    %c5_i32_187 = arith.constant 5 : i32
    %c0_i32_188 = arith.constant 0 : i32
    %258 = tpu.memref_slice %arg1[%105, %c0_i32_188] : memref<10000x128xf32, #tpu.memory_space<any>> -> memref<1x128xf32, #tpu.memory_space<any>>
    %c21_i32_189 = arith.constant 21 : i32
    %c0_i32_190 = arith.constant 0 : i32
    %259 = tpu.memref_slice %arg13[%c21_i32_189, %c0_i32_190] : memref<32x128xf32, #tpu.memory_space<vmem>> -> memref<1x128xf32, #tpu.memory_space<vmem>>
    %260 = tpu.memref_slice %arg24[%c5_i32_187] : memref<8x!tpu.dma_semaphore, #tpu.memory_space<semaphore_mem>> -> memref<1x!tpu.dma_semaphore, #tpu.memory_space<semaphore_mem>>
    %261 = tpu.memref_squeeze %260 : memref<1x!tpu.dma_semaphore, #tpu.memory_space<semaphore_mem>> -> memref<!tpu.dma_semaphore, #tpu.memory_space<semaphore_mem>>
    tpu.wait_dma2 semaphore(%261 : memref<!tpu.dma_semaphore, #tpu.memory_space<semaphore_mem>>) src(%258 : memref<1x128xf32, #tpu.memory_space<any>>) dst(%259 : memref<1x128xf32, #tpu.memory_space<vmem>>)
    %c6_i32_191 = arith.constant 6 : i32
    %c0_i32_192 = arith.constant 0 : i32
    %262 = tpu.memref_slice %arg1[%110, %c0_i32_192] : memref<10000x128xf32, #tpu.memory_space<any>> -> memref<1x128xf32, #tpu.memory_space<any>>
    %c22_i32_193 = arith.constant 22 : i32
    %c0_i32_194 = arith.constant 0 : i32
    %263 = tpu.memref_slice %arg13[%c22_i32_193, %c0_i32_194] : memref<32x128xf32, #tpu.memory_space<vmem>> -> memref<1x128xf32, #tpu.memory_space<vmem>>
    %264 = tpu.memref_slice %arg24[%c6_i32_191] : memref<8x!tpu.dma_semaphore, #tpu.memory_space<semaphore_mem>> -> memref<1x!tpu.dma_semaphore, #tpu.memory_space<semaphore_mem>>
    %265 = tpu.memref_squeeze %264 : memref<1x!tpu.dma_semaphore, #tpu.memory_space<semaphore_mem>> -> memref<!tpu.dma_semaphore, #tpu.memory_space<semaphore_mem>>
    tpu.wait_dma2 semaphore(%265 : memref<!tpu.dma_semaphore, #tpu.memory_space<semaphore_mem>>) src(%262 : memref<1x128xf32, #tpu.memory_space<any>>) dst(%263 : memref<1x128xf32, #tpu.memory_space<vmem>>)
    %c7_i32_195 = arith.constant 7 : i32
    %c0_i32_196 = arith.constant 0 : i32
    %266 = tpu.memref_slice %arg1[%115, %c0_i32_196] : memref<10000x128xf32, #tpu.memory_space<any>> -> memref<1x128xf32, #tpu.memory_space<any>>
    %c23_i32_197 = arith.constant 23 : i32
    %c0_i32_198 = arith.constant 0 : i32
    %267 = tpu.memref_slice %arg13[%c23_i32_197, %c0_i32_198] : memref<32x128xf32, #tpu.memory_space<vmem>> -> memref<1x128xf32, #tpu.memory_space<vmem>>
    %268 = tpu.memref_slice %arg24[%c7_i32_195] : memref<8x!tpu.dma_semaphore, #tpu.memory_space<semaphore_mem>> -> memref<1x!tpu.dma_semaphore, #tpu.memory_space<semaphore_mem>>
    %269 = tpu.memref_squeeze %268 : memref<1x!tpu.dma_semaphore, #tpu.memory_space<semaphore_mem>> -> memref<!tpu.dma_semaphore, #tpu.memory_space<semaphore_mem>>
    tpu.wait_dma2 semaphore(%269 : memref<!tpu.dma_semaphore, #tpu.memory_space<semaphore_mem>>) src(%266 : memref<1x128xf32, #tpu.memory_space<any>>) dst(%267 : memref<1x128xf32, #tpu.memory_space<vmem>>)
    %c0_i32_199 = arith.constant 0 : i32
    %c0_i32_200 = arith.constant 0 : i32
    %270 = tpu.memref_slice %arg1[%120, %c0_i32_200] : memref<10000x128xf32, #tpu.memory_space<any>> -> memref<1x128xf32, #tpu.memory_space<any>>
    %c24_i32_201 = arith.constant 24 : i32
    %c0_i32_202 = arith.constant 0 : i32
    %271 = tpu.memref_slice %arg13[%c24_i32_201, %c0_i32_202] : memref<32x128xf32, #tpu.memory_space<vmem>> -> memref<1x128xf32, #tpu.memory_space<vmem>>
    %272 = tpu.memref_slice %arg24[%c0_i32_199] : memref<8x!tpu.dma_semaphore, #tpu.memory_space<semaphore_mem>> -> memref<1x!tpu.dma_semaphore, #tpu.memory_space<semaphore_mem>>
    %273 = tpu.memref_squeeze %272 : memref<1x!tpu.dma_semaphore, #tpu.memory_space<semaphore_mem>> -> memref<!tpu.dma_semaphore, #tpu.memory_space<semaphore_mem>>
    tpu.wait_dma2 semaphore(%273 : memref<!tpu.dma_semaphore, #tpu.memory_space<semaphore_mem>>) src(%270 : memref<1x128xf32, #tpu.memory_space<any>>) dst(%271 : memref<1x128xf32, #tpu.memory_space<vmem>>)
    %c1_i32_203 = arith.constant 1 : i32
    %c0_i32_204 = arith.constant 0 : i32
    %274 = tpu.memref_slice %arg1[%125, %c0_i32_204] : memref<10000x128xf32, #tpu.memory_space<any>> -> memref<1x128xf32, #tpu.memory_space<any>>
    %c25_i32_205 = arith.constant 25 : i32
    %c0_i32_206 = arith.constant 0 : i32
    %275 = tpu.memref_slice %arg13[%c25_i32_205, %c0_i32_206] : memref<32x128xf32, #tpu.memory_space<vmem>> -> memref<1x128xf32, #tpu.memory_space<vmem>>
    %276 = tpu.memref_slice %arg24[%c1_i32_203] : memref<8x!tpu.dma_semaphore, #tpu.memory_space<semaphore_mem>> -> memref<1x!tpu.dma_semaphore, #tpu.memory_space<semaphore_mem>>
    %277 = tpu.memref_squeeze %276 : memref<1x!tpu.dma_semaphore, #tpu.memory_space<semaphore_mem>> -> memref<!tpu.dma_semaphore, #tpu.memory_space<semaphore_mem>>
    tpu.wait_dma2 semaphore(%277 : memref<!tpu.dma_semaphore, #tpu.memory_space<semaphore_mem>>) src(%274 : memref<1x128xf32, #tpu.memory_space<any>>) dst(%275 : memref<1x128xf32, #tpu.memory_space<vmem>>)
    %c2_i32_207 = arith.constant 2 : i32
    %c0_i32_208 = arith.constant 0 : i32
    %278 = tpu.memref_slice %arg1[%130, %c0_i32_208] : memref<10000x128xf32, #tpu.memory_space<any>> -> memref<1x128xf32, #tpu.memory_space<any>>
    %c26_i32_209 = arith.constant 26 : i32
    %c0_i32_210 = arith.constant 0 : i32
    %279 = tpu.memref_slice %arg13[%c26_i32_209, %c0_i32_210] : memref<32x128xf32, #tpu.memory_space<vmem>> -> memref<1x128xf32, #tpu.memory_space<vmem>>
    %280 = tpu.memref_slice %arg24[%c2_i32_207] : memref<8x!tpu.dma_semaphore, #tpu.memory_space<semaphore_mem>> -> memref<1x!tpu.dma_semaphore, #tpu.memory_space<semaphore_mem>>
    %281 = tpu.memref_squeeze %280 : memref<1x!tpu.dma_semaphore, #tpu.memory_space<semaphore_mem>> -> memref<!tpu.dma_semaphore, #tpu.memory_space<semaphore_mem>>
    tpu.wait_dma2 semaphore(%281 : memref<!tpu.dma_semaphore, #tpu.memory_space<semaphore_mem>>) src(%278 : memref<1x128xf32, #tpu.memory_space<any>>) dst(%279 : memref<1x128xf32, #tpu.memory_space<vmem>>)
    %c3_i32_211 = arith.constant 3 : i32
    %c0_i32_212 = arith.constant 0 : i32
    %282 = tpu.memref_slice %arg1[%135, %c0_i32_212] : memref<10000x128xf32, #tpu.memory_space<any>> -> memref<1x128xf32, #tpu.memory_space<any>>
    %c27_i32_213 = arith.constant 27 : i32
    %c0_i32_214 = arith.constant 0 : i32
    %283 = tpu.memref_slice %arg13[%c27_i32_213, %c0_i32_214] : memref<32x128xf32, #tpu.memory_space<vmem>> -> memref<1x128xf32, #tpu.memory_space<vmem>>
    %284 = tpu.memref_slice %arg24[%c3_i32_211] : memref<8x!tpu.dma_semaphore, #tpu.memory_space<semaphore_mem>> -> memref<1x!tpu.dma_semaphore, #tpu.memory_space<semaphore_mem>>
    %285 = tpu.memref_squeeze %284 : memref<1x!tpu.dma_semaphore, #tpu.memory_space<semaphore_mem>> -> memref<!tpu.dma_semaphore, #tpu.memory_space<semaphore_mem>>
    tpu.wait_dma2 semaphore(%285 : memref<!tpu.dma_semaphore, #tpu.memory_space<semaphore_mem>>) src(%282 : memref<1x128xf32, #tpu.memory_space<any>>) dst(%283 : memref<1x128xf32, #tpu.memory_space<vmem>>)
    %c4_i32_215 = arith.constant 4 : i32
    %c0_i32_216 = arith.constant 0 : i32
    %286 = tpu.memref_slice %arg1[%140, %c0_i32_216] : memref<10000x128xf32, #tpu.memory_space<any>> -> memref<1x128xf32, #tpu.memory_space<any>>
    %c28_i32_217 = arith.constant 28 : i32
    %c0_i32_218 = arith.constant 0 : i32
    %287 = tpu.memref_slice %arg13[%c28_i32_217, %c0_i32_218] : memref<32x128xf32, #tpu.memory_space<vmem>> -> memref<1x128xf32, #tpu.memory_space<vmem>>
    %288 = tpu.memref_slice %arg24[%c4_i32_215] : memref<8x!tpu.dma_semaphore, #tpu.memory_space<semaphore_mem>> -> memref<1x!tpu.dma_semaphore, #tpu.memory_space<semaphore_mem>>
    %289 = tpu.memref_squeeze %288 : memref<1x!tpu.dma_semaphore, #tpu.memory_space<semaphore_mem>> -> memref<!tpu.dma_semaphore, #tpu.memory_space<semaphore_mem>>
    tpu.wait_dma2 semaphore(%289 : memref<!tpu.dma_semaphore, #tpu.memory_space<semaphore_mem>>) src(%286 : memref<1x128xf32, #tpu.memory_space<any>>) dst(%287 : memref<1x128xf32, #tpu.memory_space<vmem>>)
    %c5_i32_219 = arith.constant 5 : i32
    %c0_i32_220 = arith.constant 0 : i32
    %290 = tpu.memref_slice %arg1[%145, %c0_i32_220] : memref<10000x128xf32, #tpu.memory_space<any>> -> memref<1x128xf32, #tpu.memory_space<any>>
    %c29_i32_221 = arith.constant 29 : i32
    %c0_i32_222 = arith.constant 0 : i32
    %291 = tpu.memref_slice %arg13[%c29_i32_221, %c0_i32_222] : memref<32x128xf32, #tpu.memory_space<vmem>> -> memref<1x128xf32, #tpu.memory_space<vmem>>
    %292 = tpu.memref_slice %arg24[%c5_i32_219] : memref<8x!tpu.dma_semaphore, #tpu.memory_space<semaphore_mem>> -> memref<1x!tpu.dma_semaphore, #tpu.memory_space<semaphore_mem>>
    %293 = tpu.memref_squeeze %292 : memref<1x!tpu.dma_semaphore, #tpu.memory_space<semaphore_mem>> -> memref<!tpu.dma_semaphore, #tpu.memory_space<semaphore_mem>>
    tpu.wait_dma2 semaphore(%293 : memref<!tpu.dma_semaphore, #tpu.memory_space<semaphore_mem>>) src(%290 : memref<1x128xf32, #tpu.memory_space<any>>) dst(%291 : memref<1x128xf32, #tpu.memory_space<vmem>>)
    %c6_i32_223 = arith.constant 6 : i32
    %c0_i32_224 = arith.constant 0 : i32
    %294 = tpu.memref_slice %arg1[%150, %c0_i32_224] : memref<10000x128xf32, #tpu.memory_space<any>> -> memref<1x128xf32, #tpu.memory_space<any>>
    %c30_i32_225 = arith.constant 30 : i32
    %c0_i32_226 = arith.constant 0 : i32
    %295 = tpu.memref_slice %arg13[%c30_i32_225, %c0_i32_226] : memref<32x128xf32, #tpu.memory_space<vmem>> -> memref<1x128xf32, #tpu.memory_space<vmem>>
    %296 = tpu.memref_slice %arg24[%c6_i32_223] : memref<8x!tpu.dma_semaphore, #tpu.memory_space<semaphore_mem>> -> memref<1x!tpu.dma_semaphore, #tpu.memory_space<semaphore_mem>>
    %297 = tpu.memref_squeeze %296 : memref<1x!tpu.dma_semaphore, #tpu.memory_space<semaphore_mem>> -> memref<!tpu.dma_semaphore, #tpu.memory_space<semaphore_mem>>
    tpu.wait_dma2 semaphore(%297 : memref<!tpu.dma_semaphore, #tpu.memory_space<semaphore_mem>>) src(%294 : memref<1x128xf32, #tpu.memory_space<any>>) dst(%295 : memref<1x128xf32, #tpu.memory_space<vmem>>)
    %c7_i32_227 = arith.constant 7 : i32
    %c0_i32_228 = arith.constant 0 : i32
    %298 = tpu.memref_slice %arg1[%155, %c0_i32_228] : memref<10000x128xf32, #tpu.memory_space<any>> -> memref<1x128xf32, #tpu.memory_space<any>>
    %c31_i32_229 = arith.constant 31 : i32
    %c0_i32_230 = arith.constant 0 : i32
    %299 = tpu.memref_slice %arg13[%c31_i32_229, %c0_i32_230] : memref<32x128xf32, #tpu.memory_space<vmem>> -> memref<1x128xf32, #tpu.memory_space<vmem>>
    %300 = tpu.memref_slice %arg24[%c7_i32_227] : memref<8x!tpu.dma_semaphore, #tpu.memory_space<semaphore_mem>> -> memref<1x!tpu.dma_semaphore, #tpu.memory_space<semaphore_mem>>
    %301 = tpu.memref_squeeze %300 : memref<1x!tpu.dma_semaphore, #tpu.memory_space<semaphore_mem>> -> memref<!tpu.dma_semaphore, #tpu.memory_space<semaphore_mem>>
    tpu.wait_dma2 semaphore(%301 : memref<!tpu.dma_semaphore, #tpu.memory_space<semaphore_mem>>) src(%298 : memref<1x128xf32, #tpu.memory_space<any>>) dst(%299 : memref<1x128xf32, #tpu.memory_space<vmem>>)
    %c0_i32_231 = arith.constant 0 : i32
    %302 = tpu.memref_slice %arg25[%c0_i32_231] : memref<7x!tpu.dma_semaphore, #tpu.memory_space<semaphore_mem>> -> memref<1x!tpu.dma_semaphore, #tpu.memory_space<semaphore_mem>>
    %303 = tpu.memref_squeeze %302 : memref<1x!tpu.dma_semaphore, #tpu.memory_space<semaphore_mem>> -> memref<!tpu.dma_semaphore, #tpu.memory_space<semaphore_mem>>
    tpu.wait_dma2 semaphore(%303 : memref<!tpu.dma_semaphore, #tpu.memory_space<semaphore_mem>>) src(%arg2 : memref<128x1024xbf16, #tpu.memory_space<any>>) dst(%arg17 : memref<128x1024xbf16, #tpu.memory_space<vmem>>)
    %c1_i32_232 = arith.constant 1 : i32
    %304 = tpu.memref_slice %arg25[%c1_i32_232] : memref<7x!tpu.dma_semaphore, #tpu.memory_space<semaphore_mem>> -> memref<1x!tpu.dma_semaphore, #tpu.memory_space<semaphore_mem>>
    %305 = tpu.memref_squeeze %304 : memref<1x!tpu.dma_semaphore, #tpu.memory_space<semaphore_mem>> -> memref<!tpu.dma_semaphore, #tpu.memory_space<semaphore_mem>>
    tpu.wait_dma2 semaphore(%305 : memref<!tpu.dma_semaphore, #tpu.memory_space<semaphore_mem>>) src(%arg3 : memref<128x512xbf16, #tpu.memory_space<any>>) dst(%arg18 : memref<128x512xbf16, #tpu.memory_space<vmem>>)
    %c2_i32_233 = arith.constant 2 : i32
    %306 = tpu.memref_slice %arg25[%c2_i32_233] : memref<7x!tpu.dma_semaphore, #tpu.memory_space<semaphore_mem>> -> memref<1x!tpu.dma_semaphore, #tpu.memory_space<semaphore_mem>>
    %307 = tpu.memref_squeeze %306 : memref<1x!tpu.dma_semaphore, #tpu.memory_space<semaphore_mem>> -> memref<!tpu.dma_semaphore, #tpu.memory_space<semaphore_mem>>
    tpu.wait_dma2 semaphore(%307 : memref<!tpu.dma_semaphore, #tpu.memory_space<semaphore_mem>>) src(%arg4 : memref<128x512xbf16, #tpu.memory_space<any>>) dst(%arg19 : memref<128x512xbf16, #tpu.memory_space<vmem>>)
    %c0_234 = arith.constant 0 : index
    %c0_235 = arith.constant 0 : index
    %308 = vector.load %arg13[%c0_234, %c0_235] : memref<32x128xf32, #tpu.memory_space<vmem>>, vector<32x128xf32>
    %309 = arith.truncf %308 : vector<32x128xf32> to vector<32x128xbf16>
    %c0_236 = arith.constant 0 : index
    %c0_237 = arith.constant 0 : index
    %310 = vector.load %arg17[%c0_236, %c0_237] : memref<128x1024xbf16, #tpu.memory_space<vmem>>, vector<128x1024xbf16>
    %cst = arith.constant dense<0.000000e+00> : vector<32x1024xf32>
    %311 = tpu.matmul %309, %310, %cst {dimension_numbers = #tpu.dot_dimension_numbers<[1], [0], [0], [1], [0, 0, 1, 1], [], []>} : vector<32x128xbf16>, vector<128x1024xbf16>, vector<32x1024xf32> -> vector<32x1024xf32>
    %c0_238 = arith.constant 0 : index
    %c0_239 = arith.constant 0 : index
    %312 = vector.load %arg5[%c0_238, %c0_239] : memref<1x1024xf32, #tpu.memory_space<vmem>>, vector<1x1024xf32>
    %313 = vector.broadcast %312 : vector<1x1024xf32> to vector<32x1024xf32>
    %314 = arith.addf %311, %313 : vector<32x1024xf32>
    %c0_240 = arith.constant 0 : index
    %c0_241 = arith.constant 0 : index
    %315 = vector.load %arg14[%c0_240, %c0_241] : memref<32x1024xf32, #tpu.memory_space<vmem>>, vector<32x1024xf32>
    tpu.vector_store %arg14[%c0_240, %c0_241], %314 {strides = array<i32>} : memref<32x1024xf32, #tpu.memory_space<vmem>>, vector<32x1024xf32>,
    %cst_242 = arith.constant 0.000000e+00 : f32
    %316 = vector.broadcast %cst_242 : f32 to vector<16x128xf32>
    %cst_243 = arith.constant 0.000000e+00 : f32
    %317 = vector.broadcast %cst_243 : f32 to vector<16x128xf32>
    %c0_244 = arith.constant 0 : index
    %c0_245 = arith.constant 0 : index
    %318 = vector.load %arg14[%c0_244, %c0_245] : memref<32x1024xf32, #tpu.memory_space<vmem>>, vector<8x512xf32>
    %319 = vector.extract_strided_slice %316 {offsets = [0, 0], sizes = [8, 128], strides = [1, 1]} : vector<16x128xf32> to vector<8x128xf32>
    %320 = arith.truncf %319 : vector<8x128xf32> to vector<8x128xbf16>
    %c0_246 = arith.constant 0 : index
    %c0_247 = arith.constant 0 : index
    %321 = vector.load %arg18[%c0_246, %c0_247] : memref<128x512xbf16, #tpu.memory_space<vmem>>, vector<128x512xbf16>
    %cst_248 = arith.constant dense<0.000000e+00> : vector<8x512xf32>
    %322 = tpu.matmul %320, %321, %cst_248 {dimension_numbers = #tpu.dot_dimension_numbers<[1], [0], [0], [1], [0, 0, 1, 1], [], []>} : vector<8x128xbf16>, vector<128x512xbf16>, vector<8x512xf32> -> vector<8x512xf32>
    %323 = arith.addf %318, %322 : vector<8x512xf32>
    %c24_249 = arith.constant 24 : index
    %c512 = arith.constant 512 : index
    %324 = vector.load %arg14[%c24_249, %c512] : memref<32x1024xf32, #tpu.memory_space<vmem>>, vector<8x512xf32>
    %325 = vector.extract_strided_slice %316 {offsets = [8, 0], sizes = [8, 128], strides = [1, 1]} : vector<16x128xf32> to vector<8x128xf32>
    %326 = arith.truncf %325 : vector<8x128xf32> to vector<8x128xbf16>
    %c0_250 = arith.constant 0 : index
    %c0_251 = arith.constant 0 : index
    %327 = vector.load %arg19[%c0_250, %c0_251] : memref<128x512xbf16, #tpu.memory_space<vmem>>, vector<128x512xbf16>
    %cst_252 = arith.constant dense<0.000000e+00> : vector<8x512xf32>
    %328 = tpu.matmul %326, %327, %cst_252 {dimension_numbers = #tpu.dot_dimension_numbers<[1], [0], [0], [1], [0, 0, 1, 1], [], []>} : vector<8x128xbf16>, vector<128x512xbf16>, vector<8x512xf32> -> vector<8x512xf32>
    %329 = arith.addf %324, %328 : vector<8x512xf32>
    %330 = tpu.concatenate %323, %329 in 0 : vector<8x512xf32>, vector<8x512xf32> -> vector<16x512xf32>
    %331 = vector.extract_strided_slice %330 {offsets = [0, 0], sizes = [16, 128], strides = [1, 1]} : vector<16x512xf32> to vector<16x128xf32>
    %332 = arith.negf %331 : vector<16x128xf32>
    %333 = math.exp %332 : vector<16x128xf32>
    %cst_253 = arith.constant 1.000000e+00 : f32
    %334 = vector.broadcast %cst_253 : f32 to vector<16x128xf32>
    %335 = arith.addf %334, %333 : vector<16x128xf32>
    %336 = arith.divf %334, %335 : vector<16x128xf32>
    %337 = vector.extract_strided_slice %330 {offsets = [0, 128], sizes = [16, 128], strides = [1, 1]} : vector<16x512xf32> to vector<16x128xf32>
    %338 = arith.negf %337 : vector<16x128xf32>
    %339 = math.exp %338 : vector<16x128xf32>
    %cst_254 = arith.constant 1.000000e+00 : f32
    %340 = vector.broadcast %cst_254 : f32 to vector<16x128xf32>
    %341 = arith.addf %340, %339 : vector<16x128xf32>
    %342 = arith.divf %340, %341 : vector<16x128xf32>
    %343 = vector.extract_strided_slice %330 {offsets = [0, 256], sizes = [16, 128], strides = [1, 1]} : vector<16x512xf32> to vector<16x128xf32>
    %344 = math.tanh %343 : vector<16x128xf32>
    %345 = vector.extract_strided_slice %330 {offsets = [0, 384], sizes = [16, 128], strides = [1, 1]} : vector<16x512xf32> to vector<16x128xf32>
    %346 = arith.negf %345 : vector<16x128xf32>
    %347 = math.exp %346 : vector<16x128xf32>
    %cst_255 = arith.constant 1.000000e+00 : f32
    %348 = vector.broadcast %cst_255 : f32 to vector<16x128xf32>
    %349 = arith.addf %348, %347 : vector<16x128xf32>
    %350 = arith.divf %348, %349 : vector<16x128xf32>
    %351 = arith.mulf %342, %317 : vector<16x128xf32>
    %352 = arith.mulf %336, %344 : vector<16x128xf32>
    %353 = arith.addf %351, %352 : vector<16x128xf32>
    %354 = math.tanh %353 : vector<16x128xf32>
    %355 = arith.mulf %350, %354 : vector<16x128xf32>
    %356 = vector.extract_strided_slice %355 {offsets = [0, 0], sizes = [8, 128], strides = [1, 1]} : vector<16x128xf32> to vector<8x128xf32>
    %c0_256 = arith.constant 0 : index
    %c0_257 = arith.constant 0 : index
    %357 = vector.load %arg15[%c0_256, %c0_257] : memref<32x256xf32, #tpu.memory_space<vmem>>, vector<8x128xf32>
    tpu.vector_store %arg15[%c0_256, %c0_257], %356 {strides = array<i32>} : memref<32x256xf32, #tpu.memory_space<vmem>>, vector<8x128xf32>,
    %358 = vector.extract_strided_slice %355 {offsets = [8, 0], sizes = [8, 128], strides = [1, 1]} : vector<16x128xf32> to vector<8x128xf32>
    %c24_258 = arith.constant 24 : index
    %c128 = arith.constant 128 : index
    %359 = vector.load %arg15[%c24_258, %c128] : memref<32x256xf32, #tpu.memory_space<vmem>>, vector<8x128xf32>
    tpu.vector_store %arg15[%c24_258, %c128], %358 {strides = array<i32>} : memref<32x256xf32, #tpu.memory_space<vmem>>, vector<8x128xf32>,
    %c8_259 = arith.constant 8 : index
    %c0_260 = arith.constant 0 : index
    %360 = vector.load %arg14[%c8_259, %c0_260] : memref<32x1024xf32, #tpu.memory_space<vmem>>, vector<8x512xf32>
    %361 = vector.extract_strided_slice %355 {offsets = [0, 0], sizes = [8, 128], strides = [1, 1]} : vector<16x128xf32> to vector<8x128xf32>
    %362 = arith.truncf %361 : vector<8x128xf32> to vector<8x128xbf16>
    %c0_261 = arith.constant 0 : index
    %c0_262 = arith.constant 0 : index
    %363 = vector.load %arg18[%c0_261, %c0_262] : memref<128x512xbf16, #tpu.memory_space<vmem>>, vector<128x512xbf16>
    %cst_263 = arith.constant dense<0.000000e+00> : vector<8x512xf32>
    %364 = tpu.matmul %362, %363, %cst_263 {dimension_numbers = #tpu.dot_dimension_numbers<[1], [0], [0], [1], [0, 0, 1, 1], [], []>} : vector<8x128xbf16>, vector<128x512xbf16>, vector<8x512xf32> -> vector<8x512xf32>
    %365 = arith.addf %360, %364 : vector<8x512xf32>
    %c16_264 = arith.constant 16 : index
    %c512_265 = arith.constant 512 : index
    %366 = vector.load %arg14[%c16_264, %c512_265] : memref<32x1024xf32, #tpu.memory_space<vmem>>, vector<8x512xf32>
    %367 = vector.extract_strided_slice %355 {offsets = [8, 0], sizes = [8, 128], strides = [1, 1]} : vector<16x128xf32> to vector<8x128xf32>
    %368 = arith.truncf %367 : vector<8x128xf32> to vector<8x128xbf16>
    %c0_266 = arith.constant 0 : index
    %c0_267 = arith.constant 0 : index
    %369 = vector.load %arg19[%c0_266, %c0_267] : memref<128x512xbf16, #tpu.memory_space<vmem>>, vector<128x512xbf16>
    %cst_268 = arith.constant dense<0.000000e+00> : vector<8x512xf32>
    %370 = tpu.matmul %368, %369, %cst_268 {dimension_numbers = #tpu.dot_dimension_numbers<[1], [0], [0], [1], [0, 0, 1, 1], [], []>} : vector<8x128xbf16>, vector<128x512xbf16>, vector<8x512xf32> -> vector<8x512xf32>
    %371 = arith.addf %366, %370 : vector<8x512xf32>
    %372 = tpu.concatenate %365, %371 in 0 : vector<8x512xf32>, vector<8x512xf32> -> vector<16x512xf32>
    %373 = vector.extract_strided_slice %372 {offsets = [0, 0], sizes = [16, 128], strides = [1, 1]} : vector<16x512xf32> to vector<16x128xf32>
    %374 = arith.negf %373 : vector<16x128xf32>
    %375 = math.exp %374 : vector<16x128xf32>
    %cst_269 = arith.constant 1.000000e+00 : f32
    %376 = vector.broadcast %cst_269 : f32 to vector<16x128xf32>
    %377 = arith.addf %376, %375 : vector<16x128xf32>
    %378 = arith.divf %376, %377 : vector<16x128xf32>
    %379 = vector.extract_strided_slice %372 {offsets = [0, 128], sizes = [16, 128], strides = [1, 1]} : vector<16x512xf32> to vector<16x128xf32>
    %380 = arith.negf %379 : vector<16x128xf32>
    %381 = math.exp %380 : vector<16x128xf32>
    %cst_270 = arith.constant 1.000000e+00 : f32
    %382 = vector.broadcast %cst_270 : f32 to vector<16x128xf32>
    %383 = arith.addf %382, %381 : vector<16x128xf32>
    %384 = arith.divf %382, %383 : vector<16x128xf32>
    %385 = vector.extract_strided_slice %372 {offsets = [0, 256], sizes = [16, 128], strides = [1, 1]} : vector<16x512xf32> to vector<16x128xf32>
    %386 = math.tanh %385 : vector<16x128xf32>
    %387 = vector.extract_strided_slice %372 {offsets = [0, 384], sizes = [16, 128], strides = [1, 1]} : vector<16x512xf32> to vector<16x128xf32>
    %388 = arith.negf %387 : vector<16x128xf32>
    %389 = math.exp %388 : vector<16x128xf32>
    %cst_271 = arith.constant 1.000000e+00 : f32
    %390 = vector.broadcast %cst_271 : f32 to vector<16x128xf32>
    %391 = arith.addf %390, %389 : vector<16x128xf32>
    %392 = arith.divf %390, %391 : vector<16x128xf32>
    %393 = arith.mulf %384, %353 : vector<16x128xf32>
    %394 = arith.mulf %378, %386 : vector<16x128xf32>
    %395 = arith.addf %393, %394 : vector<16x128xf32>
    %396 = math.tanh %395 : vector<16x128xf32>
    %397 = arith.mulf %392, %396 : vector<16x128xf32>
    %398 = vector.extract_strided_slice %397 {offsets = [0, 0], sizes = [8, 128], strides = [1, 1]} : vector<16x128xf32> to vector<8x128xf32>
    %c8_272 = arith.constant 8 : index
    %c0_273 = arith.constant 0 : index
    %399 = vector.load %arg15[%c8_272, %c0_273] : memref<32x256xf32, #tpu.memory_space<vmem>>, vector<8x128xf32>
    tpu.vector_store %arg15[%c8_272, %c0_273], %398 {strides = array<i32>} : memref<32x256xf32, #tpu.memory_space<vmem>>, vector<8x128xf32>,
    %400 = vector.extract_strided_slice %397 {offsets = [8, 0], sizes = [8, 128], strides = [1, 1]} : vector<16x128xf32> to vector<8x128xf32>
    %c16_274 = arith.constant 16 : index
    %c128_275 = arith.constant 128 : index
    %401 = vector.load %arg15[%c16_274, %c128_275] : memref<32x256xf32, #tpu.memory_space<vmem>>, vector<8x128xf32>
    tpu.vector_store %arg15[%c16_274, %c128_275], %400 {strides = array<i32>} : memref<32x256xf32, #tpu.memory_space<vmem>>, vector<8x128xf32>,
    %c16_276 = arith.constant 16 : index
    %c0_277 = arith.constant 0 : index
    %402 = vector.load %arg14[%c16_276, %c0_277] : memref<32x1024xf32, #tpu.memory_space<vmem>>, vector<8x512xf32>
    %403 = vector.extract_strided_slice %397 {offsets = [0, 0], sizes = [8, 128], strides = [1, 1]} : vector<16x128xf32> to vector<8x128xf32>
    %404 = arith.truncf %403 : vector<8x128xf32> to vector<8x128xbf16>
    %c0_278 = arith.constant 0 : index
    %c0_279 = arith.constant 0 : index
    %405 = vector.load %arg18[%c0_278, %c0_279] : memref<128x512xbf16, #tpu.memory_space<vmem>>, vector<128x512xbf16>
    %cst_280 = arith.constant dense<0.000000e+00> : vector<8x512xf32>
    %406 = tpu.matmul %404, %405, %cst_280 {dimension_numbers = #tpu.dot_dimension_numbers<[1], [0], [0], [1], [0, 0, 1, 1], [], []>} : vector<8x128xbf16>, vector<128x512xbf16>, vector<8x512xf32> -> vector<8x512xf32>
    %407 = arith.addf %402, %406 : vector<8x512xf32>
    %c8_281 = arith.constant 8 : index
    %c512_282 = arith.constant 512 : index
    %408 = vector.load %arg14[%c8_281, %c512_282] : memref<32x1024xf32, #tpu.memory_space<vmem>>, vector<8x512xf32>
    %409 = vector.extract_strided_slice %397 {offsets = [8, 0], sizes = [8, 128], strides = [1, 1]} : vector<16x128xf32> to vector<8x128xf32>
    %410 = arith.truncf %409 : vector<8x128xf32> to vector<8x128xbf16>
    %c0_283 = arith.constant 0 : index
    %c0_284 = arith.constant 0 : index
    %411 = vector.load %arg19[%c0_283, %c0_284] : memref<128x512xbf16, #tpu.memory_space<vmem>>, vector<128x512xbf16>
    %cst_285 = arith.constant dense<0.000000e+00> : vector<8x512xf32>
    %412 = tpu.matmul %410, %411, %cst_285 {dimension_numbers = #tpu.dot_dimension_numbers<[1], [0], [0], [1], [0, 0, 1, 1], [], []>} : vector<8x128xbf16>, vector<128x512xbf16>, vector<8x512xf32> -> vector<8x512xf32>
    %413 = arith.addf %408, %412 : vector<8x512xf32>
    %414 = tpu.concatenate %407, %413 in 0 : vector<8x512xf32>, vector<8x512xf32> -> vector<16x512xf32>
    %415 = vector.extract_strided_slice %414 {offsets = [0, 0], sizes = [16, 128], strides = [1, 1]} : vector<16x512xf32> to vector<16x128xf32>
    %416 = arith.negf %415 : vector<16x128xf32>
    %417 = math.exp %416 : vector<16x128xf32>
    %cst_286 = arith.constant 1.000000e+00 : f32
    %418 = vector.broadcast %cst_286 : f32 to vector<16x128xf32>
    %419 = arith.addf %418, %417 : vector<16x128xf32>
    %420 = arith.divf %418, %419 : vector<16x128xf32>
    %421 = vector.extract_strided_slice %414 {offsets = [0, 128], sizes = [16, 128], strides = [1, 1]} : vector<16x512xf32> to vector<16x128xf32>
    %422 = arith.negf %421 : vector<16x128xf32>
    %423 = math.exp %422 : vector<16x128xf32>
    %cst_287 = arith.constant 1.000000e+00 : f32
    %424 = vector.broadcast %cst_287 : f32 to vector<16x128xf32>
    %425 = arith.addf %424, %423 : vector<16x128xf32>
    %426 = arith.divf %424, %425 : vector<16x128xf32>
    %427 = vector.extract_strided_slice %414 {offsets = [0, 256], sizes = [16, 128], strides = [1, 1]} : vector<16x512xf32> to vector<16x128xf32>
    %428 = math.tanh %427 : vector<16x128xf32>
    %429 = vector.extract_strided_slice %414 {offsets = [0, 384], sizes = [16, 128], strides = [1, 1]} : vector<16x512xf32> to vector<16x128xf32>
    %430 = arith.negf %429 : vector<16x128xf32>
    %431 = math.exp %430 : vector<16x128xf32>
    %cst_288 = arith.constant 1.000000e+00 : f32
    %432 = vector.broadcast %cst_288 : f32 to vector<16x128xf32>
    %433 = arith.addf %432, %431 : vector<16x128xf32>
    %434 = arith.divf %432, %433 : vector<16x128xf32>
    %435 = arith.mulf %426, %395 : vector<16x128xf32>
    %436 = arith.mulf %420, %428 : vector<16x128xf32>
    %437 = arith.addf %435, %436 : vector<16x128xf32>
    %438 = math.tanh %437 : vector<16x128xf32>
    %439 = arith.mulf %434, %438 : vector<16x128xf32>
    %440 = vector.extract_strided_slice %439 {offsets = [0, 0], sizes = [8, 128], strides = [1, 1]} : vector<16x128xf32> to vector<8x128xf32>
    %c16_289 = arith.constant 16 : index
    %c0_290 = arith.constant 0 : index
    %441 = vector.load %arg15[%c16_289, %c0_290] : memref<32x256xf32, #tpu.memory_space<vmem>>, vector<8x128xf32>
    tpu.vector_store %arg15[%c16_289, %c0_290], %440 {strides = array<i32>} : memref<32x256xf32, #tpu.memory_space<vmem>>, vector<8x128xf32>,
    %442 = vector.extract_strided_slice %439 {offsets = [8, 0], sizes = [8, 128], strides = [1, 1]} : vector<16x128xf32> to vector<8x128xf32>
    %c8_291 = arith.constant 8 : index
    %c128_292 = arith.constant 128 : index
    %443 = vector.load %arg15[%c8_291, %c128_292] : memref<32x256xf32, #tpu.memory_space<vmem>>, vector<8x128xf32>
    tpu.vector_store %arg15[%c8_291, %c128_292], %442 {strides = array<i32>} : memref<32x256xf32, #tpu.memory_space<vmem>>, vector<8x128xf32>,
    %c24_293 = arith.constant 24 : index
    %c0_294 = arith.constant 0 : index
    %444 = vector.load %arg14[%c24_293, %c0_294] : memref<32x1024xf32, #tpu.memory_space<vmem>>, vector<8x512xf32>
    %445 = vector.extract_strided_slice %439 {offsets = [0, 0], sizes = [8, 128], strides = [1, 1]} : vector<16x128xf32> to vector<8x128xf32>
    %446 = arith.truncf %445 : vector<8x128xf32> to vector<8x128xbf16>
    %c0_295 = arith.constant 0 : index
    %c0_296 = arith.constant 0 : index
    %447 = vector.load %arg18[%c0_295, %c0_296] : memref<128x512xbf16, #tpu.memory_space<vmem>>, vector<128x512xbf16>
    %cst_297 = arith.constant dense<0.000000e+00> : vector<8x512xf32>
    %448 = tpu.matmul %446, %447, %cst_297 {dimension_numbers = #tpu.dot_dimension_numbers<[1], [0], [0], [1], [0, 0, 1, 1], [], []>} : vector<8x128xbf16>, vector<128x512xbf16>, vector<8x512xf32> -> vector<8x512xf32>
    %449 = arith.addf %444, %448 : vector<8x512xf32>
    %c0_298 = arith.constant 0 : index
    %c512_299 = arith.constant 512 : index
    %450 = vector.load %arg14[%c0_298, %c512_299] : memref<32x1024xf32, #tpu.memory_space<vmem>>, vector<8x512xf32>
    %451 = vector.extract_strided_slice %439 {offsets = [8, 0], sizes = [8, 128], strides = [1, 1]} : vector<16x128xf32> to vector<8x128xf32>
    %452 = arith.truncf %451 : vector<8x128xf32> to vector<8x128xbf16>
    %c0_300 = arith.constant 0 : index
    %c0_301 = arith.constant 0 : index
    %453 = vector.load %arg19[%c0_300, %c0_301] : memref<128x512xbf16, #tpu.memory_space<vmem>>, vector<128x512xbf16>
    %cst_302 = arith.constant dense<0.000000e+00> : vector<8x512xf32>
    %454 = tpu.matmul %452, %453, %cst_302 {dimension_numbers = #tpu.dot_dimension_numbers<[1], [0], [0], [1], [0, 0, 1, 1], [], []>} : vector<8x128xbf16>, vector<128x512xbf16>, vector<8x512xf32> -> vector<8x512xf32>
    %455 = arith.addf %450, %454 : vector<8x512xf32>
    %456 = tpu.concatenate %449, %455 in 0 : vector<8x512xf32>, vector<8x512xf32> -> vector<16x512xf32>
    %457 = vector.extract_strided_slice %456 {offsets = [0, 0], sizes = [16, 128], strides = [1, 1]} : vector<16x512xf32> to vector<16x128xf32>
    %458 = arith.negf %457 : vector<16x128xf32>
    %459 = math.exp %458 : vector<16x128xf32>
    %cst_303 = arith.constant 1.000000e+00 : f32
    %460 = vector.broadcast %cst_303 : f32 to vector<16x128xf32>
    %461 = arith.addf %460, %459 : vector<16x128xf32>
    %462 = arith.divf %460, %461 : vector<16x128xf32>
    %463 = vector.extract_strided_slice %456 {offsets = [0, 128], sizes = [16, 128], strides = [1, 1]} : vector<16x512xf32> to vector<16x128xf32>
    %464 = arith.negf %463 : vector<16x128xf32>
    %465 = math.exp %464 : vector<16x128xf32>
    %cst_304 = arith.constant 1.000000e+00 : f32
    %466 = vector.broadcast %cst_304 : f32 to vector<16x128xf32>
    %467 = arith.addf %466, %465 : vector<16x128xf32>
    %468 = arith.divf %466, %467 : vector<16x128xf32>
    %469 = vector.extract_strided_slice %456 {offsets = [0, 256], sizes = [16, 128], strides = [1, 1]} : vector<16x512xf32> to vector<16x128xf32>
    %470 = math.tanh %469 : vector<16x128xf32>
    %471 = vector.extract_strided_slice %456 {offsets = [0, 384], sizes = [16, 128], strides = [1, 1]} : vector<16x512xf32> to vector<16x128xf32>
    %472 = arith.negf %471 : vector<16x128xf32>
    %473 = math.exp %472 : vector<16x128xf32>
    %cst_305 = arith.constant 1.000000e+00 : f32
    %474 = vector.broadcast %cst_305 : f32 to vector<16x128xf32>
    %475 = arith.addf %474, %473 : vector<16x128xf32>
    %476 = arith.divf %474, %475 : vector<16x128xf32>
    %477 = arith.mulf %468, %437 : vector<16x128xf32>
    %478 = arith.mulf %462, %470 : vector<16x128xf32>
    %479 = arith.addf %477, %478 : vector<16x128xf32>
    %480 = math.tanh %479 : vector<16x128xf32>
    %481 = arith.mulf %476, %480 : vector<16x128xf32>
    %482 = vector.extract_strided_slice %481 {offsets = [0, 0], sizes = [8, 128], strides = [1, 1]} : vector<16x128xf32> to vector<8x128xf32>
    %c24_306 = arith.constant 24 : index
    %c0_307 = arith.constant 0 : index
    %483 = vector.load %arg15[%c24_306, %c0_307] : memref<32x256xf32, #tpu.memory_space<vmem>>, vector<8x128xf32>
    tpu.vector_store %arg15[%c24_306, %c0_307], %482 {strides = array<i32>} : memref<32x256xf32, #tpu.memory_space<vmem>>, vector<8x128xf32>,
    %484 = vector.extract_strided_slice %481 {offsets = [8, 0], sizes = [8, 128], strides = [1, 1]} : vector<16x128xf32> to vector<8x128xf32>
    %c0_308 = arith.constant 0 : index
    %c128_309 = arith.constant 128 : index
    %485 = vector.load %arg15[%c0_308, %c128_309] : memref<32x256xf32, #tpu.memory_space<vmem>>, vector<8x128xf32>
    tpu.vector_store %arg15[%c0_308, %c128_309], %484 {strides = array<i32>} : memref<32x256xf32, #tpu.memory_space<vmem>>, vector<8x128xf32>,
    %c3_i32_310 = arith.constant 3 : i32
    %486 = tpu.memref_slice %arg25[%c3_i32_310] : memref<7x!tpu.dma_semaphore, #tpu.memory_space<semaphore_mem>> -> memref<1x!tpu.dma_semaphore, #tpu.memory_space<semaphore_mem>>
    %487 = tpu.memref_squeeze %486 : memref<1x!tpu.dma_semaphore, #tpu.memory_space<semaphore_mem>> -> memref<!tpu.dma_semaphore, #tpu.memory_space<semaphore_mem>>
    tpu.wait_dma2 semaphore(%487 : memref<!tpu.dma_semaphore, #tpu.memory_space<semaphore_mem>>) src(%arg6 : memref<256x1024xbf16, #tpu.memory_space<any>>) dst(%arg20 : memref<256x1024xbf16, #tpu.memory_space<vmem>>)
    %c4_i32_311 = arith.constant 4 : i32
    %488 = tpu.memref_slice %arg25[%c4_i32_311] : memref<7x!tpu.dma_semaphore, #tpu.memory_space<semaphore_mem>> -> memref<1x!tpu.dma_semaphore, #tpu.memory_space<semaphore_mem>>
    %489 = tpu.memref_squeeze %488 : memref<1x!tpu.dma_semaphore, #tpu.memory_space<semaphore_mem>> -> memref<!tpu.dma_semaphore, #tpu.memory_space<semaphore_mem>>
    tpu.wait_dma2 semaphore(%489 : memref<!tpu.dma_semaphore, #tpu.memory_space<semaphore_mem>>) src(%arg7 : memref<128x512xbf16, #tpu.memory_space<any>>) dst(%arg21 : memref<128x512xbf16, #tpu.memory_space<vmem>>)
    %c5_i32_312 = arith.constant 5 : i32
    %490 = tpu.memref_slice %arg25[%c5_i32_312] : memref<7x!tpu.dma_semaphore, #tpu.memory_space<semaphore_mem>> -> memref<1x!tpu.dma_semaphore, #tpu.memory_space<semaphore_mem>>
    %491 = tpu.memref_squeeze %490 : memref<1x!tpu.dma_semaphore, #tpu.memory_space<semaphore_mem>> -> memref<!tpu.dma_semaphore, #tpu.memory_space<semaphore_mem>>
    tpu.wait_dma2 semaphore(%491 : memref<!tpu.dma_semaphore, #tpu.memory_space<semaphore_mem>>) src(%arg8 : memref<128x512xbf16, #tpu.memory_space<any>>) dst(%arg22 : memref<128x512xbf16, #tpu.memory_space<vmem>>)
    %c0_313 = arith.constant 0 : index
    %c0_314 = arith.constant 0 : index
    %492 = vector.load %arg15[%c0_313, %c0_314] : memref<32x256xf32, #tpu.memory_space<vmem>>, vector<32x256xf32>
    %493 = arith.truncf %492 : vector<32x256xf32> to vector<32x256xbf16>
    %c0_315 = arith.constant 0 : index
    %c0_316 = arith.constant 0 : index
    %494 = vector.load %arg20[%c0_315, %c0_316] : memref<256x1024xbf16, #tpu.memory_space<vmem>>, vector<256x1024xbf16>
    %cst_317 = arith.constant dense<0.000000e+00> : vector<32x1024xf32>
    %495 = tpu.matmul %493, %494, %cst_317 {dimension_numbers = #tpu.dot_dimension_numbers<[1], [0], [0], [1], [0, 0, 1, 1], [], []>} : vector<32x256xbf16>, vector<256x1024xbf16>, vector<32x1024xf32> -> vector<32x1024xf32>
    %c0_318 = arith.constant 0 : index
    %c0_319 = arith.constant 0 : index
    %496 = vector.load %arg9[%c0_318, %c0_319] : memref<1x1024xf32, #tpu.memory_space<vmem>>, vector<1x1024xf32>
    %497 = vector.broadcast %496 : vector<1x1024xf32> to vector<32x1024xf32>
    %498 = arith.addf %495, %497 : vector<32x1024xf32>
    %c0_320 = arith.constant 0 : index
    %c0_321 = arith.constant 0 : index
    %499 = vector.load %arg14[%c0_320, %c0_321] : memref<32x1024xf32, #tpu.memory_space<vmem>>, vector<32x1024xf32>
    tpu.vector_store %arg14[%c0_320, %c0_321], %498 {strides = array<i32>} : memref<32x1024xf32, #tpu.memory_space<vmem>>, vector<32x1024xf32>,
    %cst_322 = arith.constant 0.000000e+00 : f32
    %500 = vector.broadcast %cst_322 : f32 to vector<16x128xf32>
    %cst_323 = arith.constant 0.000000e+00 : f32
    %501 = vector.broadcast %cst_323 : f32 to vector<16x128xf32>
    %c0_324 = arith.constant 0 : index
    %c0_325 = arith.constant 0 : index
    %502 = vector.load %arg14[%c0_324, %c0_325] : memref<32x1024xf32, #tpu.memory_space<vmem>>, vector<8x512xf32>
    %503 = vector.extract_strided_slice %500 {offsets = [0, 0], sizes = [8, 128], strides = [1, 1]} : vector<16x128xf32> to vector<8x128xf32>
    %504 = arith.truncf %503 : vector<8x128xf32> to vector<8x128xbf16>
    %c0_326 = arith.constant 0 : index
    %c0_327 = arith.constant 0 : index
    %505 = vector.load %arg21[%c0_326, %c0_327] : memref<128x512xbf16, #tpu.memory_space<vmem>>, vector<128x512xbf16>
    %cst_328 = arith.constant dense<0.000000e+00> : vector<8x512xf32>
    %506 = tpu.matmul %504, %505, %cst_328 {dimension_numbers = #tpu.dot_dimension_numbers<[1], [0], [0], [1], [0, 0, 1, 1], [], []>} : vector<8x128xbf16>, vector<128x512xbf16>, vector<8x512xf32> -> vector<8x512xf32>
    %507 = arith.addf %502, %506 : vector<8x512xf32>
    %c24_329 = arith.constant 24 : index
    %c512_330 = arith.constant 512 : index
    %508 = vector.load %arg14[%c24_329, %c512_330] : memref<32x1024xf32, #tpu.memory_space<vmem>>, vector<8x512xf32>
    %509 = vector.extract_strided_slice %500 {offsets = [8, 0], sizes = [8, 128], strides = [1, 1]} : vector<16x128xf32> to vector<8x128xf32>
    %510 = arith.truncf %509 : vector<8x128xf32> to vector<8x128xbf16>
    %c0_331 = arith.constant 0 : index
    %c0_332 = arith.constant 0 : index
    %511 = vector.load %arg22[%c0_331, %c0_332] : memref<128x512xbf16, #tpu.memory_space<vmem>>, vector<128x512xbf16>
    %cst_333 = arith.constant dense<0.000000e+00> : vector<8x512xf32>
    %512 = tpu.matmul %510, %511, %cst_333 {dimension_numbers = #tpu.dot_dimension_numbers<[1], [0], [0], [1], [0, 0, 1, 1], [], []>} : vector<8x128xbf16>, vector<128x512xbf16>, vector<8x512xf32> -> vector<8x512xf32>
    %513 = arith.addf %508, %512 : vector<8x512xf32>
    %514 = tpu.concatenate %507, %513 in 0 : vector<8x512xf32>, vector<8x512xf32> -> vector<16x512xf32>
    %515 = vector.extract_strided_slice %514 {offsets = [0, 0], sizes = [16, 128], strides = [1, 1]} : vector<16x512xf32> to vector<16x128xf32>
    %516 = arith.negf %515 : vector<16x128xf32>
    %517 = math.exp %516 : vector<16x128xf32>
    %cst_334 = arith.constant 1.000000e+00 : f32
    %518 = vector.broadcast %cst_334 : f32 to vector<16x128xf32>
    %519 = arith.addf %518, %517 : vector<16x128xf32>
    %520 = arith.divf %518, %519 : vector<16x128xf32>
    %521 = vector.extract_strided_slice %514 {offsets = [0, 128], sizes = [16, 128], strides = [1, 1]} : vector<16x512xf32> to vector<16x128xf32>
    %522 = arith.negf %521 : vector<16x128xf32>
    %523 = math.exp %522 : vector<16x128xf32>
    %cst_335 = arith.constant 1.000000e+00 : f32
    %524 = vector.broadcast %cst_335 : f32 to vector<16x128xf32>
    %525 = arith.addf %524, %523 : vector<16x128xf32>
    %526 = arith.divf %524, %525 : vector<16x128xf32>
    %527 = vector.extract_strided_slice %514 {offsets = [0, 256], sizes = [16, 128], strides = [1, 1]} : vector<16x512xf32> to vector<16x128xf32>
    %528 = math.tanh %527 : vector<16x128xf32>
    %529 = vector.extract_strided_slice %514 {offsets = [0, 384], sizes = [16, 128], strides = [1, 1]} : vector<16x512xf32> to vector<16x128xf32>
    %530 = arith.negf %529 : vector<16x128xf32>
    %531 = math.exp %530 : vector<16x128xf32>
    %cst_336 = arith.constant 1.000000e+00 : f32
    %532 = vector.broadcast %cst_336 : f32 to vector<16x128xf32>
    %533 = arith.addf %532, %531 : vector<16x128xf32>
    %534 = arith.divf %532, %533 : vector<16x128xf32>
    %535 = arith.mulf %526, %501 : vector<16x128xf32>
    %536 = arith.mulf %520, %528 : vector<16x128xf32>
    %537 = arith.addf %535, %536 : vector<16x128xf32>
    %538 = math.tanh %537 : vector<16x128xf32>
    %539 = arith.mulf %534, %538 : vector<16x128xf32>
    %540 = vector.extract_strided_slice %539 {offsets = [0, 0], sizes = [8, 128], strides = [1, 1]} : vector<16x128xf32> to vector<8x128xf32>
    %c0_337 = arith.constant 0 : index
    %c0_338 = arith.constant 0 : index
    %541 = vector.load %arg16[%c0_337, %c0_338] : memref<32x256xf32, #tpu.memory_space<vmem>>, vector<8x128xf32>
    tpu.vector_store %arg16[%c0_337, %c0_338], %540 {strides = array<i32>} : memref<32x256xf32, #tpu.memory_space<vmem>>, vector<8x128xf32>,
    %542 = vector.extract_strided_slice %539 {offsets = [8, 0], sizes = [8, 128], strides = [1, 1]} : vector<16x128xf32> to vector<8x128xf32>
    %c24_339 = arith.constant 24 : index
    %c128_340 = arith.constant 128 : index
    %543 = vector.load %arg16[%c24_339, %c128_340] : memref<32x256xf32, #tpu.memory_space<vmem>>, vector<8x128xf32>
    tpu.vector_store %arg16[%c24_339, %c128_340], %542 {strides = array<i32>} : memref<32x256xf32, #tpu.memory_space<vmem>>, vector<8x128xf32>,
    %c8_341 = arith.constant 8 : index
    %c0_342 = arith.constant 0 : index
    %544 = vector.load %arg14[%c8_341, %c0_342] : memref<32x1024xf32, #tpu.memory_space<vmem>>, vector<8x512xf32>
    %545 = vector.extract_strided_slice %539 {offsets = [0, 0], sizes = [8, 128], strides = [1, 1]} : vector<16x128xf32> to vector<8x128xf32>
    %546 = arith.truncf %545 : vector<8x128xf32> to vector<8x128xbf16>
    %c0_343 = arith.constant 0 : index
    %c0_344 = arith.constant 0 : index
    %547 = vector.load %arg21[%c0_343, %c0_344] : memref<128x512xbf16, #tpu.memory_space<vmem>>, vector<128x512xbf16>
    %cst_345 = arith.constant dense<0.000000e+00> : vector<8x512xf32>
    %548 = tpu.matmul %546, %547, %cst_345 {dimension_numbers = #tpu.dot_dimension_numbers<[1], [0], [0], [1], [0, 0, 1, 1], [], []>} : vector<8x128xbf16>, vector<128x512xbf16>, vector<8x512xf32> -> vector<8x512xf32>
    %549 = arith.addf %544, %548 : vector<8x512xf32>
    %c16_346 = arith.constant 16 : index
    %c512_347 = arith.constant 512 : index
    %550 = vector.load %arg14[%c16_346, %c512_347] : memref<32x1024xf32, #tpu.memory_space<vmem>>, vector<8x512xf32>
    %551 = vector.extract_strided_slice %539 {offsets = [8, 0], sizes = [8, 128], strides = [1, 1]} : vector<16x128xf32> to vector<8x128xf32>
    %552 = arith.truncf %551 : vector<8x128xf32> to vector<8x128xbf16>
    %c0_348 = arith.constant 0 : index
    %c0_349 = arith.constant 0 : index
    %553 = vector.load %arg22[%c0_348, %c0_349] : memref<128x512xbf16, #tpu.memory_space<vmem>>, vector<128x512xbf16>
    %cst_350 = arith.constant dense<0.000000e+00> : vector<8x512xf32>
    %554 = tpu.matmul %552, %553, %cst_350 {dimension_numbers = #tpu.dot_dimension_numbers<[1], [0], [0], [1], [0, 0, 1, 1], [], []>} : vector<8x128xbf16>, vector<128x512xbf16>, vector<8x512xf32> -> vector<8x512xf32>
    %555 = arith.addf %550, %554 : vector<8x512xf32>
    %556 = tpu.concatenate %549, %555 in 0 : vector<8x512xf32>, vector<8x512xf32> -> vector<16x512xf32>
    %557 = vector.extract_strided_slice %556 {offsets = [0, 0], sizes = [16, 128], strides = [1, 1]} : vector<16x512xf32> to vector<16x128xf32>
    %558 = arith.negf %557 : vector<16x128xf32>
    %559 = math.exp %558 : vector<16x128xf32>
    %cst_351 = arith.constant 1.000000e+00 : f32
    %560 = vector.broadcast %cst_351 : f32 to vector<16x128xf32>
    %561 = arith.addf %560, %559 : vector<16x128xf32>
    %562 = arith.divf %560, %561 : vector<16x128xf32>
    %563 = vector.extract_strided_slice %556 {offsets = [0, 128], sizes = [16, 128], strides = [1, 1]} : vector<16x512xf32> to vector<16x128xf32>
    %564 = arith.negf %563 : vector<16x128xf32>
    %565 = math.exp %564 : vector<16x128xf32>
    %cst_352 = arith.constant 1.000000e+00 : f32
    %566 = vector.broadcast %cst_352 : f32 to vector<16x128xf32>
    %567 = arith.addf %566, %565 : vector<16x128xf32>
    %568 = arith.divf %566, %567 : vector<16x128xf32>
    %569 = vector.extract_strided_slice %556 {offsets = [0, 256], sizes = [16, 128], strides = [1, 1]} : vector<16x512xf32> to vector<16x128xf32>
    %570 = math.tanh %569 : vector<16x128xf32>
    %571 = vector.extract_strided_slice %556 {offsets = [0, 384], sizes = [16, 128], strides = [1, 1]} : vector<16x512xf32> to vector<16x128xf32>
    %572 = arith.negf %571 : vector<16x128xf32>
    %573 = math.exp %572 : vector<16x128xf32>
    %cst_353 = arith.constant 1.000000e+00 : f32
    %574 = vector.broadcast %cst_353 : f32 to vector<16x128xf32>
    %575 = arith.addf %574, %573 : vector<16x128xf32>
    %576 = arith.divf %574, %575 : vector<16x128xf32>
    %577 = arith.mulf %568, %537 : vector<16x128xf32>
    %578 = arith.mulf %562, %570 : vector<16x128xf32>
    %579 = arith.addf %577, %578 : vector<16x128xf32>
    %580 = math.tanh %579 : vector<16x128xf32>
    %581 = arith.mulf %576, %580 : vector<16x128xf32>
    %582 = vector.extract_strided_slice %581 {offsets = [0, 0], sizes = [8, 128], strides = [1, 1]} : vector<16x128xf32> to vector<8x128xf32>
    %c8_354 = arith.constant 8 : index
    %c0_355 = arith.constant 0 : index
    %583 = vector.load %arg16[%c8_354, %c0_355] : memref<32x256xf32, #tpu.memory_space<vmem>>, vector<8x128xf32>
    tpu.vector_store %arg16[%c8_354, %c0_355], %582 {strides = array<i32>} : memref<32x256xf32, #tpu.memory_space<vmem>>, vector<8x128xf32>,
    %584 = vector.extract_strided_slice %581 {offsets = [8, 0], sizes = [8, 128], strides = [1, 1]} : vector<16x128xf32> to vector<8x128xf32>
    %c16_356 = arith.constant 16 : index
    %c128_357 = arith.constant 128 : index
    %585 = vector.load %arg16[%c16_356, %c128_357] : memref<32x256xf32, #tpu.memory_space<vmem>>, vector<8x128xf32>
    tpu.vector_store %arg16[%c16_356, %c128_357], %584 {strides = array<i32>} : memref<32x256xf32, #tpu.memory_space<vmem>>, vector<8x128xf32>,
    %c16_358 = arith.constant 16 : index
    %c0_359 = arith.constant 0 : index
    %586 = vector.load %arg14[%c16_358, %c0_359] : memref<32x1024xf32, #tpu.memory_space<vmem>>, vector<8x512xf32>
    %587 = vector.extract_strided_slice %581 {offsets = [0, 0], sizes = [8, 128], strides = [1, 1]} : vector<16x128xf32> to vector<8x128xf32>
    %588 = arith.truncf %587 : vector<8x128xf32> to vector<8x128xbf16>
    %c0_360 = arith.constant 0 : index
    %c0_361 = arith.constant 0 : index
    %589 = vector.load %arg21[%c0_360, %c0_361] : memref<128x512xbf16, #tpu.memory_space<vmem>>, vector<128x512xbf16>
    %cst_362 = arith.constant dense<0.000000e+00> : vector<8x512xf32>
    %590 = tpu.matmul %588, %589, %cst_362 {dimension_numbers = #tpu.dot_dimension_numbers<[1], [0], [0], [1], [0, 0, 1, 1], [], []>} : vector<8x128xbf16>, vector<128x512xbf16>, vector<8x512xf32> -> vector<8x512xf32>
    %591 = arith.addf %586, %590 : vector<8x512xf32>
    %c8_363 = arith.constant 8 : index
    %c512_364 = arith.constant 512 : index
    %592 = vector.load %arg14[%c8_363, %c512_364] : memref<32x1024xf32, #tpu.memory_space<vmem>>, vector<8x512xf32>
    %593 = vector.extract_strided_slice %581 {offsets = [8, 0], sizes = [8, 128], strides = [1, 1]} : vector<16x128xf32> to vector<8x128xf32>
    %594 = arith.truncf %593 : vector<8x128xf32> to vector<8x128xbf16>
    %c0_365 = arith.constant 0 : index
    %c0_366 = arith.constant 0 : index
    %595 = vector.load %arg22[%c0_365, %c0_366] : memref<128x512xbf16, #tpu.memory_space<vmem>>, vector<128x512xbf16>
    %cst_367 = arith.constant dense<0.000000e+00> : vector<8x512xf32>
    %596 = tpu.matmul %594, %595, %cst_367 {dimension_numbers = #tpu.dot_dimension_numbers<[1], [0], [0], [1], [0, 0, 1, 1], [], []>} : vector<8x128xbf16>, vector<128x512xbf16>, vector<8x512xf32> -> vector<8x512xf32>
    %597 = arith.addf %592, %596 : vector<8x512xf32>
    %598 = tpu.concatenate %591, %597 in 0 : vector<8x512xf32>, vector<8x512xf32> -> vector<16x512xf32>
    %599 = vector.extract_strided_slice %598 {offsets = [0, 0], sizes = [16, 128], strides = [1, 1]} : vector<16x512xf32> to vector<16x128xf32>
    %600 = arith.negf %599 : vector<16x128xf32>
    %601 = math.exp %600 : vector<16x128xf32>
    %cst_368 = arith.constant 1.000000e+00 : f32
    %602 = vector.broadcast %cst_368 : f32 to vector<16x128xf32>
    %603 = arith.addf %602, %601 : vector<16x128xf32>
    %604 = arith.divf %602, %603 : vector<16x128xf32>
    %605 = vector.extract_strided_slice %598 {offsets = [0, 128], sizes = [16, 128], strides = [1, 1]} : vector<16x512xf32> to vector<16x128xf32>
    %606 = arith.negf %605 : vector<16x128xf32>
    %607 = math.exp %606 : vector<16x128xf32>
    %cst_369 = arith.constant 1.000000e+00 : f32
    %608 = vector.broadcast %cst_369 : f32 to vector<16x128xf32>
    %609 = arith.addf %608, %607 : vector<16x128xf32>
    %610 = arith.divf %608, %609 : vector<16x128xf32>
    %611 = vector.extract_strided_slice %598 {offsets = [0, 256], sizes = [16, 128], strides = [1, 1]} : vector<16x512xf32> to vector<16x128xf32>
    %612 = math.tanh %611 : vector<16x128xf32>
    %613 = vector.extract_strided_slice %598 {offsets = [0, 384], sizes = [16, 128], strides = [1, 1]} : vector<16x512xf32> to vector<16x128xf32>
    %614 = arith.negf %613 : vector<16x128xf32>
    %615 = math.exp %614 : vector<16x128xf32>
    %cst_370 = arith.constant 1.000000e+00 : f32
    %616 = vector.broadcast %cst_370 : f32 to vector<16x128xf32>
    %617 = arith.addf %616, %615 : vector<16x128xf32>
    %618 = arith.divf %616, %617 : vector<16x128xf32>
    %619 = arith.mulf %610, %579 : vector<16x128xf32>
    %620 = arith.mulf %604, %612 : vector<16x128xf32>
    %621 = arith.addf %619, %620 : vector<16x128xf32>
    %622 = math.tanh %621 : vector<16x128xf32>
    %623 = arith.mulf %618, %622 : vector<16x128xf32>
    %624 = vector.extract_strided_slice %623 {offsets = [0, 0], sizes = [8, 128], strides = [1, 1]} : vector<16x128xf32> to vector<8x128xf32>
    %c16_371 = arith.constant 16 : index
    %c0_372 = arith.constant 0 : index
    %625 = vector.load %arg16[%c16_371, %c0_372] : memref<32x256xf32, #tpu.memory_space<vmem>>, vector<8x128xf32>
    tpu.vector_store %arg16[%c16_371, %c0_372], %624 {strides = array<i32>} : memref<32x256xf32, #tpu.memory_space<vmem>>, vector<8x128xf32>,
    %626 = vector.extract_strided_slice %623 {offsets = [8, 0], sizes = [8, 128], strides = [1, 1]} : vector<16x128xf32> to vector<8x128xf32>
    %c8_373 = arith.constant 8 : index
    %c128_374 = arith.constant 128 : index
    %627 = vector.load %arg16[%c8_373, %c128_374] : memref<32x256xf32, #tpu.memory_space<vmem>>, vector<8x128xf32>
    tpu.vector_store %arg16[%c8_373, %c128_374], %626 {strides = array<i32>} : memref<32x256xf32, #tpu.memory_space<vmem>>, vector<8x128xf32>,
    %c24_375 = arith.constant 24 : index
    %c0_376 = arith.constant 0 : index
    %628 = vector.load %arg14[%c24_375, %c0_376] : memref<32x1024xf32, #tpu.memory_space<vmem>>, vector<8x512xf32>
    %629 = vector.extract_strided_slice %623 {offsets = [0, 0], sizes = [8, 128], strides = [1, 1]} : vector<16x128xf32> to vector<8x128xf32>
    %630 = arith.truncf %629 : vector<8x128xf32> to vector<8x128xbf16>
    %c0_377 = arith.constant 0 : index
    %c0_378 = arith.constant 0 : index
    %631 = vector.load %arg21[%c0_377, %c0_378] : memref<128x512xbf16, #tpu.memory_space<vmem>>, vector<128x512xbf16>
    %cst_379 = arith.constant dense<0.000000e+00> : vector<8x512xf32>
    %632 = tpu.matmul %630, %631, %cst_379 {dimension_numbers = #tpu.dot_dimension_numbers<[1], [0], [0], [1], [0, 0, 1, 1], [], []>} : vector<8x128xbf16>, vector<128x512xbf16>, vector<8x512xf32> -> vector<8x512xf32>
    %633 = arith.addf %628, %632 : vector<8x512xf32>
    %c0_380 = arith.constant 0 : index
    %c512_381 = arith.constant 512 : index
    %634 = vector.load %arg14[%c0_380, %c512_381] : memref<32x1024xf32, #tpu.memory_space<vmem>>, vector<8x512xf32>
    %635 = vector.extract_strided_slice %623 {offsets = [8, 0], sizes = [8, 128], strides = [1, 1]} : vector<16x128xf32> to vector<8x128xf32>
    %636 = arith.truncf %635 : vector<8x128xf32> to vector<8x128xbf16>
    %c0_382 = arith.constant 0 : index
    %c0_383 = arith.constant 0 : index
    %637 = vector.load %arg22[%c0_382, %c0_383] : memref<128x512xbf16, #tpu.memory_space<vmem>>, vector<128x512xbf16>
    %cst_384 = arith.constant dense<0.000000e+00> : vector<8x512xf32>
    %638 = tpu.matmul %636, %637, %cst_384 {dimension_numbers = #tpu.dot_dimension_numbers<[1], [0], [0], [1], [0, 0, 1, 1], [], []>} : vector<8x128xbf16>, vector<128x512xbf16>, vector<8x512xf32> -> vector<8x512xf32>
    %639 = arith.addf %634, %638 : vector<8x512xf32>
    %640 = tpu.concatenate %633, %639 in 0 : vector<8x512xf32>, vector<8x512xf32> -> vector<16x512xf32>
    %641 = vector.extract_strided_slice %640 {offsets = [0, 0], sizes = [16, 128], strides = [1, 1]} : vector<16x512xf32> to vector<16x128xf32>
    %642 = arith.negf %641 : vector<16x128xf32>
    %643 = math.exp %642 : vector<16x128xf32>
    %cst_385 = arith.constant 1.000000e+00 : f32
    %644 = vector.broadcast %cst_385 : f32 to vector<16x128xf32>
    %645 = arith.addf %644, %643 : vector<16x128xf32>
    %646 = arith.divf %644, %645 : vector<16x128xf32>
    %647 = vector.extract_strided_slice %640 {offsets = [0, 128], sizes = [16, 128], strides = [1, 1]} : vector<16x512xf32> to vector<16x128xf32>
    %648 = arith.negf %647 : vector<16x128xf32>
    %649 = math.exp %648 : vector<16x128xf32>
    %cst_386 = arith.constant 1.000000e+00 : f32
    %650 = vector.broadcast %cst_386 : f32 to vector<16x128xf32>
    %651 = arith.addf %650, %649 : vector<16x128xf32>
    %652 = arith.divf %650, %651 : vector<16x128xf32>
    %653 = vector.extract_strided_slice %640 {offsets = [0, 256], sizes = [16, 128], strides = [1, 1]} : vector<16x512xf32> to vector<16x128xf32>
    %654 = math.tanh %653 : vector<16x128xf32>
    %655 = vector.extract_strided_slice %640 {offsets = [0, 384], sizes = [16, 128], strides = [1, 1]} : vector<16x512xf32> to vector<16x128xf32>
    %656 = arith.negf %655 : vector<16x128xf32>
    %657 = math.exp %656 : vector<16x128xf32>
    %cst_387 = arith.constant 1.000000e+00 : f32
    %658 = vector.broadcast %cst_387 : f32 to vector<16x128xf32>
    %659 = arith.addf %658, %657 : vector<16x128xf32>
    %660 = arith.divf %658, %659 : vector<16x128xf32>
    %661 = arith.mulf %652, %621 : vector<16x128xf32>
    %662 = arith.mulf %646, %654 : vector<16x128xf32>
    %663 = arith.addf %661, %662 : vector<16x128xf32>
    %664 = math.tanh %663 : vector<16x128xf32>
    %665 = arith.mulf %660, %664 : vector<16x128xf32>
    %666 = vector.extract_strided_slice %665 {offsets = [0, 0], sizes = [8, 128], strides = [1, 1]} : vector<16x128xf32> to vector<8x128xf32>
    %c24_388 = arith.constant 24 : index
    %c0_389 = arith.constant 0 : index
    %667 = vector.load %arg16[%c24_388, %c0_389] : memref<32x256xf32, #tpu.memory_space<vmem>>, vector<8x128xf32>
    tpu.vector_store %arg16[%c24_388, %c0_389], %666 {strides = array<i32>} : memref<32x256xf32, #tpu.memory_space<vmem>>, vector<8x128xf32>,
    %668 = vector.extract_strided_slice %665 {offsets = [8, 0], sizes = [8, 128], strides = [1, 1]} : vector<16x128xf32> to vector<8x128xf32>
    %c0_390 = arith.constant 0 : index
    %c128_391 = arith.constant 128 : index
    %669 = vector.load %arg16[%c0_390, %c128_391] : memref<32x256xf32, #tpu.memory_space<vmem>>, vector<8x128xf32>
    tpu.vector_store %arg16[%c0_390, %c128_391], %668 {strides = array<i32>} : memref<32x256xf32, #tpu.memory_space<vmem>>, vector<8x128xf32>,
    %c6_i32_392 = arith.constant 6 : i32
    %670 = tpu.memref_slice %arg25[%c6_i32_392] : memref<7x!tpu.dma_semaphore, #tpu.memory_space<semaphore_mem>> -> memref<1x!tpu.dma_semaphore, #tpu.memory_space<semaphore_mem>>
    %671 = tpu.memref_squeeze %670 : memref<1x!tpu.dma_semaphore, #tpu.memory_space<semaphore_mem>> -> memref<!tpu.dma_semaphore, #tpu.memory_space<semaphore_mem>>
    tpu.wait_dma2 semaphore(%671 : memref<!tpu.dma_semaphore, #tpu.memory_space<semaphore_mem>>) src(%arg10 : memref<8x256x128xbf16, #tpu.memory_space<any>>) dst(%arg23 : memref<8x256x128xbf16, #tpu.memory_space<vmem>>)
    %c0_393 = arith.constant 0 : index
    %c0_394 = arith.constant 0 : index
    %672 = vector.load %arg16[%c0_393, %c0_394] : memref<32x256xf32, #tpu.memory_space<vmem>>, vector<32x256xf32>
    %673 = vector.shape_cast %672 : vector<32x256xf32> to vector<4x8x256xf32>
    %cst_395 = arith.constant 0.000000e+00 : f32
    %674 = vector.broadcast %cst_395 : f32 to vector<4x128xf32>
    %675 = vector.extract_strided_slice %673 {offsets = [0, 0, 0], sizes = [4, 1, 256], strides = [1, 1, 1]} : vector<4x8x256xf32> to vector<4x1x256xf32>
    %676 = vector.shape_cast %675 : vector<4x1x256xf32> to vector<4x256xf32>
    %677 = arith.truncf %676 : vector<4x256xf32> to vector<4x256xbf16>
    %c0_396 = arith.constant 0 : index
    %c0_397 = arith.constant 0 : index
    %c0_398 = arith.constant 0 : index
    %678 = vector.load %arg23[%c0_396, %c0_397, %c0_398] : memref<8x256x128xbf16, #tpu.memory_space<vmem>>, vector<1x256x128xbf16>
    %679 = vector.shape_cast %678 : vector<1x256x128xbf16> to vector<256x128xbf16>
    %cst_399 = arith.constant dense<0.000000e+00> : vector<4x128xf32>
    %680 = tpu.matmul %677, %679, %cst_399 {dimension_numbers = #tpu.dot_dimension_numbers<[1], [0], [0], [1], [0, 0, 1, 1], [], []>} : vector<4x256xbf16>, vector<256x128xbf16>, vector<4x128xf32> -> vector<4x128xf32>
    %681 = arith.addf %674, %680 : vector<4x128xf32>
    %682 = vector.extract_strided_slice %673 {offsets = [0, 1, 0], sizes = [4, 1, 256], strides = [1, 1, 1]} : vector<4x8x256xf32> to vector<4x1x256xf32>
    %683 = vector.shape_cast %682 : vector<4x1x256xf32> to vector<4x256xf32>
    %684 = arith.truncf %683 : vector<4x256xf32> to vector<4x256xbf16>
    %c1_400 = arith.constant 1 : index
    %c0_401 = arith.constant 0 : index
    %c0_402 = arith.constant 0 : index
    %685 = vector.load %arg23[%c1_400, %c0_401, %c0_402] : memref<8x256x128xbf16, #tpu.memory_space<vmem>>, vector<1x256x128xbf16>
    %686 = vector.shape_cast %685 : vector<1x256x128xbf16> to vector<256x128xbf16>
    %cst_403 = arith.constant dense<0.000000e+00> : vector<4x128xf32>
    %687 = tpu.matmul %684, %686, %cst_403 {dimension_numbers = #tpu.dot_dimension_numbers<[1], [0], [0], [1], [0, 0, 1, 1], [], []>} : vector<4x256xbf16>, vector<256x128xbf16>, vector<4x128xf32> -> vector<4x128xf32>
    %688 = arith.addf %681, %687 : vector<4x128xf32>
    %689 = vector.extract_strided_slice %673 {offsets = [0, 2, 0], sizes = [4, 1, 256], strides = [1, 1, 1]} : vector<4x8x256xf32> to vector<4x1x256xf32>
    %690 = vector.shape_cast %689 : vector<4x1x256xf32> to vector<4x256xf32>
    %691 = arith.truncf %690 : vector<4x256xf32> to vector<4x256xbf16>
    %c2_404 = arith.constant 2 : index
    %c0_405 = arith.constant 0 : index
    %c0_406 = arith.constant 0 : index
    %692 = vector.load %arg23[%c2_404, %c0_405, %c0_406] : memref<8x256x128xbf16, #tpu.memory_space<vmem>>, vector<1x256x128xbf16>
    %693 = vector.shape_cast %692 : vector<1x256x128xbf16> to vector<256x128xbf16>
    %cst_407 = arith.constant dense<0.000000e+00> : vector<4x128xf32>
    %694 = tpu.matmul %691, %693, %cst_407 {dimension_numbers = #tpu.dot_dimension_numbers<[1], [0], [0], [1], [0, 0, 1, 1], [], []>} : vector<4x256xbf16>, vector<256x128xbf16>, vector<4x128xf32> -> vector<4x128xf32>
    %695 = arith.addf %688, %694 : vector<4x128xf32>
    %696 = vector.extract_strided_slice %673 {offsets = [0, 3, 0], sizes = [4, 1, 256], strides = [1, 1, 1]} : vector<4x8x256xf32> to vector<4x1x256xf32>
    %697 = vector.shape_cast %696 : vector<4x1x256xf32> to vector<4x256xf32>
    %698 = arith.truncf %697 : vector<4x256xf32> to vector<4x256xbf16>
    %c3_408 = arith.constant 3 : index
    %c0_409 = arith.constant 0 : index
    %c0_410 = arith.constant 0 : index
    %699 = vector.load %arg23[%c3_408, %c0_409, %c0_410] : memref<8x256x128xbf16, #tpu.memory_space<vmem>>, vector<1x256x128xbf16>
    %700 = vector.shape_cast %699 : vector<1x256x128xbf16> to vector<256x128xbf16>
    %cst_411 = arith.constant dense<0.000000e+00> : vector<4x128xf32>
    %701 = tpu.matmul %698, %700, %cst_411 {dimension_numbers = #tpu.dot_dimension_numbers<[1], [0], [0], [1], [0, 0, 1, 1], [], []>} : vector<4x256xbf16>, vector<256x128xbf16>, vector<4x128xf32> -> vector<4x128xf32>
    %702 = arith.addf %695, %701 : vector<4x128xf32>
    %703 = vector.extract_strided_slice %673 {offsets = [0, 4, 0], sizes = [4, 1, 256], strides = [1, 1, 1]} : vector<4x8x256xf32> to vector<4x1x256xf32>
    %704 = vector.shape_cast %703 : vector<4x1x256xf32> to vector<4x256xf32>
    %705 = arith.truncf %704 : vector<4x256xf32> to vector<4x256xbf16>
    %c4_412 = arith.constant 4 : index
    %c0_413 = arith.constant 0 : index
    %c0_414 = arith.constant 0 : index
    %706 = vector.load %arg23[%c4_412, %c0_413, %c0_414] : memref<8x256x128xbf16, #tpu.memory_space<vmem>>, vector<1x256x128xbf16>
    %707 = vector.shape_cast %706 : vector<1x256x128xbf16> to vector<256x128xbf16>
    %cst_415 = arith.constant dense<0.000000e+00> : vector<4x128xf32>
    %708 = tpu.matmul %705, %707, %cst_415 {dimension_numbers = #tpu.dot_dimension_numbers<[1], [0], [0], [1], [0, 0, 1, 1], [], []>} : vector<4x256xbf16>, vector<256x128xbf16>, vector<4x128xf32> -> vector<4x128xf32>
    %709 = arith.addf %702, %708 : vector<4x128xf32>
    %710 = vector.extract_strided_slice %673 {offsets = [0, 5, 0], sizes = [4, 1, 256], strides = [1, 1, 1]} : vector<4x8x256xf32> to vector<4x1x256xf32>
    %711 = vector.shape_cast %710 : vector<4x1x256xf32> to vector<4x256xf32>
    %712 = arith.truncf %711 : vector<4x256xf32> to vector<4x256xbf16>
    %c5_416 = arith.constant 5 : index
    %c0_417 = arith.constant 0 : index
    %c0_418 = arith.constant 0 : index
    %713 = vector.load %arg23[%c5_416, %c0_417, %c0_418] : memref<8x256x128xbf16, #tpu.memory_space<vmem>>, vector<1x256x128xbf16>
    %714 = vector.shape_cast %713 : vector<1x256x128xbf16> to vector<256x128xbf16>
    %cst_419 = arith.constant dense<0.000000e+00> : vector<4x128xf32>
    %715 = tpu.matmul %712, %714, %cst_419 {dimension_numbers = #tpu.dot_dimension_numbers<[1], [0], [0], [1], [0, 0, 1, 1], [], []>} : vector<4x256xbf16>, vector<256x128xbf16>, vector<4x128xf32> -> vector<4x128xf32>
    %716 = arith.addf %709, %715 : vector<4x128xf32>
    %717 = vector.extract_strided_slice %673 {offsets = [0, 6, 0], sizes = [4, 1, 256], strides = [1, 1, 1]} : vector<4x8x256xf32> to vector<4x1x256xf32>
    %718 = vector.shape_cast %717 : vector<4x1x256xf32> to vector<4x256xf32>
    %719 = arith.truncf %718 : vector<4x256xf32> to vector<4x256xbf16>
    %c6_420 = arith.constant 6 : index
    %c0_421 = arith.constant 0 : index
    %c0_422 = arith.constant 0 : index
    %720 = vector.load %arg23[%c6_420, %c0_421, %c0_422] : memref<8x256x128xbf16, #tpu.memory_space<vmem>>, vector<1x256x128xbf16>
    %721 = vector.shape_cast %720 : vector<1x256x128xbf16> to vector<256x128xbf16>
    %cst_423 = arith.constant dense<0.000000e+00> : vector<4x128xf32>
    %722 = tpu.matmul %719, %721, %cst_423 {dimension_numbers = #tpu.dot_dimension_numbers<[1], [0], [0], [1], [0, 0, 1, 1], [], []>} : vector<4x256xbf16>, vector<256x128xbf16>, vector<4x128xf32> -> vector<4x128xf32>
    %723 = arith.addf %716, %722 : vector<4x128xf32>
    %724 = vector.extract_strided_slice %673 {offsets = [0, 7, 0], sizes = [4, 1, 256], strides = [1, 1, 1]} : vector<4x8x256xf32> to vector<4x1x256xf32>
    %725 = vector.shape_cast %724 : vector<4x1x256xf32> to vector<4x256xf32>
    %726 = arith.truncf %725 : vector<4x256xf32> to vector<4x256xbf16>
    %c7_424 = arith.constant 7 : index
    %c0_425 = arith.constant 0 : index
    %c0_426 = arith.constant 0 : index
    %727 = vector.load %arg23[%c7_424, %c0_425, %c0_426] : memref<8x256x128xbf16, #tpu.memory_space<vmem>>, vector<1x256x128xbf16>
    %728 = vector.shape_cast %727 : vector<1x256x128xbf16> to vector<256x128xbf16>
    %cst_427 = arith.constant dense<0.000000e+00> : vector<4x128xf32>
    %729 = tpu.matmul %726, %728, %cst_427 {dimension_numbers = #tpu.dot_dimension_numbers<[1], [0], [0], [1], [0, 0, 1, 1], [], []>} : vector<4x256xbf16>, vector<256x128xbf16>, vector<4x128xf32> -> vector<4x128xf32>
    %730 = arith.addf %723, %729 : vector<4x128xf32>
    %c0_428 = arith.constant 0 : index
    %c0_429 = arith.constant 0 : index
    %731 = vector.load %arg11[%c0_428, %c0_429] : memref<1x128xf32, #tpu.memory_space<vmem>>, vector<1x128xf32>
    %732 = vector.broadcast %731 : vector<1x128xf32> to vector<4x128xf32>
    %733 = arith.addf %730, %732 : vector<4x128xf32>
    %734 = tpu.iota {dimensions = array<i32: 1>} : vector<4x128xi32>
    %c35_i32 = arith.constant 35 : i32
    %735 = vector.broadcast %c35_i32 : i32 to vector<4x128xi32>
    %736 = arith.cmpi slt, %734, %735 : vector<4x128xi32>
    %cst_430 = arith.constant -1.000000e+30 : f32
    %737 = vector.broadcast %cst_430 : f32 to vector<4x128xf32>
    %738 = arith.select %736, %733, %737 : vector<4x128xi1>, vector<4x128xf32>
    %cst_431 = arith.constant dense<0xFF800000> : vector<4xf32>
    %739 = vector.multi_reduction <maximumf>, %738, %cst_431 [1] : vector<4x128xf32> to vector<4xf32>
    %740 = vector.shape_cast %739 : vector<4xf32> to vector<4x1xf32>
    %741 = vector.broadcast %740 : vector<4x1xf32> to vector<4x128xf32>
    %742 = arith.subf %738, %741 : vector<4x128xf32>
    %743 = math.exp %742 : vector<4x128xf32>
    %cst_432 = arith.constant dense<0.000000e+00> : vector<4xf32>
    %744 = vector.multi_reduction <add>, %743, %cst_432 [1] : vector<4x128xf32> to vector<4xf32>
    %745 = vector.shape_cast %744 : vector<4xf32> to vector<4x1xf32>
    %746 = vector.broadcast %745 : vector<4x1xf32> to vector<4x128xf32>
    %747 = arith.divf %743, %746 : vector<4x128xf32>
    %c0_433 = arith.constant 0 : index
    %c0_434 = arith.constant 0 : index
    %748 = vector.load %arg12[%c0_433, %c0_434] : memref<4x128xf32, #tpu.memory_space<vmem>>, vector<4x128xf32>
    tpu.vector_store %arg12[%c0_433, %c0_434], %747 {strides = array<i32>} : memref<4x128xf32, #tpu.memory_space<vmem>>, vector<4x128xf32>,
    return
  }
}

</mosaic_0001>

<bundles_post_ra>
// kernel: net_forward.1
= control target key start
LH: loop header
LB: loop body
LE: loop exit
PB: predicated region body
PF: predicated region fallthrough
CT: control target
= control target key end

     0   :  { %17 = vsyncpa [#allocation18], 0  ;;  %s8562_s0 = inlined_call_operand.vmem [shape: s32[32], index: 0, kind: input, shape index: {}]   ;;  %s8563_s1 = inlined_call_operand.hbm [shape: f32[10000,128], index: 1, kind: input, shape index: {}]   ;;  %s8564_s2 = inlined_call_operand.hbm [shape: bf16[128,1024], index: 2, kind: input, shape index: {}]   ;;  %s8565_s3 = inlined_call_operand.hbm [shape: bf16[128,512], index: 3, kind: input, shape index: {}]   ;;  %s8566_s4 = inlined_call_operand.hbm [shape: bf16[128,512], index: 4, kind: input, shape index: {}]   ;;  %s8567_s5 = inlined_call_operand.hbm [shape: f32[1,1024], index: 5, kind: input, shape index: {}]   ;;  %s8568_s6 = inlined_call_operand.hbm [shape: bf16[256,1024], index: 6, kind: input, shape index: {}]   ;;  %s8569_s7 = inlined_call_operand.hbm [shape: bf16[128,512], index: 7, kind: input, shape index: {}]   ;;  %s8570_s8 = inlined_call_operand.hbm [shape: bf16[128,512], index: 8, kind: input, shape index: {}]   ;;  %s8571_s9 = inlined_call_operand.hbm [shape: f32[1,1024], index: 9, kind: input, shape index: {}]   ;;  %s8572_s10 = inlined_call_operand.hbm [shape: bf16[8,256,128], index: 10, kind: input, shape index: {}]   ;;  %s8573_s11 = inlined_call_operand.hbm [shape: f32[1,128], index: 11, kind: input, shape index: {}]   ;;  %s8574_s12 = inlined_call_operand.hbm [shape: f32[4,128], index: 12, kind: output, shape index: {}]  }
   0x1   :  { %18 = vsyncpa [#allocation16], 0 }
   0x2   :  { %19 = vsyncpa [#allocation21], 0 }
   0x3   :  { %20 = vsyncpa [#allocation17], 0  ;;  %s27_s23 = sshll.u32 %s8562_s0, 4  ;;  %s6473_s24 = smov [#allocation20]   ;;  %s28_s23 = int_to_ptr.vmem [resolvable:$true] %s27_s23 }
   0x4   :  { %s47_s25 = sshll.u32 %s6473_s24, 4  ;;  %s5497_s28 = scalar_lea.hbm %s8571_s9, 128  ;;  %s48_s25 = int_to_ptr.vmem [resolvable:$true] %s47_s25 }
   0x5   :  { %p5498_p0 = scmp.ne.s32.totalorder %s8571_s9, %s5497_s28  ;;  %p5501_p1 = scmp.lt.u32.totalorder %s5497_s28, %s8571_s9 }
   0x7   :  { %p5503_p2 = pnand %p5501_p1, %p5498_p0 }
   0x9   :  { %5506 = shalt.err (!%p5503_p2)
}
   0xa   :  { %s5507_s15 = scalar_lea.vmem %s48_s25, 128  ;;  %p5512_p4 = scmp.lt.s32.totalorder %s48_s25, %s48_s25 }
   0xb   :  { %p5508_p3 = scmp.ne.s32.totalorder %s48_s25, %s5507_s15  ;;  %p5513_p5 = scmp.lt.s32.totalorder %s5507_s15, %s5507_s15 }
   0xd   :  { %p5514_p6 = por %p5513_p5, %p5512_p4 }
   0xf   :  { %p5515_p7 = pnand %p5514_p6, %p5508_p3 }
  0x11   :  { %5518 = shalt.err (!%p5515_p7)
}
  0x12   :  { %50 = dma.hbm_to_vmem [thread:$0]  %s8571_s9, 128, %s48_s25, [#allocation21]  }
  0x13   :  { %s5519_s17 = scalar_lea.vmem %s28_s23, 16  ;;  %p5524_p9 = scmp.lt.s32.totalorder %s28_s23, %s28_s23 }
  0x14   :  { %p5520_p8 = scmp.ne.s32.totalorder %s28_s23, %s5519_s17  ;;  %p5525_p10 = scmp.lt.s32.totalorder %s5519_s17, %s5519_s17 }
  0x16   :  { %p5526_p11 = por %p5525_p10, %p5524_p9 }
  0x18   :  { %p5527_p12 = pnand %p5526_p11, %p5520_p8 }
  0x1a   :  { %5530 = shalt.err (!%p5527_p12)
}
  0x1b   :  { %s6474_s18 = smov [#allocation15]   ;;  %s6475_s19 = smov [#allocation19]  }
  0x1c   :  { %30 = dma.vmem_to_smem %s28_s23, 16, %s6474_s18, [#allocation18]  }
  0x1d   :  { %s37_s20 = sshll.u32 %s6475_s19, 4  ;;  %s6476_s21 = smov [#allocation22]   ;;  %s38_s20 = int_to_ptr.vmem [resolvable:$true] %s37_s20 }
  0x1e   :  { %s57_s22 = sshll.u32 %s6476_s21, 4  ;;  %s5531_s27 = scalar_lea.hbm %s8567_s5, 128  ;;  %s58_s22 = int_to_ptr.vmem [resolvable:$true] %s57_s22 }
  0x1f   :  { %p5532_p13 = scmp.ne.s32.totalorder %s8567_s5, %s5531_s27  ;;  %p5535_p0 = scmp.lt.u32.totalorder %s5531_s27, %s8567_s5 }
  0x21   :  { %p5537_p1 = pnand %p5535_p0, %p5532_p13 }
  0x23   :  { %5540 = shalt.err (!%p5537_p1)
}
  0x24   :  { %s5541_s23 = scalar_lea.vmem %s38_s20, 128  ;;  %p5546_p3 = scmp.lt.s32.totalorder %s38_s20, %s38_s20 }
  0x25   :  { %p5542_p2 = scmp.ne.s32.totalorder %s38_s20, %s5541_s23  ;;  %p5547_p4 = scmp.lt.s32.totalorder %s5541_s23, %s5541_s23 }
  0x27   :  { %p5548_p5 = por %p5547_p4, %p5546_p3 }
  0x29   :  { %p5549_p6 = pnand %p5548_p5, %p5542_p2 }
  0x2b   :  { %5552 = shalt.err (!%p5549_p6)
}
  0x2c   :  { %40 = dma.hbm_to_vmem [thread:$0]  %s8567_s5, 128, %s38_s20, [#allocation16]  }
  0x2d   :  { %s5553_s0 = scalar_lea.hbm %s8573_s11, 16 }
  0x2e   :  { %p5554_p7 = scmp.ne.s32.totalorder %s8573_s11, %s5553_s0  ;;  %p5557_p8 = scmp.lt.u32.totalorder %s5553_s0, %s8573_s11 }
  0x30   :  { %p5559_p9 = pnand %p5557_p8, %p5554_p7 }
  0x32   :  { %5562 = shalt.err (!%p5559_p9)
}
  0x33   :  { %s5563_s21 = scalar_lea.vmem %s58_s22, 16  ;;  %s5567_s24 = scalar_lea.vmem %s58_s22, 32 }
  0x34   :  { %p5564_p10 = scmp.ne.s32.totalorder %s58_s22, %s5563_s21  ;;  %p5568_p11 = scmp.lt.s32.totalorder %s58_s22, %s58_s22 }
  0x35   :  { %p5569_p12 = scmp.lt.s32.totalorder %s5567_s24, %s5563_s21 }
  0x37   :  { %p5570_p13 = por %p5569_p12, %p5568_p11 }
  0x39   :  { %p5571_p0 = pnand %p5570_p13, %p5564_p10 }
  0x3b   :  { %5574 = shalt.err (!%p5571_p0)
}
  0x3c   :  { %60 = dma.hbm_to_vmem [thread:$0]  %s8573_s11, 16, %s58_s22, [#allocation21]  }
  0x3d   :  { %6387 = dma.done.wait [#allocation18], 16  }
  0x3e   :  { %6388 = vsyncadd [#allocation18], 4294967280 }
  0x3f   :  { %6389 = dma.done.wait [#allocation16], 128  }
  0x40   :  { %6390 = vsyncadd [#allocation16], 4294967168 }
  0x41   :  { %6391 = dma.done.wait [#allocation21], 144  }
  0x42   :  { %6392 = vsyncadd [#allocation21], 4294967152 }
  0x43   :  { %73 = sfence }
  0x44   :  { %s75_s26 = sld [smem:[#allocation15]]  ;;  %s6477_s27 = smov [#allocation2]  }
  0x45   :  { %s85_s9 = sshll.u32 %s6477_s27, 4  ;;  %s6642_s25 = sld [smem:[#allocation15 + $0x1]]  ;;  %s6644_s9 = int_to_ptr.vmem [resolvable:$true] %s85_s9 }
  0x46   :  { %s6478_s28 = smov [#allocation2 + $0x1]   ;;  %s6646_s23 = sld [smem:[#allocation15 + $0x2]] }
  0x47   :  { %s101_s29 = sshll.u32 %s6478_s28, 4  ;;  %s6479_s11 = smov [#allocation2 + $0x2]   ;;  %s6648_s29 = int_to_ptr.vmem [resolvable:$true] %s101_s29 }
  0x48   :  { %s117_s22 = sshll.u32 %s6479_s11, 4  ;;  %s6650_s30 = sld [smem:[#allocation15 + $0x3]]  ;;  %s6652_s22 = int_to_ptr.vmem [resolvable:$true] %s117_s22 }
  0x49   :  { %s6661_s21 = scalar_lea.hbm %s8563_s1, 160000 }
  0x4a   :  { %s4857_s13 = sshll.u32 %s75_s26, 4 }
  0x4b   :  { %s77_s0 = scalar_lea.hbm %s8563_s1, %s4857_s13  ;;  %s4859_s16 = sshll.u32 %s6642_s25, 4 }
  0x4c   :  { %s5575_s17 = scalar_lea.hbm %s77_s0, 16  ;;  %p5578_p2 = scmp.lt.u32.totalorder %s77_s0, %s8563_s1 }
  0x4d   :  { %p5576_p1 = scmp.ne.s32.totalorder %s77_s0, %s5575_s17  ;;  %p5579_p3 = scmp.lt.u32.totalorder %s6661_s21, %s5575_s17 }
  0x4e   :  { %p5581_p5 = scmp.lt.u32.totalorder %s5575_s17, %s77_s0 }
  0x4f   :  { %p5580_p4 = por %p5579_p3, %p5578_p2 }
  0x51   :  { %p5582_p6 = por %p5581_p5, %p5580_p4 }
  0x53   :  { %p5583_p7 = pnand %p5582_p6, %p5576_p1 }
  0x55   :  { %5586 = shalt.err (!%p5583_p7)  }
  0x56   :  { %s5587_s20 = scalar_lea.vmem %s6644_s9, 16  ;;  %s6670_s26 = scalar_lea.vmem %s6644_s9, 512 }
  0x57   :  { %p5588_p8 = scmp.ne.s32.totalorder %s6644_s9, %s5587_s20  ;;  %p5592_p9 = scmp.lt.s32.totalorder %s6644_s9, %s6644_s9 }
  0x58   :  { %p5593_p10 = scmp.lt.s32.totalorder %s6670_s26, %s5587_s20 }
  0x5a   :  { %p5594_p11 = por %p5593_p10, %p5592_p9 }
  0x5c   :  { %p5595_p12 = pnand %p5594_p11, %p5588_p8 }
  0x5e   :  { %5598 = shalt.err (!%p5595_p12)  }
  0x5f   :  { %88 = dma.hbm_to_vmem [thread:$0]  %s77_s0, 16, %s6644_s9, [#allocation13] }
  0x60   :  { %s91_s28 = scalar_lea.hbm %s8563_s1, %s4859_s16  ;;  %s4861_s11 = sshll.u32 %s6646_s23, 4 }
  0x61   :  { %s5599_s13 = scalar_lea.hbm %s91_s28, 16  ;;  %p5602_p0 = scmp.lt.u32.totalorder %s91_s28, %s8563_s1 }
  0x62   :  { %p5600_p13 = scmp.ne.s32.totalorder %s91_s28, %s5599_s13  ;;  %p5603_p1 = scmp.lt.u32.totalorder %s6661_s21, %s5599_s13 }
  0x63   :  { %p5605_p3 = scmp.lt.u32.totalorder %s5599_s13, %s91_s28 }
  0x64   :  { %p5604_p2 = por %p5603_p1, %p5602_p0 }
  0x66   :  { %p5606_p4 = por %p5605_p3, %p5604_p2 }
  0x68   :  { %p5607_p5 = pnand %p5606_p4, %p5600_p13 }
  0x6a   :  { %5610 = shalt.err (!%p5607_p5)  }
  0x6b   :  { %s5611_s0 = scalar_lea.vmem %s6648_s29, 16  ;;  %p5616_p7 = scmp.lt.s32.totalorder %s6648_s29, %s6644_s9 }
  0x6c   :  { %p5612_p6 = scmp.ne.s32.totalorder %s6648_s29, %s5611_s0  ;;  %p5617_p8 = scmp.lt.s32.totalorder %s6670_s26, %s5611_s0 }
  0x6e   :  { %p5618_p9 = por %p5617_p8, %p5616_p7 }
  0x70   :  { %p5619_p10 = pnand %p5618_p9, %p5612_p6 }
  0x72   :  { %5622 = shalt.err (!%p5619_p10)  }
  0x73   :  { %104 = dma.hbm_to_vmem [thread:$0]  %s91_s28, 16, %s6648_s29, [#allocation13 + $0x1] }
  0x74   :  { %s107_s17 = scalar_lea.hbm %s8563_s1, %s4861_s11  ;;  %s4863_s18 = sshll.u32 %s6650_s30, 4 }
  0x75   :  { %s5623_s19 = scalar_lea.hbm %s107_s17, 16  ;;  %p5626_p12 = scmp.lt.u32.totalorder %s107_s17, %s8563_s1 }
  0x76   :  { %p5624_p11 = scmp.ne.s32.totalorder %s107_s17, %s5623_s19  ;;  %p5627_p13 = scmp.lt.u32.totalorder %s6661_s21, %s5623_s19 }
  0x77   :  { %p5629_p1 = scmp.lt.u32.totalorder %s5623_s19, %s107_s17 }
  0x78   :  { %p5628_p0 = por %p5627_p13, %p5626_p12 }
  0x7a   :  { %p5630_p2 = por %p5629_p1, %p5628_p0 }
  0x7c   :  { %p5631_p3 = pnand %p5630_p2, %p5624_p11 }
  0x7e   :  { %5634 = shalt.err (!%p5631_p3)  }
  0x7f   :  { %s5635_s29 = scalar_lea.vmem %s6652_s22, 16  ;;  %p5640_p5 = scmp.lt.s32.totalorder %s6652_s22, %s6644_s9 }
  0x80   :  { %p5636_p4 = scmp.ne.s32.totalorder %s6652_s22, %s5635_s29  ;;  %p5641_p6 = scmp.lt.s32.totalorder %s6670_s26, %s5635_s29 }
  0x82   :  { %p5642_p7 = por %p5641_p6, %p5640_p5 }
  0x84   :  { %p5643_p8 = pnand %p5642_p7, %p5636_p4 }
  0x86   :  { %5646 = shalt.err (!%p5643_p8)  }
  0x87   :  { %120 = dma.hbm_to_vmem [thread:$0]  %s107_s17, 16, %s6652_s22, [#allocation13 + $0x2] }
  0x88   :  { %s123_s27 = scalar_lea.hbm %s8563_s1, %s4863_s18  ;;  %s6480_s25 = smov [#allocation2 + $0x3]  }
  0x89   :  { %s133_s28 = sshll.u32 %s6480_s25, 4  ;;  %s6707_s11 = sld [smem:[#allocation15 + $0x4]]  ;;  %s134_s28 = int_to_ptr.vmem [resolvable:$true] %s133_s28 }
  0x8a   :  { %s5647_s13 = scalar_lea.hbm %s123_s27, 16  ;;  %p5650_p10 = scmp.lt.u32.totalorder %s123_s27, %s8563_s1 }
  0x8b   :  { %p5648_p9 = scmp.ne.s32.totalorder %s123_s27, %s5647_s13  ;;  %p5651_p11 = scmp.lt.u32.totalorder %s6661_s21, %s5647_s13 }
  0x8c   :  { %p5653_p13 = scmp.lt.u32.totalorder %s5647_s13, %s123_s27 }
  0x8d   :  { %p5652_p12 = por %p5651_p11, %p5650_p10 }
  0x8f   :  { %p5654_p0 = por %p5653_p13, %p5652_p12 }
  0x91   :  { %p5655_p1 = pnand %p5654_p0, %p5648_p9 }
  0x93   :  { %5658 = shalt.err (!%p5655_p1)  }
  0x94   :  { %s5659_s22 = scalar_lea.vmem %s134_s28, 16  ;;  %p5664_p3 = scmp.lt.s32.totalorder %s134_s28, %s6644_s9 }
  0x95   :  { %p5660_p2 = scmp.ne.s32.totalorder %s134_s28, %s5659_s22  ;;  %p5665_p4 = scmp.lt.s32.totalorder %s6670_s26, %s5659_s22 }
  0x97   :  { %p5666_p5 = por %p5665_p4, %p5664_p3 }
  0x99   :  { %p5667_p6 = pnand %p5666_p5, %p5660_p2 }
  0x9b   :  { %5670 = shalt.err (!%p5667_p6)  }
  0x9c   :  { %136 = dma.hbm_to_vmem [thread:$0]  %s123_s27, 16, %s134_s28, [#allocation13 + $0x3] }
  0x9d   :  { %s6481_s0 = smov [#allocation2 + $0x4]   ;;  %s6715_s16 = sld [smem:[#allocation15 + $0x5]] }
  0x9e   :  { %s149_s23 = sshll.u32 %s6481_s0, 4  ;;  %s6482_s17 = smov [#allocation2 + $0x5]   ;;  %s150_s23 = int_to_ptr.vmem [resolvable:$true] %s149_s23 }
  0x9f   :  { %s165_s18 = sshll.u32 %s6482_s17, 4  ;;  %s6717_s19 = sld [smem:[#allocation15 + $0x6]]  ;;  %s6720_s18 = int_to_ptr.vmem [resolvable:$true] %s165_s18 }
  0xa0   :  { %s4865_s24 = sshll.u32 %s6707_s11, 4 }
  0xa1   :  { %s139_s30 = scalar_lea.hbm %s8563_s1, %s4865_s24 }
  0xa2   :  { %s5671_s20 = scalar_lea.hbm %s139_s30, 16  ;;  %p5674_p8 = scmp.lt.u32.totalorder %s139_s30, %s8563_s1 }
  0xa3   :  { %p5672_p7 = scmp.ne.s32.totalorder %s139_s30, %s5671_s20  ;;  %p5675_p9 = scmp.lt.u32.totalorder %s6661_s21, %s5671_s20 }
  0xa4   :  { %p5677_p11 = scmp.lt.u32.totalorder %s5671_s20, %s139_s30 }
  0xa5   :  { %p5676_p10 = por %p5675_p9, %p5674_p8 }
  0xa7   :  { %p5678_p12 = por %p5677_p11, %p5676_p10 }
  0xa9   :  { %p5679_p13 = pnand %p5678_p12, %p5672_p7 }
  0xab   :  { %5682 = shalt.err (!%p5679_p13)  }
  0xac   :  { %s5683_s28 = scalar_lea.vmem %s150_s23, 16  ;;  %p5688_p1 = scmp.lt.s32.totalorder %s150_s23, %s6644_s9 }
  0xad   :  { %p5684_p0 = scmp.ne.s32.totalorder %s150_s23, %s5683_s28  ;;  %p5689_p2 = scmp.lt.s32.totalorder %s6670_s26, %s5683_s28 }
  0xaf   :  { %p5690_p3 = por %p5689_p2, %p5688_p1 }
  0xb1   :  { %p5691_p4 = pnand %p5690_p3, %p5684_p0 }
  0xb3   :  { %5694 = shalt.err (!%p5691_p4)  }
  0xb4   :  { %152 = dma.hbm_to_vmem [thread:$0]  %s139_s30, 16, %s150_s23, [#allocation13 + $0x4] }
  0xb5   :  { %s4867_s11 = sshll.u32 %s6715_s16, 4  ;;  %s6483_s13 = smov [#allocation2 + $0x6]  }
  0xb6   :  { %s181_s14 = sshll.u32 %s6483_s13, 4  ;;  %s155_s0 = scalar_lea.hbm %s8563_s1, %s4867_s11  ;;  %s6735_s14 = int_to_ptr.vmem [resolvable:$true] %s181_s14 }
  0xb7   :  { %s5695_s17 = scalar_lea.hbm %s155_s0, 16  ;;  %p5698_p6 = scmp.lt.u32.totalorder %s155_s0, %s8563_s1 }
  0xb8   :  { %p5696_p5 = scmp.ne.s32.totalorder %s155_s0, %s5695_s17  ;;  %p5699_p7 = scmp.lt.u32.totalorder %s6661_s21, %s5695_s17 }
  0xb9   :  { %p5701_p9 = scmp.lt.u32.totalorder %s5695_s17, %s155_s0 }
  0xba   :  { %p5700_p8 = por %p5699_p7, %p5698_p6 }
  0xbc   :  { %p5702_p10 = por %p5701_p9, %p5700_p8 }
  0xbe   :  { %p5703_p11 = pnand %p5702_p10, %p5696_p5 }
  0xc0   :  { %5706 = shalt.err (!%p5703_p11)  }
  0xc1   :  { %s5707_s23 = scalar_lea.vmem %s6720_s18, 16  ;;  %p5712_p13 = scmp.lt.s32.totalorder %s6720_s18, %s6644_s9 }
  0xc2   :  { %p5708_p12 = scmp.ne.s32.totalorder %s6720_s18, %s5707_s23  ;;  %p5713_p0 = scmp.lt.s32.totalorder %s6670_s26, %s5707_s23 }
  0xc4   :  { %p5714_p1 = por %p5713_p0, %p5712_p13 }
  0xc6   :  { %p5715_p2 = pnand %p5714_p1, %p5708_p12 }
  0xc8   :  { %5718 = shalt.err (!%p5715_p2)  }
  0xc9   :  { %168 = dma.hbm_to_vmem [thread:$0]  %s155_s0, 16, %s6720_s18, [#allocation13 + $0x5] }
  0xca   :  { %s4869_s16 = sshll.u32 %s6717_s19, 4  ;;  %s6748_s29 = sld [smem:[#allocation15 + $0x7]] }
  0xcb   :  { %s171_s27 = scalar_lea.hbm %s8563_s1, %s4869_s16 }
  0xcc   :  { %s5719_s25 = scalar_lea.hbm %s171_s27, 16  ;;  %p5722_p4 = scmp.lt.u32.totalorder %s171_s27, %s8563_s1 }
  0xcd   :  { %p5720_p3 = scmp.ne.s32.totalorder %s171_s27, %s5719_s25  ;;  %p5723_p5 = scmp.lt.u32.totalorder %s6661_s21, %s5719_s25 }
  0xce   :  { %p5725_p7 = scmp.lt.u32.totalorder %s5719_s25, %s171_s27 }
  0xcf   :  { %p5724_p6 = por %p5723_p5, %p5722_p4 }
  0xd1   :  { %p5726_p8 = por %p5725_p7, %p5724_p6 }
  0xd3   :  { %p5727_p9 = pnand %p5726_p8, %p5720_p3 }
  0xd5   :  { %5730 = shalt.err (!%p5727_p9)  }
  0xd6   :  { %s5731_s18 = scalar_lea.vmem %s6735_s14, 16  ;;  %p5736_p11 = scmp.lt.s32.totalorder %s6735_s14, %s6644_s9 }
  0xd7   :  { %p5732_p10 = scmp.ne.s32.totalorder %s6735_s14, %s5731_s18  ;;  %p5737_p12 = scmp.lt.s32.totalorder %s6670_s26, %s5731_s18 }
  0xd9   :  { %p5738_p13 = por %p5737_p12, %p5736_p11 }
  0xdb   :  { %p5739_p0 = pnand %p5738_p13, %p5732_p10 }
  0xdd   :  { %5742 = shalt.err (!%p5739_p0)  }
  0xde   :  { %184 = dma.hbm_to_vmem [thread:$0]  %s171_s27, 16, %s6735_s14, [#allocation13 + $0x6] }
  0xdf   :  { %s6484_s19 = smov [#allocation2 + $0x7]   ;;  %s6763_s15 = sld [smem:[#allocation15 + $0x8]] }
  0xe0   :  { %s197_s13 = sshll.u32 %s6484_s19, 4  ;;  %s6485_s22 = smov [#allocation2 + $0x8]   ;;  %s198_s13 = int_to_ptr.vmem [resolvable:$true] %s197_s13 }
  0xe1   :  { %s212_s0 = sshll.u32 %s6485_s22, 4  ;;  %s6765_s17 = sld [smem:[#allocation15 + $0x9]]  ;;  %s6768_s0 = int_to_ptr.vmem [resolvable:$true] %s212_s0 }
  0xe2   :  { %s4871_s24 = sshll.u32 %s6748_s29, 4 }
  0xe3   :  { %s187_s16 = scalar_lea.hbm %s8563_s1, %s4871_s24 }
  0xe4   :  { %s5743_s30 = scalar_lea.hbm %s187_s16, 16  ;;  %p5746_p2 = scmp.lt.u32.totalorder %s187_s16, %s8563_s1 }
  0xe5   :  { %p5744_p1 = scmp.ne.s32.totalorder %s187_s16, %s5743_s30  ;;  %p5747_p3 = scmp.lt.u32.totalorder %s6661_s21, %s5743_s30 }
  0xe6   :  { %p5749_p5 = scmp.lt.u32.totalorder %s5743_s30, %s187_s16 }
  0xe7   :  { %p5748_p4 = por %p5747_p3, %p5746_p2 }
  0xe9   :  { %p5750_p6 = por %p5749_p5, %p5748_p4 }
  0xeb   :  { %p5751_p7 = pnand %p5750_p6, %p5744_p1 }
  0xed   :  { %5754 = shalt.err (!%p5751_p7)  }
  0xee   :  { %s5755_s27 = scalar_lea.vmem %s198_s13, 16  ;;  %p5760_p9 = scmp.lt.s32.totalorder %s198_s13, %s6644_s9 }
  0xef   :  { %p5756_p8 = scmp.ne.s32.totalorder %s198_s13, %s5755_s27  ;;  %p5761_p10 = scmp.lt.s32.totalorder %s6670_s26, %s5755_s27 }
  0xf1   :  { %p5762_p11 = por %p5761_p10, %p5760_p9 }
  0xf3   :  { %p5763_p12 = pnand %p5762_p11, %p5756_p8 }
  0xf5   :  { %5766 = shalt.err (!%p5763_p12)  }
  0xf6   :  { %200 = dma.hbm_to_vmem [thread:$0]  %s187_s16, 16, %s198_s13, [#allocation13 + $0x7] }
  0xf7   :  { %s4873_s29 = sshll.u32 %s6763_s15, 4  ;;  %s6486_s25 = smov [#allocation2 + $0x9]  }
  0xf8   :  { %s227_s28 = sshll.u32 %s6486_s25, 4  ;;  %s203_s19 = scalar_lea.hbm %s8563_s1, %s4873_s29  ;;  %s6783_s28 = int_to_ptr.vmem [resolvable:$true] %s227_s28 }
  0xf9   :  { %s5767_s22 = scalar_lea.hbm %s203_s19, 16  ;;  %p5770_p0 = scmp.lt.u32.totalorder %s203_s19, %s8563_s1 }
  0xfa   :  { %p5768_p13 = scmp.ne.s32.totalorder %s203_s19, %s5767_s22  ;;  %p5771_p1 = scmp.lt.u32.totalorder %s6661_s21, %s5767_s22 }
  0xfb   :  { %p5773_p3 = scmp.lt.u32.totalorder %s5767_s22, %s203_s19 }
  0xfc   :  { %p5772_p2 = por %p5771_p1, %p5770_p0 }
  0xfe   :  { %p5774_p4 = por %p5773_p3, %p5772_p2 }
 0x100   :  { %p5775_p5 = pnand %p5774_p4, %p5768_p13 }
 0x102   :  { %5778 = shalt.err (!%p5775_p5)  }
 0x103   :  { %s5779_s13 = scalar_lea.vmem %s6768_s0, 16  ;;  %p5784_p7 = scmp.lt.s32.totalorder %s6768_s0, %s6644_s9 }
 0x104   :  { %p5780_p6 = scmp.ne.s32.totalorder %s6768_s0, %s5779_s13  ;;  %p5785_p8 = scmp.lt.s32.totalorder %s6670_s26, %s5779_s13 }
 0x106   :  { %p5786_p9 = por %p5785_p8, %p5784_p7 }
 0x108   :  { %p5787_p10 = pnand %p5786_p9, %p5780_p6 }
 0x10a   :  { %5790 = shalt.err (!%p5787_p10)  }
 0x10b   :  { %215 = dma.hbm_to_vmem [thread:$0]  %s203_s19, 16, %s6768_s0, [#allocation13] }
 0x10c   :  { %s4875_s15 = sshll.u32 %s6765_s17, 4  ;;  %s6796_s23 = sld [smem:[#allocation15 + $0xa]] }
 0x10d   :  { %s218_s20 = scalar_lea.hbm %s8563_s1, %s4875_s15 }
 0x10e   :  { %s5791_s14 = scalar_lea.hbm %s218_s20, 16  ;;  %p5794_p12 = scmp.lt.u32.totalorder %s218_s20, %s8563_s1 }
 0x10f   :  { %p5792_p11 = scmp.ne.s32.totalorder %s218_s20, %s5791_s14  ;;  %p5795_p13 = scmp.lt.u32.totalorder %s6661_s21, %s5791_s14 }
 0x110   :  { %p5797_p1 = scmp.lt.u32.totalorder %s5791_s14, %s218_s20 }
 0x111   :  { %p5796_p0 = por %p5795_p13, %p5794_p12 }
 0x113   :  { %p5798_p2 = por %p5797_p1, %p5796_p0 }
 0x115   :  { %p5799_p3 = pnand %p5798_p2, %p5792_p11 }
 0x117   :  { %5802 = shalt.err (!%p5799_p3)  }
 0x118   :  { %s5803_s0 = scalar_lea.vmem %s6783_s28, 16  ;;  %p5808_p5 = scmp.lt.s32.totalorder %s6783_s28, %s6644_s9 }
 0x119   :  { %p5804_p4 = scmp.ne.s32.totalorder %s6783_s28, %s5803_s0  ;;  %p5809_p6 = scmp.lt.s32.totalorder %s6670_s26, %s5803_s0 }
 0x11b   :  { %p5810_p7 = por %p5809_p6, %p5808_p5 }
 0x11d   :  { %p5811_p8 = pnand %p5810_p7, %p5804_p4 }
 0x11f   :  { %5814 = shalt.err (!%p5811_p8)  }
 0x120   :  { %230 = dma.hbm_to_vmem [thread:$0]  %s218_s20, 16, %s6783_s28, [#allocation13 + $0x1] }
 0x121   :  { %s6487_s17 = smov [#allocation2 + $0xa]   ;;  %s6811_s11 = sld [smem:[#allocation15 + $0xb]] }
 0x122   :  { %s242_s25 = sshll.u32 %s6487_s17, 4  ;;  %s6488_s18 = smov [#allocation2 + $0xb]   ;;  %s243_s25 = int_to_ptr.vmem [resolvable:$true] %s242_s25 }
 0x123   :  { %s257_s19 = sshll.u32 %s6488_s18, 4  ;;  %s6813_s22 = sld [smem:[#allocation15 + $0xc]]  ;;  %s6816_s19 = int_to_ptr.vmem [resolvable:$true] %s257_s19 }
 0x124   :  { %s4877_s24 = sshll.u32 %s6796_s23, 4 }
 0x125   :  { %s233_s15 = scalar_lea.hbm %s8563_s1, %s4877_s24 }
 0x126   :  { %s5815_s16 = scalar_lea.hbm %s233_s15, 16  ;;  %p5818_p10 = scmp.lt.u32.totalorder %s233_s15, %s8563_s1 }
 0x127   :  { %p5816_p9 = scmp.ne.s32.totalorder %s233_s15, %s5815_s16  ;;  %p5819_p11 = scmp.lt.u32.totalorder %s6661_s21, %s5815_s16 }
 0x128   :  { %p5821_p13 = scmp.lt.u32.totalorder %s5815_s16, %s233_s15 }
 0x129   :  { %p5820_p12 = por %p5819_p11, %p5818_p10 }
 0x12b   :  { %p5822_p0 = por %p5821_p13, %p5820_p12 }
 0x12d   :  { %p5823_p1 = pnand %p5822_p0, %p5816_p9 }
 0x12f   :  { %5826 = shalt.err (!%p5823_p1)  }
 0x130   :  { %s5827_s20 = scalar_lea.vmem %s243_s25, 16  ;;  %p5832_p3 = scmp.lt.s32.totalorder %s243_s25, %s6644_s9 }
 0x131   :  { %p5828_p2 = scmp.ne.s32.totalorder %s243_s25, %s5827_s20  ;;  %p5833_p4 = scmp.lt.s32.totalorder %s6670_s26, %s5827_s20 }
 0x133   :  { %p5834_p5 = por %p5833_p4, %p5832_p3 }
 0x135   :  { %p5835_p6 = pnand %p5834_p5, %p5828_p2 }
 0x137   :  { %5838 = shalt.err (!%p5835_p6)  }
 0x138   :  { %245 = dma.hbm_to_vmem [thread:$0]  %s233_s15, 16, %s243_s25, [#allocation13 + $0x2] }
 0x139   :  { %s4879_s23 = sshll.u32 %s6811_s11, 4  ;;  %s6489_s14 = smov [#allocation2 + $0xc]  }
 0x13a   :  { %s272_s27 = sshll.u32 %s6489_s14, 4  ;;  %s248_s17 = scalar_lea.hbm %s8563_s1, %s4879_s23  ;;  %s6831_s27 = int_to_ptr.vmem [resolvable:$true] %s272_s27 }
 0x13b   :  { %s5839_s18 = scalar_lea.hbm %s248_s17, 16  ;;  %p5842_p8 = scmp.lt.u32.totalorder %s248_s17, %s8563_s1 }
 0x13c   :  { %p5840_p7 = scmp.ne.s32.totalorder %s248_s17, %s5839_s18  ;;  %p5843_p9 = scmp.lt.u32.totalorder %s6661_s21, %s5839_s18 }
 0x13d   :  { %p5845_p11 = scmp.lt.u32.totalorder %s5839_s18, %s248_s17 }
 0x13e   :  { %p5844_p10 = por %p5843_p9, %p5842_p8 }
 0x140   :  { %p5846_p12 = por %p5845_p11, %p5844_p10 }
 0x142   :  { %p5847_p13 = pnand %p5846_p12, %p5840_p7 }
 0x144   :  { %5850 = shalt.err (!%p5847_p13)  }
 0x145   :  { %s5851_s25 = scalar_lea.vmem %s6816_s19, 16  ;;  %p5856_p1 = scmp.lt.s32.totalorder %s6816_s19, %s6644_s9 }
 0x146   :  { %p5852_p0 = scmp.ne.s32.totalorder %s6816_s19, %s5851_s25  ;;  %p5857_p2 = scmp.lt.s32.totalorder %s6670_s26, %s5851_s25 }
 0x148   :  { %p5858_p3 = por %p5857_p2, %p5856_p1 }
 0x14a   :  { %p5859_p4 = pnand %p5858_p3, %p5852_p0 }
 0x14c   :  { %5862 = shalt.err (!%p5859_p4)  }
 0x14d   :  { %260 = dma.hbm_to_vmem [thread:$0]  %s248_s17, 16, %s6816_s19, [#allocation13 + $0x3] }
 0x14e   :  { %s4881_s11 = sshll.u32 %s6813_s22, 4  ;;  %s6844_s13 = sld [smem:[#allocation15 + $0xd]] }
 0x14f   :  { %s263_s30 = scalar_lea.hbm %s8563_s1, %s4881_s11 }
 0x150   :  { %s5863_s28 = scalar_lea.hbm %s263_s30, 16  ;;  %p5866_p6 = scmp.lt.u32.totalorder %s263_s30, %s8563_s1 }
 0x151   :  { %p5864_p5 = scmp.ne.s32.totalorder %s263_s30, %s5863_s28  ;;  %p5867_p7 = scmp.lt.u32.totalorder %s6661_s21, %s5863_s28 }
 0x152   :  { %p5869_p9 = scmp.lt.u32.totalorder %s5863_s28, %s263_s30 }
 0x153   :  { %p5868_p8 = por %p5867_p7, %p5866_p6 }
 0x155   :  { %p5870_p10 = por %p5869_p9, %p5868_p8 }
 0x157   :  { %p5871_p11 = pnand %p5870_p10, %p5864_p5 }
 0x159   :  { %5874 = shalt.err (!%p5871_p11)  }
 0x15a   :  { %s5875_s19 = scalar_lea.vmem %s6831_s27, 16  ;;  %p5880_p13 = scmp.lt.s32.totalorder %s6831_s27, %s6644_s9 }
 0x15b   :  { %p5876_p12 = scmp.ne.s32.totalorder %s6831_s27, %s5875_s19  ;;  %p5881_p0 = scmp.lt.s32.totalorder %s6670_s26, %s5875_s19 }
 0x15d   :  { %p5882_p1 = por %p5881_p0, %p5880_p13 }
 0x15f   :  { %p5883_p2 = pnand %p5882_p1, %p5876_p12 }
 0x161   :  { %5886 = shalt.err (!%p5883_p2)  }
 0x162   :  { %275 = dma.hbm_to_vmem [thread:$0]  %s263_s30, 16, %s6831_s27, [#allocation13 + $0x4] }
 0x163   :  { %s6490_s22 = smov [#allocation2 + $0xd]   ;;  %s6859_s29 = sld [smem:[#allocation15 + $0xe]] }
 0x164   :  { %s287_s14 = sshll.u32 %s6490_s22, 4  ;;  %s6491_s0 = smov [#allocation2 + $0xe]   ;;  %s288_s14 = int_to_ptr.vmem [resolvable:$true] %s287_s14 }
 0x165   :  { %s302_s17 = sshll.u32 %s6491_s0, 4  ;;  %s6861_s18 = sld [smem:[#allocation15 + $0xf]]  ;;  %s6864_s17 = int_to_ptr.vmem [resolvable:$true] %s302_s17 }
 0x166   :  { %s4883_s24 = sshll.u32 %s6844_s13, 4 }
 0x167   :  { %s278_s11 = scalar_lea.hbm %s8563_s1, %s4883_s24 }
 0x168   :  { %s5887_s15 = scalar_lea.hbm %s278_s11, 16  ;;  %p5890_p4 = scmp.lt.u32.totalorder %s278_s11, %s8563_s1 }
 0x169   :  { %p5888_p3 = scmp.ne.s32.totalorder %s278_s11, %s5887_s15  ;;  %p5891_p5 = scmp.lt.u32.totalorder %s6661_s21, %s5887_s15 }
 0x16a   :  { %p5893_p7 = scmp.lt.u32.totalorder %s5887_s15, %s278_s11 }
 0x16b   :  { %p5892_p6 = por %p5891_p5, %p5890_p4 }
 0x16d   :  { %p5894_p8 = por %p5893_p7, %p5892_p6 }
 0x16f   :  { %p5895_p9 = pnand %p5894_p8, %p5888_p3 }
 0x171   :  { %5898 = shalt.err (!%p5895_p9)  }
 0x172   :  { %s5899_s30 = scalar_lea.vmem %s288_s14, 16  ;;  %p5904_p11 = scmp.lt.s32.totalorder %s288_s14, %s6644_s9 }
 0x173   :  { %p5900_p10 = scmp.ne.s32.totalorder %s288_s14, %s5899_s30  ;;  %p5905_p12 = scmp.lt.s32.totalorder %s6670_s26, %s5899_s30 }
 0x175   :  { %p5906_p13 = por %p5905_p12, %p5904_p11 }
 0x177   :  { %p5907_p0 = pnand %p5906_p13, %p5900_p10 }
 0x179   :  { %5910 = shalt.err (!%p5907_p0)  }
 0x17a   :  { %290 = dma.hbm_to_vmem [thread:$0]  %s278_s11, 16, %s288_s14, [#allocation13 + $0x5] }
 0x17b   :  { %s4885_s13 = sshll.u32 %s6859_s29, 4  ;;  %s6492_s28 = smov [#allocation2 + $0xf]  }
 0x17c   :  { %s317_s20 = sshll.u32 %s6492_s28, 4  ;;  %s293_s22 = scalar_lea.hbm %s8563_s1, %s4885_s13  ;;  %s6879_s20 = int_to_ptr.vmem [resolvable:$true] %s317_s20 }
 0x17d   :  { %s5911_s0 = scalar_lea.hbm %s293_s22, 16  ;;  %p5914_p2 = scmp.lt.u32.totalorder %s293_s22, %s8563_s1 }
 0x17e   :  { %p5912_p1 = scmp.ne.s32.totalorder %s293_s22, %s5911_s0  ;;  %p5915_p3 = scmp.lt.u32.totalorder %s6661_s21, %s5911_s0 }
 0x17f   :  { %p5917_p5 = scmp.lt.u32.totalorder %s5911_s0, %s293_s22 }
 0x180   :  { %p5916_p4 = por %p5915_p3, %p5914_p2 }
 0x182   :  { %p5918_p6 = por %p5917_p5, %p5916_p4 }
 0x184   :  { %p5919_p7 = pnand %p5918_p6, %p5912_p1 }
 0x186   :  { %5922 = shalt.err (!%p5919_p7)  }
 0x187   :  { %s5923_s14 = scalar_lea.vmem %s6864_s17, 16  ;;  %p5928_p9 = scmp.lt.s32.totalorder %s6864_s17, %s6644_s9 }
 0x188   :  { %p5924_p8 = scmp.ne.s32.totalorder %s6864_s17, %s5923_s14  ;;  %p5929_p10 = scmp.lt.s32.totalorder %s6670_s26, %s5923_s14 }
 0x18a   :  { %p5930_p11 = por %p5929_p10, %p5928_p9 }
 0x18c   :  { %p5931_p12 = pnand %p5930_p11, %p5924_p8 }
 0x18e   :  { %5934 = shalt.err (!%p5931_p12)  }
 0x18f   :  { %305 = dma.hbm_to_vmem [thread:$0]  %s293_s22, 16, %s6864_s17, [#allocation13 + $0x6] }
 0x190   :  { %s4887_s29 = sshll.u32 %s6861_s18, 4  ;;  %s6892_s25 = sld [smem:[#allocation15 + $0x10]] }
 0x191   :  { %s308_s16 = scalar_lea.hbm %s8563_s1, %s4887_s29 }
 0x192   :  { %s5935_s27 = scalar_lea.hbm %s308_s16, 16  ;;  %p5938_p0 = scmp.lt.u32.totalorder %s308_s16, %s8563_s1 }
 0x193   :  { %p5936_p13 = scmp.ne.s32.totalorder %s308_s16, %s5935_s27  ;;  %p5939_p1 = scmp.lt.u32.totalorder %s6661_s21, %s5935_s27 }
 0x194   :  { %p5941_p3 = scmp.lt.u32.totalorder %s5935_s27, %s308_s16 }
 0x195   :  { %p5940_p2 = por %p5939_p1, %p5938_p0 }
 0x197   :  { %p5942_p4 = por %p5941_p3, %p5940_p2 }
 0x199   :  { %p5943_p5 = pnand %p5942_p4, %p5936_p13 }
 0x19b   :  { %5946 = shalt.err (!%p5943_p5)  }
 0x19c   :  { %s5947_s17 = scalar_lea.vmem %s6879_s20, 16  ;;  %p5952_p7 = scmp.lt.s32.totalorder %s6879_s20, %s6644_s9 }
 0x19d   :  { %p5948_p6 = scmp.ne.s32.totalorder %s6879_s20, %s5947_s17  ;;  %p5953_p8 = scmp.lt.s32.totalorder %s6670_s26, %s5947_s17 }
 0x19f   :  { %p5954_p9 = por %p5953_p8, %p5952_p7 }
 0x1a1   :  { %p5955_p10 = pnand %p5954_p9, %p5948_p6 }
 0x1a3   :  { %5958 = shalt.err (!%p5955_p10)  }
 0x1a4   :  { %320 = dma.hbm_to_vmem [thread:$0]  %s308_s16, 16, %s6879_s20, [#allocation13 + $0x7] }
 0x1a5   :  { %s6493_s18 = smov [#allocation2 + $0x10]   ;;  %s6907_s23 = sld [smem:[#allocation15 + $0x11]] }
 0x1a6   :  { %s332_s28 = sshll.u32 %s6493_s18, 4  ;;  %s6494_s19 = smov [#allocation2 + $0x11]   ;;  %s333_s28 = int_to_ptr.vmem [resolvable:$true] %s332_s28 }
 0x1a7   :  { %s347_s22 = sshll.u32 %s6494_s19, 4  ;;  %s6909_s0 = sld [smem:[#allocation15 + $0x12]]  ;;  %s6912_s22 = int_to_ptr.vmem [resolvable:$true] %s347_s22 }
 0x1a8   :  { %s4889_s24 = sshll.u32 %s6892_s25, 4 }
 0x1a9   :  { %s323_s29 = scalar_lea.hbm %s8563_s1, %s4889_s24 }
 0x1aa   :  { %s5959_s11 = scalar_lea.hbm %s323_s29, 16  ;;  %p5962_p12 = scmp.lt.u32.totalorder %s323_s29, %s8563_s1 }
 0x1ab   :  { %p5960_p11 = scmp.ne.s32.totalorder %s323_s29, %s5959_s11  ;;  %p5963_p13 = scmp.lt.u32.totalorder %s6661_s21, %s5959_s11 }
 0x1ac   :  { %p5965_p1 = scmp.lt.u32.totalorder %s5959_s11, %s323_s29 }
 0x1ad   :  { %p5964_p0 = por %p5963_p13, %p5962_p12 }
 0x1af   :  { %p5966_p2 = por %p5965_p1, %p5964_p0 }
 0x1b1   :  { %p5967_p3 = pnand %p5966_p2, %p5960_p11 }
 0x1b3   :  { %5970 = shalt.err (!%p5967_p3)  }
 0x1b4   :  { %s5971_s16 = scalar_lea.vmem %s333_s28, 16  ;;  %p5976_p5 = scmp.lt.s32.totalorder %s333_s28, %s6644_s9 }
 0x1b5   :  { %p5972_p4 = scmp.ne.s32.totalorder %s333_s28, %s5971_s16  ;;  %p5977_p6 = scmp.lt.s32.totalorder %s6670_s26, %s5971_s16 }
 0x1b7   :  { %p5978_p7 = por %p5977_p6, %p5976_p5 }
 0x1b9   :  { %p5979_p8 = pnand %p5978_p7, %p5972_p4 }
 0x1bb   :  { %5982 = shalt.err (!%p5979_p8)  }
 0x1bc   :  { %335 = dma.hbm_to_vmem [thread:$0]  %s323_s29, 16, %s333_s28, [#allocation13] }
 0x1bd   :  { %s4891_s25 = sshll.u32 %s6907_s23, 4  ;;  %s6495_s27 = smov [#allocation2 + $0x12]  }
 0x1be   :  { %s362_s30 = sshll.u32 %s6495_s27, 4  ;;  %s338_s18 = scalar_lea.hbm %s8563_s1, %s4891_s25  ;;  %s6927_s30 = int_to_ptr.vmem [resolvable:$true] %s362_s30 }
 0x1bf   :  { %s5983_s19 = scalar_lea.hbm %s338_s18, 16  ;;  %p5986_p10 = scmp.lt.u32.totalorder %s338_s18, %s8563_s1 }
 0x1c0   :  { %p5984_p9 = scmp.ne.s32.totalorder %s338_s18, %s5983_s19  ;;  %p5987_p11 = scmp.lt.u32.totalorder %s6661_s21, %s5983_s19 }
 0x1c1   :  { %p5989_p13 = scmp.lt.u32.totalorder %s5983_s19, %s338_s18 }
 0x1c2   :  { %p5988_p12 = por %p5987_p11, %p5986_p10 }
 0x1c4   :  { %p5990_p0 = por %p5989_p13, %p5988_p12 }
 0x1c6   :  { %p5991_p1 = pnand %p5990_p0, %p5984_p9 }
 0x1c8   :  { %5994 = shalt.err (!%p5991_p1)  }
 0x1c9   :  { %s5995_s28 = scalar_lea.vmem %s6912_s22, 16  ;;  %p6000_p3 = scmp.lt.s32.totalorder %s6912_s22, %s6644_s9 }
 0x1ca   :  { %p5996_p2 = scmp.ne.s32.totalorder %s6912_s22, %s5995_s28  ;;  %p6001_p4 = scmp.lt.s32.totalorder %s6670_s26, %s5995_s28 }
 0x1cc   :  { %p6002_p5 = por %p6001_p4, %p6000_p3 }
 0x1ce   :  { %p6003_p6 = pnand %p6002_p5, %p5996_p2 }
 0x1d0   :  { %6006 = shalt.err (!%p6003_p6)  }
 0x1d1   :  { %350 = dma.hbm_to_vmem [thread:$0]  %s338_s18, 16, %s6912_s22, [#allocation13 + $0x1] }
 0x1d2   :  { %s4893_s23 = sshll.u32 %s6909_s0, 4  ;;  %s6940_s14 = sld [smem:[#allocation15 + $0x13]] }
 0x1d3   :  { %s353_s15 = scalar_lea.hbm %s8563_s1, %s4893_s23 }
 0x1d4   :  { %s6007_s20 = scalar_lea.hbm %s353_s15, 16  ;;  %p6010_p8 = scmp.lt.u32.totalorder %s353_s15, %s8563_s1 }
 0x1d5   :  { %p6008_p7 = scmp.ne.s32.totalorder %s353_s15, %s6007_s20  ;;  %p6011_p9 = scmp.lt.u32.totalorder %s6661_s21, %s6007_s20 }
 0x1d6   :  { %p6013_p11 = scmp.lt.u32.totalorder %s6007_s20, %s353_s15 }
 0x1d7   :  { %p6012_p10 = por %p6011_p9, %p6010_p8 }
 0x1d9   :  { %p6014_p12 = por %p6013_p11, %p6012_p10 }
 0x1db   :  { %p6015_p13 = pnand %p6014_p12, %p6008_p7 }
 0x1dd   :  { %6018 = shalt.err (!%p6015_p13)  }
 0x1de   :  { %s6019_s22 = scalar_lea.vmem %s6927_s30, 16  ;;  %p6024_p1 = scmp.lt.s32.totalorder %s6927_s30, %s6644_s9 }
 0x1df   :  { %p6020_p0 = scmp.ne.s32.totalorder %s6927_s30, %s6019_s22  ;;  %p6025_p2 = scmp.lt.s32.totalorder %s6670_s26, %s6019_s22 }
 0x1e1   :  { %p6026_p3 = por %p6025_p2, %p6024_p1 }
 0x1e3   :  { %p6027_p4 = pnand %p6026_p3, %p6020_p0 }
 0x1e5   :  { %6030 = shalt.err (!%p6027_p4)  }
 0x1e6   :  { %365 = dma.hbm_to_vmem [thread:$0]  %s353_s15, 16, %s6927_s30, [#allocation13 + $0x2] }
 0x1e7   :  { %s6496_s0 = smov [#allocation2 + $0x13]   ;;  %s6955_s13 = sld [smem:[#allocation15 + $0x14]] }
 0x1e8   :  { %s377_s27 = sshll.u32 %s6496_s0, 4  ;;  %s6497_s17 = smov [#allocation2 + $0x14]   ;;  %s378_s27 = int_to_ptr.vmem [resolvable:$true] %s377_s27 }
 0x1e9   :  { %s392_s18 = sshll.u32 %s6497_s17, 4  ;;  %s6957_s19 = sld [smem:[#allocation15 + $0x15]]  ;;  %s6960_s18 = int_to_ptr.vmem [resolvable:$true] %s392_s18 }
 0x1ea   :  { %s4895_s24 = sshll.u32 %s6940_s14, 4 }
 0x1eb   :  { %s368_s23 = scalar_lea.hbm %s8563_s1, %s4895_s24 }
 0x1ec   :  { %s6031_s29 = scalar_lea.hbm %s368_s23, 16  ;;  %p6034_p6 = scmp.lt.u32.totalorder %s368_s23, %s8563_s1 }
 0x1ed   :  { %p6032_p5 = scmp.ne.s32.totalorder %s368_s23, %s6031_s29  ;;  %p6035_p7 = scmp.lt.u32.totalorder %s6661_s21, %s6031_s29 }
 0x1ee   :  { %p6037_p9 = scmp.lt.u32.totalorder %s6031_s29, %s368_s23 }
 0x1ef   :  { %p6036_p8 = por %p6035_p7, %p6034_p6 }
 0x1f1   :  { %p6038_p10 = por %p6037_p9, %p6036_p8 }
 0x1f3   :  { %p6039_p11 = pnand %p6038_p10, %p6032_p5 }
 0x1f5   :  { %6042 = shalt.err (!%p6039_p11)  }
 0x1f6   :  { %s6043_s15 = scalar_lea.vmem %s378_s27, 16  ;;  %p6048_p13 = scmp.lt.s32.totalorder %s378_s27, %s6644_s9 }
 0x1f7   :  { %p6044_p12 = scmp.ne.s32.totalorder %s378_s27, %s6043_s15  ;;  %p6049_p0 = scmp.lt.s32.totalorder %s6670_s26, %s6043_s15 }
 0x1f9   :  { %p6050_p1 = por %p6049_p0, %p6048_p13 }
 0x1fb   :  { %p6051_p2 = pnand %p6050_p1, %p6044_p12 }
 0x1fd   :  { %6054 = shalt.err (!%p6051_p2)  }
 0x1fe   :  { %380 = dma.hbm_to_vmem [thread:$0]  %s368_s23, 16, %s378_s27, [#allocation13 + $0x3] }
 0x1ff   :  { %s4897_s14 = sshll.u32 %s6955_s13, 4  ;;  %s6498_s20 = smov [#allocation2 + $0x15]  }
 0x200   :  { %s407_s16 = sshll.u32 %s6498_s20, 4  ;;  %s383_s0 = scalar_lea.hbm %s8563_s1, %s4897_s14  ;;  %s6975_s16 = int_to_ptr.vmem [resolvable:$true] %s407_s16 }
 0x201   :  { %s6055_s17 = scalar_lea.hbm %s383_s0, 16  ;;  %p6058_p4 = scmp.lt.u32.totalorder %s383_s0, %s8563_s1 }
 0x202   :  { %p6056_p3 = scmp.ne.s32.totalorder %s383_s0, %s6055_s17  ;;  %p6059_p5 = scmp.lt.u32.totalorder %s6661_s21, %s6055_s17 }
 0x203   :  { %p6061_p7 = scmp.lt.u32.totalorder %s6055_s17, %s383_s0 }
 0x204   :  { %p6060_p6 = por %p6059_p5, %p6058_p4 }
 0x206   :  { %p6062_p8 = por %p6061_p7, %p6060_p6 }
 0x208   :  { %p6063_p9 = pnand %p6062_p8, %p6056_p3 }
 0x20a   :  { %6066 = shalt.err (!%p6063_p9)  }
 0x20b   :  { %s6067_s27 = scalar_lea.vmem %s6960_s18, 16  ;;  %p6072_p11 = scmp.lt.s32.totalorder %s6960_s18, %s6644_s9 }
 0x20c   :  { %p6068_p10 = scmp.ne.s32.totalorder %s6960_s18, %s6067_s27  ;;  %p6073_p12 = scmp.lt.s32.totalorder %s6670_s26, %s6067_s27 }
 0x20e   :  { %p6074_p13 = por %p6073_p12, %p6072_p11 }
 0x210   :  { %p6075_p0 = pnand %p6074_p13, %p6068_p10 }
 0x212   :  { %6078 = shalt.err (!%p6075_p0)  }
 0x213   :  { %395 = dma.hbm_to_vmem [thread:$0]  %s383_s0, 16, %s6960_s18, [#allocation13 + $0x4] }
 0x214   :  { %s4899_s13 = sshll.u32 %s6957_s19, 4  ;;  %s6988_s28 = sld [smem:[#allocation15 + $0x16]] }
 0x215   :  { %s398_s11 = scalar_lea.hbm %s8563_s1, %s4899_s13 }
 0x216   :  { %s6079_s30 = scalar_lea.hbm %s398_s11, 16  ;;  %p6082_p2 = scmp.lt.u32.totalorder %s398_s11, %s8563_s1 }
 0x217   :  { %p6080_p1 = scmp.ne.s32.totalorder %s398_s11, %s6079_s30  ;;  %p6083_p3 = scmp.lt.u32.totalorder %s6661_s21, %s6079_s30 }
 0x218   :  { %p6085_p5 = scmp.lt.u32.totalorder %s6079_s30, %s398_s11 }
 0x219   :  { %p6084_p4 = por %p6083_p3, %p6082_p2 }
 0x21b   :  { %p6086_p6 = por %p6085_p5, %p6084_p4 }
 0x21d   :  { %p6087_p7 = pnand %p6086_p6, %p6080_p1 }
 0x21f   :  { %6090 = shalt.err (!%p6087_p7)  }
 0x220   :  { %s6091_s18 = scalar_lea.vmem %s6975_s16, 16  ;;  %p6096_p9 = scmp.lt.s32.totalorder %s6975_s16, %s6644_s9 }
 0x221   :  { %p6092_p8 = scmp.ne.s32.totalorder %s6975_s16, %s6091_s18  ;;  %p6097_p10 = scmp.lt.s32.totalorder %s6670_s26, %s6091_s18 }
 0x223   :  { %p6098_p11 = por %p6097_p10, %p6096_p9 }
 0x225   :  { %p6099_p12 = pnand %p6098_p11, %p6092_p8 }
 0x227   :  { %6102 = shalt.err (!%p6099_p12)  }
 0x228   :  { %410 = dma.hbm_to_vmem [thread:$0]  %s398_s11, 16, %s6975_s16, [#allocation13 + $0x5] }
 0x229   :  { %s6499_s19 = smov [#allocation2 + $0x16]   ;;  %s7003_s25 = sld [smem:[#allocation15 + $0x17]] }
 0x22a   :  { %s422_s20 = sshll.u32 %s6499_s19, 4  ;;  %s6500_s22 = smov [#allocation2 + $0x17]   ;;  %s423_s20 = int_to_ptr.vmem [resolvable:$true] %s422_s20 }
 0x22b   :  { %s437_s0 = sshll.u32 %s6500_s22, 4  ;;  %s7005_s17 = sld [smem:[#allocation15 + $0x18]]  ;;  %s7008_s0 = int_to_ptr.vmem [resolvable:$true] %s437_s0 }
 0x22c   :  { %s4901_s24 = sshll.u32 %s6988_s28, 4 }
 0x22d   :  { %s413_s13 = scalar_lea.hbm %s8563_s1, %s4901_s24 }
 0x22e   :  { %s6103_s23 = scalar_lea.hbm %s413_s13, 16  ;;  %p6106_p0 = scmp.lt.u32.totalorder %s413_s13, %s8563_s1 }
 0x22f   :  { %p6104_p13 = scmp.ne.s32.totalorder %s413_s13, %s6103_s23  ;;  %p6107_p1 = scmp.lt.u32.totalorder %s6661_s21, %s6103_s23 }
 0x230   :  { %p6109_p3 = scmp.lt.u32.totalorder %s6103_s23, %s413_s13 }
 0x231   :  { %p6108_p2 = por %p6107_p1, %p6106_p0 }
 0x233   :  { %p6110_p4 = por %p6109_p3, %p6108_p2 }
 0x235   :  { %p6111_p5 = pnand %p6110_p4, %p6104_p13 }
 0x237   :  { %6114 = shalt.err (!%p6111_p5)  }
 0x238   :  { %s6115_s11 = scalar_lea.vmem %s423_s20, 16  ;;  %p6120_p7 = scmp.lt.s32.totalorder %s423_s20, %s6644_s9 }
 0x239   :  { %p6116_p6 = scmp.ne.s32.totalorder %s423_s20, %s6115_s11  ;;  %p6121_p8 = scmp.lt.s32.totalorder %s6670_s26, %s6115_s11 }
 0x23b   :  { %p6122_p9 = por %p6121_p8, %p6120_p7 }
 0x23d   :  { %p6123_p10 = pnand %p6122_p9, %p6116_p6 }
 0x23f   :  { %6126 = shalt.err (!%p6123_p10)  }
 0x240   :  { %425 = dma.hbm_to_vmem [thread:$0]  %s413_s13, 16, %s423_s20, [#allocation13 + $0x6] }
 0x241   :  { %s4903_s28 = sshll.u32 %s7003_s25, 4  ;;  %s6501_s30 = smov [#allocation2 + $0x18]  }
 0x242   :  { %s452_s15 = sshll.u32 %s6501_s30, 4  ;;  %s428_s19 = scalar_lea.hbm %s8563_s1, %s4903_s28  ;;  %s7023_s15 = int_to_ptr.vmem [resolvable:$true] %s452_s15 }
 0x243   :  { %s6127_s22 = scalar_lea.hbm %s428_s19, 16  ;;  %p6130_p12 = scmp.lt.u32.totalorder %s428_s19, %s8563_s1 }
 0x244   :  { %p6128_p11 = scmp.ne.s32.totalorder %s428_s19, %s6127_s22  ;;  %p6131_p13 = scmp.lt.u32.totalorder %s6661_s21, %s6127_s22 }
 0x245   :  { %p6133_p1 = scmp.lt.u32.totalorder %s6127_s22, %s428_s19 }
 0x246   :  { %p6132_p0 = por %p6131_p13, %p6130_p12 }
 0x248   :  { %p6134_p2 = por %p6133_p1, %p6132_p0 }
 0x24a   :  { %p6135_p3 = pnand %p6134_p2, %p6128_p11 }
 0x24c   :  { %6138 = shalt.err (!%p6135_p3)  }
 0x24d   :  { %s6139_s20 = scalar_lea.vmem %s7008_s0, 16  ;;  %p6144_p5 = scmp.lt.s32.totalorder %s7008_s0, %s6644_s9 }
 0x24e   :  { %p6140_p4 = scmp.ne.s32.totalorder %s7008_s0, %s6139_s20  ;;  %p6145_p6 = scmp.lt.s32.totalorder %s6670_s26, %s6139_s20 }
 0x250   :  { %p6146_p7 = por %p6145_p6, %p6144_p5 }
 0x252   :  { %p6147_p8 = pnand %p6146_p7, %p6140_p4 }
 0x254   :  { %6150 = shalt.err (!%p6147_p8)  }
 0x255   :  { %440 = dma.hbm_to_vmem [thread:$0]  %s428_s19, 16, %s7008_s0, [#allocation13 + $0x7] }
 0x256   :  { %s4905_s25 = sshll.u32 %s7005_s17, 4  ;;  %s7036_s27 = sld [smem:[#allocation15 + $0x19]] }
 0x257   :  { %s443_s29 = scalar_lea.hbm %s8563_s1, %s4905_s25 }
 0x258   :  { %s6151_s16 = scalar_lea.hbm %s443_s29, 16  ;;  %p6154_p10 = scmp.lt.u32.totalorder %s443_s29, %s8563_s1 }
 0x259   :  { %p6152_p9 = scmp.ne.s32.totalorder %s443_s29, %s6151_s16  ;;  %p6155_p11 = scmp.lt.u32.totalorder %s6661_s21, %s6151_s16 }
 0x25a   :  { %p6157_p13 = scmp.lt.u32.totalorder %s6151_s16, %s443_s29 }
 0x25b   :  { %p6156_p12 = por %p6155_p11, %p6154_p10 }
 0x25d   :  { %p6158_p0 = por %p6157_p13, %p6156_p12 }
 0x25f   :  { %p6159_p1 = pnand %p6158_p0, %p6152_p9 }
 0x261   :  { %6162 = shalt.err (!%p6159_p1)  }
 0x262   :  { %s6163_s0 = scalar_lea.vmem %s7023_s15, 16  ;;  %p6168_p3 = scmp.lt.s32.totalorder %s7023_s15, %s6644_s9 }
 0x263   :  { %p6164_p2 = scmp.ne.s32.totalorder %s7023_s15, %s6163_s0  ;;  %p6169_p4 = scmp.lt.s32.totalorder %s6670_s26, %s6163_s0 }
 0x265   :  { %p6170_p5 = por %p6169_p4, %p6168_p3 }
 0x267   :  { %p6171_p6 = pnand %p6170_p5, %p6164_p2 }
 0x269   :  { %6174 = shalt.err (!%p6171_p6)  }
 0x26a   :  { %455 = dma.hbm_to_vmem [thread:$0]  %s443_s29, 16, %s7023_s15, [#allocation13] }
 0x26b   :  { %s6502_s17 = smov [#allocation2 + $0x19]   ;;  %s7051_s14 = sld [smem:[#allocation15 + $0x1a]] }
 0x26c   :  { %s467_s30 = sshll.u32 %s6502_s17, 4  ;;  %s6503_s18 = smov [#allocation2 + $0x1a]   ;;  %s468_s30 = int_to_ptr.vmem [resolvable:$true] %s467_s30 }
 0x26d   :  { %s482_s19 = sshll.u32 %s6503_s18, 4  ;;  %s7053_s22 = sld [smem:[#allocation15 + $0x1b]]  ;;  %s7056_s19 = int_to_ptr.vmem [resolvable:$true] %s482_s19 }
 0x26e   :  { %s4907_s24 = sshll.u32 %s7036_s27, 4 }
 0x26f   :  { %s458_s25 = scalar_lea.hbm %s8563_s1, %s4907_s24 }
 0x270   :  { %s6175_s13 = scalar_lea.hbm %s458_s25, 16  ;;  %p6178_p8 = scmp.lt.u32.totalorder %s458_s25, %s8563_s1 }
 0x271   :  { %p6176_p7 = scmp.ne.s32.totalorder %s458_s25, %s6175_s13  ;;  %p6179_p9 = scmp.lt.u32.totalorder %s6661_s21, %s6175_s13 }
 0x272   :  { %p6181_p11 = scmp.lt.u32.totalorder %s6175_s13, %s458_s25 }
 0x273   :  { %p6180_p10 = por %p6179_p9, %p6178_p8 }
 0x275   :  { %p6182_p12 = por %p6181_p11, %p6180_p10 }
 0x277   :  { %p6183_p13 = pnand %p6182_p12, %p6176_p7 }
 0x279   :  { %6186 = shalt.err (!%p6183_p13)  }
 0x27a   :  { %s6187_s29 = scalar_lea.vmem %s468_s30, 16  ;;  %p6192_p1 = scmp.lt.s32.totalorder %s468_s30, %s6644_s9 }
 0x27b   :  { %p6188_p0 = scmp.ne.s32.totalorder %s468_s30, %s6187_s29  ;;  %p6193_p2 = scmp.lt.s32.totalorder %s6670_s26, %s6187_s29 }
 0x27d   :  { %p6194_p3 = por %p6193_p2, %p6192_p1 }
 0x27f   :  { %p6195_p4 = pnand %p6194_p3, %p6188_p0 }
 0x281   :  { %6198 = shalt.err (!%p6195_p4)  }
 0x282   :  { %470 = dma.hbm_to_vmem [thread:$0]  %s458_s25, 16, %s468_s30, [#allocation13 + $0x1] }
 0x283   :  { %s4909_s27 = sshll.u32 %s7051_s14, 4  ;;  %s6504_s16 = smov [#allocation2 + $0x1b]  }
 0x284   :  { %s497_s11 = sshll.u32 %s6504_s16, 4  ;;  %s473_s17 = scalar_lea.hbm %s8563_s1, %s4909_s27  ;;  %s7071_s11 = int_to_ptr.vmem [resolvable:$true] %s497_s11 }
 0x285   :  { %s6199_s18 = scalar_lea.hbm %s473_s17, 16  ;;  %p6202_p6 = scmp.lt.u32.totalorder %s473_s17, %s8563_s1 }
 0x286   :  { %p6200_p5 = scmp.ne.s32.totalorder %s473_s17, %s6199_s18  ;;  %p6203_p7 = scmp.lt.u32.totalorder %s6661_s21, %s6199_s18 }
 0x287   :  { %p6205_p9 = scmp.lt.u32.totalorder %s6199_s18, %s473_s17 }
 0x288   :  { %p6204_p8 = por %p6203_p7, %p6202_p6 }
 0x28a   :  { %p6206_p10 = por %p6205_p9, %p6204_p8 }
 0x28c   :  { %p6207_p11 = pnand %p6206_p10, %p6200_p5 }
 0x28e   :  { %6210 = shalt.err (!%p6207_p11)  }
 0x28f   :  { %s6211_s30 = scalar_lea.vmem %s7056_s19, 16  ;;  %p6216_p13 = scmp.lt.s32.totalorder %s7056_s19, %s6644_s9 }
 0x290   :  { %p6212_p12 = scmp.ne.s32.totalorder %s7056_s19, %s6211_s30  ;;  %p6217_p0 = scmp.lt.s32.totalorder %s6670_s26, %s6211_s30 }
 0x292   :  { %p6218_p1 = por %p6217_p0, %p6216_p13 }
 0x294   :  { %p6219_p2 = pnand %p6218_p1, %p6212_p12 }
 0x296   :  { %6222 = shalt.err (!%p6219_p2)  }
 0x297   :  { %485 = dma.hbm_to_vmem [thread:$0]  %s473_s17, 16, %s7056_s19, [#allocation13 + $0x2] }
 0x298   :  { %s4911_s14 = sshll.u32 %s7053_s22, 4  ;;  %s7084_s20 = sld [smem:[#allocation15 + $0x1c]] }
 0x299   :  { %s488_s23 = scalar_lea.hbm %s8563_s1, %s4911_s14 }
 0x29a   :  { %s6223_s15 = scalar_lea.hbm %s488_s23, 16  ;;  %p6226_p4 = scmp.lt.u32.totalorder %s488_s23, %s8563_s1 }
 0x29b   :  { %p6224_p3 = scmp.ne.s32.totalorder %s488_s23, %s6223_s15  ;;  %p6227_p5 = scmp.lt.u32.totalorder %s6661_s21, %s6223_s15 }
 0x29c   :  { %p6229_p7 = scmp.lt.u32.totalorder %s6223_s15, %s488_s23 }
 0x29d   :  { %p6228_p6 = por %p6227_p5, %p6226_p4 }
 0x29f   :  { %p6230_p8 = por %p6229_p7, %p6228_p6 }
 0x2a1   :  { %p6231_p9 = pnand %p6230_p8, %p6224_p3 }
 0x2a3   :  { %6234 = shalt.err (!%p6231_p9)  }
 0x2a4   :  { %s6235_s19 = scalar_lea.vmem %s7071_s11, 16  ;;  %p6240_p11 = scmp.lt.s32.totalorder %s7071_s11, %s6644_s9 }
 0x2a5   :  { %p6236_p10 = scmp.ne.s32.totalorder %s7071_s11, %s6235_s19  ;;  %p6241_p12 = scmp.lt.s32.totalorder %s6670_s26, %s6235_s19 }
 0x2a7   :  { %p6242_p13 = por %p6241_p12, %p6240_p11 }
 0x2a9   :  { %p6243_p0 = pnand %p6242_p13, %p6236_p10 }
 0x2ab   :  { %6246 = shalt.err (!%p6243_p0)  }
 0x2ac   :  { %500 = dma.hbm_to_vmem [thread:$0]  %s488_s23, 16, %s7071_s11, [#allocation13 + $0x3] }
 0x2ad   :  { %s6505_s22 = smov [#allocation2 + $0x1c]   ;;  %s7099_s28 = sld [smem:[#allocation15 + $0x1d]] }
 0x2ae   :  { %s512_s16 = sshll.u32 %s6505_s22, 4  ;;  %s6506_s0 = smov [#allocation2 + $0x1d]   ;;  %s513_s16 = int_to_ptr.vmem [resolvable:$true] %s512_s16 }
 0x2af   :  { %s527_s17 = sshll.u32 %s6506_s0, 4  ;;  %s7101_s18 = sld [smem:[#allocation15 + $0x1e]]  ;;  %s7104_s17 = int_to_ptr.vmem [resolvable:$true] %s527_s17 }
 0x2b0   :  { %s4913_s24 = sshll.u32 %s7084_s20, 4 }
 0x2b1   :  { %s503_s14 = scalar_lea.hbm %s8563_s1, %s4913_s24 }
 0x2b2   :  { %s6247_s25 = scalar_lea.hbm %s503_s14, 16  ;;  %p6250_p2 = scmp.lt.u32.totalorder %s503_s14, %s8563_s1 }
 0x2b3   :  { %p6248_p1 = scmp.ne.s32.totalorder %s503_s14, %s6247_s25  ;;  %p6251_p3 = scmp.lt.u32.totalorder %s6661_s21, %s6247_s25 }
 0x2b4   :  { %p6253_p5 = scmp.lt.u32.totalorder %s6247_s25, %s503_s14 }
 0x2b5   :  { %p6252_p4 = por %p6251_p3, %p6250_p2 }
 0x2b7   :  { %p6254_p6 = por %p6253_p5, %p6252_p4 }
 0x2b9   :  { %p6255_p7 = pnand %p6254_p6, %p6248_p1 }
 0x2bb   :  { %6258 = shalt.err (!%p6255_p7)  }
 0x2bc   :  { %s6259_s23 = scalar_lea.vmem %s513_s16, 16  ;;  %p6264_p9 = scmp.lt.s32.totalorder %s513_s16, %s6644_s9 }
 0x2bd   :  { %p6260_p8 = scmp.ne.s32.totalorder %s513_s16, %s6259_s23  ;;  %p6265_p10 = scmp.lt.s32.totalorder %s6670_s26, %s6259_s23 }
 0x2bf   :  { %p6266_p11 = por %p6265_p10, %p6264_p9 }
 0x2c1   :  { %p6267_p12 = pnand %p6266_p11, %p6260_p8 }
 0x2c3   :  { %6270 = shalt.err (!%p6267_p12)  }
 0x2c4   :  { %515 = dma.hbm_to_vmem [thread:$0]  %s503_s14, 16, %s513_s16, [#allocation13 + $0x4] }
 0x2c5   :  { %s4915_s20 = sshll.u32 %s7099_s28, 4  ;;  %s6507_s15 = smov [#allocation2 + $0x1e]  }
 0x2c6   :  { %s542_s29 = sshll.u32 %s6507_s15, 4  ;;  %s518_s22 = scalar_lea.hbm %s8563_s1, %s4915_s20  ;;  %s7119_s29 = int_to_ptr.vmem [resolvable:$true] %s542_s29 }
 0x2c7   :  { %s6271_s0 = scalar_lea.hbm %s518_s22, 16  ;;  %p6274_p0 = scmp.lt.u32.totalorder %s518_s22, %s8563_s1 }
 0x2c8   :  { %p6272_p13 = scmp.ne.s32.totalorder %s518_s22, %s6271_s0  ;;  %p6275_p1 = scmp.lt.u32.totalorder %s6661_s21, %s6271_s0 }
 0x2c9   :  { %p6277_p3 = scmp.lt.u32.totalorder %s6271_s0, %s518_s22 }
 0x2ca   :  { %p6276_p2 = por %p6275_p1, %p6274_p0 }
 0x2cc   :  { %p6278_p4 = por %p6277_p3, %p6276_p2 }
 0x2ce   :  { %p6279_p5 = pnand %p6278_p4, %p6272_p13 }
 0x2d0   :  { %6282 = shalt.err (!%p6279_p5)  }
 0x2d1   :  { %s6283_s16 = scalar_lea.vmem %s7104_s17, 16  ;;  %p6288_p7 = scmp.lt.s32.totalorder %s7104_s17, %s6644_s9 }
 0x2d2   :  { %p6284_p6 = scmp.ne.s32.totalorder %s7104_s17, %s6283_s16  ;;  %p6289_p8 = scmp.lt.s32.totalorder %s6670_s26, %s6283_s16 }
 0x2d4   :  { %p6290_p9 = por %p6289_p8, %p6288_p7 }
 0x2d6   :  { %p6291_p10 = pnand %p6290_p9, %p6284_p6 }
 0x2d8   :  { %6294 = shalt.err (!%p6291_p10)  }
 0x2d9   :  { %530 = dma.hbm_to_vmem [thread:$0]  %s518_s22, 16, %s7104_s17, [#allocation13 + $0x5] }
 0x2da   :  { %s4917_s28 = sshll.u32 %s7101_s18, 4  ;;  %s4918_s30 = sld [smem:[#allocation15 + $0x1f]] }
 0x2db   :  { %s533_s13 = scalar_lea.hbm %s8563_s1, %s4917_s28 }
 0x2dc   :  { %s6295_s11 = scalar_lea.hbm %s533_s13, 16  ;;  %p6298_p12 = scmp.lt.u32.totalorder %s533_s13, %s8563_s1 }
 0x2dd   :  { %p6296_p11 = scmp.ne.s32.totalorder %s533_s13, %s6295_s11  ;;  %p6299_p13 = scmp.lt.u32.totalorder %s6661_s21, %s6295_s11 }
 0x2de   :  { %p6301_p1 = scmp.lt.u32.totalorder %s6295_s11, %s533_s13 }
 0x2df   :  { %p6300_p0 = por %p6299_p13, %p6298_p12 }
 0x2e1   :  { %p6302_p2 = por %p6301_p1, %p6300_p0 }
 0x2e3   :  { %p6303_p3 = pnand %p6302_p2, %p6296_p11 }
 0x2e5   :  { %6306 = shalt.err (!%p6303_p3)  }
 0x2e6   :  { %s6307_s17 = scalar_lea.vmem %s7119_s29, 16  ;;  %p6312_p5 = scmp.lt.s32.totalorder %s7119_s29, %s6644_s9 }
 0x2e7   :  { %p6308_p4 = scmp.ne.s32.totalorder %s7119_s29, %s6307_s17  ;;  %p6313_p6 = scmp.lt.s32.totalorder %s6670_s26, %s6307_s17 }
 0x2e9   :  { %p6314_p7 = por %p6313_p6, %p6312_p5 }
 0x2eb   :  { %p6315_p8 = pnand %p6314_p7, %p6308_p4 }
 0x2ed   :  { %6318 = shalt.err (!%p6315_p8)  }
 0x2ee   :  { %545 = dma.hbm_to_vmem [thread:$0]  %s533_s13, 16, %s7119_s29, [#allocation13 + $0x6] }
 0x2ef   :  { %s6508_s18 = smov [#allocation2 + $0x1f]   ;;  %s565_s27 = sld [smem:[#allocation0]]  }
 0x2f0   :  { %s557_s15 = sshll.u32 %s6508_s18, 4  ;;  %s6509_s19 = smov [#allocation6]   ;;  %s558_s15 = int_to_ptr.vmem [resolvable:$true] %s557_s15 }
 0x2f1   :  { %s7145_s22 = sshll.u32 %s6509_s19, 4  ;;  %s4919_s0 = sshll.u32 %s4918_s30, 4  ;;  %s574_s22 = int_to_ptr.vmem [resolvable:$true] %s7145_s22 }
 0x2f2   :  { %s548_s16 = scalar_lea.hbm %s8563_s1, %s4919_s0  ;;  %s6510_s28 = smov 1024  }
 0x2f3   :  { %577 = sst [smem:[#allocation91]] %s6510_s28  ;;  %s6319_s14 = scalar_lea.hbm %s548_s16, 16 }
 0x2f4   :  { %p6320_p9 = scmp.ne.s32.totalorder %s548_s16, %s6319_s14  ;;  %p6322_p10 = scmp.lt.u32.totalorder %s548_s16, %s8563_s1 }
 0x2f5   :  { %p6323_p11 = scmp.lt.u32.totalorder %s6661_s21, %s6319_s14  ;;  %p6325_p13 = scmp.lt.u32.totalorder %s6319_s14, %s548_s16 }
 0x2f7   :  { %p6324_p12 = por %p6323_p11, %p6322_p10 }
 0x2f9   :  { %p6326_p0 = por %p6325_p13, %p6324_p12 }
 0x2fb   :  { %p6327_p1 = pnand %p6326_p0, %p6320_p9 }
 0x2fd   :  { %6330 = shalt.err (!%p6327_p1)  }
 0x2fe   :  { %s6331_s30 = scalar_lea.vmem %s558_s15, 16  ;;  %p6336_p3 = scmp.lt.s32.totalorder %s558_s15, %s6644_s9 }
 0x2ff   :  { %p6332_p2 = scmp.ne.s32.totalorder %s558_s15, %s6331_s30  ;;  %p6337_p4 = scmp.lt.s32.totalorder %s6670_s26, %s6331_s30 }
 0x301   :  { %p6338_p5 = por %p6337_p4, %p6336_p3 }
 0x303   :  { %p6339_p6 = pnand %p6338_p5, %p6332_p2 }
 0x305   :  { %6342 = shalt.err (!%p6339_p6)  }
 0x306   :  { %560 = dma.hbm_to_vmem [thread:$0]  %s548_s16, 16, %s558_s15, [#allocation13 + $0x7] }
 0x307   :  { %s4920_s13 = sshll.u32 %s565_s27, 26  ;;  %579 = sst [smem:[#allocation91 + $0x1]] %s6510_s28 }
 0x308   :  { %s7159_s1 = sadd.s32 134217728, %s4920_s13  ;;  %s6511_s21 = smov 8  }
 0x309   :  { %581 = sst [smem:[#allocation91 + $0x2]] %s6511_s21  ;;  %s6512_s11 = smov 64  }
 0x30a   :  { %583 = sst [smem:[#allocation91 + $0x3]] %s6512_s11  ;;  %s6513_s23 = smov 128  }
 0x30b   :  { %585 = sst [smem:[#allocation91 + $0x4]] %s6513_s23  ;;  %s6514_s9 = smov 2  }
 0x30c   :  { %587 = sst [smem:[#allocation91 + $0x5]] %s6514_s9  ;;  %s6515_s26 = smov 512  }
 0x30d   :  { %589 = sst [smem:[#allocation91 + $0x6]] %s6515_s26  ;;  %s6516_s20 = smov 4  }
 0x30e   :  { %591 = sst [smem:[#allocation91 + $0x7]] %s6512_s11  ;;  %s6517_s17 = smov [#allocation14]  }
 0x30f   :  { %593 = sst [smem:[#allocation91 + $0x8]] %s6516_s20  ;;  %s6518_s18 = smov [#allocation90]  }
 0x310   :  { %595 = dma.general %s8564_s2, 8192, %s574_s22, %s6517_s17, %s6518_s18, [#allocation91], %s7159_s1, 0  }
 0x311   :  { %612 = sst [smem:[#allocation93]] %s6515_s26  ;;  %s6519_s19 = smov [#allocation7]  }
 0x312   :  { %614 = sst [smem:[#allocation93 + $0x1]] %s6515_s26  ;;  %s608_s0 = sshll.u32 %s6519_s19, 4  ;;  %s609_s0 = int_to_ptr.vmem [resolvable:$true] %s608_s0 }
 0x313   :  { %616 = sst [smem:[#allocation93 + $0x2]] %s6516_s20  ;;  %s6520_s24 = smov 256  }
 0x314   :  { %618 = sst [smem:[#allocation93 + $0x3]] %s6512_s11  ;;  %s6521_s2 = smov [#allocation14 + $0x1]  }
 0x315   :  { %620 = sst [smem:[#allocation93 + $0x4]] %s6513_s23  ;;  %s6522_s22 = smov [#allocation92]  }
 0x316   :  { %622 = sst [smem:[#allocation93 + $0x5]] %s6514_s9  ;;  %s6523_s14 = smov [#allocation8]  }
 0x317   :  { %624 = sst [smem:[#allocation93 + $0x6]] %s6520_s24  ;;  %s643_s29 = sshll.u32 %s6523_s14, 4  ;;  %s644_s29 = int_to_ptr.vmem [resolvable:$true] %s643_s29 }
 0x318   :  { %626 = sst [smem:[#allocation93 + $0x7]] %s6512_s11  ;;  %s6525_s25 = smov [#allocation94]  }
 0x319   :  { %628 = sst [smem:[#allocation93 + $0x8]] %s6516_s20  ;;  %s6526_s17 = smov [#allocation9]  }
 0x31a   :  { %630 = dma.general %s8565_s3, 4096, %s609_s0, %s6521_s2, %s6522_s22, [#allocation93], %s7159_s1, 0  }
 0x31b   :  { %647 = sst [smem:[#allocation95]] %s6515_s26  ;;  %s6524_s3 = smov [#allocation14 + $0x2]  }
 0x31c   :  { %649 = sst [smem:[#allocation95 + $0x1]] %s6515_s26  ;;  %s678_s18 = sshll.u32 %s6526_s17, 4  ;;  %s679_s18 = int_to_ptr.vmem [resolvable:$true] %s678_s18 }
 0x31d   :  { %651 = sst [smem:[#allocation95 + $0x2]] %s6516_s20  ;;  %s6528_s15 = smov [#allocation96]  }
 0x31e   :  { %653 = sst [smem:[#allocation95 + $0x3]] %s6512_s11  ;;  %s6531_s0 = smov [#allocation98]  }
 0x31f   :  { %655 = sst [smem:[#allocation95 + $0x4]] %s6513_s23  ;;  %s6532_s5 = smov [#allocation11]  }
 0x320   :  { %657 = sst [smem:[#allocation95 + $0x5]] %s6514_s9  ;;  %s748_s16 = sshll.u32 %s6532_s5, 4  ;;  %s749_s16 = int_to_ptr.vmem [resolvable:$true] %s748_s16 }
 0x321   :  { %659 = sst [smem:[#allocation95 + $0x6]] %s6520_s24  ;;  %s6533_s14 = smov [#allocation12]  }
 0x322   :  { %661 = sst [smem:[#allocation95 + $0x7]] %s6512_s11 }
 0x323   :  { %663 = sst [smem:[#allocation95 + $0x8]] %s6516_s20 }
 0x324   :  { %665 = dma.general %s8566_s4, 4096, %s644_s29, %s6524_s3, %s6525_s25, [#allocation95], %s7159_s1, 0  }
 0x325   :  { %682 = sst [smem:[#allocation97]] %s6510_s28  ;;  %s6527_s4 = smov [#allocation14 + $0x3]  }
 0x326   :  { %684 = sst [smem:[#allocation97 + $0x1]] %s6510_s28  ;;  %s779_s29 = sshll.u32 %s6533_s14, 4  ;;  %s780_s29 = int_to_ptr.vmem [resolvable:$true] %s779_s29 }
 0x327   :  { %686 = sst [smem:[#allocation97 + $0x2]] %s6511_s21  ;;  %s6529_s21 = smov [#allocation10]  }
 0x328   :  { %688 = sst [smem:[#allocation97 + $0x3]] %s6512_s11  ;;  %s713_s19 = sshll.u32 %s6529_s21, 4  ;;  %s714_s19 = int_to_ptr.vmem [resolvable:$true] %s713_s19 }
 0x329   :  { %690 = sst [smem:[#allocation97 + $0x4]] %s6513_s23 }
 0x32a   :  { %692 = sst [smem:[#allocation97 + $0x5]] %s6514_s9 }
 0x32b   :  { %694 = sst [smem:[#allocation97 + $0x6]] %s6515_s26 }
 0x32c   :  { %696 = sst [smem:[#allocation97 + $0x7]] %s6512_s11 }
 0x32d   :  { %698 = sst [smem:[#allocation97 + $0x8]] %s6516_s20 }
 0x32e   :  { %700 = dma.general %s8568_s6, 16384, %s679_s18, %s6527_s4, %s6528_s15, [#allocation97], %s7159_s1, 0  }
 0x32f   :  { %717 = sst [smem:[#allocation99]] %s6515_s26  ;;  %s6530_s6 = smov [#allocation14 + $0x4]  }
 0x330   :  { %719 = sst [smem:[#allocation99 + $0x1]] %s6515_s26 }
 0x331   :  { %721 = sst [smem:[#allocation99 + $0x2]] %s6516_s20 }
 0x332   :  { %723 = sst [smem:[#allocation99 + $0x3]] %s6512_s11 }
 0x333   :  { %725 = sst [smem:[#allocation99 + $0x4]] %s6513_s23 }
 0x334   :  { %727 = sst [smem:[#allocation99 + $0x5]] %s6514_s9 }
 0x335   :  { %729 = sst [smem:[#allocation99 + $0x6]] %s6520_s24 }
 0x336   :  { %731 = sst [smem:[#allocation99 + $0x7]] %s6512_s11 }
 0x337   :  { %733 = sst [smem:[#allocation99 + $0x8]] %s6516_s20 }
 0x338   :  { %735 = dma.general %s8569_s7, 4096, %s714_s19, %s6530_s6, %s6531_s0, [#allocation99], %s7159_s1, 0  }
 0x339   :  { %752 = sst [smem:[#allocation101]] %s6515_s26  ;;  %s6534_s7 = smov [#allocation14 + $0x5]  }
 0x33a   :  { %754 = sst [smem:[#allocation101 + $0x1]] %s6515_s26  ;;  %s6535_s26 = smov [#allocation100]  }
 0x33b   :  { %756 = sst [smem:[#allocation101 + $0x2]] %s6516_s20 }
 0x33c   :  { %758 = sst [smem:[#allocation101 + $0x3]] %s6512_s11 }
 0x33d   :  { %760 = sst [smem:[#allocation101 + $0x4]] %s6513_s23  ;;  %s6343_s23 = scalar_lea.hbm %s8572_s10, 16384 }
 0x33e   :  { %762 = sst [smem:[#allocation101 + $0x5]] %s6514_s9  ;;  %p6344_p7 = scmp.ne.s32.totalorder %s8572_s10, %s6343_s23 }
 0x33f   :  { %764 = sst [smem:[#allocation101 + $0x6]] %s6520_s24  ;;  %p6347_p8 = scmp.lt.u32.totalorder %s6343_s23, %s8572_s10 }
 0x340   :  { %766 = sst [smem:[#allocation101 + $0x7]] %s6512_s11 }
 0x341   :  { %768 = sst [smem:[#allocation101 + $0x8]] %s6516_s20  ;;  %p6349_p9 = pnand %p6347_p8, %p6344_p7 }
 0x342   :  { %770 = dma.general %s8570_s8, 4096, %s749_s16, %s6534_s7, %s6535_s26, [#allocation101], %s7159_s1, 0  }
 0x343   :  { %6352 = shalt.err (!%p6349_p9)  }
 0x344   :  { %s6353_s11 = scalar_lea.vmem %s780_s29, 16384  ;;  %p6358_p11 = scmp.lt.s32.totalorder %s780_s29, %s780_s29 }
 0x345   :  { %p6354_p10 = scmp.ne.s32.totalorder %s780_s29, %s6353_s11  ;;  %p6359_p12 = scmp.lt.s32.totalorder %s6353_s11, %s6353_s11 }
 0x347   :  { %p6360_p13 = por %p6359_p12, %p6358_p11 }
 0x349   :  { %p6361_p0 = pnand %p6360_p13, %p6354_p10 }
 0x34b   :  { %6364 = shalt.err (!%p6361_p0)  }
 0x34c   :  { %782 = dma.hbm_to_vmem [thread:$0]  %s8572_s10, 16384, %s780_s29, [#allocation14 + $0x6] }
 0x34d   :  { %6393 = dma.done.wait [#allocation13], 16 }
 0x34e   :  { %6394 = vsyncadd [#allocation13], 4294967280 }
 0x34f   :  { %6395 = dma.done.wait [#allocation13 + $0x1], 16 }
 0x350   :  { %6396 = vsyncadd [#allocation13 + $0x1], 4294967280 }
 0x351   :  { %6397 = dma.done.wait [#allocation13 + $0x2], 16 }
 0x352   :  { %6398 = vsyncadd [#allocation13 + $0x2], 4294967280 }
 0x353   :  { %6399 = dma.done.wait [#allocation13 + $0x3], 16 }
 0x354   :  { %6400 = vsyncadd [#allocation13 + $0x3], 4294967280 }
 0x355   :  { %6401 = dma.done.wait [#allocation13 + $0x4], 16 }
 0x356   :  { %6402 = vsyncadd [#allocation13 + $0x4], 4294967280 }
 0x357   :  { %6403 = dma.done.wait [#allocation13 + $0x5], 16 }
 0x358   :  { %6404 = vsyncadd [#allocation13 + $0x5], 4294967280 }
 0x359   :  { %6405 = dma.done.wait [#allocation13 + $0x6], 16 }
 0x35a   :  { %6406 = vsyncadd [#allocation13 + $0x6], 4294967280 }
 0x35b   :  { %6407 = dma.done.wait [#allocation13 + $0x7], 16 }
 0x35c   :  { %6408 = vsyncadd [#allocation13 + $0x7], 4294967280 }
 0x35d   :  { %6409 = dma.done.wait [#allocation13], 16 }
 0x35e   :  { %6410 = vsyncadd [#allocation13], 4294967280 }
 0x35f   :  { %6411 = dma.done.wait [#allocation13 + $0x1], 16 }
 0x360   :  { %6412 = vsyncadd [#allocation13 + $0x1], 4294967280 }
 0x361   :  { %6413 = dma.done.wait [#allocation13 + $0x2], 16 }
 0x362   :  { %6414 = vsyncadd [#allocation13 + $0x2], 4294967280 }
 0x363   :  { %6415 = dma.done.wait [#allocation13 + $0x3], 16 }
 0x364   :  { %6416 = vsyncadd [#allocation13 + $0x3], 4294967280 }
 0x365   :  { %6417 = dma.done.wait [#allocation13 + $0x4], 16 }
 0x366   :  { %6418 = vsyncadd [#allocation13 + $0x4], 4294967280 }
 0x367   :  { %6419 = dma.done.wait [#allocation13 + $0x5], 16 }
 0x368   :  { %6420 = vsyncadd [#allocation13 + $0x5], 4294967280 }
 0x369   :  { %6421 = dma.done.wait [#allocation13 + $0x6], 16 }
 0x36a   :  { %6422 = vsyncadd [#allocation13 + $0x6], 4294967280 }
 0x36b   :  { %6423 = dma.done.wait [#allocation13 + $0x7], 16 }
 0x36c   :  { %6424 = vsyncadd [#allocation13 + $0x7], 4294967280 }
 0x36d   :  { %6425 = dma.done.wait [#allocation13], 16 }
 0x36e   :  { %6426 = vsyncadd [#allocation13], 4294967280 }
 0x36f   :  { %6427 = dma.done.wait [#allocation13 + $0x1], 16 }
 0x370   :  { %6428 = vsyncadd [#allocation13 + $0x1], 4294967280 }
 0x371   :  { %6429 = dma.done.wait [#allocation13 + $0x2], 16 }
 0x372   :  { %6430 = vsyncadd [#allocation13 + $0x2], 4294967280 }
 0x373   :  { %6431 = dma.done.wait [#allocation13 + $0x3], 16 }
 0x374   :  { %6432 = vsyncadd [#allocation13 + $0x3], 4294967280 }
 0x375   :  { %6433 = dma.done.wait [#allocation13 + $0x4], 16 }
 0x376   :  { %6434 = vsyncadd [#allocation13 + $0x4], 4294967280 }
 0x377   :  { %6435 = dma.done.wait [#allocation13 + $0x5], 16 }
 0x378   :  { %6436 = vsyncadd [#allocation13 + $0x5], 4294967280 }
 0x379   :  { %6437 = dma.done.wait [#allocation13 + $0x6], 16 }
 0x37a   :  { %6438 = vsyncadd [#allocation13 + $0x6], 4294967280 }
 0x37b   :  { %6439 = dma.done.wait [#allocation13 + $0x7], 16 }
 0x37c   :  { %6440 = vsyncadd [#allocation13 + $0x7], 4294967280 }
 0x37d   :  { %6441 = dma.done.wait [#allocation13], 16 }
 0x37e   :  { %6442 = vsyncadd [#allocation13], 4294967280 }
 0x37f   :  { %6443 = dma.done.wait [#allocation13 + $0x1], 16 }
 0x380   :  { %6444 = vsyncadd [#allocation13 + $0x1], 4294967280 }
 0x381   :  { %6445 = dma.done.wait [#allocation13 + $0x2], 16 }
 0x382   :  { %6446 = vsyncadd [#allocation13 + $0x2], 4294967280 }
 0x383   :  { %6447 = dma.done.wait [#allocation13 + $0x3], 16 }
 0x384   :  { %6448 = vsyncadd [#allocation13 + $0x3], 4294967280 }
 0x385   :  { %6449 = dma.done.wait [#allocation13 + $0x4], 16 }
 0x386   :  { %6450 = vsyncadd [#allocation13 + $0x4], 4294967280 }
 0x387   :  { %6451 = dma.done.wait [#allocation13 + $0x5], 16 }
 0x388   :  { %6452 = vsyncadd [#allocation13 + $0x5], 4294967280 }
 0x389   :  { %6453 = dma.done.wait [#allocation13 + $0x6], 16 }
 0x38a   :  { %6454 = vsyncadd [#allocation13 + $0x6], 4294967280 }
 0x38b   :  { %6455 = dma.done.wait [#allocation13 + $0x7], 16 }
 0x38c   :  { %6456 = vsyncadd [#allocation13 + $0x7], 4294967280 }
 0x38d   :  { %6457 = dma.done.wait [#allocation14], 8192 }
 0x38e   :  { %6458 = vsyncadd [#allocation14], 4294959104 }
 0x38f   :  { %6459 = dma.done.wait [#allocation14 + $0x1], 4096 }
 0x390   :  { %6460 = vsyncadd [#allocation14 + $0x1], 4294963200 }
 0x391   :  { %6461 = dma.done.wait [#allocation14 + $0x2], 4096 }
 0x392   :  { %6462 = vsyncadd [#allocation14 + $0x2], 4294963200  ;;  %v8575_v0 = vmov 0   ;;  %v864_v1 = vld [vmem:[#allocation6 + $0x8] sm:$0xff]  ;;  %v866_v2 = vld [vmem:[#allocation6 + $0x18] sm:$0xff] }
 0x393   :  { %1001 = vmatprep.mubr.bf16.mxu0 %v8575_v0  ;;  %1054 = vmatprep.mubr.bf16.mxu1 %v8575_v0  ;;  %v863_v3 = vld [vmem:[#allocation6] sm:$0xff]  ;;  %v865_v4 = vld [vmem:[#allocation6 + $0x10] sm:$0xff]  ;;  %v872_v5 = vld [vmem:[#allocation6 + $0x48] sm:$0xff] }
 0x394   :  { %969 = vmatprep.subr.bf16.mxu0 %v864_v1  ;;  %1022 = vmatprep.subr.bf16.mxu1 %v866_v2  ;;  %v874_v6 = vld [vmem:[#allocation6 + $0x58] sm:$0xff]  ;;  %v871_v7 = vld [vmem:[#allocation6 + $0x40] sm:$0xff]  ;;  %v873_v8 = vld [vmem:[#allocation6 + $0x50] sm:$0xff] }
 0x395   :  { %970 = vmatpush1.bf16.msra.mxu0 %v863_v3  ;;  %1023 = vmatpush1.bf16.msra.mxu1 %v865_v4  ;;  %v880_v9 = vld [vmem:[#allocation6 + $0x88] sm:$0xff]  ;;  %v882_v10 = vld [vmem:[#allocation6 + $0x98] sm:$0xff]  ;;  %v879_v11 = vld [vmem:[#allocation6 + $0x80] sm:$0xff] }
 0x396   :  { %971 = vmatprep.subr.bf16.mxu0 %v872_v5  ;;  %1024 = vmatprep.subr.bf16.mxu1 %v874_v6  ;;  %v881_v12 = vld [vmem:[#allocation6 + $0x90] sm:$0xff]  ;;  %v888_v13 = vld [vmem:[#allocation6 + $0xc8] sm:$0xff]  ;;  %v890_v14 = vld [vmem:[#allocation6 + $0xd8] sm:$0xff] }
 0x397   :  { %v887_v15 = vld [vmem:[#allocation6 + $0xc0] sm:$0xff]  ;;  %v889_v16 = vld [vmem:[#allocation6 + $0xd0] sm:$0xff]  ;;  %v896_v17 = vld [vmem:[#allocation6 + $0x108] sm:$0xff] }
 0x398   :  { %v898_v18 = vld [vmem:[#allocation6 + $0x118] sm:$0xff]  ;;  %v895_v19 = vld [vmem:[#allocation6 + $0x100] sm:$0xff]  ;;  %v897_v20 = vld [vmem:[#allocation6 + $0x110] sm:$0xff] }
 0x399   :  { %972 = vmatpush1.bf16.msra.mxu0 %v871_v7  ;;  %1025 = vmatpush1.bf16.msra.mxu1 %v873_v8  ;;  %v904_v21 = vld [vmem:[#allocation6 + $0x148] sm:$0xff]  ;;  %v906_v22 = vld [vmem:[#allocation6 + $0x158] sm:$0xff]  ;;  %v903_v23 = vld [vmem:[#allocation6 + $0x140] sm:$0xff] }
 0x39a   :  { %973 = vmatprep.subr.bf16.mxu0 %v880_v9  ;;  %1026 = vmatprep.subr.bf16.mxu1 %v882_v10  ;;  %v905_v24 = vld [vmem:[#allocation6 + $0x150] sm:$0xff]  ;;  %v912_v25 = vld [vmem:[#allocation6 + $0x188] sm:$0xff]  ;;  %v914_v26 = vld [vmem:[#allocation6 + $0x198] sm:$0xff] }
 0x39b   :  { %v911_v27 = vld [vmem:[#allocation6 + $0x180] sm:$0xff]  ;;  %v913_v28 = vld [vmem:[#allocation6 + $0x190] sm:$0xff]  ;;  %v920_v29 = vld [vmem:[#allocation6 + $0x1c8] sm:$0xff] }
 0x39c   :  { %v922_v30 = vld [vmem:[#allocation6 + $0x1d8] sm:$0xff]  ;;  %v857_v31 = vld [vmem:[#allocation2] sm:$0xff]  ;;  %v858_v32 = vld [vmem:[#allocation2 + $0x8] sm:$0xff] }
 0x39d   :  { %974 = vmatpush1.bf16.msra.mxu0 %v879_v11  ;;  %1027 = vmatpush1.bf16.msra.mxu1 %v881_v12  ;;  %v919_v33 = vld [vmem:[#allocation6 + $0x1c0] sm:$0xff]  ;;  %v921_v34 = vld [vmem:[#allocation6 + $0x1d0] sm:$0xff]  ;;  %v868_v35 = vld [vmem:[#allocation6 + $0x28] sm:$0xff]  ;;  %v7253_v37 = vpack.c.bf16 %v858_v32, %v857_v31 }
 0x39e   :  { %975 = vmatprep.subr.bf16.mxu0 %v888_v13  ;;  %1028 = vmatprep.subr.bf16.mxu1 %v890_v14  ;;  %v870_v36 = vld [vmem:[#allocation6 + $0x38] sm:$0xff]  ;;  %v867_v38 = vld [vmem:[#allocation6 + $0x20] sm:$0xff]  ;;  %v869_v39 = vld [vmem:[#allocation6 + $0x30] sm:$0xff] }
 0x39f   :  { %v876_v40 = vld [vmem:[#allocation6 + $0x68] sm:$0xff]  ;;  %v878_v41 = vld [vmem:[#allocation6 + $0x78] sm:$0xff]  ;;  %v859_v42 = vld [vmem:[#allocation2 + $0x10] sm:$0xff] }
 0x3a0   :  { %v860_v43 = vld [vmem:[#allocation2 + $0x18] sm:$0xff]  ;;  %v875_v44 = vld [vmem:[#allocation6 + $0x60] sm:$0xff]  ;;  %v877_v45 = vld [vmem:[#allocation6 + $0x70] sm:$0xff] }
 0x3a1   :  { %976 = vmatpush1.bf16.msra.mxu0 %v887_v15  ;;  %1029 = vmatpush1.bf16.msra.mxu1 %v889_v16  ;;  %v884_v46 = vld [vmem:[#allocation6 + $0xa8] sm:$0xff]  ;;  %v886_v47 = vld [vmem:[#allocation6 + $0xb8] sm:$0xff]  ;;  %v7259_v48 = vpack.c.bf16 %v860_v43, %v859_v42  ;;  %v883_v49 = vld [vmem:[#allocation6 + $0xa0] sm:$0xff] }
 0x3a2   :  { %977 = vmatprep.subr.bf16.mxu0 %v896_v17  ;;  %1030 = vmatprep.subr.bf16.mxu1 %v898_v18  ;;  %v885_v50 = vld [vmem:[#allocation6 + $0xb0] sm:$0xff]  ;;  %v892_v51 = vld [vmem:[#allocation6 + $0xe8] sm:$0xff]  ;;  %v894_v52 = vld [vmem:[#allocation6 + $0xf8] sm:$0xff] }
 0x3a3   :  { %v891_v53 = vld [vmem:[#allocation6 + $0xe0] sm:$0xff]  ;;  %v893_v54 = vld [vmem:[#allocation6 + $0xf0] sm:$0xff]  ;;  %v900_v55 = vld [vmem:[#allocation6 + $0x128] sm:$0xff] }
 0x3a4   :  { %v902_v56 = vld [vmem:[#allocation6 + $0x138] sm:$0xff]  ;;  %v899_v57 = vld [vmem:[#allocation6 + $0x120] sm:$0xff]  ;;  %v901_v58 = vld [vmem:[#allocation6 + $0x130] sm:$0xff] }
 0x3a5   :  { %978 = vmatpush1.bf16.msra.mxu0 %v895_v19  ;;  %1031 = vmatpush1.bf16.msra.mxu1 %v897_v20  ;;  %v908_v59 = vld [vmem:[#allocation6 + $0x168] sm:$0xff]  ;;  %v910_v60 = vld [vmem:[#allocation6 + $0x178] sm:$0xff]  ;;  %v907_v61 = vld [vmem:[#allocation6 + $0x160] sm:$0xff] }
 0x3a6   :  { %979 = vmatprep.subr.bf16.mxu0 %v904_v21  ;;  %1032 = vmatprep.subr.bf16.mxu1 %v906_v22  ;;  %v909_v62 = vld [vmem:[#allocation6 + $0x170] sm:$0xff]  ;;  %v916_v63 = vld [vmem:[#allocation6 + $0x1a8] sm:$0xff]  ;;  %v918_v1 = vld [vmem:[#allocation6 + $0x1b8] sm:$0xff] }
 0x3a7   :  { %v915_v2 = vld [vmem:[#allocation6 + $0x1a0] sm:$0xff]  ;;  %v917_v3 = vld [vmem:[#allocation6 + $0x1b0] sm:$0xff]  ;;  %v924_v4 = vld [vmem:[#allocation6 + $0x1e8] sm:$0xff] }
 0x3a8   :  { %v926_v5 = vld [vmem:[#allocation6 + $0x1f8] sm:$0xff]  ;;  %v923_v6 = vld [vmem:[#allocation6 + $0x1e0] sm:$0xff]  ;;  %v925_v7 = vld [vmem:[#allocation6 + $0x1f0] sm:$0xff] }
 0x3a9   :  { %980 = vmatpush1.bf16.msra.mxu0 %v903_v23  ;;  %1033 = vmatpush1.bf16.msra.mxu1 %v905_v24  ;;  %v7265_v8 = vld [vmem:[#allocation7 + $0x8] sm:$0xff]  ;;  %v7267_v9 = vld [vmem:[#allocation7 + $0x18] sm:$0xff]  ;;  %v7271_v10 = vld [vmem:[#allocation7] sm:$0xff] }
 0x3aa   :  { %981 = vmatprep.subr.bf16.mxu0 %v912_v25  ;;  %1034 = vmatprep.subr.bf16.mxu1 %v914_v26  ;;  %v7273_v11 = vld [vmem:[#allocation7 + $0x10] sm:$0xff]  ;;  %v7275_v12 = vld [vmem:[#allocation7 + $0x28] sm:$0xff]  ;;  %v7277_v13 = vld [vmem:[#allocation7 + $0x38] sm:$0xff] }
 0x3ab   :  { %8657 = vst [vmem:[#allocation147_spill] sm:$0xff] %v7273_v11  ;;  %8658 = vst [vmem:[#allocation148_spill] sm:$0xff] %v7275_v12  ;;  %v7285_v14 = vld [vmem:[#allocation7 + $0x20] sm:$0xff]  ;;  %v7287_v15 = vld [vmem:[#allocation7 + $0x30] sm:$0xff] }
 0x3ac   :  { %8659 = vst [vmem:[#allocation149_spill] sm:$0xff] %v7277_v13  ;;  %8660 = vst [vmem:[#allocation150_spill] sm:$0xff] %v7285_v14  ;;  %v7289_v16 = vld [vmem:[#allocation7 + $0x48] sm:$0xff]  ;;  %v7291_v17 = vld [vmem:[#allocation7 + $0x58] sm:$0xff] }
 0x3ad   :  { %982 = vmatpush1.bf16.msra.mxu0 %v911_v27  ;;  %1035 = vmatpush1.bf16.msra.mxu1 %v913_v28  ;;  %8661 = vst [vmem:[#allocation151_spill] sm:$0xff] %v7287_v15  ;;  %8662 = vst [vmem:[#allocation152_spill] sm:$0xff] %v7289_v16  ;;  %v7299_v18 = vld [vmem:[#allocation7 + $0x40] sm:$0xff]  ;;  %v7301_v19 = vld [vmem:[#allocation7 + $0x50] sm:$0xff] }
 0x3ae   :  { %983 = vmatprep.subr.bf16.mxu0 %v920_v29  ;;  %1036 = vmatprep.subr.bf16.mxu1 %v922_v30  ;;  %8663 = vst [vmem:[#allocation153_spill] sm:$0xff] %v7291_v17  ;;  %8664 = vst [vmem:[#allocation154_spill] sm:$0xff] %v7299_v18  ;;  %v7303_v20 = vld [vmem:[#allocation7 + $0x68] sm:$0xff]  ;;  %v7305_v21 = vld [vmem:[#allocation7 + $0x78] sm:$0xff] }
 0x3af   :  { %8665 = vst [vmem:[#allocation155_spill] sm:$0xff] %v7301_v19  ;;  %8666 = vst [vmem:[#allocation156_spill] sm:$0xff] %v7303_v20  ;;  %v7313_v22 = vld [vmem:[#allocation7 + $0x60] sm:$0xff]  ;;  %v7315_v23 = vld [vmem:[#allocation7 + $0x70] sm:$0xff] }
 0x3b0   :  { %8667 = vst [vmem:[#allocation157_spill] sm:$0xff] %v7305_v21  ;;  %8668 = vst [vmem:[#allocation158_spill] sm:$0xff] %v7313_v22  ;;  %v7317_v24 = vld [vmem:[#allocation7 + $0x88] sm:$0xff]  ;;  %v7319_v25 = vld [vmem:[#allocation7 + $0x98] sm:$0xff] }
 0x3b1   :  { %984 = vmatpush1.bf16.msra.mxu0 %v919_v33  ;;  %1037 = vmatpush1.bf16.msra.mxu1 %v921_v34  ;;  %8669 = vst [vmem:[#allocation159_spill] sm:$0xff] %v7315_v23  ;;  %8670 = vst [vmem:[#allocation160_spill] sm:$0xff] %v7317_v24  ;;  %v7327_v26 = vld [vmem:[#allocation7 + $0x80] sm:$0xff]  ;;  %v7329_v27 = vld [vmem:[#allocation7 + $0x90] sm:$0xff] }
 0x3b2   :  { %1075 = vmatprep.subr.bf16.mxu0 %v868_v35  ;;  %1128 = vmatprep.subr.bf16.mxu1 %v870_v36  ;;  %8671 = vst [vmem:[#allocation161_spill] sm:$0xff] %v7319_v25  ;;  %8672 = vst [vmem:[#allocation162_spill] sm:$0xff] %v7327_v26  ;;  %v7331_v28 = vld [vmem:[#allocation7 + $0xa8] sm:$0xff]  ;;  %v7333_v29 = vld [vmem:[#allocation7 + $0xb8] sm:$0xff] }
 0x3b3   :  { %8673 = vst [vmem:[#allocation163_spill] sm:$0xff] %v7329_v27  ;;  %8674 = vst [vmem:[#allocation164_spill] sm:$0xff] %v7331_v28  ;;  %v7339_v30 = vld [vmem:[#allocation7 + $0xa0] sm:$0xff]  ;;  %v7341_v31 = vld [vmem:[#allocation7 + $0xb0] sm:$0xff] }
 0x3b4   :  { %1002 = vmatmul.mubr.bf16.vlgmr.msra.gmra.mrb[0].mxu0 %v7253_v37  ;;  %1055 = vmatmul.mubr.bf16.vlgmr.msra.gmra.mrb[0].mxu1 %v7253_v37  ;;  %8675 = vst [vmem:[#allocation165_spill] sm:$0xff] %v7333_v29  ;;  %8676 = vst [vmem:[#allocation166_spill] sm:$0xff] %v7339_v30  ;;  %v7343_v32 = vld [vmem:[#allocation7 + $0xc8] sm:$0xff]  ;;  %v7345_v33 = vld [vmem:[#allocation7 + $0xd8] sm:$0xff] }
 0x3b5   :  { %1076 = vmatpush1.bf16.msra.mxu0 %v867_v38  ;;  %1129 = vmatpush1.bf16.msra.mxu1 %v869_v39  ;;  %8677 = vst [vmem:[#allocation167_spill] sm:$0xff] %v7341_v31  ;;  %8678 = vst [vmem:[#allocation168_spill] sm:$0xff] %v7343_v32  ;;  %v7351_v34 = vld [vmem:[#allocation7 + $0xc0] sm:$0xff]  ;;  %v7353_v35 = vld [vmem:[#allocation7 + $0xd0] sm:$0xff] }
 0x3b6   :  { %1077 = vmatprep.subr.bf16.mxu0 %v876_v40  ;;  %1130 = vmatprep.subr.bf16.mxu1 %v878_v41  ;;  %8679 = vst [vmem:[#allocation169_spill] sm:$0xff] %v7345_v33  ;;  %8680 = vst [vmem:[#allocation170_spill] sm:$0xff] %v7351_v34  ;;  %v7355_v36 = vld [vmem:[#allocation7 + $0xe8] sm:$0xff]  ;;  %v7363_v38 = vld [vmem:[#allocation7 + $0xe0] sm:$0xff] }
 0x3b7   :  { %1011 = vmatprep.mubr.bf16.mxu0 %v8575_v0  ;;  %1064 = vmatprep.mubr.bf16.mxu1 %v8575_v0  ;;  %8681 = vst [vmem:[#allocation171_spill] sm:$0xff] %v7353_v35  ;;  %8682 = vst [vmem:[#allocation172_spill] sm:$0xff] %v7355_v36  ;;  %v7365_v39 = vld [vmem:[#allocation7 + $0xf0] sm:$0xff]  ;;  %v7367_v40 = vld [vmem:[#allocation8 + $0x8] sm:$0xff] }
 0x3b8   :  { %8684 = vst [vmem:[#allocation174_spill] sm:$0xff] %v7363_v38  ;;  %8685 = vst [vmem:[#allocation175_spill] sm:$0xff] %v7365_v39  ;;  %v7369_v41 = vld [vmem:[#allocation8 + $0x18] sm:$0xff]  ;;  %v7375_v42 = vld [vmem:[#allocation8] sm:$0xff] }
 0x3b9   :  { %1078 = vmatpush1.bf16.msra.mxu0 %v875_v44  ;;  %1131 = vmatpush1.bf16.msra.mxu1 %v877_v45  ;;  %8686 = vst [vmem:[#allocation176_spill] sm:$0xff] %v7367_v40  ;;  %8687 = vst [vmem:[#allocation177_spill] sm:$0xff] %v7369_v41  ;;  %v7377_v43 = vld [vmem:[#allocation8 + $0x10] sm:$0xff]  ;;  %v7379_v44 = vld [vmem:[#allocation8 + $0x28] sm:$0xff] }
 0x3ba   :  { %1079 = vmatprep.subr.bf16.mxu0 %v884_v46  ;;  %1132 = vmatprep.subr.bf16.mxu1 %v886_v47  ;;  %v7381_v45 = vld [vmem:[#allocation8 + $0x38] sm:$0xff]  ;;  %v7389_v46 = vld [vmem:[#allocation8 + $0x20] sm:$0xff]  ;;  %v7391_v47 = vld [vmem:[#allocation8 + $0x30] sm:$0xff] }
 0x3bc   :  { %1012 = vmatmul.mubr.bf16.gmra.mrb[4].mxu0 %v7259_v48  ;;  %1065 = vmatmul.mubr.bf16.gmra.mrb[4].mxu1 %v7259_v48 }
 0x3bd   :  { %1080 = vmatpush1.bf16.msra.mxu0 %v883_v49  ;;  %1133 = vmatpush1.bf16.msra.mxu1 %v885_v50  ;;  %v7395_v49 = vld [vmem:[#allocation8 + $0x58] sm:$0xff]  ;;  %v7403_v50 = vld [vmem:[#allocation8 + $0x40] sm:$0xff] }
 0x3be   :  { %1081 = vmatprep.subr.bf16.mxu0 %v892_v51  ;;  %1134 = vmatprep.subr.bf16.mxu1 %v894_v52  ;;  %v7405_v51 = vld [vmem:[#allocation8 + $0x50] sm:$0xff]  ;;  %v7407_v52 = vld [vmem:[#allocation8 + $0x68] sm:$0xff] }
 0x3bf   :  { %1107 = vmatprep.mubr.bf16.mxu0 %v8575_v0  ;;  %1160 = vmatprep.mubr.bf16.mxu1 %v8575_v0 }
 0x3c1   :  { %1082 = vmatpush1.bf16.msra.mxu0 %v891_v53  ;;  %1135 = vmatpush1.bf16.msra.mxu1 %v893_v54  ;;  %v7409_v53 = vld [vmem:[#allocation8 + $0x78] sm:$0xff]  ;;  %v7415_v54 = vld [vmem:[#allocation8 + $0x60] sm:$0xff] }
 0x3c2   :  { %1083 = vmatprep.subr.bf16.mxu0 %v900_v55  ;;  %1136 = vmatprep.subr.bf16.mxu1 %v902_v56  ;;  %v7417_v55 = vld [vmem:[#allocation8 + $0x70] sm:$0xff]  ;;  %v7419_v56 = vld [vmem:[#allocation8 + $0x88] sm:$0xff] }
 0x3c5   :  { %1084 = vmatpush1.bf16.msra.mxu0 %v899_v57  ;;  %1137 = vmatpush1.bf16.msra.mxu1 %v901_v58  ;;  %v7421_v57 = vld [vmem:[#allocation8 + $0x98] sm:$0xff]  ;;  %v7427_v58 = vld [vmem:[#allocation8 + $0x80] sm:$0xff] }
 0x3c6   :  { %1085 = vmatprep.subr.bf16.mxu0 %v908_v59  ;;  %1138 = vmatprep.subr.bf16.mxu1 %v910_v60  ;;  %v7429_v59 = vld [vmem:[#allocation8 + $0x90] sm:$0xff]  ;;  %v7431_v60 = vld [vmem:[#allocation8 + $0xa8] sm:$0xff] }
 0x3c9   :  { %1086 = vmatpush1.bf16.msra.mxu0 %v907_v61  ;;  %1139 = vmatpush1.bf16.msra.mxu1 %v909_v62  ;;  %v7433_v61 = vld [vmem:[#allocation8 + $0xb8] sm:$0xff]  ;;  %v7439_v62 = vld [vmem:[#allocation8 + $0xa0] sm:$0xff] }
 0x3ca   :  { %1087 = vmatprep.subr.bf16.mxu0 %v916_v63  ;;  %1140 = vmatprep.subr.bf16.mxu1 %v918_v1  ;;  %v7441_v63 = vld [vmem:[#allocation8 + $0xb0] sm:$0xff]  ;;  %v7443_v1 = vld [vmem:[#allocation8 + $0xc8] sm:$0xff] }
 0x3cd   :  { %1088 = vmatpush1.bf16.msra.mxu0 %v915_v2  ;;  %1141 = vmatpush1.bf16.msra.mxu1 %v917_v3  ;;  %v7445_v2 = vld [vmem:[#allocation8 + $0xd8] sm:$0xff]  ;;  %v7451_v3 = vld [vmem:[#allocation8 + $0xc0] sm:$0xff] }
 0x3ce   :  { %1089 = vmatprep.subr.bf16.mxu0 %v924_v4  ;;  %1142 = vmatprep.subr.bf16.mxu1 %v926_v5  ;;  %8688 = vst [vmem:[#allocation178_spill] sm:$0xff] %v7445_v2  ;;  %v7453_v4 = vld [vmem:[#allocation8 + $0xd0] sm:$0xff]  ;;  %v7455_v5 = vld [vmem:[#allocation8 + $0xe8] sm:$0xff] }
 0x3d1   :  { %1090 = vmatpush1.bf16.msra.mxu0 %v923_v6  ;;  %1143 = vmatpush1.bf16.msra.mxu1 %v925_v7  ;;  %v7457_v6 = vld [vmem:[#allocation8 + $0xf8] sm:$0xff]  ;;  %v7463_v7 = vld [vmem:[#allocation8 + $0xe0] sm:$0xff] }
 0x3d2   :  { %1249 = vmatprep.subr.bf16.mxu0 %v7265_v8  ;;  %1290 = vmatprep.subr.bf16.mxu1 %v7267_v9 }
 0x3d4   :  { %1108 = vmatmul.mubr.bf16.vlgmr.msra.gmra.mrb[8].mxu0 %v7253_v37  ;;  %1161 = vmatmul.mubr.bf16.vlgmr.msra.gmra.mrb[8].mxu1 %v7253_v37  ;;  %v7357_v37 = vld [vmem:[#allocation7 + $0xf8] sm:$0xff] }
 0x3d5   :  { %1250 = vmatpush1.bf16.msra.mxu0 %v7271_v10  ;;  %1291 = vmatpush1.bf16.msra.mxu1 %v7273_v11  ;;  %8683 = vst [vmem:[#allocation173_spill] sm:$0xff] %v7357_v37 }
 0x3d6   :  { %1251 = vmatprep.subr.bf16.mxu0 %v7275_v12  ;;  %1292 = vmatprep.subr.bf16.mxu1 %v7277_v13 }
 0x3d7   :  { %1117 = vmatprep.mubr.bf16.mxu0 %v8575_v0  ;;  %1170 = vmatprep.mubr.bf16.mxu1 %v8575_v0 }
 0x3d9   :  { %1252 = vmatpush1.bf16.msra.mxu0 %v7285_v14  ;;  %1293 = vmatpush1.bf16.msra.mxu1 %v7287_v15 }
 0x3da   :  { %1253 = vmatprep.subr.bf16.mxu0 %v7289_v16  ;;  %1294 = vmatprep.subr.bf16.mxu1 %v7291_v17 }
 0x3dc   :  { %1118 = vmatmul.mubr.bf16.gmra.mrb[12].mxu0 %v7259_v48  ;;  %1171 = vmatmul.mubr.bf16.gmra.mrb[12].mxu1 %v7259_v48  ;;  %v7393_v48 = vld [vmem:[#allocation8 + $0x48] sm:$0xff] }
 0x3dd   :  { %1254 = vmatpush1.bf16.msra.mxu0 %v7299_v18  ;;  %1295 = vmatpush1.bf16.msra.mxu1 %v7301_v19 }
 0x3de   :  { %1255 = vmatprep.subr.bf16.mxu0 %v7303_v20  ;;  %1296 = vmatprep.subr.bf16.mxu1 %v7305_v21 }
 0x3df   :  { %1281 = vmatprep.mubr.bf16.mxu0 %v8575_v0  ;;  %1322 = vmatprep.mubr.bf16.mxu1 %v8575_v0 }
 0x3e1   :  { %1256 = vmatpush1.bf16.msra.mxu0 %v7313_v22  ;;  %1297 = vmatpush1.bf16.msra.mxu1 %v7315_v23 }
 0x3e2   :  { %1257 = vmatprep.subr.bf16.mxu0 %v7317_v24  ;;  %1298 = vmatprep.subr.bf16.mxu1 %v7319_v25 }
 0x3e5   :  { %1258 = vmatpush1.bf16.msra.mxu0 %v7327_v26  ;;  %1299 = vmatpush1.bf16.msra.mxu1 %v7329_v27 }
 0x3e6   :  { %1259 = vmatprep.subr.bf16.mxu0 %v7331_v28  ;;  %1300 = vmatprep.subr.bf16.mxu1 %v7333_v29 }
 0x3e9   :  { %1260 = vmatpush1.bf16.msra.mxu0 %v7339_v30  ;;  %1301 = vmatpush1.bf16.msra.mxu1 %v7341_v31 }
 0x3ea   :  { %1261 = vmatprep.subr.bf16.mxu0 %v7343_v32  ;;  %1302 = vmatprep.subr.bf16.mxu1 %v7345_v33 }
 0x3ed   :  { %1262 = vmatpush1.bf16.msra.mxu0 %v7351_v34  ;;  %1303 = vmatpush1.bf16.msra.mxu1 %v7353_v35 }
 0x3ee   :  { %1263 = vmatprep.subr.bf16.mxu0 %v7355_v36  ;;  %1304 = vmatprep.subr.bf16.mxu1 %v7357_v37 }
 0x3f1   :  { %1264 = vmatpush1.bf16.msra.mxu0 %v7363_v38  ;;  %1305 = vmatpush1.bf16.msra.mxu1 %v7365_v39 }
 0x3f2   :  { %1371 = vmatprep.subr.bf16.mxu0 %v7367_v40  ;;  %1412 = vmatprep.subr.bf16.mxu1 %v7369_v41 }
 0x3f4   :  { %1282 = vmatmul.mubr.bf16.vlgmr.msra.gmra.mrb[16].mxu0 %v8575_v0  ;;  %1323 = vmatmul.mubr.bf16.vlgmr.msra.gmra.mrb[16].mxu1 %v8575_v0 }
 0x3f5   :  { %1372 = vmatpush1.bf16.msra.mxu0 %v7375_v42  ;;  %1413 = vmatpush1.bf16.msra.mxu1 %v7377_v43 }
 0x3f6   :  { %1373 = vmatprep.subr.bf16.mxu0 %v7379_v44  ;;  %1414 = vmatprep.subr.bf16.mxu1 %v7381_v45 }
 0x3f7   :  { %1403 = vmatprep.mubr.bf16.mxu0 %v8575_v0  ;;  %1444 = vmatprep.mubr.bf16.mxu1 %v8575_v0  ;;  %v7465_v0 = vld [vmem:[#allocation8 + $0xf0] sm:$0xff] }
 0x3f9   :  { %1374 = vmatpush1.bf16.msra.mxu0 %v7389_v46  ;;  %1415 = vmatpush1.bf16.msra.mxu1 %v7391_v47 }
 0x3fa   :  { %1375 = vmatprep.subr.bf16.mxu0 %v7393_v48  ;;  %1416 = vmatprep.subr.bf16.mxu1 %v7395_v49 }
 0x3fd   :  { %1376 = vmatpush1.bf16.msra.mxu0 %v7403_v50  ;;  %1417 = vmatpush1.bf16.msra.mxu1 %v7405_v51 }
 0x3fe   :  { %1377 = vmatprep.subr.bf16.mxu0 %v7407_v52  ;;  %1418 = vmatprep.subr.bf16.mxu1 %v7409_v53 }
 0x401   :  { %1378 = vmatpush1.bf16.msra.mxu0 %v7415_v54  ;;  %1419 = vmatpush1.bf16.msra.mxu1 %v7417_v55 }
 0x402   :  { %1379 = vmatprep.subr.bf16.mxu0 %v7419_v56  ;;  %1420 = vmatprep.subr.bf16.mxu1 %v7421_v57 }
 0x405   :  { %1380 = vmatpush1.bf16.msra.mxu0 %v7427_v58  ;;  %1421 = vmatpush1.bf16.msra.mxu1 %v7429_v59 }
 0x406   :  { %1381 = vmatprep.subr.bf16.mxu0 %v7431_v60  ;;  %1422 = vmatprep.subr.bf16.mxu1 %v7433_v61 }
 0x409   :  { %1382 = vmatpush1.bf16.msra.mxu0 %v7439_v62  ;;  %1423 = vmatpush1.bf16.msra.mxu1 %v7441_v63 }
 0x40a   :  { %1383 = vmatprep.subr.bf16.mxu0 %v7443_v1  ;;  %1424 = vmatprep.subr.bf16.mxu1 %v7445_v2  ;;  %v8689_v2 = vmov 0  }
 0x40d   :  { %1384 = vmatpush1.bf16.msra.mxu0 %v7451_v3  ;;  %1425 = vmatpush1.bf16.msra.mxu1 %v7453_v4 }
 0x40e   :  { %1385 = vmatprep.subr.bf16.mxu0 %v7455_v5  ;;  %1426 = vmatprep.subr.bf16.mxu1 %v7457_v6 }
 0x411   :  { %1386 = vmatpush1.bf16.msra.mxu0 %v7463_v7  ;;  %1427 = vmatpush1.bf16.msra.mxu1 %v7465_v0 }
 0x412   :  { %1544 = vmatprep.subr.bf16.mxu0 %v7265_v8  ;;  %1585 = vmatprep.subr.bf16.mxu1 %v7267_v9 }
 0x414   :  { %1404 = vmatmul.mubr.bf16.vlgmr.msra.gmra.mrb[20].mxu0 %v8689_v2  ;;  %1445 = vmatmul.mubr.bf16.vlgmr.msra.gmra.mrb[20].mxu1 %v8689_v2 }
 0x415   :  { %1545 = vmatpush1.bf16.msra.mxu0 %v7271_v10  ;;  %1586 = vmatpush1.bf16.msra.mxu1 %v7273_v11 }
 0x416   :  { %1546 = vmatprep.subr.bf16.mxu0 %v7275_v12  ;;  %1587 = vmatprep.subr.bf16.mxu1 %v7277_v13 }
 0x417   :  { %1576 = vmatprep.mubr.bf16.mxu0 %v8689_v2  ;;  %1617 = vmatprep.mubr.bf16.mxu1 %v8689_v2 }
 0x419   :  { %1547 = vmatpush1.bf16.msra.mxu0 %v7285_v14  ;;  %1588 = vmatpush1.bf16.msra.mxu1 %v7287_v15 }
 0x41a   :  { %1548 = vmatprep.subr.bf16.mxu0 %v7289_v16  ;;  %1589 = vmatprep.subr.bf16.mxu1 %v7291_v17 }
 0x41d   :  { %1549 = vmatpush1.bf16.msra.mxu0 %v7299_v18  ;;  %1590 = vmatpush1.bf16.msra.mxu1 %v7301_v19 }
 0x41e   :  { %1550 = vmatprep.subr.bf16.mxu0 %v7303_v20  ;;  %1591 = vmatprep.subr.bf16.mxu1 %v7305_v21 }
 0x421   :  { %1551 = vmatpush1.bf16.msra.mxu0 %v7313_v22  ;;  %1592 = vmatpush1.bf16.msra.mxu1 %v7315_v23 }
 0x422   :  { %1552 = vmatprep.subr.bf16.mxu0 %v7317_v24  ;;  %1593 = vmatprep.subr.bf16.mxu1 %v7319_v25 }
 0x425   :  { %1553 = vmatpush1.bf16.msra.mxu0 %v7327_v26  ;;  %1594 = vmatpush1.bf16.msra.mxu1 %v7329_v27 }
 0x426   :  { %1554 = vmatprep.subr.bf16.mxu0 %v7331_v28  ;;  %1595 = vmatprep.subr.bf16.mxu1 %v7333_v29 }
 0x429   :  { %1555 = vmatpush1.bf16.msra.mxu0 %v7339_v30  ;;  %1596 = vmatpush1.bf16.msra.mxu1 %v7341_v31  ;;  %v8589_v31 = vlaneseq }
 0x42a   :  { %1556 = vmatprep.subr.bf16.mxu0 %v7343_v32  ;;  %1597 = vmatprep.subr.bf16.mxu1 %v7345_v33  ;;  %v927_v33 = vld [vmem:[#allocation19] sm:$0xff] }
 0x42b   :  { %v7508_v32 = vshrl.u32 %v8589_v31, 7 }
 0x42d   :  { %1557 = vmatpush1.bf16.msra.mxu0 %v7351_v34  ;;  %1598 = vmatpush1.bf16.msra.mxu1 %v7353_v35  ;;  %8690 = vst [vmem:[#allocation179_spill] sm:$0xff] %v7508_v32  ;;  %v8593_v34 = vsub.s32 0, %v7508_v32  ;;  %v8596_v35 = vsub.s32 2, %v7508_v32 }
 0x42e   :  { %1558 = vmatprep.subr.bf16.mxu0 %v7355_v36  ;;  %1599 = vmatprep.subr.bf16.mxu1 %v7357_v37  ;;  %v8600_v36 = vsub.s32 3, %v7508_v32  ;;  %v8604_v37 = vsub.s32 1, %v7508_v32 }
 0x431   :  { %1559 = vmatpush1.bf16.msra.mxu0 %v7363_v38  ;;  %1600 = vmatpush1.bf16.msra.mxu1 %v7365_v39  ;;  %v7516_v39 = vrot.slane %v927_v33, %v8593_v34  ;;  %v7528_v38 = vrot.slane %v927_v33, %v8600_v36  ;;  %v7536_v34 = vrot.slane %v927_v33, %v8604_v37 }
 0x432   :  { %1667 = vmatprep.subr.bf16.mxu0 %v7367_v40  ;;  %1708 = vmatprep.subr.bf16.mxu1 %v7369_v41  ;;  %v7520_v41 = vrot.slane %v927_v33, %v8596_v35 }
 0x487   :  { %v7522_v40 = vpop.f32.mrb[0].mxu0  ;;  %v7524_v31 = vpop.f32.mrb[0].mxu1 }
 0x488   :  { %v7530_v30 = vpop.f32.mrb[1].mxu0  ;;  %v7532_v29 = vpop.f32.mrb[1].mxu1  ;;  %v1004_v17 = vadd.f32 %v7522_v40, %v7516_v39 }
 0x489   :  { %v1007_v28 = vpop.f32.mrb[2].mxu0  ;;  %v1060_v27 = vpop.f32.mrb[2].mxu1 }
 0x48a   :  { %v7539_v35 = vadd.f32 %v1007_v28, %v7516_v39  ;;  %v1009_v26 = vpop.f32.mrb[3].mxu0  ;;  %v7542_v25 = vadd.f32 %v1060_v27, %v7520_v41  ;;  %v1062_v24 = vpop.f32.mrb[3].mxu1 }
 0x48b   :  { %v7545_v36 = vadd.f32 %v1009_v26, %v7536_v34  ;;  %v7548_v23 = vadd.f32 %v1062_v24, %v7528_v38 }
 0x48c   :  { %8691 = vst [vmem:[#allocation180_spill] sm:$0xff] %v7539_v35  ;;  %8692 = vst [vmem:[#allocation181_spill] sm:$0xff] %v7542_v25 }
 0x48d   :  { %8693 = vst [vmem:[#allocation182_spill] sm:$0xff] %v7545_v36  ;;  %8694 = vst [vmem:[#allocation183_spill] sm:$0xff] %v7548_v23 }
 0x48f   :  { %v1013_v22 = vpop.f32.mrb[4].mxu0  ;;  %v1066_v21 = vpop.f32.mrb[4].mxu1 }
 0x490   :  { %v7551_v37 = vadd.f32 %v1013_v22, %v7516_v39  ;;  %v1015_v20 = vpop.f32.mrb[5].mxu0  ;;  %v7554_v28 = vadd.f32 %v1066_v21, %v7520_v41  ;;  %v1068_v35 = vpop.f32.mrb[5].mxu1 }
 0x491   :  { %v7557_v27 = vadd.f32 %v1015_v20, %v7536_v34  ;;  %v1017_v25 = vpop.f32.mrb[6].mxu0  ;;  %v7560_v26 = vadd.f32 %v1068_v35, %v7528_v38  ;;  %v1070_v36 = vpop.f32.mrb[6].mxu1  ;;  %v8606_v20 = vsub.s32 4, %v7508_v32  ;;  %v8608_v35 = vsub.s32 6, %v7508_v32 }
 0x492   :  { %8695 = vst [vmem:[#allocation184_spill] sm:$0xff] %v7551_v37  ;;  %8696 = vst [vmem:[#allocation185_spill] sm:$0xff] %v7554_v28  ;;  %v7563_v24 = vadd.f32 %v1017_v25, %v7516_v39  ;;  %v1019_v23 = vpop.f32.mrb[7].mxu0  ;;  %v7566_v22 = vadd.f32 %v1070_v36, %v7520_v41  ;;  %v1072_v37 = vpop.f32.mrb[7].mxu1  ;;  %v8613_v25 = vsub.s32 7, %v7508_v32 }
 0x493   :  { %8697 = vst [vmem:[#allocation186_spill] sm:$0xff] %v7557_v27  ;;  %8698 = vst [vmem:[#allocation187_spill] sm:$0xff] %v7560_v26  ;;  %v7569_v21 = vadd.f32 %v1019_v23, %v7536_v34  ;;  %v7572_v28 = vadd.f32 %v1072_v37, %v7528_v38  ;;  %v8610_v26 = vsub.s32 5, %v7508_v32  ;;  %v7584_v36 = vrot.slane %v927_v33, %v8608_v35 }
 0x494   :  { %8699 = vst [vmem:[#allocation188_spill] sm:$0xff] %v7563_v24  ;;  %8700 = vst [vmem:[#allocation189_spill] sm:$0xff] %v7566_v22  ;;  %v7580_v24 = vrot.slane %v927_v33, %v8606_v20  ;;  %v7592_v37 = vrot.slane %v927_v33, %v8613_v25 }
 0x495   :  { %8701 = vst [vmem:[#allocation190_spill] sm:$0xff] %v7569_v21  ;;  %8702 = vst [vmem:[#allocation191_spill] sm:$0xff] %v7572_v28  ;;  %v7588_v23 = vrot.slane %v927_v33, %v8610_v26 }
 0x4a7   :  { %v1109_v28 = vpop.f32.mrb[8].mxu0  ;;  %v1162_v21 = vpop.f32.mrb[8].mxu1 }
 0x4a8   :  { %v7595_v22 = vadd.f32 %v1109_v28, %v7580_v24  ;;  %v1111_v27 = vpop.f32.mrb[9].mxu0  ;;  %v7598_v20 = vadd.f32 %v1162_v21, %v7584_v36  ;;  %v1164_v19 = vpop.f32.mrb[9].mxu1 }
 0x4a9   :  { %v7601_v35 = vadd.f32 %v1111_v27, %v7588_v23  ;;  %v1113_v18 = vpop.f32.mrb[10].mxu0  ;;  %v7604_v26 = vadd.f32 %v1164_v19, %v7592_v37  ;;  %v1166_v32 = vpop.f32.mrb[10].mxu1 }
 0x4aa   :  { %8703 = vst [vmem:[#allocation192_spill] sm:$0xff] %v7595_v22  ;;  %8704 = vst [vmem:[#allocation193_spill] sm:$0xff] %v7598_v20  ;;  %v7607_v33 = vadd.f32 %v1113_v18, %v7580_v24  ;;  %v1115_v25 = vpop.f32.mrb[11].mxu0  ;;  %v7610_v28 = vadd.f32 %v1166_v32, %v7584_v36  ;;  %v1168_v22 = vpop.f32.mrb[11].mxu1 }
 0x4ab   :  { %8705 = vst [vmem:[#allocation194_spill] sm:$0xff] %v7601_v35  ;;  %8706 = vst [vmem:[#allocation195_spill] sm:$0xff] %v7604_v26  ;;  %v7613_v21 = vadd.f32 %v1115_v25, %v7588_v23  ;;  %v7616_v20 = vadd.f32 %v1168_v22, %v7592_v37 }
 0x4ac   :  { %8707 = vst [vmem:[#allocation196_spill] sm:$0xff] %v7607_v33  ;;  %8708 = vst [vmem:[#allocation197_spill] sm:$0xff] %v7610_v28 }
 0x4ad   :  { %8709 = vst [vmem:[#allocation198_spill] sm:$0xff] %v7613_v21  ;;  %8710 = vst [vmem:[#allocation199_spill] sm:$0xff] %v7616_v20 }
 0x4af   :  { %v1119_v27 = vpop.f32.mrb[12].mxu0  ;;  %v1172_v35 = vpop.f32.mrb[12].mxu1 }
 0x4b0   :  { %v7619_v19 = vadd.f32 %v1119_v27, %v7580_v24  ;;  %v1121_v26 = vpop.f32.mrb[13].mxu0  ;;  %v7622_v18 = vadd.f32 %v1172_v35, %v7584_v36  ;;  %v1174_v33 = vpop.f32.mrb[13].mxu1  ;;  %v1057_v27 = vadd.f32 %v7524_v31, %v7520_v41  ;;  %v1006_v35 = vadd.f32 %v7530_v30, %v7536_v34 }
 0x4b1   :  { %v7625_v32 = vadd.f32 %v1121_v26, %v7588_v23  ;;  %v1123_v28 = vpop.f32.mrb[14].mxu0  ;;  %v7628_v25 = vadd.f32 %v1174_v33, %v7592_v37  ;;  %v1176_v21 = vpop.f32.mrb[14].mxu1  ;;  %v1059_v26 = vadd.f32 %v7532_v29, %v7528_v38 }
 0x4b2   :  { %8711 = vst [vmem:[#allocation200_spill] sm:$0xff] %v7619_v19  ;;  %8712 = vst [vmem:[#allocation201_spill] sm:$0xff] %v7622_v18  ;;  %v1125_v22 = vpop.f32.mrb[15].mxu0  ;;  %v1178_v20 = vpop.f32.mrb[15].mxu1 }
 0x4b3   :  { %8713 = vst [vmem:[#allocation202_spill] sm:$0xff] %v7625_v32  ;;  %8714 = vst [vmem:[#allocation203_spill] sm:$0xff] %v7628_v25 }
 0x4c7   :  { %v1283_v32 = vpop.f32.mrb[16].mxu0  ;;  %v1324_v18 = vpop.f32.mrb[16].mxu1 }
 0x4c8   :  { %v1331_v19 = vadd.f32 %v1283_v32, %v1004_v17  ;;  %v1333_v33 = vadd.f32 %v1324_v18, %v1057_v27  ;;  %v1285_v25 = vpop.f32.mrb[17].mxu0  ;;  %v1326_v16 = vpop.f32.mrb[17].mxu1 }
 0x4c9   :  { %v1332_v15 = vadd.f32 %v1285_v25, %v1006_v35  ;;  %v1334_v14 = vadd.f32 %v1326_v16, %v1059_v26  ;;  %v1287_v13 = vpop.f32.mrb[18].mxu0  ;;  %v1328_v12 = vpop.f32.mrb[18].mxu1  ;;  %v1179_v25 = vadd.f32 %v1178_v20, %v7592_v37 }
 0x4ca   :  { %v4932_v39 = vmul.f32 -1.442695, %v1331_v19  ;;  %v1288_v40 = vpop.f32.mrb[19].mxu0  ;;  %v1329_v11 = vpop.f32.mrb[19].mxu1 }
 0x4cb   :  { %v4934_v31 = vmul.f32 -1.442695, %v1332_v15  ;;  %v4936_v30 = vmul.f32 -1.442695, %v1334_v14  ;;  %v1124_v11 = vadd.f32 %v1123_v28, %v7580_v24  ;;  %v1177_v15 = vadd.f32 %v1176_v21, %v7584_v36 }
 0x4cc   :  { %5237 = vpow2.f32 %v4932_v39  ;;  %v1126_v14 = vadd.f32 %v1125_v22, %v7588_v23 }
 0x4cd   :  { %5239 = vpow2.f32 %v4934_v31 }
 0x4ce   :  { %5241 = vpow2.f32 %v4936_v30 }
 0x4cf   :  { %5243 = vtanh.f32 %v1333_v33 }
 0x4d6   :  { %v5238_v34 = vpop.eup %5237 }
 0x4d7   :  { %v5240_v41 = vpop.eup %5239  ;;  %v1463_v29 = vadd.f32 1.0, %v5238_v34 }
 0x4d8   :  { %v1475_v17 = vadd.f32 1.0, %v5240_v41  ;;  %v5242_v38 = vpop.eup %5241 }
 0x4d9   :  { %5245 = vrcp.f32 %v1463_v29  ;;  %v5244_v18 = vpop.eup %5243  ;;  %v1489_v19 = vadd.f32 1.0, %v5242_v38 }
 0x4da   :  { %5247 = vrcp.f32 %v1475_v17 }
 0x4db   :  { %5249 = vrcp.f32 %v1489_v19 }
 0x4e3   :  { %v5246_v16 = vpop.eup %5245 }
 0x4e4   :  { %v5248_v13 = vpop.eup %5247  ;;  %v1497_v12 = vmul.f32 %v5246_v16, %v5244_v18 }
 0x4e5   :  { %v1495_v32 = vmul.f32 0.0, %v5248_v13  ;;  %v5250_v20 = vpop.eup %5249 }
 0x4e7   :  { %v7642_v27 = vadd.f32 %v1497_v12, %v1495_v32  ;;  %v1405_v35 = vpop.f32.mrb[20].mxu0  ;;  %v1446_v26 = vpop.f32.mrb[20].mxu1 }
 0x4e8   :  { %v1453_v33 = vadd.f32 %v1405_v35, %v1124_v11  ;;  %v1455_v39 = vadd.f32 %v1446_v26, %v1177_v15  ;;  %v1407_v40 = vpop.f32.mrb[21].mxu0  ;;  %v1448_v31 = vpop.f32.mrb[21].mxu1  ;;  %v8715_v26 = vld [vmem:[#allocation178_spill] sm:$0xff] }
 0x4e9   :  { %5251 = vtanh.f32 %v7642_v27  ;;  %v1454_v30 = vadd.f32 %v1407_v40, %v1126_v14  ;;  %v1456_v34 = vadd.f32 %v1448_v31, %v1179_v25  ;;  %v1409_v24 = vpop.f32.mrb[22].mxu0  ;;  %v1450_v28 = vpop.f32.mrb[22].mxu1 }
 0x4ea   :  { %v4933_v36 = vmul.f32 -1.442695, %v1453_v33  ;;  %v1410_v21 = vpop.f32.mrb[23].mxu0  ;;  %v1451_v23 = vpop.f32.mrb[23].mxu1  ;;  %v8718_v24 = vld [vmem:[#allocation149_spill] sm:$0xff]  ;;  %v8719_v28 = vld [vmem:[#allocation150_spill] sm:$0xff] }
 0x4eb   :  { %v4935_v22 = vmul.f32 -1.442695, %v1454_v30  ;;  %v4937_v41 = vmul.f32 -1.442695, %v1456_v34  ;;  %v8716_v30 = vld [vmem:[#allocation147_spill] sm:$0xff]  ;;  %v8717_v34 = vld [vmem:[#allocation148_spill] sm:$0xff] }
 0x4ec   :  { %5253 = vpow2.f32 %v4933_v36  ;;  %v8720_v36 = vld [vmem:[#allocation151_spill] sm:$0xff]  ;;  %v8723_v21 = vld [vmem:[#allocation154_spill] sm:$0xff]  ;;  %v8725_v23 = vld [vmem:[#allocation156_spill] sm:$0xff] }
 0x4ed   :  { %5255 = vpow2.f32 %v4935_v22  ;;  %v8726_v22 = vld [vmem:[#allocation157_spill] sm:$0xff] }
 0x4ee   :  { %5257 = vpow2.f32 %v4937_v41  ;;  %v8729_v41 = vld [vmem:[#allocation160_spill] sm:$0xff] }
 0x4ef   :  { %5259 = vtanh.f32 %v1455_v39 }
 0x4f3   :  { %v5252_v37 = vpop.eup %5251 }
 0x4f4   :  { %v7645_v29 = vmul.f32 %v5252_v37, %v5250_v20  ;;  %v8727_v20 = vld [vmem:[#allocation158_spill] sm:$0xff]  ;;  %v8728_v37 = vld [vmem:[#allocation159_spill] sm:$0xff] }
 0x4f6   :  { %v5254_v17 = vpop.eup %5253  ;;  %v1511_v38 = vpack.c.bf16 %v7645_v29, %v7645_v29 }
 0x4f7   :  { %v5256_v18 = vpop.eup %5255  ;;  %v1464_v16 = vadd.f32 1.0, %v5254_v17  ;;  %v8730_v17 = vld [vmem:[#allocation161_spill] sm:$0xff] }
 0x4f8   :  { %v1476_v13 = vadd.f32 1.0, %v5256_v18  ;;  %1577 = vmatmul.mubr.bf16.vlgmr.msra.gmra.mrb[24].mxu0 %v1511_v38  ;;  %1618 = vmatmul.mubr.bf16.vlgmr.msra.gmra.mrb[24].mxu1 %v1511_v38  ;;  %v5258_v12 = vpop.eup %5257  ;;  %v8731_v38 = vld [vmem:[#allocation162_spill] sm:$0xff]  ;;  %v8732_v18 = vld [vmem:[#allocation163_spill] sm:$0xff] }
 0x4f9   :  { %5261 = vrcp.f32 %v1464_v16  ;;  %1668 = vmatpush1.bf16.msra.mxu0 %v7375_v42  ;;  %1709 = vmatpush1.bf16.msra.mxu1 %v7377_v43  ;;  %v5260_v19 = vpop.eup %5259  ;;  %v1490_v14 = vadd.f32 1.0, %v5258_v12  ;;  %v8733_v16 = vld [vmem:[#allocation164_spill] sm:$0xff]  ;;  %v8735_v12 = vld [vmem:[#allocation166_spill] sm:$0xff] }
 0x4fa   :  { %5263 = vrcp.f32 %v1476_v13  ;;  %1669 = vmatprep.subr.bf16.mxu0 %v7379_v44  ;;  %1710 = vmatprep.subr.bf16.mxu1 %v7381_v45  ;;  %v8734_v13 = vld [vmem:[#allocation165_spill] sm:$0xff] }
 0x4fb   :  { %1699 = vmatprep.mubr.bf16.mxu0 %v8689_v2  ;;  %1740 = vmatprep.mubr.bf16.mxu1 %v8689_v2  ;;  %5265 = vrcp.f32 %v1490_v14  ;;  %v8740_v14 = vld [vmem:[#allocation171_spill] sm:$0xff] }
 0x4fd   :  { %1670 = vmatpush1.bf16.msra.mxu0 %v7389_v46  ;;  %1711 = vmatpush1.bf16.msra.mxu1 %v7391_v47 }
 0x4fe   :  { %1671 = vmatprep.subr.bf16.mxu0 %v7393_v48  ;;  %1712 = vmatprep.subr.bf16.mxu1 %v7395_v49 }
 0x501   :  { %1672 = vmatpush1.bf16.msra.mxu0 %v7403_v50  ;;  %1713 = vmatpush1.bf16.msra.mxu1 %v7405_v51 }
 0x502   :  { %1673 = vmatprep.subr.bf16.mxu0 %v7407_v52  ;;  %1714 = vmatprep.subr.bf16.mxu1 %v7409_v53 }
 0x503   :  { %v5262_v32 = vpop.eup %5261 }
 0x504   :  { %v5264_v11 = vpop.eup %5263  ;;  %v1498_v15 = vmul.f32 %v5262_v32, %v5260_v19  ;;  %v8736_v19 = vld [vmem:[#allocation167_spill] sm:$0xff]  ;;  %v8737_v32 = vld [vmem:[#allocation168_spill] sm:$0xff] }
 0x505   :  { %v1496_v25 = vmul.f32 0.0, %v5264_v11  ;;  %1674 = vmatpush1.bf16.msra.mxu0 %v7415_v54  ;;  %1715 = vmatpush1.bf16.msra.mxu1 %v7417_v55  ;;  %v5266_v33 = vpop.eup %5265  ;;  %v8738_v11 = vld [vmem:[#allocation169_spill] sm:$0xff] }
 0x506   :  { %1675 = vmatprep.subr.bf16.mxu0 %v7419_v56  ;;  %1716 = vmatprep.subr.bf16.mxu1 %v7421_v57 }
 0x507   :  { %v7667_v35 = vadd.f32 %v1498_v15, %v1496_v25  ;;  %v8739_v15 = vld [vmem:[#allocation170_spill] sm:$0xff]  ;;  %v8741_v25 = vld [vmem:[#allocation172_spill] sm:$0xff] }
 0x509   :  { %5267 = vtanh.f32 %v7667_v35  ;;  %1676 = vmatpush1.bf16.msra.mxu0 %v7427_v58  ;;  %1717 = vmatpush1.bf16.msra.mxu1 %v7429_v59 }
 0x50a   :  { %1677 = vmatprep.subr.bf16.mxu0 %v7431_v60  ;;  %1718 = vmatprep.subr.bf16.mxu1 %v7433_v61 }
 0x50d   :  { %1678 = vmatpush1.bf16.msra.mxu0 %v7439_v62  ;;  %1719 = vmatpush1.bf16.msra.mxu1 %v7441_v63 }
 0x50e   :  { %1679 = vmatprep.subr.bf16.mxu0 %v7443_v1  ;;  %1720 = vmatprep.subr.bf16.mxu1 %v8715_v26 }
 0x511   :  { %1680 = vmatpush1.bf16.msra.mxu0 %v7451_v3  ;;  %1721 = vmatpush1.bf16.msra.mxu1 %v7453_v4 }
 0x512   :  { %1681 = vmatprep.subr.bf16.mxu0 %v7455_v5  ;;  %1722 = vmatprep.subr.bf16.mxu1 %v7457_v6 }
 0x513   :  { %v5268_v39 = vpop.eup %5267 }
 0x514   :  { %v7682_v40 = vmul.f32 %v5268_v39, %v5266_v33  ;;  %v8742_v33 = vld [vmem:[#allocation173_spill] sm:$0xff]  ;;  %v8743_v39 = vld [vmem:[#allocation174_spill] sm:$0xff] }
 0x515   :  { %1682 = vmatpush1.bf16.msra.mxu0 %v7463_v7  ;;  %1723 = vmatpush1.bf16.msra.mxu1 %v7465_v0 }
 0x516   :  { %v1634_v31 = vpack.c.bf16 %v7682_v40, %v7682_v40  ;;  %1840 = vmatprep.subr.bf16.mxu0 %v7265_v8  ;;  %1881 = vmatprep.subr.bf16.mxu1 %v7267_v9  ;;  %v8721_v8 = vld [vmem:[#allocation152_spill] sm:$0xff]  ;;  %v8722_v9 = vld [vmem:[#allocation153_spill] sm:$0xff] }
 0x518   :  { %1700 = vmatmul.mubr.bf16.vlgmr.msra.gmra.mrb[28].mxu0 %v1634_v31  ;;  %1741 = vmatmul.mubr.bf16.vlgmr.msra.gmra.mrb[28].mxu1 %v1634_v31  ;;  %v8744_v31 = vld [vmem:[#allocation175_spill] sm:$0xff] }
 0x519   :  { %1841 = vmatpush1.bf16.msra.mxu0 %v7271_v10  ;;  %1882 = vmatpush1.bf16.msra.mxu1 %v8716_v30  ;;  %v8724_v10 = vld [vmem:[#allocation155_spill] sm:$0xff]  ;;  %v8745_v30 = vld [vmem:[#allocation176_spill] sm:$0xff] }
 0x51a   :  { %1842 = vmatprep.subr.bf16.mxu0 %v8717_v34  ;;  %1883 = vmatprep.subr.bf16.mxu1 %v8718_v24  ;;  %v8746_v34 = vld [vmem:[#allocation177_spill] sm:$0xff] }
 0x51b   :  { %1872 = vmatprep.mubr.bf16.mxu0 %v8689_v2  ;;  %1913 = vmatprep.mubr.bf16.mxu1 %v8689_v2 }
 0x51d   :  { %1843 = vmatpush1.bf16.msra.mxu0 %v8719_v28  ;;  %1884 = vmatpush1.bf16.msra.mxu1 %v8720_v36  ;;  %v8747_v36 = vld [vmem:[#allocation180_spill] sm:$0xff] }
 0x51e   :  { %1844 = vmatprep.subr.bf16.mxu0 %v8721_v8  ;;  %1885 = vmatprep.subr.bf16.mxu1 %v8722_v9  ;;  %v8748_v9 = vld [vmem:[#allocation181_spill] sm:$0xff] }
 0x521   :  { %1845 = vmatpush1.bf16.msra.mxu0 %v8723_v21  ;;  %1886 = vmatpush1.bf16.msra.mxu1 %v8724_v10 }
 0x522   :  { %1846 = vmatprep.subr.bf16.mxu0 %v8725_v23  ;;  %1887 = vmatprep.subr.bf16.mxu1 %v8726_v22  ;;  %v8749_v22 = vld [vmem:[#allocation182_spill] sm:$0xff] }
 0x525   :  { %1847 = vmatpush1.bf16.msra.mxu0 %v8727_v20  ;;  %1888 = vmatpush1.bf16.msra.mxu1 %v8728_v37  ;;  %v8750_v37 = vld [vmem:[#allocation183_spill] sm:$0xff] }
 0x526   :  { %1848 = vmatprep.subr.bf16.mxu0 %v8729_v41  ;;  %1889 = vmatprep.subr.bf16.mxu1 %v8730_v17 }
 0x529   :  { %1849 = vmatpush1.bf16.msra.mxu0 %v8731_v38  ;;  %1890 = vmatpush1.bf16.msra.mxu1 %v8732_v18 }
 0x52a   :  { %1850 = vmatprep.subr.bf16.mxu0 %v8733_v16  ;;  %1891 = vmatprep.subr.bf16.mxu1 %v8734_v13 }
 0x52d   :  { %1851 = vmatpush1.bf16.msra.mxu0 %v8735_v12  ;;  %1892 = vmatpush1.bf16.msra.mxu1 %v8736_v19 }
 0x52e   :  { %1852 = vmatprep.subr.bf16.mxu0 %v8737_v32  ;;  %1893 = vmatprep.subr.bf16.mxu1 %v8738_v11 }
 0x531   :  { %1853 = vmatpush1.bf16.msra.mxu0 %v8739_v15  ;;  %1894 = vmatpush1.bf16.msra.mxu1 %v8740_v14 }
 0x532   :  { %1854 = vmatprep.subr.bf16.mxu0 %v8741_v25  ;;  %1895 = vmatprep.subr.bf16.mxu1 %v8742_v33 }
 0x535   :  { %1855 = vmatpush1.bf16.msra.mxu0 %v8743_v39  ;;  %1896 = vmatpush1.bf16.msra.mxu1 %v8744_v31 }
 0x536   :  { %1963 = vmatprep.subr.bf16.mxu0 %v8745_v30  ;;  %2004 = vmatprep.subr.bf16.mxu1 %v8746_v34 }
 0x5cb   :  { %v1578_v24 = vpop.f32.mrb[24].mxu0  ;;  %v1619_v28 = vpop.f32.mrb[24].mxu1 }
 0x5cc   :  { %v1626_v8 = vadd.f32 %v1578_v24, %v8747_v36  ;;  %v1628_v21 = vadd.f32 %v1619_v28, %v8748_v9  ;;  %v1580_v10 = vpop.f32.mrb[25].mxu0  ;;  %v1621_v23 = vpop.f32.mrb[25].mxu1  ;;  %v8751_v9 = vld [vmem:[#allocation200_spill] sm:$0xff] }
 0x5cd   :  { %v1627_v20 = vadd.f32 %v1580_v10, %v8749_v22  ;;  %v1629_v41 = vadd.f32 %v1621_v23, %v8750_v37  ;;  %v1582_v17 = vpop.f32.mrb[26].mxu0  ;;  %v1623_v38 = vpop.f32.mrb[26].mxu1  ;;  %v8752_v23 = vld [vmem:[#allocation201_spill] sm:$0xff]  ;;  %v8753_v37 = vld [vmem:[#allocation202_spill] sm:$0xff] }
 0x5ce   :  { %v4938_v18 = vmul.f32 -1.442695, %v1626_v8  ;;  %v1583_v16 = vpop.f32.mrb[27].mxu0  ;;  %v1624_v13 = vpop.f32.mrb[27].mxu1  ;;  %v8754_v17 = vld [vmem:[#allocation203_spill] sm:$0xff] }
 0x5cf   :  { %v4940_v12 = vmul.f32 -1.442695, %v1627_v20  ;;  %v4942_v19 = vmul.f32 -1.442695, %v1629_v41 }
 0x5d0   :  { %5269 = vpow2.f32 %v4938_v18 }
 0x5d1   :  { %5271 = vpow2.f32 %v4940_v12 }
 0x5d2   :  { %5273 = vpow2.f32 %v4942_v19 }
 0x5d3   :  { %5275 = vtanh.f32 %v1628_v21 }
 0x5da   :  { %v5270_v32 = vpop.eup %5269 }
 0x5db   :  { %v5272_v11 = vpop.eup %5271  ;;  %v1759_v15 = vadd.f32 1.0, %v5270_v32 }
 0x5dc   :  { %v1771_v14 = vadd.f32 1.0, %v5272_v11  ;;  %v5274_v25 = vpop.eup %5273 }
 0x5dd   :  { %5277 = vrcp.f32 %v1759_v15  ;;  %v5276_v33 = vpop.eup %5275  ;;  %v1785_v34 = vadd.f32 1.0, %v5274_v25 }
 0x5de   :  { %5279 = vrcp.f32 %v1771_v14 }
 0x5df   :  { %5281 = vrcp.f32 %v1785_v34 }
 0x5e7   :  { %v5278_v39 = vpop.eup %5277 }
 0x5e8   :  { %v5280_v31 = vpop.eup %5279  ;;  %v1793_v30 = vmul.f32 %v5278_v39, %v5276_v33 }
 0x5e9   :  { %v1791_v24 = vmul.f32 %v5280_v31, %v7642_v27  ;;  %v5282_v32 = vpop.eup %5281 }
 0x5eb   :  { %v7729_v28 = vadd.f32 %v1793_v30, %v1791_v24  ;;  %v1701_v36 = vpop.f32.mrb[28].mxu0  ;;  %v1742_v8 = vpop.f32.mrb[28].mxu1  ;;  %v2125_v24 = vld [vmem:[#allocation7 + $0xa8] sm:$0xff] }
 0x5ec   :  { %v1749_v10 = vadd.f32 %v1701_v36, %v8751_v9  ;;  %v1751_v21 = vadd.f32 %v1742_v8, %v8752_v23  ;;  %v1703_v22 = vpop.f32.mrb[29].mxu0  ;;  %v1744_v20 = vpop.f32.mrb[29].mxu1  ;;  %v2127_v36 = vld [vmem:[#allocation7 + $0xb8] sm:$0xff]  ;;  %v2124_v8 = vld [vmem:[#allocation7 + $0xa0] sm:$0xff]  ;;  %v2126_v9 = vld [vmem:[#allocation7 + $0xb0] sm:$0xff] }
 0x5ed   :  { %v1750_v41 = vadd.f32 %v1703_v22, %v8753_v37  ;;  %v1752_v38 = vadd.f32 %v1744_v20, %v8754_v17  ;;  %v1705_v18 = vpop.f32.mrb[30].mxu0  ;;  %v1746_v16 = vpop.f32.mrb[30].mxu1  ;;  %5283 = vtanh.f32 %v7729_v28  ;;  %v2131_v23 = vld [vmem:[#allocation7 + $0xd8] sm:$0xff]  ;;  %v2130_v22 = vld [vmem:[#allocation7 + $0xd0] sm:$0xff]  ;;  %v2133_v20 = vld [vmem:[#allocation7 + $0xe8] sm:$0xff] }
 0x5ee   :  { %v4939_v27 = vmul.f32 -1.442695, %v1749_v10  ;;  %v1706_v13 = vpop.f32.mrb[31].mxu0  ;;  %v1747_v12 = vpop.f32.mrb[31].mxu1  ;;  %v2129_v10 = vld [vmem:[#allocation7 + $0xc8] sm:$0xff]  ;;  %v2135_v37 = vld [vmem:[#allocation7 + $0xf8] sm:$0xff] }
 0x5ef   :  { %v4941_v19 = vmul.f32 -1.442695, %v1750_v41  ;;  %v4943_v15 = vmul.f32 -1.442695, %v1752_v38  ;;  %v2132_v41 = vld [vmem:[#allocation7 + $0xe0] sm:$0xff]  ;;  %v2134_v17 = vld [vmem:[#allocation7 + $0xf0] sm:$0xff] }
 0x5f0   :  { %5285 = vpow2.f32 %v4939_v27  ;;  %v2228_v38 = vld [vmem:[#allocation8 + $0x8] sm:$0xff]  ;;  %v2230_v18 = vld [vmem:[#allocation8 + $0x18] sm:$0xff] }
 0x5f1   :  { %5287 = vpow2.f32 %v4941_v19  ;;  %v8755_v13 = vld [vmem:[#allocation184_spill] sm:$0xff]  ;;  %v8756_v19 = vld [vmem:[#allocation185_spill] sm:$0xff] }
 0x5f2   :  { %5289 = vpow2.f32 %v4943_v15 }
 0x5f3   :  { %5291 = vtanh.f32 %v1751_v21  ;;  %v2128_v21 = vld [vmem:[#allocation7 + $0xc0] sm:$0xff] }
 0x5f7   :  { %v5284_v11 = vpop.eup %5283 }
 0x5f8   :  { %v7736_v14 = vmul.f32 %v5284_v11, %v5282_v32 }
 0x5fa   :  { %v5286_v25 = vpop.eup %5285  ;;  %v1807_v33 = vpack.c.bf16 %v7736_v14, %v7736_v14 }
 0x5fb   :  { %v5288_v39 = vpop.eup %5287  ;;  %v1760_v31 = vadd.f32 1.0, %v5286_v25  ;;  %v8757_v25 = vld [vmem:[#allocation186_spill] sm:$0xff] }
 0x5fc   :  { %v1772_v30 = vadd.f32 1.0, %v5288_v39  ;;  %1873 = vmatmul.mubr.bf16.vlgmr.msra.gmra.mrb[32].mxu0 %v1807_v33  ;;  %1914 = vmatmul.mubr.bf16.vlgmr.msra.gmra.mrb[32].mxu1 %v1807_v33  ;;  %v8758_v39 = vld [vmem:[#allocation187_spill] sm:$0xff] }
 0x5fd   :  { %5293 = vrcp.f32 %v1760_v31  ;;  %1964 = vmatpush1.bf16.msra.mxu0 %v7375_v42  ;;  %2005 = vmatpush1.bf16.msra.mxu1 %v7377_v43  ;;  %v5290_v42 = vpop.eup %5289 }
 0x5fe   :  { %5295 = vrcp.f32 %v1772_v30  ;;  %1965 = vmatprep.subr.bf16.mxu0 %v7379_v44  ;;  %2006 = vmatprep.subr.bf16.mxu1 %v7381_v45  ;;  %v5292_v43 = vpop.eup %5291 }
 0x5ff   :  { %1995 = vmatprep.mubr.bf16.mxu0 %v8689_v2  ;;  %2036 = vmatprep.mubr.bf16.mxu1 %v8689_v2 }
 0x601   :  { %1966 = vmatpush1.bf16.msra.mxu0 %v7389_v46  ;;  %2007 = vmatpush1.bf16.msra.mxu1 %v7391_v47  ;;  %v1786_v46 = vadd.f32 1.0, %v5290_v42 }
 0x602   :  { %1967 = vmatprep.subr.bf16.mxu0 %v7393_v48  ;;  %2008 = vmatprep.subr.bf16.mxu1 %v7395_v49 }
 0x603   :  { %5297 = vrcp.f32 %v1786_v46 }
 0x605   :  { %1968 = vmatpush1.bf16.msra.mxu0 %v7403_v50  ;;  %2009 = vmatpush1.bf16.msra.mxu1 %v7405_v51 }
 0x606   :  { %1969 = vmatprep.subr.bf16.mxu0 %v7407_v52  ;;  %2010 = vmatprep.subr.bf16.mxu1 %v7409_v53  ;;  %v2105_v53 = vld [vmem:[#allocation7 + $0x8] sm:$0xff] }
 0x607   :  { %v5294_v44 = vpop.eup %5293 }
 0x608   :  { %v5296_v45 = vpop.eup %5295  ;;  %v1794_v34 = vmul.f32 %v5294_v44, %v5292_v43 }
 0x609   :  { %v1792_v47 = vmul.f32 %v5296_v45, %v7667_v35  ;;  %1970 = vmatpush1.bf16.msra.mxu0 %v7415_v54  ;;  %2011 = vmatpush1.bf16.msra.mxu1 %v7417_v55  ;;  %v2107_v54 = vld [vmem:[#allocation7 + $0x18] sm:$0xff]  ;;  %v2104_v55 = vld [vmem:[#allocation7] sm:$0xff] }
 0x60a   :  { %1971 = vmatprep.subr.bf16.mxu0 %v7419_v56  ;;  %2012 = vmatprep.subr.bf16.mxu1 %v7421_v57  ;;  %v2106_v56 = vld [vmem:[#allocation7 + $0x10] sm:$0xff]  ;;  %v2109_v57 = vld [vmem:[#allocation7 + $0x28] sm:$0xff]  ;;  %v2120_v35 = vld [vmem:[#allocation7 + $0x80] sm:$0xff] }
 0x60b   :  { %v7759_v48 = vadd.f32 %v1794_v34, %v1792_v47 }
 0x60d   :  { %1972 = vmatpush1.bf16.msra.mxu0 %v7427_v58  ;;  %2013 = vmatpush1.bf16.msra.mxu1 %v7429_v59  ;;  %5299 = vtanh.f32 %v7759_v48  ;;  %v5298_v49 = vpop.eup %5297  ;;  %v2111_v58 = vld [vmem:[#allocation7 + $0x38] sm:$0xff]  ;;  %v2110_v59 = vld [vmem:[#allocation7 + $0x30] sm:$0xff] }
 0x60e   :  { %1973 = vmatprep.subr.bf16.mxu0 %v7431_v60  ;;  %2014 = vmatprep.subr.bf16.mxu1 %v7433_v61  ;;  %v2113_v60 = vld [vmem:[#allocation7 + $0x48] sm:$0xff]  ;;  %v2115_v61 = vld [vmem:[#allocation7 + $0x58] sm:$0xff] }
 0x611   :  { %1974 = vmatpush1.bf16.msra.mxu0 %v7439_v62  ;;  %2015 = vmatpush1.bf16.msra.mxu1 %v7441_v63  ;;  %v2112_v62 = vld [vmem:[#allocation7 + $0x40] sm:$0xff]  ;;  %v2114_v63 = vld [vmem:[#allocation7 + $0x50] sm:$0xff] }
 0x612   :  { %1975 = vmatprep.subr.bf16.mxu0 %v7443_v1  ;;  %2016 = vmatprep.subr.bf16.mxu1 %v8715_v26  ;;  %v2117_v1 = vld [vmem:[#allocation7 + $0x68] sm:$0xff]  ;;  %v2122_v26 = vld [vmem:[#allocation7 + $0x90] sm:$0xff] }
 0x615   :  { %1976 = vmatpush1.bf16.msra.mxu0 %v7451_v3  ;;  %2017 = vmatpush1.bf16.msra.mxu1 %v7453_v4  ;;  %v2119_v3 = vld [vmem:[#allocation7 + $0x78] sm:$0xff]  ;;  %v2116_v4 = vld [vmem:[#allocation7 + $0x60] sm:$0xff] }
 0x616   :  { %1977 = vmatprep.subr.bf16.mxu0 %v7455_v5  ;;  %2018 = vmatprep.subr.bf16.mxu1 %v7457_v6  ;;  %v2118_v5 = vld [vmem:[#allocation7 + $0x70] sm:$0xff]  ;;  %v2121_v6 = vld [vmem:[#allocation7 + $0x88] sm:$0xff] }
 0x617   :  { %v5300_v50 = vpop.eup %5299 }
 0x618   :  { %v7774_v51 = vmul.f32 %v5300_v50, %v5298_v49 }
 0x619   :  { %1978 = vmatpush1.bf16.msra.mxu0 %v7463_v7  ;;  %2019 = vmatpush1.bf16.msra.mxu1 %v7465_v0  ;;  %v2108_v0 = vld [vmem:[#allocation7 + $0x20] sm:$0xff]  ;;  %v2123_v7 = vld [vmem:[#allocation7 + $0x98] sm:$0xff] }
 0x61a   :  { %v1930_v52 = vpack.c.bf16 %v7774_v51, %v7774_v51  ;;  %2136 = vmatprep.subr.bf16.mxu0 %v2105_v53  ;;  %2177 = vmatprep.subr.bf16.mxu1 %v2107_v54 }
 0x61c   :  { %1996 = vmatmul.mubr.bf16.vlgmr.msra.gmra.mrb[36].mxu0 %v1930_v52  ;;  %2037 = vmatmul.mubr.bf16.vlgmr.msra.gmra.mrb[36].mxu1 %v1930_v52 }
 0x61d   :  { %2168 = vmatprep.mubr.bf16.mxu0 %v8689_v2  ;;  %2209 = vmatprep.mubr.bf16.mxu1 %v8689_v2 }
 0x61e   :  { %2137 = vmatpush1.bf16.msra.mxu0 %v2104_v55  ;;  %2178 = vmatpush1.bf16.msra.mxu1 %v2106_v56 }
 0x61f   :  { %2138 = vmatprep.subr.bf16.mxu0 %v2109_v57  ;;  %2179 = vmatprep.subr.bf16.mxu1 %v2111_v58 }
 0x622   :  { %2139 = vmatpush1.bf16.msra.mxu0 %v2108_v0  ;;  %2180 = vmatpush1.bf16.msra.mxu1 %v2110_v59 }
 0x623   :  { %2140 = vmatprep.subr.bf16.mxu0 %v2113_v60  ;;  %2181 = vmatprep.subr.bf16.mxu1 %v2115_v61 }
 0x626   :  { %2141 = vmatpush1.bf16.msra.mxu0 %v2112_v62  ;;  %2182 = vmatpush1.bf16.msra.mxu1 %v2114_v63  ;;  %v8759_v62 = vld [vmem:[#allocation196_spill] sm:$0xff] }
 0x627   :  { %2142 = vmatprep.subr.bf16.mxu0 %v2117_v1  ;;  %2183 = vmatprep.subr.bf16.mxu1 %v2119_v3  ;;  %v8760_v1 = vld [vmem:[#allocation197_spill] sm:$0xff] }
 0x62a   :  { %2143 = vmatpush1.bf16.msra.mxu0 %v2116_v4  ;;  %2184 = vmatpush1.bf16.msra.mxu1 %v2118_v5 }
 0x62b   :  { %2144 = vmatprep.subr.bf16.mxu0 %v2121_v6  ;;  %2185 = vmatprep.subr.bf16.mxu1 %v2123_v7  ;;  %v8761_v6 = vld [vmem:[#allocation198_spill] sm:$0xff] }
 0x62e   :  { %2145 = vmatpush1.bf16.msra.mxu0 %v2120_v35  ;;  %2186 = vmatpush1.bf16.msra.mxu1 %v2122_v26  ;;  %v8762_v35 = vld [vmem:[#allocation199_spill] sm:$0xff] }
 0x62f   :  { %2146 = vmatprep.subr.bf16.mxu0 %v2125_v24  ;;  %2187 = vmatprep.subr.bf16.mxu1 %v2127_v36 }
 0x632   :  { %2147 = vmatpush1.bf16.msra.mxu0 %v2124_v8  ;;  %2188 = vmatpush1.bf16.msra.mxu1 %v2126_v9 }
 0x633   :  { %2148 = vmatprep.subr.bf16.mxu0 %v2129_v10  ;;  %2189 = vmatprep.subr.bf16.mxu1 %v2131_v23 }
 0x636   :  { %2149 = vmatpush1.bf16.msra.mxu0 %v2128_v21  ;;  %2190 = vmatpush1.bf16.msra.mxu1 %v2130_v22 }
 0x637   :  { %2150 = vmatprep.subr.bf16.mxu0 %v2133_v20  ;;  %2191 = vmatprep.subr.bf16.mxu1 %v2135_v37 }
 0x63a   :  { %2151 = vmatpush1.bf16.msra.mxu0 %v2132_v41  ;;  %2192 = vmatpush1.bf16.msra.mxu1 %v2134_v17  ;;  %v2227_v17 = vld [vmem:[#allocation8] sm:$0xff] }
 0x63b   :  { %2259 = vmatprep.subr.bf16.mxu0 %v2228_v38  ;;  %2300 = vmatprep.subr.bf16.mxu1 %v2230_v18  ;;  %v2229_v38 = vld [vmem:[#allocation8 + $0x10] sm:$0xff] }
 0x6cf   :  { %v1874_v16 = vpop.f32.mrb[32].mxu0  ;;  %v1915_v27 = vpop.f32.mrb[32].mxu1 }
 0x6d0   :  { %v1922_v12 = vadd.f32 %v1874_v16, %v8755_v13  ;;  %v1924_v32 = vadd.f32 %v1915_v27, %v8756_v19  ;;  %v1876_v11 = vpop.f32.mrb[33].mxu0  ;;  %v1917_v15 = vpop.f32.mrb[33].mxu1  ;;  %v2232_v27 = vld [vmem:[#allocation8 + $0x28] sm:$0xff]  ;;  %v2234_v13 = vld [vmem:[#allocation8 + $0x38] sm:$0xff]  ;;  %v2231_v19 = vld [vmem:[#allocation8 + $0x20] sm:$0xff] }
 0x6d1   :  { %v1923_v33 = vadd.f32 %v1876_v11, %v8757_v25  ;;  %v1925_v31 = vadd.f32 %v1917_v15, %v8758_v39  ;;  %v1878_v30 = vpop.f32.mrb[34].mxu0  ;;  %v1919_v42 = vpop.f32.mrb[34].mxu1  ;;  %v2236_v11 = vld [vmem:[#allocation8 + $0x48] sm:$0xff]  ;;  %v2238_v15 = vld [vmem:[#allocation8 + $0x58] sm:$0xff]  ;;  %v2235_v25 = vld [vmem:[#allocation8 + $0x40] sm:$0xff] }
 0x6d2   :  { %v4944_v43 = vmul.f32 -1.442695, %v1922_v12  ;;  %v1879_v44 = vpop.f32.mrb[35].mxu0  ;;  %v1920_v45 = vpop.f32.mrb[35].mxu1  ;;  %v2240_v39 = vld [vmem:[#allocation8 + $0x68] sm:$0xff] }
 0x6d3   :  { %v4946_v34 = vmul.f32 -1.442695, %v1923_v33  ;;  %v4948_v46 = vmul.f32 -1.442695, %v1925_v31  ;;  %v2237_v33 = vld [vmem:[#allocation8 + $0x50] sm:$0xff]  ;;  %v2242_v31 = vld [vmem:[#allocation8 + $0x78] sm:$0xff] }
 0x6d4   :  { %5301 = vpow2.f32 %v4944_v43  ;;  %v2239_v43 = vld [vmem:[#allocation8 + $0x60] sm:$0xff]  ;;  %v2241_v44 = vld [vmem:[#allocation8 + $0x70] sm:$0xff] }
 0x6d5   :  { %5303 = vpow2.f32 %v4946_v34  ;;  %v2244_v34 = vld [vmem:[#allocation8 + $0x88] sm:$0xff] }
 0x6d6   :  { %5305 = vpow2.f32 %v4948_v46  ;;  %v2246_v46 = vld [vmem:[#allocation8 + $0x98] sm:$0xff] }
 0x6d7   :  { %5307 = vtanh.f32 %v1924_v32  ;;  %v2233_v32 = vld [vmem:[#allocation8 + $0x30] sm:$0xff] }
 0x6de   :  { %v5302_v47 = vpop.eup %5301 }
 0x6df   :  { %v5304_v49 = vpop.eup %5303  ;;  %v2055_v50 = vadd.f32 1.0, %v5302_v47 }
 0x6e0   :  { %v2067_v52 = vadd.f32 1.0, %v5304_v49  ;;  %v5306_v53 = vpop.eup %5305 }
 0x6e1   :  { %5309 = vrcp.f32 %v2055_v50  ;;  %v5308_v54 = vpop.eup %5307  ;;  %v2081_v58 = vadd.f32 1.0, %v5306_v53  ;;  %v2243_v53 = vld [vmem:[#allocation8 + $0x80] sm:$0xff] }
 0x6e2   :  { %5311 = vrcp.f32 %v2067_v52 }
 0x6e3   :  { %5313 = vrcp.f32 %v2081_v58  ;;  %v2247_v58 = vld [vmem:[#allocation8 + $0xa0] sm:$0xff] }
 0x6eb   :  { %v5310_v55 = vpop.eup %5309 }
 0x6ec   :  { %v5312_v56 = vpop.eup %5311  ;;  %v2089_v57 = vmul.f32 %v5310_v55, %v5308_v54  ;;  %v2245_v54 = vld [vmem:[#allocation8 + $0x90] sm:$0xff] }
 0x6ed   :  { %v2087_v0 = vmul.f32 %v5312_v56, %v7729_v28  ;;  %v5314_v23 = vpop.eup %5313  ;;  %v2248_v56 = vld [vmem:[#allocation8 + $0xa8] sm:$0xff] }
 0x6ef   :  { %v7787_v59 = vadd.f32 %v2089_v57, %v2087_v0  ;;  %v1997_v60 = vpop.f32.mrb[36].mxu0  ;;  %v2038_v61 = vpop.f32.mrb[36].mxu1  ;;  %v2250_v57 = vld [vmem:[#allocation8 + $0xb8] sm:$0xff]  ;;  %v2249_v0 = vld [vmem:[#allocation8 + $0xb0] sm:$0xff] }
 0x6f0   :  { %v2045_v63 = vadd.f32 %v1997_v60, %v8759_v62  ;;  %v2047_v3 = vadd.f32 %v2038_v61, %v8760_v1  ;;  %v1999_v4 = vpop.f32.mrb[37].mxu0  ;;  %v2040_v5 = vpop.f32.mrb[37].mxu1  ;;  %v2254_v60 = vld [vmem:[#allocation8 + $0xd8] sm:$0xff]  ;;  %v2251_v61 = vld [vmem:[#allocation8 + $0xc0] sm:$0xff]  ;;  %v2253_v62 = vld [vmem:[#allocation8 + $0xd0] sm:$0xff] }
 0x6f1   :  { %v2046_v7 = vadd.f32 %v1999_v4, %v8761_v6  ;;  %v2048_v26 = vadd.f32 %v2040_v5, %v8762_v35  ;;  %v2001_v24 = vpop.f32.mrb[38].mxu0  ;;  %v2042_v36 = vpop.f32.mrb[38].mxu1  ;;  %5315 = vtanh.f32 %v7787_v59  ;;  %v2258_v1 = vld [vmem:[#allocation8 + $0xf8] sm:$0xff]  ;;  %v2255_v4 = vld [vmem:[#allocation8 + $0xe0] sm:$0xff]  ;;  %v2257_v5 = vld [vmem:[#allocation8 + $0xf0] sm:$0xff] }
 0x6f2   :  { %v4945_v28 = vmul.f32 -1.442695, %v2045_v63  ;;  %v2002_v8 = vpop.f32.mrb[39].mxu0  ;;  %v2043_v9 = vpop.f32.mrb[39].mxu1  ;;  %v2256_v63 = vld [vmem:[#allocation8 + $0xe8] sm:$0xff]  ;;  %v8763_v36 = vld [vmem:[#allocation188_spill] sm:$0xff] }
 0x6f3   :  { %v4947_v10 = vmul.f32 -1.442695, %v2046_v7  ;;  %v4949_v22 = vmul.f32 -1.442695, %v2048_v26  ;;  %v8764_v8 = vld [vmem:[#allocation189_spill] sm:$0xff] }
 0x6f4   :  { %5317 = vpow2.f32 %v4945_v28 }
 0x6f5   :  { %5319 = vpow2.f32 %v4947_v10 }
 0x6f6   :  { %5321 = vpow2.f32 %v4949_v22 }
 0x6f7   :  { %5323 = vtanh.f32 %v2047_v3 }
 0x6fb   :  { %v5316_v21 = vpop.eup %5315 }
 0x6fc   :  { %v7794_v20 = vmul.f32 %v5316_v21, %v5314_v23  ;;  %v8765_v21 = vld [vmem:[#allocation190_spill] sm:$0xff] }
 0x6fe   :  { %v5318_v37 = vpop.eup %5317  ;;  %v2103_v41 = vpack.c.bf16 %v7794_v20, %v7794_v20 }
 0x6ff   :  { %v5320_v18 = vpop.eup %5319  ;;  %v2056_v16 = vadd.f32 1.0, %v5318_v37  ;;  %v8766_v37 = vld [vmem:[#allocation191_spill] sm:$0xff] }
 0x700   :  { %v2068_v12 = vadd.f32 1.0, %v5320_v18  ;;  %2169 = vmatmul.mubr.bf16.vlgmr.msra.gmra.mrb[40].mxu0 %v2103_v41  ;;  %2210 = vmatmul.mubr.bf16.vlgmr.msra.gmra.mrb[40].mxu1 %v2103_v41  ;;  %v5322_v30 = vpop.eup %5321 }
 0x701   :  { %5325 = vrcp.f32 %v2056_v16  ;;  %2260 = vmatpush1.bf16.msra.mxu0 %v2227_v17  ;;  %2301 = vmatpush1.bf16.msra.mxu1 %v2229_v38  ;;  %v5324_v42 = vpop.eup %5323  ;;  %v2082_v50 = vadd.f32 1.0, %v5322_v30 }
 0x702   :  { %5327 = vrcp.f32 %v2068_v12  ;;  %2261 = vmatprep.subr.bf16.mxu0 %v2232_v27  ;;  %2302 = vmatprep.subr.bf16.mxu1 %v2234_v13 }
 0x703   :  { %2291 = vmatprep.mubr.bf16.mxu0 %v8689_v2  ;;  %2332 = vmatprep.mubr.bf16.mxu1 %v8689_v2  ;;  %5329 = vrcp.f32 %v2082_v50 }
 0x705   :  { %2262 = vmatpush1.bf16.msra.mxu0 %v2231_v19  ;;  %2303 = vmatpush1.bf16.msra.mxu1 %v2233_v32 }
 0x706   :  { %2263 = vmatprep.subr.bf16.mxu0 %v2236_v11  ;;  %2304 = vmatprep.subr.bf16.mxu1 %v2238_v15 }
 0x709   :  { %2264 = vmatpush1.bf16.msra.mxu0 %v2235_v25  ;;  %2305 = vmatpush1.bf16.msra.mxu1 %v2237_v33 }
 0x70a   :  { %2265 = vmatprep.subr.bf16.mxu0 %v2240_v39  ;;  %2306 = vmatprep.subr.bf16.mxu1 %v2242_v31 }
 0x70b   :  { %v5326_v45 = vpop.eup %5325 }
 0x70c   :  { %v5328_v47 = vpop.eup %5327  ;;  %v2090_v49 = vmul.f32 %v5326_v45, %v5324_v42 }
 0x70d   :  { %v2088_v52 = vmul.f32 %v5328_v47, %v7759_v48  ;;  %2266 = vmatpush1.bf16.msra.mxu0 %v2239_v43  ;;  %2307 = vmatpush1.bf16.msra.mxu1 %v2241_v44  ;;  %v2252_v48 = vld [vmem:[#allocation8 + $0xc8] sm:$0xff]  ;;  %v5330_v3 = vpop.eup %5329 }
 0x70e   :  { %2267 = vmatprep.subr.bf16.mxu0 %v2244_v34  ;;  %2308 = vmatprep.subr.bf16.mxu1 %v2246_v46  ;;  %v8767_v46 = vld [vmem:[#allocation192_spill] sm:$0xff] }
 0x70f   :  { %v7801_v55 = vadd.f32 %v2090_v49, %v2088_v52  ;;  %v8768_v49 = vld [vmem:[#allocation193_spill] sm:$0xff] }
 0x711   :  { %2268 = vmatpush1.bf16.msra.mxu0 %v2243_v53  ;;  %2309 = vmatpush1.bf16.msra.mxu1 %v2245_v54  ;;  %5331 = vtanh.f32 %v7801_v55  ;;  %v8769_v54 = vld [vmem:[#allocation194_spill] sm:$0xff] }
 0x712   :  { %2269 = vmatprep.subr.bf16.mxu0 %v2248_v56  ;;  %2310 = vmatprep.subr.bf16.mxu1 %v2250_v57  ;;  %v8770_v57 = vld [vmem:[#allocation195_spill] sm:$0xff] }
 0x715   :  { %2270 = vmatpush1.bf16.msra.mxu0 %v2247_v58  ;;  %2311 = vmatpush1.bf16.msra.mxu1 %v2249_v0 }
 0x716   :  { %2271 = vmatprep.subr.bf16.mxu0 %v2252_v48  ;;  %2312 = vmatprep.subr.bf16.mxu1 %v2254_v60 }
 0x719   :  { %2272 = vmatpush1.bf16.msra.mxu0 %v2251_v61  ;;  %2313 = vmatpush1.bf16.msra.mxu1 %v2253_v62 }
 0x71a   :  { %2273 = vmatprep.subr.bf16.mxu0 %v2256_v63  ;;  %2314 = vmatprep.subr.bf16.mxu1 %v2258_v1 }
 0x71b   :  { %v5332_v6 = vpop.eup %5331 }
 0x71c   :  { %v7804_v7 = vmul.f32 %v5332_v6, %v5330_v3 }
 0x71d   :  { %2274 = vmatpush1.bf16.msra.mxu0 %v2255_v4  ;;  %2315 = vmatpush1.bf16.msra.mxu1 %v2257_v5 }
 0x71e   :  { %v2226_v35 = vpack.c.bf16 %v7804_v7, %v7804_v7 }
 0x720   :  { %2292 = vmatmul.mubr.bf16.vlgmr.msra.gmra.mrb[44].mxu0 %v2226_v35  ;;  %2333 = vmatmul.mubr.bf16.vlgmr.msra.gmra.mrb[44].mxu1 %v2226_v35 }
 0x7d3   :  { %v2170_v26 = vpop.f32.mrb[40].mxu0  ;;  %v2211_v24 = vpop.f32.mrb[40].mxu1 }
 0x7d4   :  { %v2218_v28 = vadd.f32 %v2170_v26, %v8763_v36  ;;  %v2220_v9 = vadd.f32 %v2211_v24, %v8764_v8  ;;  %v2172_v10 = vpop.f32.mrb[41].mxu0  ;;  %v2213_v23 = vpop.f32.mrb[41].mxu1 }
 0x7d5   :  { %v2219_v22 = vadd.f32 %v2172_v10, %v8765_v21  ;;  %v2221_v41 = vadd.f32 %v2213_v23, %v8766_v37  ;;  %v2174_v17 = vpop.f32.mrb[42].mxu0  ;;  %v2215_v38 = vpop.f32.mrb[42].mxu1 }
 0x7d6   :  { %v4950_v18 = vmul.f32 -1.442695, %v2218_v28  ;;  %v2175_v16 = vpop.f32.mrb[43].mxu0  ;;  %v2216_v27 = vpop.f32.mrb[43].mxu1 }
 0x7d7   :  { %v4952_v13 = vmul.f32 -1.442695, %v2219_v22  ;;  %v4954_v12 = vmul.f32 -1.442695, %v2221_v41 }
 0x7d8   :  { %5333 = vpow2.f32 %v4950_v18 }
 0x7d9   :  { %5335 = vpow2.f32 %v4952_v13 }
 0x7da   :  { %5337 = vpow2.f32 %v4954_v12 }
 0x7db   :  { %5339 = vtanh.f32 %v2220_v9 }
 0x7e2   :  { %v5334_v19 = vpop.eup %5333 }
 0x7e3   :  { %v5336_v32 = vpop.eup %5335  ;;  %v2351_v11 = vadd.f32 1.0, %v5334_v19 }
 0x7e4   :  { %v2363_v15 = vadd.f32 1.0, %v5336_v32  ;;  %v5338_v25 = vpop.eup %5337 }
 0x7e5   :  { %5341 = vrcp.f32 %v2351_v11  ;;  %v5340_v33 = vpop.eup %5339  ;;  %v2377_v42 = vadd.f32 1.0, %v5338_v25 }
 0x7e6   :  { %5343 = vrcp.f32 %v2363_v15 }
 0x7e7   :  { %5345 = vrcp.f32 %v2377_v42 }
 0x7ef   :  { %v5342_v39 = vpop.eup %5341 }
 0x7f0   :  { %v5344_v31 = vpop.eup %5343  ;;  %v2385_v30 = vmul.f32 %v5342_v39, %v5340_v33 }
 0x7f1   :  { %v2383_v43 = vmul.f32 %v5344_v31, %v7787_v59  ;;  %v5346_v63 = vpop.eup %5345 }
 0x7f3   :  { %v2387_v44 = vadd.f32 %v2385_v30, %v2383_v43  ;;  %v2293_v45 = vpop.f32.mrb[44].mxu0  ;;  %v2334_v34 = vpop.f32.mrb[44].mxu1 }
 0x7f4   :  { %v2341_v47 = vadd.f32 %v2293_v45, %v8767_v46  ;;  %v2343_v50 = vadd.f32 %v2334_v34, %v8768_v49  ;;  %v2295_v52 = vpop.f32.mrb[45].mxu0  ;;  %v2336_v53 = vpop.f32.mrb[45].mxu1 }
 0x7f5   :  { %5347 = vtanh.f32 %v2387_v44  ;;  %v2342_v56 = vadd.f32 %v2295_v52, %v8769_v54  ;;  %v2344_v58 = vadd.f32 %v2336_v53, %v8770_v57  ;;  %v2297_v0 = vpop.f32.mrb[46].mxu0  ;;  %v2338_v48 = vpop.f32.mrb[46].mxu1 }
 0x7f6   :  { %v4951_v60 = vmul.f32 -1.442695, %v2341_v47  ;;  %v2298_v61 = vpop.f32.mrb[47].mxu0  ;;  %v2339_v59 = vpop.f32.mrb[47].mxu1 }
 0x7f7   :  { %v4953_v62 = vmul.f32 -1.442695, %v2342_v56  ;;  %v4955_v3 = vmul.f32 -1.442695, %v2344_v58 }
 0x7f8   :  { %5349 = vpow2.f32 %v4951_v60 }
 0x7f9   :  { %5351 = vpow2.f32 %v4953_v62 }
 0x7fa   :  { %5353 = vpow2.f32 %v4955_v3 }
 0x7fb   :  { %5355 = vtanh.f32 %v2343_v50 }
 0x7ff   :  { %v5348_v1 = vpop.eup %5347 }
 0x800   :  { %v7817_v4 = vmul.f32 %v5348_v1, %v5346_v63 }
 0x802   :  { %v5350_v5 = vpop.eup %5349 }
 0x803   :  { %v5352_v6 = vpop.eup %5351  ;;  %v2352_v35 = vadd.f32 1.0, %v5350_v5 }
 0x804   :  { %v2364_v26 = vadd.f32 1.0, %v5352_v6  ;;  %v5354_v24 = vpop.eup %5353 }
 0x805   :  { %5357 = vrcp.f32 %v2352_v35  ;;  %v5356_v36 = vpop.eup %5355  ;;  %v2378_v10 = vadd.f32 1.0, %v5354_v24 }
 0x806   :  { %5359 = vrcp.f32 %v2364_v26 }
 0x807   :  { %5361 = vrcp.f32 %v2378_v10 }
 0x80f   :  { %v5358_v28 = vpop.eup %5357 }
 0x810   :  { %v5360_v8 = vpop.eup %5359  ;;  %v2386_v9 = vmul.f32 %v5358_v28, %v5356_v36 }
 0x811   :  { %v2384_v23 = vmul.f32 %v5360_v8, %v7801_v55  ;;  %v5362_v22 = vpop.eup %5361 }
 0x813   :  { %v2388_v21 = vadd.f32 %v2386_v9, %v2384_v23 }
 0x815   :  { %5363 = vtanh.f32 %v2388_v21 }
 0x81f   :  { %v5364_v37 = vpop.eup %5363 }
 0x820   :  { %v2392_v41 = vmul.f32 %v5364_v37, %v5362_v22 }
 0x821   :  { %6463 = dma.done.wait [#allocation14 + $0x3], 16384 }
 0x822   :  { %6464 = vsyncadd [#allocation14 + $0x3], 4294950912 }
 0x823   :  { %6465 = dma.done.wait [#allocation14 + $0x4], 4096 }
 0x824   :  { %6466 = vsyncadd [#allocation14 + $0x4], 4294963200 }
 0x825   :  { %6467 = dma.done.wait [#allocation14 + $0x5], 4096 }
 0x826   :  { %6468 = vsyncadd [#allocation14 + $0x5], 4294963200  ;;  %v7821_v17 = vpack.c.bf16 %v7804_v7, %v2392_v41  ;;  %v2416_v55 = vld [vmem:[#allocation9 + $0x8] sm:$0xff]  ;;  %v2418_v38 = vld [vmem:[#allocation9 + $0x18] sm:$0xff] }
 0x827   :  { %v2415_v18 = vld [vmem:[#allocation9] sm:$0xff]  ;;  %2585 = vmatprep.subr.bf16.mxu0 %v2416_v55  ;;  %2638 = vmatprep.subr.bf16.mxu1 %v2418_v38  ;;  %v2417_v16 = vld [vmem:[#allocation9 + $0x10] sm:$0xff]  ;;  %v2424_v27 = vld [vmem:[#allocation9 + $0x48] sm:$0xff] }
 0x828   :  { %2617 = vmatprep.mubr.bf16.mxu0 %v7821_v17  ;;  %2670 = vmatprep.mubr.bf16.mxu1 %v7821_v17  ;;  %v2426_v13 = vld [vmem:[#allocation9 + $0x58] sm:$0xff]  ;;  %v2423_v12 = vld [vmem:[#allocation9 + $0x40] sm:$0xff]  ;;  %v2425_v19 = vld [vmem:[#allocation9 + $0x50] sm:$0xff] }
 0x829   :  { %2586 = vmatpush1.bf16.msra.mxu0 %v2415_v18  ;;  %2639 = vmatpush1.bf16.msra.mxu1 %v2417_v16  ;;  %v2432_v7 = vld [vmem:[#allocation9 + $0x88] sm:$0xff]  ;;  %v2434_v32 = vld [vmem:[#allocation9 + $0x98] sm:$0xff]  ;;  %v2431_v11 = vld [vmem:[#allocation9 + $0x80] sm:$0xff] }
 0x82a   :  { %2587 = vmatprep.subr.bf16.mxu0 %v2424_v27  ;;  %2640 = vmatprep.subr.bf16.mxu1 %v2426_v13  ;;  %v2433_v15 = vld [vmem:[#allocation9 + $0x90] sm:$0xff]  ;;  %v2440_v25 = vld [vmem:[#allocation9 + $0xc8] sm:$0xff]  ;;  %v2442_v33 = vld [vmem:[#allocation9 + $0xd8] sm:$0xff] }
 0x82b   :  { %v2439_v39 = vld [vmem:[#allocation9 + $0xc0] sm:$0xff]  ;;  %v2441_v31 = vld [vmem:[#allocation9 + $0xd0] sm:$0xff]  ;;  %v2448_v30 = vld [vmem:[#allocation9 + $0x108] sm:$0xff] }
 0x82c   :  { %v2450_v42 = vld [vmem:[#allocation9 + $0x118] sm:$0xff]  ;;  %v2447_v43 = vld [vmem:[#allocation9 + $0x100] sm:$0xff]  ;;  %v2449_v44 = vld [vmem:[#allocation9 + $0x110] sm:$0xff] }
 0x82d   :  { %2588 = vmatpush1.bf16.msra.mxu0 %v2423_v12  ;;  %2641 = vmatpush1.bf16.msra.mxu1 %v2425_v19  ;;  %v2456_v45 = vld [vmem:[#allocation9 + $0x148] sm:$0xff]  ;;  %v2458_v34 = vld [vmem:[#allocation9 + $0x158] sm:$0xff]  ;;  %v2455_v46 = vld [vmem:[#allocation9 + $0x140] sm:$0xff] }
 0x82e   :  { %2589 = vmatprep.subr.bf16.mxu0 %v2432_v7  ;;  %2642 = vmatprep.subr.bf16.mxu1 %v2434_v32  ;;  %v2457_v47 = vld [vmem:[#allocation9 + $0x150] sm:$0xff]  ;;  %v2464_v49 = vld [vmem:[#allocation9 + $0x188] sm:$0xff]  ;;  %v2466_v50 = vld [vmem:[#allocation9 + $0x198] sm:$0xff] }
 0x82f   :  { %v2463_v52 = vld [vmem:[#allocation9 + $0x180] sm:$0xff]  ;;  %v2465_v53 = vld [vmem:[#allocation9 + $0x190] sm:$0xff]  ;;  %v2472_v54 = vld [vmem:[#allocation9 + $0x1c8] sm:$0xff] }
 0x830   :  { %v2474_v56 = vld [vmem:[#allocation9 + $0x1d8] sm:$0xff]  ;;  %v2471_v57 = vld [vmem:[#allocation9 + $0x1c0] sm:$0xff]  ;;  %v2473_v58 = vld [vmem:[#allocation9 + $0x1d0] sm:$0xff] }
 0x831   :  { %2590 = vmatpush1.bf16.msra.mxu0 %v2431_v11  ;;  %2643 = vmatpush1.bf16.msra.mxu1 %v2433_v15  ;;  %v2480_v0 = vld [vmem:[#allocation9 + $0x208] sm:$0xff]  ;;  %v2482_v48 = vld [vmem:[#allocation9 + $0x218] sm:$0xff]  ;;  %v2479_v60 = vld [vmem:[#allocation9 + $0x200] sm:$0xff]  ;;  %v7827_v11 = vpack.c.bf16 %v7736_v14, %v7645_v29 }
 0x832   :  { %2591 = vmatprep.subr.bf16.mxu0 %v2440_v25  ;;  %2644 = vmatprep.subr.bf16.mxu1 %v2442_v33  ;;  %v2481_v61 = vld [vmem:[#allocation9 + $0x210] sm:$0xff]  ;;  %v2488_v59 = vld [vmem:[#allocation9 + $0x248] sm:$0xff]  ;;  %v2490_v62 = vld [vmem:[#allocation9 + $0x258] sm:$0xff] }
 0x833   :  { %v2487_v63 = vld [vmem:[#allocation9 + $0x240] sm:$0xff]  ;;  %v2489_v1 = vld [vmem:[#allocation9 + $0x250] sm:$0xff]  ;;  %v2496_v3 = vld [vmem:[#allocation9 + $0x288] sm:$0xff] }
 0x834   :  { %v2498_v5 = vld [vmem:[#allocation9 + $0x298] sm:$0xff]  ;;  %v2495_v6 = vld [vmem:[#allocation9 + $0x280] sm:$0xff]  ;;  %v2497_v35 = vld [vmem:[#allocation9 + $0x290] sm:$0xff] }
 0x835   :  { %2592 = vmatpush1.bf16.msra.mxu0 %v2439_v39  ;;  %2645 = vmatpush1.bf16.msra.mxu1 %v2441_v31  ;;  %v2504_v26 = vld [vmem:[#allocation9 + $0x2c8] sm:$0xff]  ;;  %v2506_v24 = vld [vmem:[#allocation9 + $0x2d8] sm:$0xff]  ;;  %v2503_v36 = vld [vmem:[#allocation9 + $0x2c0] sm:$0xff]  ;;  %v7831_v31 = vpack.c.bf16 %v7682_v40, %v7774_v51  ;;  %v7839_v40 = vpack.c.bf16 %v7817_v4, %v7794_v20 }
 0x836   :  { %2593 = vmatprep.subr.bf16.mxu0 %v2448_v30  ;;  %2646 = vmatprep.subr.bf16.mxu1 %v2450_v42  ;;  %v2505_v28 = vld [vmem:[#allocation9 + $0x2d0] sm:$0xff]  ;;  %v2512_v8 = vld [vmem:[#allocation9 + $0x308] sm:$0xff]  ;;  %v2514_v9 = vld [vmem:[#allocation9 + $0x318] sm:$0xff] }
 0x837   :  { %v2511_v10 = vld [vmem:[#allocation9 + $0x300] sm:$0xff]  ;;  %v2513_v23 = vld [vmem:[#allocation9 + $0x310] sm:$0xff]  ;;  %v2520_v21 = vld [vmem:[#allocation9 + $0x348] sm:$0xff] }
 0x838   :  { %v2522_v22 = vld [vmem:[#allocation9 + $0x358] sm:$0xff]  ;;  %v2519_v37 = vld [vmem:[#allocation9 + $0x340] sm:$0xff]  ;;  %v2521_v41 = vld [vmem:[#allocation9 + $0x350] sm:$0xff] }
 0x839   :  { %2594 = vmatpush1.bf16.msra.mxu0 %v2447_v43  ;;  %2647 = vmatpush1.bf16.msra.mxu1 %v2449_v44  ;;  %v2528_v55 = vld [vmem:[#allocation9 + $0x388] sm:$0xff]  ;;  %v2530_v38 = vld [vmem:[#allocation9 + $0x398] sm:$0xff]  ;;  %v2527_v18 = vld [vmem:[#allocation9 + $0x380] sm:$0xff] }
 0x83a   :  { %2595 = vmatprep.subr.bf16.mxu0 %v2456_v45  ;;  %2648 = vmatprep.subr.bf16.mxu1 %v2458_v34  ;;  %v2529_v16 = vld [vmem:[#allocation9 + $0x390] sm:$0xff]  ;;  %v2536_v27 = vld [vmem:[#allocation9 + $0x3c8] sm:$0xff]  ;;  %v2538_v13 = vld [vmem:[#allocation9 + $0x3d8] sm:$0xff] }
 0x83b   :  { %v2535_v12 = vld [vmem:[#allocation9 + $0x3c0] sm:$0xff]  ;;  %v2537_v19 = vld [vmem:[#allocation9 + $0x3d0] sm:$0xff]  ;;  %v2420_v7 = vld [vmem:[#allocation9 + $0x28] sm:$0xff] }
 0x83c   :  { %v2422_v32 = vld [vmem:[#allocation9 + $0x38] sm:$0xff]  ;;  %v2419_v15 = vld [vmem:[#allocation9 + $0x20] sm:$0xff]  ;;  %v2421_v25 = vld [vmem:[#allocation9 + $0x30] sm:$0xff] }
 0x83d   :  { %2596 = vmatpush1.bf16.msra.mxu0 %v2455_v46  ;;  %2649 = vmatpush1.bf16.msra.mxu1 %v2457_v47  ;;  %v2428_v33 = vld [vmem:[#allocation9 + $0x68] sm:$0xff]  ;;  %v2430_v39 = vld [vmem:[#allocation9 + $0x78] sm:$0xff]  ;;  %v2427_v29 = vld [vmem:[#allocation9 + $0x60] sm:$0xff] }
 0x83e   :  { %2597 = vmatprep.subr.bf16.mxu0 %v2464_v49  ;;  %2650 = vmatprep.subr.bf16.mxu1 %v2466_v50  ;;  %v2429_v14 = vld [vmem:[#allocation9 + $0x70] sm:$0xff]  ;;  %v2436_v30 = vld [vmem:[#allocation9 + $0xa8] sm:$0xff]  ;;  %v2438_v42 = vld [vmem:[#allocation9 + $0xb8] sm:$0xff] }
 0x83f   :  { %v2435_v51 = vld [vmem:[#allocation9 + $0xa0] sm:$0xff]  ;;  %v2437_v43 = vld [vmem:[#allocation9 + $0xb0] sm:$0xff]  ;;  %v2444_v44 = vld [vmem:[#allocation9 + $0xe8] sm:$0xff] }
 0x840   :  { %v2446_v45 = vld [vmem:[#allocation9 + $0xf8] sm:$0xff]  ;;  %v2443_v34 = vld [vmem:[#allocation9 + $0xe0] sm:$0xff]  ;;  %v2445_v46 = vld [vmem:[#allocation9 + $0xf0] sm:$0xff] }
 0x841   :  { %2598 = vmatpush1.bf16.msra.mxu0 %v2463_v52  ;;  %2651 = vmatpush1.bf16.msra.mxu1 %v2465_v53  ;;  %v2452_v20 = vld [vmem:[#allocation9 + $0x128] sm:$0xff]  ;;  %v2454_v4 = vld [vmem:[#allocation9 + $0x138] sm:$0xff]  ;;  %v2451_v47 = vld [vmem:[#allocation9 + $0x120] sm:$0xff] }
 0x842   :  { %2599 = vmatprep.subr.bf16.mxu0 %v2472_v54  ;;  %2652 = vmatprep.subr.bf16.mxu1 %v2474_v56  ;;  %v2453_v49 = vld [vmem:[#allocation9 + $0x130] sm:$0xff]  ;;  %v2460_v50 = vld [vmem:[#allocation9 + $0x168] sm:$0xff]  ;;  %v2462_v52 = vld [vmem:[#allocation9 + $0x178] sm:$0xff] }
 0x843   :  { %v2459_v53 = vld [vmem:[#allocation9 + $0x160] sm:$0xff]  ;;  %v2461_v54 = vld [vmem:[#allocation9 + $0x170] sm:$0xff]  ;;  %v2468_v56 = vld [vmem:[#allocation9 + $0x1a8] sm:$0xff] }
 0x845   :  { %2600 = vmatpush1.bf16.msra.mxu0 %v2471_v57  ;;  %2653 = vmatpush1.bf16.msra.mxu1 %v2473_v58  ;;  %v2470_v57 = vld [vmem:[#allocation9 + $0x1b8] sm:$0xff]  ;;  %v2469_v58 = vld [vmem:[#allocation9 + $0x1b0] sm:$0xff] }
 0x846   :  { %2601 = vmatprep.subr.bf16.mxu0 %v2480_v0  ;;  %2654 = vmatprep.subr.bf16.mxu1 %v2482_v48  ;;  %v2476_v0 = vld [vmem:[#allocation9 + $0x1e8] sm:$0xff]  ;;  %v2478_v48 = vld [vmem:[#allocation9 + $0x1f8] sm:$0xff] }
 0x849   :  { %2602 = vmatpush1.bf16.msra.mxu0 %v2479_v60  ;;  %2655 = vmatpush1.bf16.msra.mxu1 %v2481_v61  ;;  %v2475_v60 = vld [vmem:[#allocation9 + $0x1e0] sm:$0xff]  ;;  %v2477_v61 = vld [vmem:[#allocation9 + $0x1f0] sm:$0xff] }
 0x84a   :  { %2603 = vmatprep.subr.bf16.mxu0 %v2488_v59  ;;  %2656 = vmatprep.subr.bf16.mxu1 %v2490_v62  ;;  %v2484_v59 = vld [vmem:[#allocation9 + $0x228] sm:$0xff]  ;;  %v2486_v62 = vld [vmem:[#allocation9 + $0x238] sm:$0xff] }
 0x84d   :  { %2604 = vmatpush1.bf16.msra.mxu0 %v2487_v63  ;;  %2657 = vmatpush1.bf16.msra.mxu1 %v2489_v1  ;;  %v2483_v63 = vld [vmem:[#allocation9 + $0x220] sm:$0xff]  ;;  %v2485_v1 = vld [vmem:[#allocation9 + $0x230] sm:$0xff] }
 0x84e   :  { %2605 = vmatprep.subr.bf16.mxu0 %v2496_v3  ;;  %2658 = vmatprep.subr.bf16.mxu1 %v2498_v5  ;;  %v2492_v3 = vld [vmem:[#allocation9 + $0x268] sm:$0xff]  ;;  %v2494_v5 = vld [vmem:[#allocation9 + $0x278] sm:$0xff] }
 0x851   :  { %2606 = vmatpush1.bf16.msra.mxu0 %v2495_v6  ;;  %2659 = vmatpush1.bf16.msra.mxu1 %v2497_v35  ;;  %v2491_v6 = vld [vmem:[#allocation9 + $0x260] sm:$0xff]  ;;  %v2493_v35 = vld [vmem:[#allocation9 + $0x270] sm:$0xff] }
 0x852   :  { %2607 = vmatprep.subr.bf16.mxu0 %v2504_v26  ;;  %2660 = vmatprep.subr.bf16.mxu1 %v2506_v24  ;;  %v2500_v26 = vld [vmem:[#allocation9 + $0x2a8] sm:$0xff]  ;;  %v2502_v24 = vld [vmem:[#allocation9 + $0x2b8] sm:$0xff] }
 0x855   :  { %2608 = vmatpush1.bf16.msra.mxu0 %v2503_v36  ;;  %2661 = vmatpush1.bf16.msra.mxu1 %v2505_v28  ;;  %v2499_v36 = vld [vmem:[#allocation9 + $0x2a0] sm:$0xff]  ;;  %v2501_v28 = vld [vmem:[#allocation9 + $0x2b0] sm:$0xff] }
 0x856   :  { %2609 = vmatprep.subr.bf16.mxu0 %v2512_v8  ;;  %2662 = vmatprep.subr.bf16.mxu1 %v2514_v9  ;;  %v2508_v8 = vld [vmem:[#allocation9 + $0x2e8] sm:$0xff]  ;;  %v2510_v9 = vld [vmem:[#allocation9 + $0x2f8] sm:$0xff] }
 0x859   :  { %2610 = vmatpush1.bf16.msra.mxu0 %v2511_v10  ;;  %2663 = vmatpush1.bf16.msra.mxu1 %v2513_v23  ;;  %v2507_v10 = vld [vmem:[#allocation9 + $0x2e0] sm:$0xff]  ;;  %v2509_v23 = vld [vmem:[#allocation9 + $0x2f0] sm:$0xff] }
 0x85a   :  { %2611 = vmatprep.subr.bf16.mxu0 %v2520_v21  ;;  %2664 = vmatprep.subr.bf16.mxu1 %v2522_v22  ;;  %v2516_v21 = vld [vmem:[#allocation9 + $0x328] sm:$0xff]  ;;  %v2518_v22 = vld [vmem:[#allocation9 + $0x338] sm:$0xff] }
 0x85d   :  { %2612 = vmatpush1.bf16.msra.mxu0 %v2519_v37  ;;  %2665 = vmatpush1.bf16.msra.mxu1 %v2521_v41  ;;  %v2515_v37 = vld [vmem:[#allocation9 + $0x320] sm:$0xff]  ;;  %v2517_v41 = vld [vmem:[#allocation9 + $0x330] sm:$0xff] }
 0x85e   :  { %2613 = vmatprep.subr.bf16.mxu0 %v2528_v55  ;;  %2666 = vmatprep.subr.bf16.mxu1 %v2530_v38  ;;  %v2524_v55 = vld [vmem:[#allocation9 + $0x368] sm:$0xff]  ;;  %v2526_v38 = vld [vmem:[#allocation9 + $0x378] sm:$0xff] }
 0x861   :  { %2614 = vmatpush1.bf16.msra.mxu0 %v2527_v18  ;;  %2667 = vmatpush1.bf16.msra.mxu1 %v2529_v16  ;;  %v2523_v18 = vld [vmem:[#allocation9 + $0x360] sm:$0xff]  ;;  %v2525_v16 = vld [vmem:[#allocation9 + $0x370] sm:$0xff] }
 0x862   :  { %2615 = vmatprep.subr.bf16.mxu0 %v2536_v27  ;;  %2668 = vmatprep.subr.bf16.mxu1 %v2538_v13  ;;  %v2532_v27 = vld [vmem:[#allocation9 + $0x3a8] sm:$0xff]  ;;  %v2534_v13 = vld [vmem:[#allocation9 + $0x3b8] sm:$0xff] }
 0x865   :  { %2616 = vmatpush1.bf16.msra.mxu0 %v2535_v12  ;;  %2669 = vmatpush1.bf16.msra.mxu1 %v2537_v19  ;;  %v2531_v12 = vld [vmem:[#allocation9 + $0x3a0] sm:$0xff]  ;;  %v2533_v19 = vld [vmem:[#allocation9 + $0x3b0] sm:$0xff] }
 0x866   :  { %2691 = vmatprep.subr.bf16.mxu0 %v2420_v7  ;;  %2744 = vmatprep.subr.bf16.mxu1 %v2422_v32  ;;  %v2540_v7 = vld [vmem:[#allocation9 + $0x3e8] sm:$0xff]  ;;  %v2542_v32 = vld [vmem:[#allocation9 + $0x3f8] sm:$0xff] }
 0x868   :  { %2618 = vmatmul.mubr.bf16.vlgmr.msra.gmra.mrb[48].mxu0 %v7827_v11  ;;  %2671 = vmatmul.mubr.bf16.vlgmr.msra.gmra.mrb[48].mxu1 %v7827_v11 }
 0x869   :  { %2692 = vmatpush1.bf16.msra.mxu0 %v2419_v15  ;;  %2745 = vmatpush1.bf16.msra.mxu1 %v2421_v25  ;;  %v2539_v15 = vld [vmem:[#allocation9 + $0x3e0] sm:$0xff]  ;;  %v2541_v25 = vld [vmem:[#allocation9 + $0x3f0] sm:$0xff] }
 0x86a   :  { %2693 = vmatprep.subr.bf16.mxu0 %v2428_v33  ;;  %2746 = vmatprep.subr.bf16.mxu1 %v2430_v39  ;;  %v7845_v33 = vld [vmem:[#allocation10 + $0x8] sm:$0xff]  ;;  %v7847_v39 = vld [vmem:[#allocation10 + $0x18] sm:$0xff] }
 0x86b   :  { %2627 = vmatprep.mubr.bf16.mxu0 %v7831_v31  ;;  %2680 = vmatprep.mubr.bf16.mxu1 %v7831_v31  ;;  %8771 = vst [vmem:[#allocation178_spill] sm:$0xff] %v7845_v33  ;;  %8772 = vst [vmem:[#allocation147_spill] sm:$0xff] %v7847_v39 }
 0x86d   :  { %2694 = vmatpush1.bf16.msra.mxu0 %v2427_v29  ;;  %2747 = vmatpush1.bf16.msra.mxu1 %v2429_v14  ;;  %v7851_v29 = vld [vmem:[#allocation10] sm:$0xff]  ;;  %v7853_v14 = vld [vmem:[#allocation10 + $0x10] sm:$0xff] }
 0x86e   :  { %2695 = vmatprep.subr.bf16.mxu0 %v2436_v30  ;;  %2748 = vmatprep.subr.bf16.mxu1 %v2438_v42  ;;  %8773 = vst [vmem:[#allocation148_spill] sm:$0xff] %v7851_v29  ;;  %8774 = vst [vmem:[#allocation149_spill] sm:$0xff] %v7853_v14  ;;  %v7855_v30 = vld [vmem:[#allocation10 + $0x28] sm:$0xff]  ;;  %v7857_v42 = vld [vmem:[#allocation10 + $0x38] sm:$0xff] }
 0x86f   :  { %8775 = vst [vmem:[#allocation150_spill] sm:$0xff] %v7855_v30  ;;  %8776 = vst [vmem:[#allocation151_spill] sm:$0xff] %v7857_v42 }
 0x870   :  { %2628 = vmatmul.mubr.bf16.gmra.mrb[52].mxu0 %v7839_v40  ;;  %2681 = vmatmul.mubr.bf16.gmra.mrb[52].mxu1 %v7839_v40 }
 0x871   :  { %2696 = vmatpush1.bf16.msra.mxu0 %v2435_v51  ;;  %2749 = vmatpush1.bf16.msra.mxu1 %v2437_v43  ;;  %v7865_v51 = vld [vmem:[#allocation10 + $0x20] sm:$0xff]  ;;  %v7867_v43 = vld [vmem:[#allocation10 + $0x30] sm:$0xff] }
 0x872   :  { %2697 = vmatprep.subr.bf16.mxu0 %v2444_v44  ;;  %2750 = vmatprep.subr.bf16.mxu1 %v2446_v45  ;;  %8777 = vst [vmem:[#allocation152_spill] sm:$0xff] %v7865_v51  ;;  %8778 = vst [vmem:[#allocation153_spill] sm:$0xff] %v7867_v43  ;;  %v7869_v44 = vld [vmem:[#allocation10 + $0x48] sm:$0xff]  ;;  %v7871_v45 = vld [vmem:[#allocation10 + $0x58] sm:$0xff] }
 0x873   :  { %2723 = vmatprep.mubr.bf16.mxu0 %v7821_v17  ;;  %2776 = vmatprep.mubr.bf16.mxu1 %v7821_v17  ;;  %v2467_v17 = vld [vmem:[#allocation9 + $0x1a0] sm:$0xff]  ;;  %8779 = vst [vmem:[#allocation154_spill] sm:$0xff] %v7869_v44  ;;  %8780 = vst [vmem:[#allocation155_spill] sm:$0xff] %v7871_v45 }
 0x875   :  { %2698 = vmatpush1.bf16.msra.mxu0 %v2443_v34  ;;  %2751 = vmatpush1.bf16.msra.mxu1 %v2445_v46  ;;  %v7881_v34 = vld [vmem:[#allocation10 + $0x50] sm:$0xff]  ;;  %v7883_v46 = vld [vmem:[#allocation10 + $0x68] sm:$0xff] }
 0x876   :  { %2699 = vmatprep.subr.bf16.mxu0 %v2452_v20  ;;  %2752 = vmatprep.subr.bf16.mxu1 %v2454_v4  ;;  %8782 = vst [vmem:[#allocation157_spill] sm:$0xff] %v7881_v34  ;;  %8783 = vst [vmem:[#allocation158_spill] sm:$0xff] %v7883_v46  ;;  %v7885_v20 = vld [vmem:[#allocation10 + $0x78] sm:$0xff]  ;;  %v7895_v4 = vld [vmem:[#allocation10 + $0x70] sm:$0xff] }
 0x877   :  { %8784 = vst [vmem:[#allocation159_spill] sm:$0xff] %v7885_v20  ;;  %8786 = vst [vmem:[#allocation161_spill] sm:$0xff] %v7895_v4 }
 0x879   :  { %2700 = vmatpush1.bf16.msra.mxu0 %v2451_v47  ;;  %2753 = vmatpush1.bf16.msra.mxu1 %v2453_v49  ;;  %v7897_v47 = vld [vmem:[#allocation10 + $0x88] sm:$0xff]  ;;  %v7899_v49 = vld [vmem:[#allocation10 + $0x98] sm:$0xff] }
 0x87a   :  { %2701 = vmatprep.subr.bf16.mxu0 %v2460_v50  ;;  %2754 = vmatprep.subr.bf16.mxu1 %v2462_v52  ;;  %8787 = vst [vmem:[#allocation162_spill] sm:$0xff] %v7897_v47  ;;  %8788 = vst [vmem:[#allocation163_spill] sm:$0xff] %v7899_v49  ;;  %v7909_v50 = vld [vmem:[#allocation10 + $0x90] sm:$0xff]  ;;  %v7911_v52 = vld [vmem:[#allocation10 + $0xa8] sm:$0xff] }
 0x87b   :  { %8790 = vst [vmem:[#allocation165_spill] sm:$0xff] %v7909_v50  ;;  %8791 = vst [vmem:[#allocation166_spill] sm:$0xff] %v7911_v52 }
 0x87d   :  { %2702 = vmatpush1.bf16.msra.mxu0 %v2459_v53  ;;  %2755 = vmatpush1.bf16.msra.mxu1 %v2461_v54  ;;  %v7913_v53 = vld [vmem:[#allocation10 + $0xb8] sm:$0xff]  ;;  %v7919_v54 = vld [vmem:[#allocation10 + $0xa0] sm:$0xff] }
 0x87e   :  { %2703 = vmatprep.subr.bf16.mxu0 %v2468_v56  ;;  %2756 = vmatprep.subr.bf16.mxu1 %v2470_v57  ;;  %8792 = vst [vmem:[#allocation167_spill] sm:$0xff] %v7913_v53  ;;  %8793 = vst [vmem:[#allocation168_spill] sm:$0xff] %v7919_v54  ;;  %v7921_v56 = vld [vmem:[#allocation10 + $0xb0] sm:$0xff]  ;;  %v7923_v57 = vld [vmem:[#allocation10 + $0xc8] sm:$0xff] }
 0x87f   :  { %8794 = vst [vmem:[#allocation169_spill] sm:$0xff] %v7921_v56  ;;  %8795 = vst [vmem:[#allocation170_spill] sm:$0xff] %v7923_v57 }
 0x881   :  { %2704 = vmatpush1.bf16.msra.mxu0 %v2467_v17  ;;  %2757 = vmatpush1.bf16.msra.mxu1 %v2469_v58  ;;  %v7925_v17 = vld [vmem:[#allocation10 + $0xd8] sm:$0xff]  ;;  %v7931_v58 = vld [vmem:[#allocation10 + $0xc0] sm:$0xff] }
 0x882   :  { %2705 = vmatprep.subr.bf16.mxu0 %v2476_v0  ;;  %2758 = vmatprep.subr.bf16.mxu1 %v2478_v48  ;;  %8796 = vst [vmem:[#allocation171_spill] sm:$0xff] %v7925_v17  ;;  %8797 = vst [vmem:[#allocation172_spill] sm:$0xff] %v7931_v58  ;;  %v7933_v0 = vld [vmem:[#allocation10 + $0xd0] sm:$0xff]  ;;  %v7935_v48 = vld [vmem:[#allocation10 + $0xe8] sm:$0xff] }
 0x883   :  { %8798 = vst [vmem:[#allocation173_spill] sm:$0xff] %v7933_v0  ;;  %8799 = vst [vmem:[#allocation174_spill] sm:$0xff] %v7935_v48 }
 0x885   :  { %2706 = vmatpush1.bf16.msra.mxu0 %v2475_v60  ;;  %2759 = vmatpush1.bf16.msra.mxu1 %v2477_v61  ;;  %v7937_v60 = vld [vmem:[#allocation10 + $0xf8] sm:$0xff]  ;;  %v7943_v61 = vld [vmem:[#allocation10 + $0xe0] sm:$0xff] }
 0x886   :  { %2707 = vmatprep.subr.bf16.mxu0 %v2484_v59  ;;  %2760 = vmatprep.subr.bf16.mxu1 %v2486_v62  ;;  %8800 = vst [vmem:[#allocation175_spill] sm:$0xff] %v7937_v60  ;;  %8801 = vst [vmem:[#allocation176_spill] sm:$0xff] %v7943_v61  ;;  %v7945_v59 = vld [vmem:[#allocation10 + $0xf0] sm:$0xff]  ;;  %v7947_v62 = vld [vmem:[#allocation11 + $0x8] sm:$0xff] }
 0x887   :  { %8802 = vst [vmem:[#allocation177_spill] sm:$0xff] %v7945_v59  ;;  %8803 = vst [vmem:[#allocation180_spill] sm:$0xff] %v7947_v62 }
 0x889   :  { %2708 = vmatpush1.bf16.msra.mxu0 %v2483_v63  ;;  %2761 = vmatpush1.bf16.msra.mxu1 %v2485_v1  ;;  %v7949_v63 = vld [vmem:[#allocation11 + $0x18] sm:$0xff]  ;;  %v7955_v1 = vld [vmem:[#allocation11] sm:$0xff] }
 0x88a   :  { %2709 = vmatprep.subr.bf16.mxu0 %v2492_v3  ;;  %2762 = vmatprep.subr.bf16.mxu1 %v2494_v5  ;;  %8804 = vst [vmem:[#allocation181_spill] sm:$0xff] %v7949_v63  ;;  %v7957_v3 = vld [vmem:[#allocation11 + $0x10] sm:$0xff]  ;;  %v7959_v5 = vld [vmem:[#allocation11 + $0x28] sm:$0xff] }
 0x88d   :  { %2710 = vmatpush1.bf16.msra.mxu0 %v2491_v6  ;;  %2763 = vmatpush1.bf16.msra.mxu1 %v2493_v35  ;;  %v7961_v6 = vld [vmem:[#allocation11 + $0x38] sm:$0xff]  ;;  %v7969_v35 = vld [vmem:[#allocation11 + $0x20] sm:$0xff] }
 0x88e   :  { %2711 = vmatprep.subr.bf16.mxu0 %v2500_v26  ;;  %2764 = vmatprep.subr.bf16.mxu1 %v2502_v24  ;;  %v7971_v26 = vld [vmem:[#allocation11 + $0x30] sm:$0xff]  ;;  %v7973_v24 = vld [vmem:[#allocation11 + $0x48] sm:$0xff] }
 0x891   :  { %2712 = vmatpush1.bf16.msra.mxu0 %v2499_v36  ;;  %2765 = vmatpush1.bf16.msra.mxu1 %v2501_v28  ;;  %v7975_v36 = vld [vmem:[#allocation11 + $0x58] sm:$0xff]  ;;  %v7983_v28 = vld [vmem:[#allocation11 + $0x40] sm:$0xff] }
 0x892   :  { %2713 = vmatprep.subr.bf16.mxu0 %v2508_v8  ;;  %2766 = vmatprep.subr.bf16.mxu1 %v2510_v9  ;;  %v7985_v8 = vld [vmem:[#allocation11 + $0x50] sm:$0xff]  ;;  %v7987_v9 = vld [vmem:[#allocation11 + $0x68] sm:$0xff] }
 0x895   :  { %2714 = vmatpush1.bf16.msra.mxu0 %v2507_v10  ;;  %2767 = vmatpush1.bf16.msra.mxu1 %v2509_v23  ;;  %v7989_v10 = vld [vmem:[#allocation11 + $0x78] sm:$0xff]  ;;  %v7995_v23 = vld [vmem:[#allocation11 + $0x60] sm:$0xff] }
 0x896   :  { %2715 = vmatprep.subr.bf16.mxu0 %v2516_v21  ;;  %2768 = vmatprep.subr.bf16.mxu1 %v2518_v22  ;;  %v7997_v21 = vld [vmem:[#allocation11 + $0x70] sm:$0xff]  ;;  %v7999_v22 = vld [vmem:[#allocation11 + $0x88] sm:$0xff] }
 0x899   :  { %2716 = vmatpush1.bf16.msra.mxu0 %v2515_v37  ;;  %2769 = vmatpush1.bf16.msra.mxu1 %v2517_v41  ;;  %v8001_v37 = vld [vmem:[#allocation11 + $0x98] sm:$0xff]  ;;  %v8007_v41 = vld [vmem:[#allocation11 + $0x80] sm:$0xff] }
 0x89a   :  { %2717 = vmatprep.subr.bf16.mxu0 %v2524_v55  ;;  %2770 = vmatprep.subr.bf16.mxu1 %v2526_v38  ;;  %v8009_v55 = vld [vmem:[#allocation11 + $0x90] sm:$0xff]  ;;  %v8011_v38 = vld [vmem:[#allocation11 + $0xa8] sm:$0xff] }
 0x89d   :  { %2718 = vmatpush1.bf16.msra.mxu0 %v2523_v18  ;;  %2771 = vmatpush1.bf16.msra.mxu1 %v2525_v16  ;;  %v8013_v18 = vld [vmem:[#allocation11 + $0xb8] sm:$0xff]  ;;  %v8019_v16 = vld [vmem:[#allocation11 + $0xa0] sm:$0xff] }
 0x89e   :  { %2719 = vmatprep.subr.bf16.mxu0 %v2532_v27  ;;  %2772 = vmatprep.subr.bf16.mxu1 %v2534_v13  ;;  %v8021_v27 = vld [vmem:[#allocation11 + $0xb0] sm:$0xff]  ;;  %v8023_v13 = vld [vmem:[#allocation11 + $0xc8] sm:$0xff] }
 0x89f   :  { %8805 = vst [vmem:[#allocation182_spill] sm:$0xff] %v8023_v13 }
 0x8a1   :  { %2720 = vmatpush1.bf16.msra.mxu0 %v2531_v12  ;;  %2773 = vmatpush1.bf16.msra.mxu1 %v2533_v19  ;;  %v8025_v12 = vld [vmem:[#allocation11 + $0xd8] sm:$0xff]  ;;  %v8031_v19 = vld [vmem:[#allocation11 + $0xc0] sm:$0xff] }
 0x8a2   :  { %2721 = vmatprep.subr.bf16.mxu0 %v2540_v7  ;;  %2774 = vmatprep.subr.bf16.mxu1 %v2542_v32  ;;  %v8033_v7 = vld [vmem:[#allocation11 + $0xd0] sm:$0xff]  ;;  %v8035_v32 = vld [vmem:[#allocation11 + $0xe8] sm:$0xff] }
 0x8a5   :  { %2722 = vmatpush1.bf16.msra.mxu0 %v2539_v15  ;;  %2775 = vmatpush1.bf16.msra.mxu1 %v2541_v25  ;;  %v8037_v15 = vld [vmem:[#allocation11 + $0xf8] sm:$0xff]  ;;  %v8043_v25 = vld [vmem:[#allocation11 + $0xe0] sm:$0xff] }
 0x8a6   :  { %2865 = vmatprep.subr.bf16.mxu0 %v7845_v33  ;;  %2906 = vmatprep.subr.bf16.mxu1 %v7847_v39 }
 0x8a8   :  { %2724 = vmatmul.mubr.bf16.vlgmr.msra.gmra.mrb[56].mxu0 %v7827_v11  ;;  %2777 = vmatmul.mubr.bf16.vlgmr.msra.gmra.mrb[56].mxu1 %v7827_v11  ;;  %v7879_v11 = vld [vmem:[#allocation10 + $0x40] sm:$0xff] }
 0x8a9   :  { %2866 = vmatpush1.bf16.msra.mxu0 %v7851_v29  ;;  %2907 = vmatpush1.bf16.msra.mxu1 %v7853_v14  ;;  %8781 = vst [vmem:[#allocation156_spill] sm:$0xff] %v7879_v11 }
 0x8aa   :  { %2867 = vmatprep.subr.bf16.mxu0 %v7855_v30  ;;  %2908 = vmatprep.subr.bf16.mxu1 %v7857_v42 }
 0x8ab   :  { %2733 = vmatprep.mubr.bf16.mxu0 %v7831_v31  ;;  %2786 = vmatprep.mubr.bf16.mxu1 %v7831_v31  ;;  %v7893_v31 = vld [vmem:[#allocation10 + $0x60] sm:$0xff] }
 0x8ac   :  { %8785 = vst [vmem:[#allocation160_spill] sm:$0xff] %v7893_v31 }
 0x8ad   :  { %2868 = vmatpush1.bf16.msra.mxu0 %v7865_v51  ;;  %2909 = vmatpush1.bf16.msra.mxu1 %v7867_v43 }
 0x8ae   :  { %2869 = vmatprep.subr.bf16.mxu0 %v7869_v44  ;;  %2910 = vmatprep.subr.bf16.mxu1 %v7871_v45 }
 0x8b0   :  { %2734 = vmatmul.mubr.bf16.gmra.mrb[60].mxu0 %v7839_v40  ;;  %2787 = vmatmul.mubr.bf16.gmra.mrb[60].mxu1 %v7839_v40  ;;  %v7907_v40 = vld [vmem:[#allocation10 + $0x80] sm:$0xff] }
 0x8b1   :  { %2870 = vmatpush1.bf16.msra.mxu0 %v7879_v11  ;;  %2911 = vmatpush1.bf16.msra.mxu1 %v7881_v34  ;;  %8789 = vst [vmem:[#allocation164_spill] sm:$0xff] %v7907_v40 }
 0x8b2   :  { %2871 = vmatprep.subr.bf16.mxu0 %v7883_v46  ;;  %2912 = vmatprep.subr.bf16.mxu1 %v7885_v20 }
 0x8b3   :  { %2897 = vmatprep.mubr.bf16.mxu0 %v8689_v2  ;;  %2938 = vmatprep.mubr.bf16.mxu1 %v8689_v2 }
 0x8b5   :  { %2872 = vmatpush1.bf16.msra.mxu0 %v7893_v31  ;;  %2913 = vmatpush1.bf16.msra.mxu1 %v7895_v4 }
 0x8b6   :  { %2873 = vmatprep.subr.bf16.mxu0 %v7897_v47  ;;  %2914 = vmatprep.subr.bf16.mxu1 %v7899_v49 }
 0x8b9   :  { %2874 = vmatpush1.bf16.msra.mxu0 %v7907_v40  ;;  %2915 = vmatpush1.bf16.msra.mxu1 %v7909_v50 }
 0x8ba   :  { %2875 = vmatprep.subr.bf16.mxu0 %v7911_v52  ;;  %2916 = vmatprep.subr.bf16.mxu1 %v7913_v53 }
 0x8bd   :  { %2876 = vmatpush1.bf16.msra.mxu0 %v7919_v54  ;;  %2917 = vmatpush1.bf16.msra.mxu1 %v7921_v56 }
 0x8be   :  { %2877 = vmatprep.subr.bf16.mxu0 %v7923_v57  ;;  %2918 = vmatprep.subr.bf16.mxu1 %v7925_v17 }
 0x8c1   :  { %2878 = vmatpush1.bf16.msra.mxu0 %v7931_v58  ;;  %2919 = vmatpush1.bf16.msra.mxu1 %v7933_v0 }
 0x8c2   :  { %2879 = vmatprep.subr.bf16.mxu0 %v7935_v48  ;;  %2920 = vmatprep.subr.bf16.mxu1 %v7937_v60 }
 0x8c5   :  { %2880 = vmatpush1.bf16.msra.mxu0 %v7943_v61  ;;  %2921 = vmatpush1.bf16.msra.mxu1 %v7945_v59 }
 0x8c6   :  { %2987 = vmatprep.subr.bf16.mxu0 %v7947_v62  ;;  %3028 = vmatprep.subr.bf16.mxu1 %v7949_v63 }
 0x8c8   :  { %2898 = vmatmul.mubr.bf16.vlgmr.msra.gmra.mrb[64].mxu0 %v8689_v2  ;;  %2939 = vmatmul.mubr.bf16.vlgmr.msra.gmra.mrb[64].mxu1 %v8689_v2 }
 0x8c9   :  { %2988 = vmatpush1.bf16.msra.mxu0 %v7955_v1  ;;  %3029 = vmatpush1.bf16.msra.mxu1 %v7957_v3 }
 0x8ca   :  { %2989 = vmatprep.subr.bf16.mxu0 %v7959_v5  ;;  %3030 = vmatprep.subr.bf16.mxu1 %v7961_v6 }
 0x8cb   :  { %3019 = vmatprep.mubr.bf16.mxu0 %v8689_v2  ;;  %3060 = vmatprep.mubr.bf16.mxu1 %v8689_v2 }
 0x8cd   :  { %2990 = vmatpush1.bf16.msra.mxu0 %v7969_v35  ;;  %3031 = vmatpush1.bf16.msra.mxu1 %v7971_v26 }
 0x8ce   :  { %2991 = vmatprep.subr.bf16.mxu0 %v7973_v24  ;;  %3032 = vmatprep.subr.bf16.mxu1 %v7975_v36 }
 0x8d1   :  { %2992 = vmatpush1.bf16.msra.mxu0 %v7983_v28  ;;  %3033 = vmatpush1.bf16.msra.mxu1 %v7985_v8 }
 0x8d2   :  { %2993 = vmatprep.subr.bf16.mxu0 %v7987_v9  ;;  %3034 = vmatprep.subr.bf16.mxu1 %v7989_v10 }
 0x8d5   :  { %2994 = vmatpush1.bf16.msra.mxu0 %v7995_v23  ;;  %3035 = vmatpush1.bf16.msra.mxu1 %v7997_v21 }
 0x8d6   :  { %2995 = vmatprep.subr.bf16.mxu0 %v7999_v22  ;;  %3036 = vmatprep.subr.bf16.mxu1 %v8001_v37 }
 0x8d9   :  { %2996 = vmatpush1.bf16.msra.mxu0 %v8007_v41  ;;  %3037 = vmatpush1.bf16.msra.mxu1 %v8009_v55 }
 0x8da   :  { %2997 = vmatprep.subr.bf16.mxu0 %v8011_v38  ;;  %3038 = vmatprep.subr.bf16.mxu1 %v8013_v18 }
 0x8dd   :  { %2998 = vmatpush1.bf16.msra.mxu0 %v8019_v16  ;;  %3039 = vmatpush1.bf16.msra.mxu1 %v8021_v27 }
 0x8de   :  { %2999 = vmatprep.subr.bf16.mxu0 %v8023_v13  ;;  %3040 = vmatprep.subr.bf16.mxu1 %v8025_v12  ;;  %v8045_v13 = vld [vmem:[#allocation11 + $0xf0] sm:$0xff] }
 0x8e1   :  { %3000 = vmatpush1.bf16.msra.mxu0 %v8031_v19  ;;  %3041 = vmatpush1.bf16.msra.mxu1 %v8033_v7 }
 0x8e2   :  { %3001 = vmatprep.subr.bf16.mxu0 %v8035_v32  ;;  %3042 = vmatprep.subr.bf16.mxu1 %v8037_v15 }
 0x8e5   :  { %3002 = vmatpush1.bf16.msra.mxu0 %v8043_v25  ;;  %3043 = vmatpush1.bf16.msra.mxu1 %v8045_v13 }
 0x8e6   :  { %3160 = vmatprep.subr.bf16.mxu0 %v7845_v33  ;;  %3201 = vmatprep.subr.bf16.mxu1 %v7847_v39 }
 0x8e8   :  { %3020 = vmatmul.mubr.bf16.vlgmr.msra.gmra.mrb[68].mxu0 %v8689_v2  ;;  %3061 = vmatmul.mubr.bf16.vlgmr.msra.gmra.mrb[68].mxu1 %v8689_v2 }
 0x8e9   :  { %3161 = vmatpush1.bf16.msra.mxu0 %v7851_v29  ;;  %3202 = vmatpush1.bf16.msra.mxu1 %v7853_v14 }
 0x8ea   :  { %3162 = vmatprep.subr.bf16.mxu0 %v7855_v30  ;;  %3203 = vmatprep.subr.bf16.mxu1 %v7857_v42 }
 0x8eb   :  { %3192 = vmatprep.mubr.bf16.mxu0 %v8689_v2  ;;  %3233 = vmatprep.mubr.bf16.mxu1 %v8689_v2 }
 0x8ed   :  { %3163 = vmatpush1.bf16.msra.mxu0 %v7865_v51  ;;  %3204 = vmatpush1.bf16.msra.mxu1 %v7867_v43 }
 0x8ee   :  { %3164 = vmatprep.subr.bf16.mxu0 %v7869_v44  ;;  %3205 = vmatprep.subr.bf16.mxu1 %v7871_v45 }
 0x8f1   :  { %3165 = vmatpush1.bf16.msra.mxu0 %v7879_v11  ;;  %3206 = vmatpush1.bf16.msra.mxu1 %v7881_v34 }
 0x8f2   :  { %3166 = vmatprep.subr.bf16.mxu0 %v7883_v46  ;;  %3207 = vmatprep.subr.bf16.mxu1 %v7885_v20 }
 0x8f5   :  { %3167 = vmatpush1.bf16.msra.mxu0 %v7893_v31  ;;  %3208 = vmatpush1.bf16.msra.mxu1 %v7895_v4 }
 0x8f6   :  { %3168 = vmatprep.subr.bf16.mxu0 %v7897_v47  ;;  %3209 = vmatprep.subr.bf16.mxu1 %v7899_v49 }
 0x8f9   :  { %3169 = vmatpush1.bf16.msra.mxu0 %v7907_v40  ;;  %3210 = vmatpush1.bf16.msra.mxu1 %v7909_v50 }
 0x8fa   :  { %3170 = vmatprep.subr.bf16.mxu0 %v7911_v52  ;;  %3211 = vmatprep.subr.bf16.mxu1 %v7913_v53 }
 0x8fd   :  { %3171 = vmatpush1.bf16.msra.mxu0 %v7919_v54  ;;  %3212 = vmatpush1.bf16.msra.mxu1 %v7921_v56  ;;  %v2543_v56 = vld [vmem:[#allocation20] sm:$0xff] }
 0x8fe   :  { %3172 = vmatprep.subr.bf16.mxu0 %v7923_v57  ;;  %3213 = vmatprep.subr.bf16.mxu1 %v7925_v17  ;;  %v8806_v57 = vld [vmem:[#allocation179_spill] sm:$0xff] }
 0x8ff   :  { %v8807_v54 = vsub.s32 0, %v8806_v57 }
 0x901   :  { %3173 = vmatpush1.bf16.msra.mxu0 %v7931_v58  ;;  %3214 = vmatpush1.bf16.msra.mxu1 %v7933_v0  ;;  %v8089_v17 = vrot.slane %v2543_v56, %v8807_v54  ;;  %v8808_v58 = vsub.s32 2, %v8806_v57 }
 0x902   :  { %3174 = vmatprep.subr.bf16.mxu0 %v7935_v48  ;;  %3215 = vmatprep.subr.bf16.mxu1 %v7937_v60  ;;  %v8809_v60 = vsub.s32 3, %v8806_v57 }
 0x903   :  { %v8093_v0 = vrot.slane %v2543_v56, %v8808_v58 }
 0x905   :  { %3175 = vmatpush1.bf16.msra.mxu0 %v7943_v61  ;;  %3216 = vmatpush1.bf16.msra.mxu1 %v7945_v59  ;;  %v8097_v61 = vrot.slane %v2543_v56, %v8809_v60 }
 0x906   :  { %3283 = vmatprep.subr.bf16.mxu0 %v7947_v62  ;;  %3324 = vmatprep.subr.bf16.mxu1 %v7949_v63  ;;  %v8810_v62 = vsub.s32 1, %v8806_v57 }
 0x908   :  { %v2552_v63 = vrot.slane %v2543_v56, %v8810_v62 }
 0x93b   :  { %v2619_v48 = vpop.f32.mrb[48].mxu0  ;;  %v2672_v53 = vpop.f32.mrb[48].mxu1 }
 0x93c   :  { %v2621_v59 = vpop.f32.mrb[49].mxu0  ;;  %v2674_v52 = vpop.f32.mrb[49].mxu1  ;;  %v2620_v45 = vadd.f32 %v2619_v48, %v8089_v17 }
 0x93d   :  { %v2623_v50 = vpop.f32.mrb[50].mxu0  ;;  %v2676_v40 = vpop.f32.mrb[50].mxu1  ;;  %v2675_v44 = vadd.f32 %v2674_v52, %v8097_v61 }
 0x93e   :  { %v8102_v54 = vadd.f32 %v2623_v50, %v8089_v17  ;;  %v2625_v49 = vpop.f32.mrb[51].mxu0  ;;  %v8105_v58 = vadd.f32 %v2676_v40, %v8093_v0  ;;  %v2678_v47 = vpop.f32.mrb[51].mxu1 }
 0x93f   :  { %v8107_v4 = vadd.f32 %v2625_v49, %v2552_v63  ;;  %v8110_v60 = vadd.f32 %v2678_v47, %v8097_v61 }
 0x940   :  { %8811 = vst [vmem:[#allocation183_spill] sm:$0xff] %v8102_v54  ;;  %8812 = vst [vmem:[#allocation200_spill] sm:$0xff] %v8105_v58 }
 0x941   :  { %8813 = vst [vmem:[#allocation201_spill] sm:$0xff] %v8107_v4  ;;  %8814 = vst [vmem:[#allocation202_spill] sm:$0xff] %v8110_v60 }
 0x943   :  { %v2629_v31 = vpop.f32.mrb[52].mxu0  ;;  %v2682_v20 = vpop.f32.mrb[52].mxu1 }
 0x944   :  { %v8113_v46 = vadd.f32 %v2629_v31, %v8089_v17  ;;  %v2631_v62 = vpop.f32.mrb[53].mxu0  ;;  %v8116_v34 = vadd.f32 %v2682_v20, %v8093_v0  ;;  %v2684_v50 = vpop.f32.mrb[53].mxu1 }
 0x945   :  { %v8118_v54 = vadd.f32 %v2631_v62, %v2552_v63  ;;  %v2633_v40 = vpop.f32.mrb[54].mxu0  ;;  %v8121_v58 = vadd.f32 %v2684_v50, %v8097_v61  ;;  %v2686_v49 = vpop.f32.mrb[54].mxu1  ;;  %v8823_v62 = vsub.s32 4, %v8806_v57  ;;  %v8824_v50 = vsub.s32 6, %v8806_v57 }
 0x946   :  { %8815 = vst [vmem:[#allocation203_spill] sm:$0xff] %v8113_v46  ;;  %8816 = vst [vmem:[#allocation184_spill] sm:$0xff] %v8116_v34  ;;  %v8124_v47 = vadd.f32 %v2633_v40, %v8089_v17  ;;  %v2635_v60 = vpop.f32.mrb[55].mxu0  ;;  %v8127_v4 = vadd.f32 %v2686_v49, %v8093_v0  ;;  %v2688_v31 = vpop.f32.mrb[55].mxu1  ;;  %v8825_v40 = vsub.s32 5, %v8806_v57  ;;  %v8826_v49 = vsub.s32 7, %v8806_v57 }
 0x947   :  { %8817 = vst [vmem:[#allocation185_spill] sm:$0xff] %v8118_v54  ;;  %8818 = vst [vmem:[#allocation186_spill] sm:$0xff] %v8121_v58  ;;  %v8129_v46 = vadd.f32 %v2635_v60, %v2552_v63  ;;  %v8132_v20 = vadd.f32 %v2688_v31, %v8097_v61  ;;  %v8136_v54 = vrot.slane %v2543_v56, %v8823_v62 }
 0x948   :  { %8819 = vst [vmem:[#allocation187_spill] sm:$0xff] %v8124_v47  ;;  %8820 = vst [vmem:[#allocation196_spill] sm:$0xff] %v8127_v4  ;;  %v8140_v58 = vrot.slane %v2543_v56, %v8824_v50  ;;  %v8144_v47 = vrot.slane %v2543_v56, %v8825_v40  ;;  %v8148_v4 = vrot.slane %v2543_v56, %v8826_v49 }
 0x949   :  { %8821 = vst [vmem:[#allocation197_spill] sm:$0xff] %v8129_v46  ;;  %8822 = vst [vmem:[#allocation198_spill] sm:$0xff] %v8132_v20 }
 0x97b   :  { %v2725_v60 = vpop.f32.mrb[56].mxu0  ;;  %v2778_v46 = vpop.f32.mrb[56].mxu1 }
 0x97c   :  { %v8151_v31 = vadd.f32 %v2725_v60, %v8136_v54  ;;  %v2727_v20 = vpop.f32.mrb[57].mxu0  ;;  %v8154_v62 = vadd.f32 %v2778_v46, %v8140_v58  ;;  %v2780_v34 = vpop.f32.mrb[57].mxu1 }
 0x97d   :  { %v8157_v50 = vadd.f32 %v2727_v20, %v8144_v47  ;;  %v2729_v11 = vpop.f32.mrb[58].mxu0  ;;  %v8160_v40 = vadd.f32 %v2780_v34, %v8148_v4  ;;  %v2782_v57 = vpop.f32.mrb[58].mxu1 }
 0x97e   :  { %8827 = vst [vmem:[#allocation199_spill] sm:$0xff] %v8151_v31  ;;  %8828 = vst [vmem:[#allocation188_spill] sm:$0xff] %v8154_v62  ;;  %v8163_v56 = vadd.f32 %v2729_v11, %v8136_v54  ;;  %v2731_v49 = vpop.f32.mrb[59].mxu0  ;;  %v8166_v60 = vadd.f32 %v2782_v57, %v8140_v58  ;;  %v2784_v31 = vpop.f32.mrb[59].mxu1 }
 0x97f   :  { %8829 = vst [vmem:[#allocation189_spill] sm:$0xff] %v8157_v50  ;;  %8830 = vst [vmem:[#allocation190_spill] sm:$0xff] %v8160_v40  ;;  %v8169_v46 = vadd.f32 %v2731_v49, %v8144_v47  ;;  %v8172_v62 = vadd.f32 %v2784_v31, %v8148_v4 }
 0x980   :  { %8831 = vst [vmem:[#allocation191_spill] sm:$0xff] %v8163_v56  ;;  %8832 = vst [vmem:[#allocation192_spill] sm:$0xff] %v8166_v60 }
 0x981   :  { %8833 = vst [vmem:[#allocation193_spill] sm:$0xff] %v8169_v46  ;;  %8834 = vst [vmem:[#allocation194_spill] sm:$0xff] %v8172_v62 }
 0x983   :  { %v2735_v20 = vpop.f32.mrb[60].mxu0  ;;  %v2788_v50 = vpop.f32.mrb[60].mxu1 }
 0x984   :  { %v8175_v34 = vadd.f32 %v2735_v20, %v8136_v54  ;;  %v2737_v40 = vpop.f32.mrb[61].mxu0  ;;  %v8178_v11 = vadd.f32 %v2788_v50, %v8140_v58  ;;  %v2790_v56 = vpop.f32.mrb[61].mxu1  ;;  %v2673_v20 = vadd.f32 %v2672_v53, %v8093_v0 }
 0x985   :  { %v8181_v57 = vadd.f32 %v2737_v40, %v8144_v47  ;;  %v2739_v60 = vpop.f32.mrb[62].mxu0  ;;  %v8184_v49 = vadd.f32 %v2790_v56, %v8148_v4  ;;  %v2792_v46 = vpop.f32.mrb[62].mxu1 }
 0x986   :  { %8835 = vst [vmem:[#allocation195_spill] sm:$0xff] %v8175_v34  ;;  %8836 = vst [vmem:[#allocation179_spill] sm:$0xff] %v8178_v11  ;;  %v2741_v31 = vpop.f32.mrb[63].mxu0  ;;  %v2794_v62 = vpop.f32.mrb[63].mxu1  ;;  %v2622_v34 = vadd.f32 %v2621_v59, %v2552_v63 }
 0x987   :  { %8837 = vst [vmem:[#allocation204_spill] sm:$0xff] %v8181_v57  ;;  %8838 = vst [vmem:[#allocation205_spill] sm:$0xff] %v8184_v49 }
 0x99b   :  { %v2899_v50 = vpop.f32.mrb[64].mxu0  ;;  %v2940_v11 = vpop.f32.mrb[64].mxu1 }
 0x99c   :  { %v2947_v43 = vadd.f32 %v2899_v50, %v2620_v45  ;;  %v2949_v51 = vadd.f32 %v2940_v11, %v2673_v20  ;;  %v2901_v40 = vpop.f32.mrb[65].mxu0  ;;  %v2942_v57 = vpop.f32.mrb[65].mxu1 }
 0x99d   :  { %v2948_v42 = vadd.f32 %v2901_v40, %v2622_v34  ;;  %v2950_v30 = vadd.f32 %v2942_v57, %v2675_v44  ;;  %v2903_v56 = vpop.f32.mrb[66].mxu0  ;;  %v2944_v49 = vpop.f32.mrb[66].mxu1 }
 0x99e   :  { %v4956_v14 = vmul.f32 -1.442695, %v2947_v43  ;;  %v2904_v29 = vpop.f32.mrb[67].mxu0  ;;  %v2945_v39 = vpop.f32.mrb[67].mxu1 }
 0x99f   :  { %v4958_v33 = vmul.f32 -1.442695, %v2948_v42  ;;  %v4960_v53 = vmul.f32 -1.442695, %v2950_v30  ;;  %v2740_v39 = vadd.f32 %v2739_v60, %v8136_v54  ;;  %v2795_v30 = vadd.f32 %v2794_v62, %v8148_v4 }
 0x9a0   :  { %5365 = vpow2.f32 %v4956_v14  ;;  %v2742_v14 = vadd.f32 %v2741_v31, %v8144_v47 }
 0x9a1   :  { %5367 = vpow2.f32 %v4958_v33  ;;  %v2793_v33 = vadd.f32 %v2792_v46, %v8140_v58 }
 0x9a2   :  { %5369 = vpow2.f32 %v4960_v53 }
 0x9a3   :  { %5371 = vtanh.f32 %v2949_v51 }
 0x9aa   :  { %v5366_v17 = vpop.eup %5365 }
 0x9ab   :  { %v5368_v0 = vpop.eup %5367  ;;  %v3079_v52 = vadd.f32 1.0, %v5366_v17 }
 0x9ac   :  { %v3091_v45 = vadd.f32 1.0, %v5368_v0  ;;  %v5370_v48 = vpop.eup %5369 }
 0x9ad   :  { %5373 = vrcp.f32 %v3079_v52  ;;  %v5372_v61 = vpop.eup %5371  ;;  %v3105_v43 = vadd.f32 1.0, %v5370_v48 }
 0x9ae   :  { %5375 = vrcp.f32 %v3091_v45 }
 0x9af   :  { %5377 = vrcp.f32 %v3105_v43 }
 0x9b7   :  { %v5374_v44 = vpop.eup %5373 }
 0x9b8   :  { %v5376_v59 = vpop.eup %5375  ;;  %v3113_v63 = vmul.f32 %v5374_v44, %v5372_v61 }
 0x9b9   :  { %v3111_v29 = vmul.f32 0.0, %v5376_v59  ;;  %v5378_v4 = vpop.eup %5377 }
 0x9bb   :  { %v8193_v42 = vadd.f32 %v3113_v63, %v3111_v29  ;;  %v3021_v51 = vpop.f32.mrb[68].mxu0  ;;  %v3062_v34 = vpop.f32.mrb[68].mxu1 }
 0x9bc   :  { %v3069_v11 = vadd.f32 %v3021_v51, %v2740_v39  ;;  %v3071_v57 = vadd.f32 %v3062_v34, %v2793_v33  ;;  %v3023_v49 = vpop.f32.mrb[69].mxu0  ;;  %v3064_v20 = vpop.f32.mrb[69].mxu1 }
 0x9bd   :  { %5379 = vtanh.f32 %v8193_v42  ;;  %v3070_v50 = vadd.f32 %v3023_v49, %v2742_v14  ;;  %v3072_v40 = vadd.f32 %v3064_v20, %v2795_v30  ;;  %v3025_v54 = vpop.f32.mrb[70].mxu0  ;;  %v3066_v60 = vpop.f32.mrb[70].mxu1  ;;  %v8839_v14 = vld [vmem:[#allocation182_spill] sm:$0xff]  ;;  %v8841_v49 = vld [vmem:[#allocation147_spill] sm:$0xff]  ;;  %v8842_v20 = vld [vmem:[#allocation148_spill] sm:$0xff] }
 0x9be   :  { %v4957_v58 = vmul.f32 -1.442695, %v3069_v11  ;;  %v3026_v46 = vpop.f32.mrb[71].mxu0  ;;  %v3067_v47 = vpop.f32.mrb[71].mxu1  ;;  %v8845_v54 = vld [vmem:[#allocation151_spill] sm:$0xff]  ;;  %v8846_v60 = vld [vmem:[#allocation152_spill] sm:$0xff] }
 0x9bf   :  { %v4959_v31 = vmul.f32 -1.442695, %v3070_v50  ;;  %v4961_v56 = vmul.f32 -1.442695, %v3072_v40  ;;  %v8843_v50 = vld [vmem:[#allocation149_spill] sm:$0xff]  ;;  %v8844_v40 = vld [vmem:[#allocation150_spill] sm:$0xff] }
 0x9c0   :  { %5381 = vpow2.f32 %v4957_v58  ;;  %v8847_v58 = vld [vmem:[#allocation153_spill] sm:$0xff]  ;;  %v8848_v46 = vld [vmem:[#allocation154_spill] sm:$0xff]  ;;  %v8849_v47 = vld [vmem:[#allocation155_spill] sm:$0xff] }
 0x9c1   :  { %5383 = vpow2.f32 %v4959_v31  ;;  %v8850_v31 = vld [vmem:[#allocation156_spill] sm:$0xff] }
 0x9c2   :  { %5385 = vpow2.f32 %v4961_v56  ;;  %v8853_v56 = vld [vmem:[#allocation159_spill] sm:$0xff] }
 0x9c3   :  { %5387 = vtanh.f32 %v3071_v57  ;;  %v8840_v57 = vld [vmem:[#allocation178_spill] sm:$0xff] }
 0x9c7   :  { %v5380_v62 = vpop.eup %5379 }
 0x9c8   :  { %v3119_v53 = vmul.f32 %v5380_v62, %v5378_v4  ;;  %v8851_v4 = vld [vmem:[#allocation157_spill] sm:$0xff]  ;;  %v8852_v62 = vld [vmem:[#allocation158_spill] sm:$0xff] }
 0x9ca   :  { %v5382_v17 = vpop.eup %5381  ;;  %v8196_v0 = vpack.c.bf16 %v3119_v53, %v3119_v53  ;;  %v8854_v53 = vld [vmem:[#allocation160_spill] sm:$0xff] }
 0x9cb   :  { %v5384_v52 = vpop.eup %5383  ;;  %v3080_v45 = vadd.f32 1.0, %v5382_v17  ;;  %v8855_v17 = vld [vmem:[#allocation161_spill] sm:$0xff] }
 0x9cc   :  { %v3092_v48 = vadd.f32 1.0, %v5384_v52  ;;  %3193 = vmatmul.mubr.bf16.vlgmr.msra.gmra.mrb[72].mxu0 %v8196_v0  ;;  %3234 = vmatmul.mubr.bf16.vlgmr.msra.gmra.mrb[72].mxu1 %v8196_v0  ;;  %v5386_v61 = vpop.eup %5385  ;;  %v8856_v52 = vld [vmem:[#allocation162_spill] sm:$0xff] }
 0x9cd   :  { %5389 = vrcp.f32 %v3080_v45  ;;  %3284 = vmatpush1.bf16.msra.mxu0 %v7955_v1  ;;  %3325 = vmatpush1.bf16.msra.mxu1 %v7957_v3  ;;  %v5388_v44 = vpop.eup %5387  ;;  %v3106_v29 = vadd.f32 1.0, %v5386_v61  ;;  %v8857_v45 = vld [vmem:[#allocation163_spill] sm:$0xff]  ;;  %v8859_v61 = vld [vmem:[#allocation165_spill] sm:$0xff] }
 0x9ce   :  { %5391 = vrcp.f32 %v3092_v48  ;;  %3285 = vmatprep.subr.bf16.mxu0 %v7959_v5  ;;  %3326 = vmatprep.subr.bf16.mxu1 %v7961_v6  ;;  %v8858_v48 = vld [vmem:[#allocation164_spill] sm:$0xff] }
 0x9cf   :  { %3315 = vmatprep.mubr.bf16.mxu0 %v8689_v2  ;;  %3356 = vmatprep.mubr.bf16.mxu1 %v8689_v2  ;;  %5393 = vrcp.f32 %v3106_v29  ;;  %v8864_v29 = vld [vmem:[#allocation170_spill] sm:$0xff] }
 0x9d1   :  { %3286 = vmatpush1.bf16.msra.mxu0 %v7969_v35  ;;  %3327 = vmatpush1.bf16.msra.mxu1 %v7971_v26 }
 0x9d2   :  { %3287 = vmatprep.subr.bf16.mxu0 %v7973_v24  ;;  %3328 = vmatprep.subr.bf16.mxu1 %v7975_v36 }
 0x9d5   :  { %3288 = vmatpush1.bf16.msra.mxu0 %v7983_v28  ;;  %3329 = vmatpush1.bf16.msra.mxu1 %v7985_v8 }
 0x9d6   :  { %3289 = vmatprep.subr.bf16.mxu0 %v7987_v9  ;;  %3330 = vmatprep.subr.bf16.mxu1 %v7989_v10 }
 0x9d7   :  { %v5390_v59 = vpop.eup %5389 }
 0x9d8   :  { %v5392_v63 = vpop.eup %5391  ;;  %v3114_v43 = vmul.f32 %v5390_v59, %v5388_v44  ;;  %v8860_v44 = vld [vmem:[#allocation166_spill] sm:$0xff]  ;;  %v8861_v59 = vld [vmem:[#allocation167_spill] sm:$0xff] }
 0x9d9   :  { %v3112_v39 = vmul.f32 0.0, %v5392_v63  ;;  %3290 = vmatpush1.bf16.msra.mxu0 %v7995_v23  ;;  %3331 = vmatpush1.bf16.msra.mxu1 %v7997_v21  ;;  %v5394_v30 = vpop.eup %5393  ;;  %v8862_v63 = vld [vmem:[#allocation168_spill] sm:$0xff] }
 0x9da   :  { %3291 = vmatprep.subr.bf16.mxu0 %v7999_v22  ;;  %3332 = vmatprep.subr.bf16.mxu1 %v8001_v37 }
 0x9db   :  { %v8218_v33 = vadd.f32 %v3114_v43, %v3112_v39  ;;  %v8863_v43 = vld [vmem:[#allocation169_spill] sm:$0xff]  ;;  %v8865_v39 = vld [vmem:[#allocation171_spill] sm:$0xff] }
 0x9dd   :  { %5395 = vtanh.f32 %v8218_v33  ;;  %3292 = vmatpush1.bf16.msra.mxu0 %v8007_v41  ;;  %3333 = vmatpush1.bf16.msra.mxu1 %v8009_v55 }
 0x9de   :  { %3293 = vmatprep.subr.bf16.mxu0 %v8011_v38  ;;  %3334 = vmatprep.subr.bf16.mxu1 %v8013_v18 }
 0x9e1   :  { %3294 = vmatpush1.bf16.msra.mxu0 %v8019_v16  ;;  %3335 = vmatpush1.bf16.msra.mxu1 %v8021_v27 }
 0x9e2   :  { %3295 = vmatprep.subr.bf16.mxu0 %v8839_v14  ;;  %3336 = vmatprep.subr.bf16.mxu1 %v8025_v12 }
 0x9e5   :  { %3296 = vmatpush1.bf16.msra.mxu0 %v8031_v19  ;;  %3337 = vmatpush1.bf16.msra.mxu1 %v8033_v7 }
 0x9e6   :  { %3297 = vmatprep.subr.bf16.mxu0 %v8035_v32  ;;  %3338 = vmatprep.subr.bf16.mxu1 %v8037_v15 }
 0x9e7   :  { %v5396_v51 = vpop.eup %5395 }
 0x9e8   :  { %v3120_v34 = vmul.f32 %v5396_v51, %v5394_v30  ;;  %v8866_v30 = vld [vmem:[#allocation172_spill] sm:$0xff]  ;;  %v8867_v51 = vld [vmem:[#allocation173_spill] sm:$0xff] }
 0x9e9   :  { %3298 = vmatpush1.bf16.msra.mxu0 %v8043_v25  ;;  %3339 = vmatpush1.bf16.msra.mxu1 %v8045_v13 }
 0x9ea   :  { %v8235_v11 = vpack.c.bf16 %v3120_v34, %v3120_v34  ;;  %3456 = vmatprep.subr.bf16.mxu0 %v8840_v57  ;;  %3497 = vmatprep.subr.bf16.mxu1 %v8841_v49  ;;  %v8868_v34 = vld [vmem:[#allocation174_spill] sm:$0xff]  ;;  %v8869_v57 = vld [vmem:[#allocation175_spill] sm:$0xff]  ;;  %v8870_v49 = vld [vmem:[#allocation176_spill] sm:$0xff] }
 0x9ec   :  { %3316 = vmatmul.mubr.bf16.vlgmr.msra.gmra.mrb[76].mxu0 %v8235_v11  ;;  %3357 = vmatmul.mubr.bf16.vlgmr.msra.gmra.mrb[76].mxu1 %v8235_v11 }
 0x9ed   :  { %3457 = vmatpush1.bf16.msra.mxu0 %v8842_v20  ;;  %3498 = vmatpush1.bf16.msra.mxu1 %v8843_v50  ;;  %v8871_v20 = vld [vmem:[#allocation177_spill] sm:$0xff]  ;;  %v8872_v50 = vld [vmem:[#allocation180_spill] sm:$0xff] }
 0x9ee   :  { %3458 = vmatprep.subr.bf16.mxu0 %v8844_v40  ;;  %3499 = vmatprep.subr.bf16.mxu1 %v8845_v54  ;;  %v8873_v40 = vld [vmem:[#allocation181_spill] sm:$0xff] }
 0x9ef   :  { %3488 = vmatprep.mubr.bf16.mxu0 %v8689_v2  ;;  %3529 = vmatprep.mubr.bf16.mxu1 %v8689_v2 }
 0x9f1   :  { %3459 = vmatpush1.bf16.msra.mxu0 %v8846_v60  ;;  %3500 = vmatpush1.bf16.msra.mxu1 %v8847_v58  ;;  %v8874_v58 = vld [vmem:[#allocation183_spill] sm:$0xff] }
 0x9f2   :  { %3460 = vmatprep.subr.bf16.mxu0 %v8848_v46  ;;  %3501 = vmatprep.subr.bf16.mxu1 %v8849_v47  ;;  %v8875_v47 = vld [vmem:[#allocation200_spill] sm:$0xff] }
 0x9f5   :  { %3461 = vmatpush1.bf16.msra.mxu0 %v8850_v31  ;;  %3502 = vmatpush1.bf16.msra.mxu1 %v8851_v4 }
 0x9f6   :  { %3462 = vmatprep.subr.bf16.mxu0 %v8852_v62  ;;  %3503 = vmatprep.subr.bf16.mxu1 %v8853_v56  ;;  %v8876_v56 = vld [vmem:[#allocation201_spill] sm:$0xff] }
 0x9f9   :  { %3463 = vmatpush1.bf16.msra.mxu0 %v8854_v53  ;;  %3504 = vmatpush1.bf16.msra.mxu1 %v8855_v17  ;;  %v8877_v17 = vld [vmem:[#allocation202_spill] sm:$0xff] }
 0x9fa   :  { %3464 = vmatprep.subr.bf16.mxu0 %v8856_v52  ;;  %3505 = vmatprep.subr.bf16.mxu1 %v8857_v45 }
 0x9fd   :  { %3465 = vmatpush1.bf16.msra.mxu0 %v8858_v48  ;;  %3506 = vmatpush1.bf16.msra.mxu1 %v8859_v61 }
 0x9fe   :  { %3466 = vmatprep.subr.bf16.mxu0 %v8860_v44  ;;  %3507 = vmatprep.subr.bf16.mxu1 %v8861_v59 }
 0xa01   :  { %3467 = vmatpush1.bf16.msra.mxu0 %v8862_v63  ;;  %3508 = vmatpush1.bf16.msra.mxu1 %v8863_v43 }
 0xa02   :  { %3468 = vmatprep.subr.bf16.mxu0 %v8864_v29  ;;  %3509 = vmatprep.subr.bf16.mxu1 %v8865_v39 }
 0xa05   :  { %3469 = vmatpush1.bf16.msra.mxu0 %v8866_v30  ;;  %3510 = vmatpush1.bf16.msra.mxu1 %v8867_v51 }
 0xa06   :  { %3470 = vmatprep.subr.bf16.mxu0 %v8868_v34  ;;  %3511 = vmatprep.subr.bf16.mxu1 %v8869_v57 }
 0xa09   :  { %3471 = vmatpush1.bf16.msra.mxu0 %v8870_v49  ;;  %3512 = vmatpush1.bf16.msra.mxu1 %v8871_v20 }
 0xa0a   :  { %3579 = vmatprep.subr.bf16.mxu0 %v8872_v50  ;;  %3620 = vmatprep.subr.bf16.mxu1 %v8873_v40 }
 0xa9f   :  { %v3194_v54 = vpop.f32.mrb[72].mxu0  ;;  %v3235_v60 = vpop.f32.mrb[72].mxu1 }
 0xaa0   :  { %v3242_v46 = vadd.f32 %v3194_v54, %v8874_v58  ;;  %v3244_v31 = vadd.f32 %v3235_v60, %v8875_v47  ;;  %v3196_v4 = vpop.f32.mrb[73].mxu0  ;;  %v3237_v62 = vpop.f32.mrb[73].mxu1  ;;  %v8878_v47 = vld [vmem:[#allocation195_spill] sm:$0xff] }
 0xaa1   :  { %v3243_v53 = vadd.f32 %v3196_v4, %v8876_v56  ;;  %v3245_v52 = vadd.f32 %v3237_v62, %v8877_v17  ;;  %v3198_v45 = vpop.f32.mrb[74].mxu0  ;;  %v3239_v48 = vpop.f32.mrb[74].mxu1  ;;  %v8879_v62 = vld [vmem:[#allocation179_spill] sm:$0xff]  ;;  %v8880_v17 = vld [vmem:[#allocation204_spill] sm:$0xff] }
 0xaa2   :  { %v4962_v61 = vmul.f32 -1.442695, %v3242_v46  ;;  %v3199_v44 = vpop.f32.mrb[75].mxu0  ;;  %v3240_v59 = vpop.f32.mrb[75].mxu1  ;;  %v8881_v45 = vld [vmem:[#allocation205_spill] sm:$0xff] }
 0xaa3   :  { %v4964_v63 = vmul.f32 -1.442695, %v3243_v53  ;;  %v4966_v43 = vmul.f32 -1.442695, %v3245_v52 }
 0xaa4   :  { %5397 = vpow2.f32 %v4962_v61 }
 0xaa5   :  { %5399 = vpow2.f32 %v4964_v63 }
 0xaa6   :  { %5401 = vpow2.f32 %v4966_v43 }
 0xaa7   :  { %5403 = vtanh.f32 %v3244_v31 }
 0xaae   :  { %v5398_v29 = vpop.eup %5397 }
 0xaaf   :  { %v5400_v39 = vpop.eup %5399  ;;  %v3375_v30 = vadd.f32 1.0, %v5398_v29 }
 0xab0   :  { %v3387_v51 = vadd.f32 1.0, %v5400_v39  ;;  %v5402_v34 = vpop.eup %5401 }
 0xab1   :  { %5405 = vrcp.f32 %v3375_v30  ;;  %v5404_v57 = vpop.eup %5403  ;;  %v3401_v40 = vadd.f32 1.0, %v5402_v34 }
 0xab2   :  { %5407 = vrcp.f32 %v3387_v51 }
 0xab3   :  { %5409 = vrcp.f32 %v3401_v40 }
 0xabb   :  { %v5406_v49 = vpop.eup %5405 }
 0xabc   :  { %v5408_v20 = vpop.eup %5407  ;;  %v3409_v50 = vmul.f32 %v5406_v49, %v5404_v57 }
 0xabd   :  { %v3407_v54 = vmul.f32 %v5408_v20, %v8193_v42  ;;  %v5410_v29 = vpop.eup %5409 }
 0xabf   :  { %v8280_v60 = vadd.f32 %v3409_v50, %v3407_v54  ;;  %v3317_v58 = vpop.f32.mrb[76].mxu0  ;;  %v3358_v46 = vpop.f32.mrb[76].mxu1  ;;  %v3741_v54 = vld [vmem:[#allocation10 + $0xa8] sm:$0xff] }
 0xac0   :  { %v3365_v4 = vadd.f32 %v3317_v58, %v8878_v47  ;;  %v3367_v31 = vadd.f32 %v3358_v46, %v8879_v62  ;;  %v3319_v56 = vpop.f32.mrb[77].mxu0  ;;  %v3360_v53 = vpop.f32.mrb[77].mxu1  ;;  %v3743_v58 = vld [vmem:[#allocation10 + $0xb8] sm:$0xff]  ;;  %v3740_v46 = vld [vmem:[#allocation10 + $0xa0] sm:$0xff]  ;;  %v3742_v47 = vld [vmem:[#allocation10 + $0xb0] sm:$0xff] }
 0xac1   :  { %v3366_v52 = vadd.f32 %v3319_v56, %v8880_v17  ;;  %v3368_v48 = vadd.f32 %v3360_v53, %v8881_v45  ;;  %v3321_v61 = vpop.f32.mrb[78].mxu0  ;;  %v3362_v44 = vpop.f32.mrb[78].mxu1  ;;  %5411 = vtanh.f32 %v8280_v60  ;;  %v3747_v62 = vld [vmem:[#allocation10 + $0xd8] sm:$0xff]  ;;  %v3746_v56 = vld [vmem:[#allocation10 + $0xd0] sm:$0xff]  ;;  %v3749_v53 = vld [vmem:[#allocation10 + $0xe8] sm:$0xff] }
 0xac2   :  { %v4963_v42 = vmul.f32 -1.442695, %v3365_v4  ;;  %v3322_v59 = vpop.f32.mrb[79].mxu0  ;;  %v3363_v63 = vpop.f32.mrb[79].mxu1  ;;  %v3745_v4 = vld [vmem:[#allocation10 + $0xc8] sm:$0xff]  ;;  %v3751_v17 = vld [vmem:[#allocation10 + $0xf8] sm:$0xff] }
 0xac3   :  { %v4965_v43 = vmul.f32 -1.442695, %v3366_v52  ;;  %v4967_v30 = vmul.f32 -1.442695, %v3368_v48  ;;  %v3748_v52 = vld [vmem:[#allocation10 + $0xe0] sm:$0xff]  ;;  %v3750_v45 = vld [vmem:[#allocation10 + $0xf0] sm:$0xff] }
 0xac4   :  { %5413 = vpow2.f32 %v4963_v42  ;;  %v3844_v48 = vld [vmem:[#allocation11 + $0x8] sm:$0xff]  ;;  %v3846_v61 = vld [vmem:[#allocation11 + $0x18] sm:$0xff] }
 0xac5   :  { %5415 = vpow2.f32 %v4965_v43  ;;  %v8882_v59 = vld [vmem:[#allocation203_spill] sm:$0xff]  ;;  %v8883_v43 = vld [vmem:[#allocation184_spill] sm:$0xff] }
 0xac6   :  { %5417 = vpow2.f32 %v4967_v30 }
 0xac7   :  { %5419 = vtanh.f32 %v3367_v31  ;;  %v3744_v31 = vld [vmem:[#allocation10 + $0xc0] sm:$0xff] }
 0xacb   :  { %v5412_v39 = vpop.eup %5411 }
 0xacc   :  { %v3415_v51 = vmul.f32 %v5412_v39, %v5410_v29 }
 0xace   :  { %v5414_v34 = vpop.eup %5413  ;;  %v8287_v57 = vpack.c.bf16 %v3415_v51, %v3415_v51  ;;  %v8884_v51 = vld [vmem:[#allocation185_spill] sm:$0xff] }
 0xacf   :  { %v5416_v49 = vpop.eup %5415  ;;  %v3376_v20 = vadd.f32 1.0, %v5414_v34 }
 0xad0   :  { %v3388_v50 = vadd.f32 1.0, %v5416_v49  ;;  %3489 = vmatmul.mubr.bf16.vlgmr.msra.gmra.mrb[80].mxu0 %v8287_v57  ;;  %3530 = vmatmul.mubr.bf16.vlgmr.msra.gmra.mrb[80].mxu1 %v8287_v57  ;;  %v8885_v49 = vld [vmem:[#allocation186_spill] sm:$0xff] }
 0xad1   :  { %5421 = vrcp.f32 %v3376_v20  ;;  %3580 = vmatpush1.bf16.msra.mxu0 %v7955_v1  ;;  %3621 = vmatpush1.bf16.msra.mxu1 %v7957_v3  ;;  %v5418_v1 = vpop.eup %5417 }
 0xad2   :  { %5423 = vrcp.f32 %v3388_v50  ;;  %3581 = vmatprep.subr.bf16.mxu0 %v7959_v5  ;;  %3622 = vmatprep.subr.bf16.mxu1 %v7961_v6  ;;  %v5420_v3 = vpop.eup %5419 }
 0xad3   :  { %3611 = vmatprep.mubr.bf16.mxu0 %v8689_v2  ;;  %3652 = vmatprep.mubr.bf16.mxu1 %v8689_v2 }
 0xad5   :  { %3582 = vmatpush1.bf16.msra.mxu0 %v7969_v35  ;;  %3623 = vmatpush1.bf16.msra.mxu1 %v7971_v26  ;;  %v3402_v35 = vadd.f32 1.0, %v5418_v1 }
 0xad6   :  { %3583 = vmatprep.subr.bf16.mxu0 %v7973_v24  ;;  %3624 = vmatprep.subr.bf16.mxu1 %v7975_v36 }
 0xad7   :  { %5425 = vrcp.f32 %v3402_v35 }
 0xad9   :  { %3584 = vmatpush1.bf16.msra.mxu0 %v7983_v28  ;;  %3625 = vmatpush1.bf16.msra.mxu1 %v7985_v8 }
 0xada   :  { %3585 = vmatprep.subr.bf16.mxu0 %v7987_v9  ;;  %3626 = vmatprep.subr.bf16.mxu1 %v7989_v10  ;;  %v3721_v10 = vld [vmem:[#allocation10 + $0x8] sm:$0xff] }
 0xadb   :  { %v5422_v5 = vpop.eup %5421 }
 0xadc   :  { %v5424_v6 = vpop.eup %5423  ;;  %v3410_v40 = vmul.f32 %v5422_v5, %v5420_v3 }
 0xadd   :  { %v3408_v26 = vmul.f32 %v5424_v6, %v8218_v33  ;;  %3586 = vmatpush1.bf16.msra.mxu0 %v7995_v23  ;;  %3627 = vmatpush1.bf16.msra.mxu1 %v7997_v21  ;;  %v3723_v23 = vld [vmem:[#allocation10 + $0x18] sm:$0xff]  ;;  %v3720_v21 = vld [vmem:[#allocation10] sm:$0xff] }
 0xade   :  { %3587 = vmatprep.subr.bf16.mxu0 %v7999_v22  ;;  %3628 = vmatprep.subr.bf16.mxu1 %v8001_v37  ;;  %v3722_v22 = vld [vmem:[#allocation10 + $0x10] sm:$0xff]  ;;  %v3725_v37 = vld [vmem:[#allocation10 + $0x28] sm:$0xff]  ;;  %v3736_v33 = vld [vmem:[#allocation10 + $0x80] sm:$0xff] }
 0xadf   :  { %v8310_v24 = vadd.f32 %v3410_v40, %v3408_v26 }
 0xae1   :  { %3588 = vmatpush1.bf16.msra.mxu0 %v8007_v41  ;;  %3629 = vmatpush1.bf16.msra.mxu1 %v8009_v55  ;;  %5427 = vtanh.f32 %v8310_v24  ;;  %v5426_v36 = vpop.eup %5425  ;;  %v3727_v41 = vld [vmem:[#allocation10 + $0x38] sm:$0xff]  ;;  %v3724_v55 = vld [vmem:[#allocation10 + $0x20] sm:$0xff] }
 0xae2   :  { %3589 = vmatprep.subr.bf16.mxu0 %v8011_v38  ;;  %3630 = vmatprep.subr.bf16.mxu1 %v8013_v18  ;;  %v3726_v38 = vld [vmem:[#allocation10 + $0x30] sm:$0xff]  ;;  %v3729_v18 = vld [vmem:[#allocation10 + $0x48] sm:$0xff] }
 0xae5   :  { %3590 = vmatpush1.bf16.msra.mxu0 %v8019_v16  ;;  %3631 = vmatpush1.bf16.msra.mxu1 %v8021_v27  ;;  %v3731_v16 = vld [vmem:[#allocation10 + $0x58] sm:$0xff]  ;;  %v3728_v27 = vld [vmem:[#allocation10 + $0x40] sm:$0xff] }
 0xae6   :  { %3591 = vmatprep.subr.bf16.mxu0 %v8839_v14  ;;  %3632 = vmatprep.subr.bf16.mxu1 %v8025_v12  ;;  %v3733_v12 = vld [vmem:[#allocation10 + $0x68] sm:$0xff]  ;;  %v3738_v14 = vld [vmem:[#allocation10 + $0x90] sm:$0xff] }
 0xae9   :  { %3592 = vmatpush1.bf16.msra.mxu0 %v8031_v19  ;;  %3633 = vmatpush1.bf16.msra.mxu1 %v8033_v7  ;;  %v3735_v19 = vld [vmem:[#allocation10 + $0x78] sm:$0xff]  ;;  %v3732_v7 = vld [vmem:[#allocation10 + $0x60] sm:$0xff] }
 0xaea   :  { %3593 = vmatprep.subr.bf16.mxu0 %v8035_v32  ;;  %3634 = vmatprep.subr.bf16.mxu1 %v8037_v15  ;;  %v3734_v32 = vld [vmem:[#allocation10 + $0x70] sm:$0xff]  ;;  %v3737_v15 = vld [vmem:[#allocation10 + $0x88] sm:$0xff] }
 0xaeb   :  { %v5428_v28 = vpop.eup %5427 }
 0xaec   :  { %v3416_v8 = vmul.f32 %v5428_v28, %v5426_v36 }
 0xaed   :  { %3594 = vmatpush1.bf16.msra.mxu0 %v8043_v25  ;;  %3635 = vmatpush1.bf16.msra.mxu1 %v8045_v13  ;;  %v3730_v13 = vld [vmem:[#allocation10 + $0x50] sm:$0xff]  ;;  %v3739_v25 = vld [vmem:[#allocation10 + $0x98] sm:$0xff] }
 0xaee   :  { %v8327_v9 = vpack.c.bf16 %v3416_v8, %v3416_v8  ;;  %3752 = vmatprep.subr.bf16.mxu0 %v3721_v10  ;;  %3793 = vmatprep.subr.bf16.mxu1 %v3723_v23 }
 0xaf0   :  { %3612 = vmatmul.mubr.bf16.vlgmr.msra.gmra.mrb[84].mxu0 %v8327_v9  ;;  %3653 = vmatmul.mubr.bf16.vlgmr.msra.gmra.mrb[84].mxu1 %v8327_v9 }
 0xaf1   :  { %3784 = vmatprep.mubr.bf16.mxu0 %v8689_v2  ;;  %3825 = vmatprep.mubr.bf16.mxu1 %v8689_v2 }
 0xaf2   :  { %3753 = vmatpush1.bf16.msra.mxu0 %v3720_v21  ;;  %3794 = vmatpush1.bf16.msra.mxu1 %v3722_v22 }
 0xaf3   :  { %3754 = vmatprep.subr.bf16.mxu0 %v3725_v37  ;;  %3795 = vmatprep.subr.bf16.mxu1 %v3727_v41 }
 0xaf6   :  { %3755 = vmatpush1.bf16.msra.mxu0 %v3724_v55  ;;  %3796 = vmatpush1.bf16.msra.mxu1 %v3726_v38 }
 0xaf7   :  { %3756 = vmatprep.subr.bf16.mxu0 %v3729_v18  ;;  %3797 = vmatprep.subr.bf16.mxu1 %v3731_v16 }
 0xafa   :  { %3757 = vmatpush1.bf16.msra.mxu0 %v3728_v27  ;;  %3798 = vmatpush1.bf16.msra.mxu1 %v3730_v13  ;;  %v8886_v27 = vld [vmem:[#allocation191_spill] sm:$0xff] }
 0xafb   :  { %3758 = vmatprep.subr.bf16.mxu0 %v3733_v12  ;;  %3799 = vmatprep.subr.bf16.mxu1 %v3735_v19  ;;  %v8887_v12 = vld [vmem:[#allocation192_spill] sm:$0xff] }
 0xafe   :  { %3759 = vmatpush1.bf16.msra.mxu0 %v3732_v7  ;;  %3800 = vmatpush1.bf16.msra.mxu1 %v3734_v32 }
 0xaff   :  { %3760 = vmatprep.subr.bf16.mxu0 %v3737_v15  ;;  %3801 = vmatprep.subr.bf16.mxu1 %v3739_v25  ;;  %v8888_v15 = vld [vmem:[#allocation193_spill] sm:$0xff] }
 0xb02   :  { %3761 = vmatpush1.bf16.msra.mxu0 %v3736_v33  ;;  %3802 = vmatpush1.bf16.msra.mxu1 %v3738_v14  ;;  %v8889_v33 = vld [vmem:[#allocation194_spill] sm:$0xff] }
 0xb03   :  { %3762 = vmatprep.subr.bf16.mxu0 %v3741_v54  ;;  %3803 = vmatprep.subr.bf16.mxu1 %v3743_v58 }
 0xb06   :  { %3763 = vmatpush1.bf16.msra.mxu0 %v3740_v46  ;;  %3804 = vmatpush1.bf16.msra.mxu1 %v3742_v47 }
 0xb07   :  { %3764 = vmatprep.subr.bf16.mxu0 %v3745_v4  ;;  %3805 = vmatprep.subr.bf16.mxu1 %v3747_v62 }
 0xb0a   :  { %3765 = vmatpush1.bf16.msra.mxu0 %v3744_v31  ;;  %3806 = vmatpush1.bf16.msra.mxu1 %v3746_v56 }
 0xb0b   :  { %3766 = vmatprep.subr.bf16.mxu0 %v3749_v53  ;;  %3807 = vmatprep.subr.bf16.mxu1 %v3751_v17 }
 0xb0e   :  { %3767 = vmatpush1.bf16.msra.mxu0 %v3748_v52  ;;  %3808 = vmatpush1.bf16.msra.mxu1 %v3750_v45  ;;  %v3843_v45 = vld [vmem:[#allocation11] sm:$0xff] }
 0xb0f   :  { %3875 = vmatprep.subr.bf16.mxu0 %v3844_v48  ;;  %3916 = vmatprep.subr.bf16.mxu1 %v3846_v61  ;;  %v3845_v48 = vld [vmem:[#allocation11 + $0x10] sm:$0xff] }
 0xba3   :  { %v3490_v44 = vpop.f32.mrb[80].mxu0  ;;  %v3531_v42 = vpop.f32.mrb[80].mxu1 }
 0xba4   :  { %v3538_v63 = vadd.f32 %v3490_v44, %v8882_v59  ;;  %v3540_v29 = vadd.f32 %v3531_v42, %v8883_v43  ;;  %v3492_v39 = vpop.f32.mrb[81].mxu0  ;;  %v3533_v30 = vpop.f32.mrb[81].mxu1  ;;  %v3848_v42 = vld [vmem:[#allocation11 + $0x28] sm:$0xff]  ;;  %v3850_v59 = vld [vmem:[#allocation11 + $0x38] sm:$0xff]  ;;  %v3847_v43 = vld [vmem:[#allocation11 + $0x20] sm:$0xff] }
 0xba5   :  { %v3539_v34 = vadd.f32 %v3492_v39, %v8884_v51  ;;  %v3541_v20 = vadd.f32 %v3533_v30, %v8885_v49  ;;  %v3494_v50 = vpop.f32.mrb[82].mxu0  ;;  %v3535_v1 = vpop.f32.mrb[82].mxu1  ;;  %v3852_v39 = vld [vmem:[#allocation11 + $0x48] sm:$0xff]  ;;  %v3854_v30 = vld [vmem:[#allocation11 + $0x58] sm:$0xff]  ;;  %v3851_v51 = vld [vmem:[#allocation11 + $0x40] sm:$0xff] }
 0xba6   :  { %v4968_v3 = vmul.f32 -1.442695, %v3538_v63  ;;  %v3495_v5 = vpop.f32.mrb[83].mxu0  ;;  %v3536_v6 = vpop.f32.mrb[83].mxu1  ;;  %v3856_v49 = vld [vmem:[#allocation11 + $0x68] sm:$0xff] }
 0xba7   :  { %v4970_v40 = vmul.f32 -1.442695, %v3539_v34  ;;  %v4972_v35 = vmul.f32 -1.442695, %v3541_v20  ;;  %v3853_v34 = vld [vmem:[#allocation11 + $0x50] sm:$0xff]  ;;  %v3858_v20 = vld [vmem:[#allocation11 + $0x78] sm:$0xff] }
 0xba8   :  { %5429 = vpow2.f32 %v4968_v3  ;;  %v3855_v3 = vld [vmem:[#allocation11 + $0x60] sm:$0xff]  ;;  %v3857_v5 = vld [vmem:[#allocation11 + $0x70] sm:$0xff] }
 0xba9   :  { %5431 = vpow2.f32 %v4970_v40  ;;  %v3860_v40 = vld [vmem:[#allocation11 + $0x88] sm:$0xff] }
 0xbaa   :  { %5433 = vpow2.f32 %v4972_v35  ;;  %v3862_v35 = vld [vmem:[#allocation11 + $0x98] sm:$0xff] }
 0xbab   :  { %5435 = vtanh.f32 %v3540_v29  ;;  %v3849_v29 = vld [vmem:[#allocation11 + $0x30] sm:$0xff] }
 0xbb2   :  { %v5430_v26 = vpop.eup %5429 }
 0xbb3   :  { %v5432_v36 = vpop.eup %5431  ;;  %v3671_v28 = vadd.f32 1.0, %v5430_v26 }
 0xbb4   :  { %v3683_v8 = vadd.f32 1.0, %v5432_v36  ;;  %v5434_v10 = vpop.eup %5433 }
 0xbb5   :  { %5437 = vrcp.f32 %v3671_v28  ;;  %v5436_v23 = vpop.eup %5435  ;;  %v3697_v41 = vadd.f32 1.0, %v5434_v10  ;;  %v3861_v10 = vld [vmem:[#allocation11 + $0x90] sm:$0xff] }
 0xbb6   :  { %5439 = vrcp.f32 %v3683_v8  ;;  %v3859_v8 = vld [vmem:[#allocation11 + $0x80] sm:$0xff] }
 0xbb7   :  { %5441 = vrcp.f32 %v3697_v41  ;;  %v3865_v41 = vld [vmem:[#allocation11 + $0xb0] sm:$0xff] }
 0xbbf   :  { %v5438_v21 = vpop.eup %5437 }
 0xbc0   :  { %v5440_v22 = vpop.eup %5439  ;;  %v3705_v37 = vmul.f32 %v5438_v21, %v5436_v23  ;;  %v3864_v21 = vld [vmem:[#allocation11 + $0xa8] sm:$0xff] }
 0xbc1   :  { %v3703_v55 = vmul.f32 %v5440_v22, %v8280_v60  ;;  %v5442_v62 = vpop.eup %5441  ;;  %v3866_v22 = vld [vmem:[#allocation11 + $0xb8] sm:$0xff] }
 0xbc3   :  { %v8338_v38 = vadd.f32 %v3705_v37, %v3703_v55  ;;  %v3613_v18 = vpop.f32.mrb[84].mxu0  ;;  %v3654_v16 = vpop.f32.mrb[84].mxu1  ;;  %v3863_v37 = vld [vmem:[#allocation11 + $0xa0] sm:$0xff]  ;;  %v3870_v55 = vld [vmem:[#allocation11 + $0xd8] sm:$0xff] }
 0xbc4   :  { %v3661_v13 = vadd.f32 %v3613_v18, %v8886_v27  ;;  %v3663_v19 = vadd.f32 %v3654_v16, %v8887_v12  ;;  %v3615_v7 = vpop.f32.mrb[85].mxu0  ;;  %v3656_v32 = vpop.f32.mrb[85].mxu1  ;;  %v3867_v18 = vld [vmem:[#allocation11 + $0xc0] sm:$0xff]  ;;  %v3869_v16 = vld [vmem:[#allocation11 + $0xd0] sm:$0xff]  ;;  %v3872_v27 = vld [vmem:[#allocation11 + $0xe8] sm:$0xff] }
 0xbc5   :  { %v3662_v25 = vadd.f32 %v3615_v7, %v8888_v15  ;;  %v3664_v14 = vadd.f32 %v3656_v32, %v8889_v33  ;;  %v3617_v54 = vpop.f32.mrb[86].mxu0  ;;  %v3658_v58 = vpop.f32.mrb[86].mxu1  ;;  %5443 = vtanh.f32 %v8338_v38  ;;  %v3873_v7 = vld [vmem:[#allocation11 + $0xf0] sm:$0xff] }
 0xbc6   :  { %v4969_v60 = vmul.f32 -1.442695, %v3661_v13  ;;  %v3618_v46 = vpop.f32.mrb[87].mxu0  ;;  %v3659_v47 = vpop.f32.mrb[87].mxu1  ;;  %v3874_v13 = vld [vmem:[#allocation11 + $0xf8] sm:$0xff] }
 0xbc7   :  { %v4971_v4 = vmul.f32 -1.442695, %v3662_v25  ;;  %v4973_v56 = vmul.f32 -1.442695, %v3664_v14  ;;  %v8890_v54 = vld [vmem:[#allocation187_spill] sm:$0xff] }
 0xbc8   :  { %5445 = vpow2.f32 %v4969_v60  ;;  %v8891_v60 = vld [vmem:[#allocation196_spill] sm:$0xff] }
 0xbc9   :  { %5447 = vpow2.f32 %v4971_v4 }
 0xbca   :  { %5449 = vpow2.f32 %v4973_v56  ;;  %v8893_v56 = vld [vmem:[#allocation198_spill] sm:$0xff] }
 0xbcb   :  { %5451 = vtanh.f32 %v3663_v19  ;;  %v3871_v19 = vld [vmem:[#allocation11 + $0xe0] sm:$0xff] }
 0xbcf   :  { %v5444_v31 = vpop.eup %5443 }
 0xbd0   :  { %v3711_v53 = vmul.f32 %v5444_v31, %v5442_v62  ;;  %v8892_v62 = vld [vmem:[#allocation197_spill] sm:$0xff] }
 0xbd2   :  { %v5446_v17 = vpop.eup %5445  ;;  %v8345_v52 = vpack.c.bf16 %v3711_v53, %v3711_v53 }
 0xbd3   :  { %v5448_v61 = vpop.eup %5447  ;;  %v3672_v44 = vadd.f32 1.0, %v5446_v17 }
 0xbd4   :  { %v3684_v63 = vadd.f32 1.0, %v5448_v61  ;;  %3785 = vmatmul.mubr.bf16.vlgmr.msra.gmra.mrb[88].mxu0 %v8345_v52  ;;  %3826 = vmatmul.mubr.bf16.vlgmr.msra.gmra.mrb[88].mxu1 %v8345_v52  ;;  %v5450_v50 = vpop.eup %5449 }
 0xbd5   :  { %5453 = vrcp.f32 %v3672_v44  ;;  %3876 = vmatpush1.bf16.msra.mxu0 %v3843_v45  ;;  %3917 = vmatpush1.bf16.msra.mxu1 %v3845_v48  ;;  %v5452_v1 = vpop.eup %5451  ;;  %v3698_v36 = vadd.f32 1.0, %v5450_v50 }
 0xbd6   :  { %5455 = vrcp.f32 %v3684_v63  ;;  %3877 = vmatprep.subr.bf16.mxu0 %v3848_v42  ;;  %3918 = vmatprep.subr.bf16.mxu1 %v3850_v59 }
 0xbd7   :  { %3907 = vmatprep.mubr.bf16.mxu0 %v8689_v2  ;;  %3948 = vmatprep.mubr.bf16.mxu1 %v8689_v2  ;;  %5457 = vrcp.f32 %v3698_v36 }
 0xbd9   :  { %3878 = vmatpush1.bf16.msra.mxu0 %v3847_v43  ;;  %3919 = vmatpush1.bf16.msra.mxu1 %v3849_v29 }
 0xbda   :  { %3879 = vmatprep.subr.bf16.mxu0 %v3852_v39  ;;  %3920 = vmatprep.subr.bf16.mxu1 %v3854_v30 }
 0xbdd   :  { %3880 = vmatpush1.bf16.msra.mxu0 %v3851_v51  ;;  %3921 = vmatpush1.bf16.msra.mxu1 %v3853_v34 }
 0xbde   :  { %3881 = vmatprep.subr.bf16.mxu0 %v3856_v49  ;;  %3922 = vmatprep.subr.bf16.mxu1 %v3858_v20 }
 0xbdf   :  { %v5454_v6 = vpop.eup %5453 }
 0xbe0   :  { %v5456_v2 = vpop.eup %5455  ;;  %v3706_v26 = vmul.f32 %v5454_v6, %v5452_v1 }
 0xbe1   :  { %v3704_v28 = vmul.f32 %v5456_v2, %v8310_v24  ;;  %3882 = vmatpush1.bf16.msra.mxu0 %v3855_v3  ;;  %3923 = vmatpush1.bf16.msra.mxu1 %v3857_v5  ;;  %v3868_v24 = vld [vmem:[#allocation11 + $0xc8] sm:$0xff]  ;;  %v5458_v12 = vpop.eup %5457  ;;  %v8895_v2 = vld [vmem:[#allocation188_spill] sm:$0xff] }
 0xbe2   :  { %3883 = vmatprep.subr.bf16.mxu0 %v3860_v40  ;;  %3924 = vmatprep.subr.bf16.mxu1 %v3862_v35  ;;  %v8894_v40 = vld [vmem:[#allocation199_spill] sm:$0xff] }
 0xbe3   :  { %v8352_v23 = vadd.f32 %v3706_v26, %v3704_v28 }
 0xbe5   :  { %3884 = vmatpush1.bf16.msra.mxu0 %v3859_v8  ;;  %3925 = vmatpush1.bf16.msra.mxu1 %v3861_v10  ;;  %5459 = vtanh.f32 %v8352_v23  ;;  %v8896_v8 = vld [vmem:[#allocation189_spill] sm:$0xff] }
 0xbe6   :  { %3885 = vmatprep.subr.bf16.mxu0 %v3864_v21  ;;  %3926 = vmatprep.subr.bf16.mxu1 %v3866_v22  ;;  %v8897_v21 = vld [vmem:[#allocation190_spill] sm:$0xff] }
 0xbe9   :  { %3886 = vmatpush1.bf16.msra.mxu0 %v3863_v37  ;;  %3927 = vmatpush1.bf16.msra.mxu1 %v3865_v41 }
 0xbea   :  { %3887 = vmatprep.subr.bf16.mxu0 %v3868_v24  ;;  %3928 = vmatprep.subr.bf16.mxu1 %v3870_v55 }
 0xbed   :  { %3888 = vmatpush1.bf16.msra.mxu0 %v3867_v18  ;;  %3929 = vmatpush1.bf16.msra.mxu1 %v3869_v16 }
 0xbee   :  { %3889 = vmatprep.subr.bf16.mxu0 %v3872_v27  ;;  %3930 = vmatprep.subr.bf16.mxu1 %v3874_v13 }
 0xbef   :  { %v5460_v32 = vpop.eup %5459 }
 0xbf0   :  { %v3712_v15 = vmul.f32 %v5460_v32, %v5458_v12 }
 0xbf1   :  { %3890 = vmatpush1.bf16.msra.mxu0 %v3871_v19  ;;  %3931 = vmatpush1.bf16.msra.mxu1 %v3873_v7 }
 0xbf2   :  { %v8355_v25 = vpack.c.bf16 %v3712_v15, %v3712_v15 }
 0xbf4   :  { %3908 = vmatmul.mubr.bf16.vlgmr.msra.gmra.mrb[92].mxu0 %v8355_v25  ;;  %3949 = vmatmul.mubr.bf16.vlgmr.msra.gmra.mrb[92].mxu1 %v8355_v25 }
 0xca7   :  { %v3786_v33 = vpop.f32.mrb[88].mxu0  ;;  %v3827_v14 = vpop.f32.mrb[88].mxu1 }
 0xca8   :  { %v3834_v58 = vadd.f32 %v3786_v33, %v8890_v54  ;;  %v3836_v46 = vadd.f32 %v3827_v14, %v8891_v60  ;;  %v3788_v47 = vpop.f32.mrb[89].mxu0  ;;  %v3829_v4 = vpop.f32.mrb[89].mxu1 }
 0xca9   :  { %v3835_v31 = vadd.f32 %v3788_v47, %v8892_v62  ;;  %v3837_v53 = vadd.f32 %v3829_v4, %v8893_v56  ;;  %v3790_v17 = vpop.f32.mrb[90].mxu0  ;;  %v3831_v45 = vpop.f32.mrb[90].mxu1 }
 0xcaa   :  { %v4974_v48 = vmul.f32 -1.442695, %v3834_v58  ;;  %v3791_v61 = vpop.f32.mrb[91].mxu0  ;;  %v3832_v44 = vpop.f32.mrb[91].mxu1 }
 0xcab   :  { %v4976_v42 = vmul.f32 -1.442695, %v3835_v31  ;;  %v4978_v59 = vmul.f32 -1.442695, %v3837_v53 }
 0xcac   :  { %5461 = vpow2.f32 %v4974_v48 }
 0xcad   :  { %5463 = vpow2.f32 %v4976_v42 }
 0xcae   :  { %5465 = vpow2.f32 %v4978_v59 }
 0xcaf   :  { %5467 = vtanh.f32 %v3836_v46 }
 0xcb6   :  { %v5462_v63 = vpop.eup %5461 }
 0xcb7   :  { %v5464_v43 = vpop.eup %5463  ;;  %v3967_v29 = vadd.f32 1.0, %v5462_v63 }
 0xcb8   :  { %v3979_v39 = vadd.f32 1.0, %v5464_v43  ;;  %v5466_v30 = vpop.eup %5465 }
 0xcb9   :  { %5469 = vrcp.f32 %v3967_v29  ;;  %v5468_v51 = vpop.eup %5467  ;;  %v3993_v50 = vadd.f32 1.0, %v5466_v30 }
 0xcba   :  { %5471 = vrcp.f32 %v3979_v39 }
 0xcbb   :  { %5473 = vrcp.f32 %v3993_v50 }
 0xcc3   :  { %v5470_v34 = vpop.eup %5469 }
 0xcc4   :  { %v5472_v49 = vpop.eup %5471  ;;  %v4001_v20 = vmul.f32 %v5470_v34, %v5468_v51 }
 0xcc5   :  { %v3999_v1 = vmul.f32 %v5472_v49, %v8338_v38  ;;  %v5474_v16 = vpop.eup %5473 }
 0xcc7   :  { %v4003_v3 = vadd.f32 %v4001_v20, %v3999_v1  ;;  %v3909_v5 = vpop.f32.mrb[92].mxu0  ;;  %v3950_v6 = vpop.f32.mrb[92].mxu1 }
 0xcc8   :  { %v3957_v35 = vadd.f32 %v3909_v5, %v8894_v40  ;;  %v3959_v26 = vadd.f32 %v3950_v6, %v8895_v2  ;;  %v3911_v36 = vpop.f32.mrb[93].mxu0  ;;  %v3952_v28 = vpop.f32.mrb[93].mxu1 }
 0xcc9   :  { %5475 = vtanh.f32 %v4003_v3  ;;  %v3958_v10 = vadd.f32 %v3911_v36, %v8896_v8  ;;  %v3960_v22 = vadd.f32 %v3952_v28, %v8897_v21  ;;  %v3913_v37 = vpop.f32.mrb[94].mxu0  ;;  %v3954_v41 = vpop.f32.mrb[94].mxu1 }
 0xcca   :  { %v4975_v24 = vmul.f32 -1.442695, %v3957_v35  ;;  %v3914_v55 = vpop.f32.mrb[95].mxu0  ;;  %v3955_v38 = vpop.f32.mrb[95].mxu1 }
 0xccb   :  { %v4977_v18 = vmul.f32 -1.442695, %v3958_v10  ;;  %v4979_v13 = vmul.f32 -1.442695, %v3960_v22 }
 0xccc   :  { %5477 = vpow2.f32 %v4975_v24 }
 0xccd   :  { %5479 = vpow2.f32 %v4977_v18 }
 0xcce   :  { %5481 = vpow2.f32 %v4979_v13 }
 0xccf   :  { %5483 = vtanh.f32 %v3959_v26 }
 0xcd3   :  { %v5476_v27 = vpop.eup %5475 }
 0xcd4   :  { %v8368_v12 = vmul.f32 %v5476_v27, %v5474_v16 }
 0xcd6   :  { %v5478_v19 = vpop.eup %5477 }
 0xcd7   :  { %v5480_v7 = vpop.eup %5479  ;;  %v3968_v32 = vadd.f32 1.0, %v5478_v19 }
 0xcd8   :  { %v3980_v15 = vadd.f32 1.0, %v5480_v7  ;;  %v5482_v33 = vpop.eup %5481 }
 0xcd9   :  { %5485 = vrcp.f32 %v3968_v32  ;;  %v5484_v14 = vpop.eup %5483  ;;  %v3994_v46 = vadd.f32 1.0, %v5482_v33 }
 0xcda   :  { %5487 = vrcp.f32 %v3980_v15 }
 0xcdb   :  { %5489 = vrcp.f32 %v3994_v46 }
 0xce3   :  { %v5486_v54 = vpop.eup %5485 }
 0xce4   :  { %v5488_v58 = vpop.eup %5487  ;;  %v4002_v60 = vmul.f32 %v5486_v54, %v5484_v14 }
 0xce5   :  { %v4000_v47 = vmul.f32 %v5488_v58, %v8352_v23  ;;  %v5490_v62 = vpop.eup %5489 }
 0xce7   :  { %v4004_v4 = vadd.f32 %v4002_v60, %v4000_v47 }
 0xce9   :  { %5491 = vtanh.f32 %v4004_v4 }
 0xcf3   :  { %v5492_v31 = vpop.eup %5491 }
 0xcf4   :  { %v4008_v56 = vmul.f32 %v5492_v31, %v5490_v62 }
 0xcf5   :  { %6469 = dma.done.wait [#allocation14 + $0x6], 16384 }
 0xcf6   :  { %6470 = vsyncadd [#allocation14 + $0x6], 4294950912  ;;  %v4025_v53 = vpack.c.bf16 %v4008_v56, %v4008_v56  ;;  %v8372_v17 = vunpack.c.l.b16 %v8355_v25  ;;  %v8375_v45 = vunpack.c.l.b16 %v8327_v9  ;;  %v8378_v48 = vunpack.c.l.b16 %v8235_v11  ;;  %v4057_v30 = vld [vmem:[#allocation12 + $0xc0] sm:$0xff]  ;;  %v4058_v1 = vld [vmem:[#allocation12 + $0xc8] sm:$0xff]  ;;  %s6537_s10 = smov [#allocation23]  }
 0xcf7   :  { %vm4082_vm0 = vcmask 1041409   ;;  %vm4085_vm1 = vcmask 1042434   ;;  %vm4088_vm2 = vcmask 1043459   ;;  %v8395_v39 = vunpack.c.l.b16 %v8196_v0  ;;  %v4040_v51 = vld [vmem:[#allocation12 + $0x40] sm:$0xff]  ;;  %4996 = vmatprep.subr.bf16.mxu0 %v4057_v30  ;;  %v4041_v3 = vld [vmem:[#allocation12 + $0x48] sm:$0xff]  ;;  %v4059_v28 = vld [vmem:[#allocation12 + $0xd0] sm:$0xff] }
 0xcf8   :  { %v8380_v23 = vunpack.c.l.b16 %v4025_v53  ;;  %v4146_v61 = vrot.slane %v8372_v17, 7  ;;  %v4092_v44 = vrot.slane %v8375_v45, 7  ;;  %v4148_v42 = vrot.slane %v8375_v45, 6  ;;  %v4049_v34 = vld [vmem:[#allocation12 + $0x80] sm:$0xff]  ;;  %5018 = vmatprep.subr.bf16.mxu1 %v4040_v51  ;;  %v4050_v2 = vld [vmem:[#allocation12 + $0x88] sm:$0xff]  ;;  %v4042_v8 = vld [vmem:[#allocation12 + $0x50] sm:$0xff] }
 0xcf9   :  { %v4150_v25 = vrot.slane %v8378_v48, 5  ;;  %v4094_v9 = vrot.slane %v8378_v48, 6  ;;  %v4032_v50 = vld [vmem:[#allocation12] sm:$0xff]  ;;  %v4030_v6 = vpack.c.bf16 %v8368_v12, %v8368_v12  ;;  %v8402_v40 = vunpack.c.l.b16 %v8287_v57  ;;  %4997 = vmatpush3.bf16.msra.mxu0 %v4049_v34  ;;  %v4033_v26 = vld [vmem:[#allocation12 + $0x8] sm:$0xff]  ;;  %v4034_v22 = vld [vmem:[#allocation12 + $0x10] sm:$0xff]  ;;  %s4679_s20 = sshll.u32 %s6537_s10, 4  ;;  %s4680_s20 = int_to_ptr.vmem [resolvable:$true] %s4679_s20 }
 0xcfa   :  { %v4090_v59 = vrot.slane %v8380_v23, 1  ;;  %v4147_v11 = vsel %vm4082_vm0, %v4146_v61, %v8380_v23  ;;  %5019 = vmatpush3.bf16.msra.mxu1 %v4032_v50  ;;  %v8405_v35 = vunpack.c.l.b16 %v8345_v52  ;;  %4998 = vmatprep.subr.bf16.mxu0 %v4058_v1  ;;  %v4081_v36 = vrot.slane %v8395_v39, 1  ;;  %v4051_v52 = vld [vmem:[#allocation12 + $0x90] sm:$0xff]  ;;  %v4060_v41 = vld [vmem:[#allocation12 + $0xd8] sm:$0xff]  ;;  %v4061_v47 = vld [vmem:[#allocation12 + $0xe0] sm:$0xff]  ;;  %s6365_s4 = scalar_lea.vmem %s4680_s20, 64  ;;  %p6370_p2 = scmp.lt.s32.totalorder %s4680_s20, %s4680_s20 }
 0xcfb   :  { %v4149_v63 = vsel %vm4085_vm1, %v4148_v42, %v4147_v11  ;;  %5020 = vmatprep.subr.bf16.mxu1 %v4041_v3  ;;  %v8408_v10 = vunpack.c.l.b16 %v4030_v6  ;;  %v4140_v57 = vrot.slane %v8402_v40, 7  ;;  %v4043_v24 = vld [vmem:[#allocation12 + $0x58] sm:$0xff]  ;;  %v4219_v38 = vrot.slane %v8380_v23, 2  ;;  %v4044_v4 = vld [vmem:[#allocation12 + $0x60] sm:$0xff]  ;;  %v4045_v50 = vld [vmem:[#allocation12 + $0x68] sm:$0xff]  ;;  %p6366_p1 = scmp.ne.s32.totalorder %s4680_s20, %s6365_s4  ;;  %p6371_p3 = scmp.lt.s32.totalorder %s6365_s4, %s6365_s4 }
 0xcfc   :  { %v4091_v43 = vsel %vm4082_vm0, %v8372_v17, %v4090_v59  ;;  %v4151_v29 = vsel %vm4088_vm2, %v4150_v25, %v4149_v63  ;;  %v4084_v21 = vrot.slane %v8405_v35, 7  ;;  %v4083_v37 = vsel %vm4082_vm0, %v8402_v40, %v4081_v36  ;;  %v4052_v33 = vld [vmem:[#allocation12 + $0x98] sm:$0xff] }
 0xcfd   :  { %v4093_v49 = vsel %vm4085_vm1, %v4092_v44, %v4091_v43  ;;  %v4153_v20 = vpack.c.b16 %v4151_v29, %v4151_v29  ;;  %4999 = vmatpush3.bf16.msra.mxu0 %v4050_v2  ;;  %v4142_v55 = vrot.slane %v8405_v35, 6  ;;  %v4368_v18 = vrot.slane %v8380_v23, 4  ;;  %v4035_v14 = vld [vmem:[#allocation12 + $0x18] sm:$0xff]  ;;  %v4053_v43 = vld [vmem:[#allocation12 + $0xa0] sm:$0xff]  ;;  %p6372_p4 = por %p6371_p3, %p6370_p2 }
 0xcfe   :  { %v4095_v5 = vsel %vm4088_vm2, %v4094_v9, %v4093_v49  ;;  %5021 = vmatpush3.bf16.msra.mxu1 %v4033_v26  ;;  %5000 = vmatprep.subr.bf16.mxu0 %v4059_v28  ;;  %v4087_v16 = vrot.slane %v8408_v10, 6  ;;  %v4141_v27 = vsel %vm4082_vm0, %v4140_v57, %v8395_v39  ;;  %v4369_v13 = vrot.slane %v8372_v17, 3  ;;  %v4036_v29 = vld [vmem:[#allocation12 + $0x20] sm:$0xff] }
 0xcff   :  { %v4097_v0 = vpack.c.b16 %v4095_v5, %v4095_v5  ;;  %4188 = vmatprep.mubr.bf16.mxu1 %v4153_v20  ;;  %5022 = vmatprep.subr.bf16.mxu1 %v4042_v8  ;;  %v4371_v12 = vrot.slane %v8375_v45, 2  ;;  %v8423_v19 = vsel %vm4085_vm1, %v4084_v21, %v4083_v37  ;;  %v4144_v7 = vrot.slane %v8408_v10, 5  ;;  %v4062_v20 = vld [vmem:[#allocation12 + $0xe8] sm:$0xff]  ;;  %p6373_p5 = pnand %p6372_p4, %p6366_p1 }
 0xd00   :  { %v4373_v32 = vrot.slane %v8378_v48, 1  ;;  %v4444_v15 = vrot.slane %v8380_v23, 5  ;;  %v4220_v54 = vrot.slane %v8372_v17, 1  ;;  %v4370_v58 = vsel %vm4082_vm0, %v4369_v13, %v4368_v18  ;;  %v4046_v18 = vld [vmem:[#allocation12 + $0x70] sm:$0xff] }
 0xd01   :  { %4132 = vmatprep.mubr.bf16.mxu0 %v4097_v0  ;;  %5001 = vmatpush3.bf16.msra.mxu0 %v4051_v52  ;;  %v4445_v60 = vrot.slane %v8372_v17, 4  ;;  %v4447_v46 = vrot.slane %v8375_v45, 3  ;;  %v8433_v62 = vsel %vm4085_vm1, %v4142_v55, %v4141_v27  ;;  %v4372_v31 = vsel %vm4085_vm1, %v4371_v12, %v4370_v58  ;;  %v4054_v52 = vld [vmem:[#allocation12 + $0xa8] sm:$0xff] }
 0xd02   :  { %5023 = vmatpush3.bf16.msra.mxu1 %v4034_v22  ;;  %5002 = vmatprep.subr.bf16.mxu0 %v4060_v41  ;;  %v4449_v56 = vrot.slane %v8378_v48, 2  ;;  %v4361_v53 = vrot.slane %v8395_v39, 4  ;;  %v8439_v61 = vsel %vm4088_vm2, %v4373_v32, %v4372_v31  ;;  %v4362_v42 = vrot.slane %v8402_v40, 3  ;;  %v4037_v22 = vld [vmem:[#allocation12 + $0x28] sm:$0xff] }
 0xd03   :  { %5024 = vmatprep.subr.bf16.mxu1 %v4043_v24  ;;  %v4446_v44 = vsel %vm4082_vm0, %v4445_v60, %v4444_v15  ;;  %v4364_v25 = vrot.slane %v8405_v35, 2  ;;  %v4293_v59 = vrot.slane %v8380_v23, 3  ;;  %v4366_v11 = vrot.slane %v8408_v10, 1 }
 0xd04   :  { %v4448_v9 = vsel %vm4085_vm1, %v4447_v46, %v4446_v44  ;;  %v4437_v63 = vrot.slane %v8395_v39, 5  ;;  %v4363_v51 = vsel %vm4082_vm0, %v4362_v42, %v4361_v53  ;;  %v4438_v34 = vrot.slane %v8402_v40, 4  ;;  %v4055_v46 = vld [vmem:[#allocation12 + $0xb0] sm:$0xff]  ;;  %v4064_v44 = vld [vmem:[#allocation12 + $0xf8] sm:$0xff] }
 0xd05   :  { %5003 = vmatpush3.bf16.msra.mxu0 %v4052_v33  ;;  %v8449_v30 = vsel %vm4088_vm2, %v4449_v56, %v4448_v9  ;;  %v4440_v49 = vrot.slane %v8405_v35, 3  ;;  %v4294_v1 = vrot.slane %v8372_v17, 2  ;;  %v4365_v3 = vsel %vm4085_vm1, %v4364_v25, %v4363_v51  ;;  %v4047_v42 = vld [vmem:[#allocation12 + $0x78] sm:$0xff] }
 0xd06   :  { %5025 = vmatpush3.bf16.msra.mxu1 %v4035_v14  ;;  %5004 = vmatprep.subr.bf16.mxu0 %v4061_v47  ;;  %v4442_v5 = vrot.slane %v8408_v10, 2  ;;  %v4520_v6 = vrot.slane %v8380_v23, 6  ;;  %v8459_v0 = vsel %vm4088_vm2, %v4366_v11, %v4365_v3  ;;  %v4439_v2 = vsel %vm4082_vm0, %v4438_v34, %v4437_v63  ;;  %v4038_v47 = vld [vmem:[#allocation12 + $0x30] sm:$0xff]  ;;  %v4056_v34 = vld [vmem:[#allocation12 + $0xb8] sm:$0xff] }
 0xd07   :  { %5026 = vmatprep.subr.bf16.mxu1 %v4044_v4  ;;  %v4521_v26 = vrot.slane %v8372_v17, 5  ;;  %v4523_v36 = vrot.slane %v8375_v45, 4  ;;  %v4221_v28 = vsel %vm4082_vm0, %v4220_v54, %v4219_v38  ;;  %v4441_v8 = vsel %vm4085_vm1, %v4440_v49, %v4439_v2  ;;  %v4063_v38 = vld [vmem:[#allocation12 + $0xf0] sm:$0xff]  ;;  %v4205_v49 = vld [vmem:[#allocation12 + $0x140] sm:$0xff]  ;;  %v4206_v2 = vld [vmem:[#allocation12 + $0x148] sm:$0xff] }
 0xd08   :  { %v4525_v57 = vrot.slane %v8378_v48, 3  ;;  %v4596_v21 = vrot.slane %v8380_v23, 7  ;;  %v8469_v37 = vsel %vm4088_vm2, %v4442_v5, %v4441_v8  ;;  %v4597_v24 = vrot.slane %v8372_v17, 6  ;;  %v4197_v5 = vld [vmem:[#allocation12 + $0x100] sm:$0xff]  ;;  %v4198_v8 = vld [vmem:[#allocation12 + $0x108] sm:$0xff] }
 0xd09   :  { %5005 = vmatpush3.bf16.msra.mxu0 %v4053_v43  ;;  %v4522_v41 = vsel %vm4082_vm0, %v4521_v26, %v4520_v6  ;;  %v4599_v55 = vrot.slane %v8375_v45, 5  ;;  %v4296_v27 = vrot.slane %v8375_v45, 1  ;;  %v4601_v23 = vrot.slane %v8378_v48, 4  ;;  %v4271_v6 = vld [vmem:[#allocation12 + $0x180] sm:$0xff]  ;;  %v4280_v26 = vld [vmem:[#allocation12 + $0x1c8] sm:$0xff] }
 0xd0a   :  { %5027 = vmatpush3.bf16.msra.mxu1 %v4036_v29  ;;  %5006 = vmatprep.subr.bf16.mxu0 %v4062_v20  ;;  %v4524_v13 = vsel %vm4085_vm1, %v4523_v36, %v4522_v41  ;;  %v4513_v12 = vrot.slane %v8395_v39, 6  ;;  %v4598_v15 = vsel %vm4082_vm0, %v4597_v24, %v4596_v21  ;;  %v4514_v33 = vrot.slane %v8402_v40, 5  ;;  %v4279_v20 = vld [vmem:[#allocation12 + $0x1c0] sm:$0xff]  ;;  %v4207_v21 = vld [vmem:[#allocation12 + $0x150] sm:$0xff]  ;;  %v4208_v41 = vld [vmem:[#allocation12 + $0x158] sm:$0xff] }
 0xd0b   :  { %5028 = vmatprep.subr.bf16.mxu1 %v4045_v50  ;;  %v8479_v32 = vsel %vm4088_vm2, %v4525_v57, %v4524_v13  ;;  %v4516_v17 = vrot.slane %v8405_v35, 4  ;;  %v4295_v14 = vsel %vm4082_vm0, %v4294_v1, %v4293_v59  ;;  %v4600_v54 = vsel %vm4085_vm1, %v4599_v55, %v4598_v15  ;;  %v4272_v57 = vld [vmem:[#allocation12 + $0x188] sm:$0xff]  ;;  %v4282_v24 = vld [vmem:[#allocation12 + $0x1d8] sm:$0xff]  ;;  %v4201_v13 = vld [vmem:[#allocation12 + $0x120] sm:$0xff] }
 0xd0c   :  { %v4518_v58 = vrot.slane %v8408_v10, 3  ;;  %v4589_v60 = vrot.slane %v8395_v39, 7  ;;  %v8489_v4 = vsel %vm4088_vm2, %v4601_v23, %v4600_v54  ;;  %v4515_v31 = vsel %vm4082_vm0, %v4514_v33, %v4513_v12  ;;  %v4200_v55 = vld [vmem:[#allocation12 + $0x118] sm:$0xff]  ;;  %v4275_v23 = vld [vmem:[#allocation12 + $0x1a0] sm:$0xff]  ;;  %v4210_v12 = vld [vmem:[#allocation12 + $0x168] sm:$0xff] }
 0xd0d   :  { %5007 = vmatpush3.bf16.msra.mxu0 %v4054_v52  ;;  %v4590_v56 = vrot.slane %v8402_v40, 6  ;;  %v4592_v53 = vrot.slane %v8405_v35, 5  ;;  %v4089_v25 = vsel %vm4088_vm2, %v4087_v16, %v8423_v19  ;;  %v4517_v59 = vsel %vm4085_vm1, %v4516_v17, %v4515_v31  ;;  %v4199_v52 = vld [vmem:[#allocation12 + $0x110] sm:$0xff]  ;;  %v4284_v15 = vld [vmem:[#allocation12 + $0x1e8] sm:$0xff] }
 0xd0e   :  { %5029 = vmatpush3.bf16.msra.mxu1 %v4037_v22  ;;  %5008 = vmatprep.subr.bf16.mxu0 %v4063_v38  ;;  %v4594_v9 = vrot.slane %v8408_v10, 4  ;;  %v4145_v11 = vsel %vm4088_vm2, %v4144_v7, %v8433_v62  ;;  %v4223_v63 = vrot.slane %v8378_v48, 7  ;;  %v8506_v43 = vsel %vm4088_vm2, %v4518_v58, %v4517_v59  ;;  %v4039_v7 = vld [vmem:[#allocation12 + $0x38] sm:$0xff]  ;;  %v4273_v22 = vld [vmem:[#allocation12 + $0x190] sm:$0xff]  ;;  %v4202_v58 = vld [vmem:[#allocation12 + $0x128] sm:$0xff] }
 0xd0f   :  { %5030 = vmatprep.subr.bf16.mxu1 %v4046_v18  ;;  %v4591_v29 = vsel %vm4082_vm0, %v4590_v56, %v4589_v60  ;;  %v4222_v16 = vsel %vm4085_vm1, %v8375_v45, %v4221_v28  ;;  %v4297_v19 = vsel %vm4085_vm1, %v4296_v27, %v4295_v14  ;;  %v4096_v50 = vpack.c.b16 %v4089_v25, %v4089_v25  ;;  %v4274_v38 = vld [vmem:[#allocation12 + $0x198] sm:$0xff]  ;;  %v4209_v18 = vld [vmem:[#allocation12 + $0x160] sm:$0xff]  ;;  %v4276_v60 = vld [vmem:[#allocation12 + $0x1a8] sm:$0xff] }
 0xd10   :  { %v4593_v51 = vsel %vm4085_vm1, %v4592_v53, %v4591_v29  ;;  %v4152_v1 = vpack.c.b16 %v4145_v11, %v4145_v11  ;;  %v4224_v3 = vsel %vm4088_vm2, %v4223_v63, %v4222_v16  ;;  %v4298_v45 = vsel %vm4088_vm2, %v8378_v48, %v4297_v19  ;;  %v4281_v48 = vld [vmem:[#allocation12 + $0x1d0] sm:$0xff]  ;;  %v4283_v27 = vld [vmem:[#allocation12 + $0x1e0] sm:$0xff]  ;;  %v4212_v59 = vld [vmem:[#allocation12 + $0x178] sm:$0xff] }
 0xd11   :  { %5009 = vmatpush3.bf16.msra.mxu0 %v4055_v46  ;;  %v8514_v62 = vsel %vm4088_vm2, %v4594_v9, %v4593_v51  ;;  %v4226_v36 = vpack.c.b16 %v4224_v3, %v4224_v3  ;;  %v4300_v28 = vpack.c.b16 %v4298_v45, %v4298_v45  ;;  %v4213_v33 = vrot.slane %v8395_v39, 2  ;;  %v4285_v31 = vld [vmem:[#allocation12 + $0x1f0] sm:$0xff]  ;;  %v4286_v9 = vld [vmem:[#allocation12 + $0x1f8] sm:$0xff]  ;;  %v4353_v19 = vld [vmem:[#allocation12 + $0x240] sm:$0xff] }
 0xd12   :  { %5031 = vmatpush3.bf16.msra.mxu1 %v4038_v47  ;;  %5010 = vmatprep.subr.bf16.mxu0 %v4064_v44  ;;  %v4214_v17 = vrot.slane %v8402_v40, 1  ;;  %v4287_v14 = vrot.slane %v8395_v39, 3  ;;  %v4288_v54 = vrot.slane %v8402_v40, 2  ;;  %v4290_v46 = vrot.slane %v8405_v35, 1  ;;  %v4211_v47 = vld [vmem:[#allocation12 + $0x170] sm:$0xff]  ;;  %v4204_v29 = vld [vmem:[#allocation12 + $0x138] sm:$0xff] }
 0xd13   :  { %5032 = vmatprep.subr.bf16.mxu1 %v4047_v42  ;;  %v4217_v39 = vrot.slane %v8408_v10, 7  ;;  %v4203_v40 = vld [vmem:[#allocation12 + $0x130] sm:$0xff]  ;;  %v4278_v16 = vld [vmem:[#allocation12 + $0x1b8] sm:$0xff]  ;;  %v4429_v51 = vld [vmem:[#allocation12 + $0x2c0] sm:$0xff]  ;;  %vm4660_vm4 = vcmask 1043456  }
 0xd14   :  { %v4215_v56 = vsel %vm4082_vm0, %v4214_v17, %v4213_v33  ;;  %v4289_v53 = vsel %vm4082_vm0, %v4288_v54, %v4287_v14  ;;  %v4277_v44 = vld [vmem:[#allocation12 + $0x1b0] sm:$0xff]  ;;  %v4346_v3 = vld [vmem:[#allocation12 + $0x208] sm:$0xff]  ;;  %v4505_v33 = vld [vmem:[#allocation12 + $0x340] sm:$0xff]  ;;  %v4375_v14 = vpack.c.b16 %v8459_v0, %v8459_v0  ;;  %v4451_v54 = vpack.c.b16 %v8469_v37, %v8469_v37 }
 0xd15   :  { %5011 = vmatpush3.bf16.msra.mxu0 %v4056_v34  ;;  %v4216_v42 = vsel %vm4085_vm1, %v8405_v35, %v4215_v56  ;;  %v4291_v25 = vsel %vm4085_vm1, %v4290_v46, %v4289_v53  ;;  %v4345_v35 = vld [vmem:[#allocation12 + $0x200] sm:$0xff]  ;;  %v4422_v45 = vld [vmem:[#allocation12 + $0x288] sm:$0xff]  ;;  %v4604_v56 = vpack.c.b16 %v8489_v4, %v8489_v4  ;;  %v4507_v53 = vld [vmem:[#allocation12 + $0x350] sm:$0xff] }
 0xd16   :  { %5033 = vmatpush3.bf16.msra.mxu1 %v4039_v7  ;;  %5040 = vmatprep.subr.bf16.mxu0 %v4205_v49  ;;  %v4218_v11 = vsel %vm4088_vm2, %v4217_v39, %v4216_v42  ;;  %v4292_v63 = vsel %vm4088_vm2, %v8408_v10, %v4291_v25  ;;  %v4421_v49 = vld [vmem:[#allocation12 + $0x280] sm:$0xff]  ;;  %v4452_v10 = vpack.c.b16 %v8449_v30, %v8449_v30  ;;  %v4432_v30 = vld [vmem:[#allocation12 + $0x2d8] sm:$0xff]  ;;  %v4506_v46 = vld [vmem:[#allocation12 + $0x348] sm:$0xff] }
 0xd17   :  { %5062 = vmatprep.subr.bf16.mxu1 %v4279_v20  ;;  %v4225_v34 = vpack.c.b16 %v4218_v11, %v4218_v11  ;;  %v4299_v7 = vpack.c.b16 %v4292_v63, %v4292_v63  ;;  %v4354_v20 = vld [vmem:[#allocation12 + $0x248] sm:$0xff]  ;;  %v4581_v17 = vld [vmem:[#allocation12 + $0x3c0] sm:$0xff]  ;;  %v4583_v39 = vld [vmem:[#allocation12 + $0x3d0] sm:$0xff] }
 0xd18   :  { %4133 = vmatmul.mubr.bf16.vlgmr.msra.gmra.mrb[96].mxu0 %v4096_v50  ;;  %v4430_v50 = vld [vmem:[#allocation12 + $0x2c8] sm:$0xff]  ;;  %v4584_v4 = vld [vmem:[#allocation12 + $0x3d8] sm:$0xff]  ;;  %v4501_v11 = vld [vmem:[#allocation12 + $0x320] sm:$0xff] }
 0xd19   :  { %4189 = vmatmul.mubr.bf16.vlgmr.msra.gmra.mrb[96].mxu1 %v4152_v1  ;;  %5041 = vmatpush3.bf16.msra.mxu0 %v4197_v5  ;;  %v4376_v1 = vpack.c.b16 %v8439_v61, %v8439_v61  ;;  %v4355_v5 = vld [vmem:[#allocation12 + $0x250] sm:$0xff]  ;;  %v4498_v0 = vld [vmem:[#allocation12 + $0x308] sm:$0xff]  ;;  %v4500_v42 = vld [vmem:[#allocation12 + $0x318] sm:$0xff] }
 0xd1a   :  { %5063 = vmatpush3.bf16.msra.mxu1 %v4271_v6  ;;  %5042 = vmatprep.subr.bf16.mxu0 %v4206_v2  ;;  %v4431_v6 = vld [vmem:[#allocation12 + $0x2d0] sm:$0xff]  ;;  %v4574_v37 = vld [vmem:[#allocation12 + $0x388] sm:$0xff]  ;;  %v4576_v25 = vld [vmem:[#allocation12 + $0x398] sm:$0xff] }
 0xd1b   :  { %5064 = vmatprep.subr.bf16.mxu1 %v4280_v26  ;;  %4261 = vmatprep.mubr.bf16.mxu0 %v4226_v36  ;;  %v4347_v61 = vld [vmem:[#allocation12 + $0x210] sm:$0xff]  ;;  %v4356_v26 = vld [vmem:[#allocation12 + $0x258] sm:$0xff]  ;;  %v4577_v63 = vld [vmem:[#allocation12 + $0x3a0] sm:$0xff] }
 0xd1c   :  { %4335 = vmatprep.mubr.bf16.mxu1 %v4300_v28  ;;  %v4423_v2 = vld [vmem:[#allocation12 + $0x290] sm:$0xff]  ;;  %v4348_v36 = vld [vmem:[#allocation12 + $0x218] sm:$0xff] }
 0xd1d   :  { %5043 = vmatpush3.bf16.msra.mxu0 %v4198_v8  ;;  %v4424_v28 = vld [vmem:[#allocation12 + $0x298] sm:$0xff]  ;;  %v4357_v8 = vld [vmem:[#allocation12 + $0x260] sm:$0xff] }
 0xd1e   :  { %5065 = vmatpush3.bf16.msra.mxu1 %v4272_v57  ;;  %5044 = vmatprep.subr.bf16.mxu0 %v4207_v21  ;;  %v4433_v57 = vld [vmem:[#allocation12 + $0x2e0] sm:$0xff] }
 0xd1f   :  { %5066 = vmatprep.subr.bf16.mxu1 %v4281_v48  ;;  %v4349_v21 = vld [vmem:[#allocation12 + $0x220] sm:$0xff] }
 0xd20   :  { %v4425_v48 = vld [vmem:[#allocation12 + $0x2a0] sm:$0xff] }
 0xd21   :  { %5045 = vmatpush3.bf16.msra.mxu0 %v4199_v52  ;;  %v4358_v52 = vld [vmem:[#allocation12 + $0x268] sm:$0xff] }
 0xd22   :  { %5067 = vmatpush3.bf16.msra.mxu1 %v4273_v22  ;;  %5046 = vmatprep.subr.bf16.mxu0 %v4208_v41  ;;  %v4434_v22 = vld [vmem:[#allocation12 + $0x2e8] sm:$0xff] }
 0xd23   :  { %5068 = vmatprep.subr.bf16.mxu1 %v4282_v24  ;;  %v4350_v41 = vld [vmem:[#allocation12 + $0x228] sm:$0xff] }
 0xd24   :  { %v4426_v24 = vld [vmem:[#allocation12 + $0x2a8] sm:$0xff] }
 0xd25   :  { %5047 = vmatpush3.bf16.msra.mxu0 %v4200_v55  ;;  %v4359_v55 = vld [vmem:[#allocation12 + $0x270] sm:$0xff] }
 0xd26   :  { %5069 = vmatpush3.bf16.msra.mxu1 %v4274_v38  ;;  %5048 = vmatprep.subr.bf16.mxu0 %v4209_v18  ;;  %v4435_v38 = vld [vmem:[#allocation12 + $0x2f0] sm:$0xff] }
 0xd27   :  { %5070 = vmatprep.subr.bf16.mxu1 %v4283_v27  ;;  %v4351_v18 = vld [vmem:[#allocation12 + $0x230] sm:$0xff] }
 0xd28   :  { %v4427_v27 = vld [vmem:[#allocation12 + $0x2b0] sm:$0xff] }
 0xd29   :  { %5049 = vmatpush3.bf16.msra.mxu0 %v4201_v13  ;;  %v4360_v13 = vld [vmem:[#allocation12 + $0x278] sm:$0xff] }
 0xd2a   :  { %5071 = vmatpush3.bf16.msra.mxu1 %v4275_v23  ;;  %5050 = vmatprep.subr.bf16.mxu0 %v4210_v12  ;;  %v4436_v23 = vld [vmem:[#allocation12 + $0x2f8] sm:$0xff] }
 0xd2b   :  { %5072 = vmatprep.subr.bf16.mxu1 %v4284_v15  ;;  %v4352_v12 = vld [vmem:[#allocation12 + $0x238] sm:$0xff] }
 0xd2c   :  { %v4428_v15 = vld [vmem:[#allocation12 + $0x2b8] sm:$0xff] }
 0xd2d   :  { %5051 = vmatpush3.bf16.msra.mxu0 %v4202_v58  ;;  %v4497_v58 = vld [vmem:[#allocation12 + $0x300] sm:$0xff] }
 0xd2e   :  { %5073 = vmatpush3.bf16.msra.mxu1 %v4276_v60  ;;  %5052 = vmatprep.subr.bf16.mxu0 %v4211_v47  ;;  %v4573_v60 = vld [vmem:[#allocation12 + $0x380] sm:$0xff]  ;;  %v4582_v47 = vld [vmem:[#allocation12 + $0x3c8] sm:$0xff] }
 0xd2f   :  { %5074 = vmatprep.subr.bf16.mxu1 %v4285_v31  ;;  %v4528_v31 = vpack.c.b16 %v8479_v32, %v8479_v32  ;;  %v4499_v32 = vld [vmem:[#allocation12 + $0x310] sm:$0xff] }
 0xd31   :  { %5053 = vmatpush3.bf16.msra.mxu0 %v4203_v40  ;;  %v4575_v40 = vld [vmem:[#allocation12 + $0x390] sm:$0xff] }
 0xd32   :  { %5075 = vmatpush3.bf16.msra.mxu1 %v4277_v44  ;;  %5054 = vmatprep.subr.bf16.mxu0 %v4212_v59  ;;  %v4508_v44 = vld [vmem:[#allocation12 + $0x358] sm:$0xff]  ;;  %v4509_v59 = vld [vmem:[#allocation12 + $0x360] sm:$0xff] }
 0xd33   :  { %5076 = vmatprep.subr.bf16.mxu1 %v4286_v9  ;;  %v4585_v9 = vld [vmem:[#allocation12 + $0x3e0] sm:$0xff] }
 0xd35   :  { %5055 = vmatpush3.bf16.msra.mxu0 %v4204_v29  ;;  %v4510_v29 = vld [vmem:[#allocation12 + $0x368] sm:$0xff] }
 0xd36   :  { %5077 = vmatpush3.bf16.msra.mxu1 %v4278_v16  ;;  %5084 = vmatprep.subr.bf16.mxu0 %v4353_v19  ;;  %v4586_v16 = vld [vmem:[#allocation12 + $0x3e8] sm:$0xff] }
 0xd37   :  { %5106 = vmatprep.subr.bf16.mxu1 %v4429_v51  ;;  %v4502_v19 = vld [vmem:[#allocation12 + $0x328] sm:$0xff] }
 0xd38   :  { %4262 = vmatmul.mubr.bf16.vlgmr.msra.gmra.mrb[100].mxu0 %v4225_v34  ;;  %v4578_v51 = vld [vmem:[#allocation12 + $0x3a8] sm:$0xff]  ;;  %v4511_v34 = vld [vmem:[#allocation12 + $0x370] sm:$0xff] }
 0xd39   :  { %4336 = vmatmul.mubr.bf16.vlgmr.msra.gmra.mrb[100].mxu1 %v4299_v7  ;;  %5085 = vmatpush3.bf16.msra.mxu0 %v4345_v35  ;;  %v4587_v7 = vld [vmem:[#allocation12 + $0x3f0] sm:$0xff] }
 0xd3a   :  { %5107 = vmatpush3.bf16.msra.mxu1 %v4421_v49  ;;  %5086 = vmatprep.subr.bf16.mxu0 %v4354_v20  ;;  %v4503_v35 = vld [vmem:[#allocation12 + $0x330] sm:$0xff]  ;;  %v4512_v20 = vld [vmem:[#allocation12 + $0x378] sm:$0xff] }
 0xd3b   :  { %5108 = vmatprep.subr.bf16.mxu1 %v4430_v50  ;;  %4411 = vmatprep.mubr.bf16.mxu0 %v4376_v1  ;;  %v4579_v49 = vld [vmem:[#allocation12 + $0x3b0] sm:$0xff]  ;;  %v4588_v50 = vld [vmem:[#allocation12 + $0x3f8] sm:$0xff] }
 0xd3c   :  { %4487 = vmatprep.mubr.bf16.mxu1 %v4452_v10  ;;  %v4504_v1 = vld [vmem:[#allocation12 + $0x338] sm:$0xff] }
 0xd3d   :  { %5087 = vmatpush3.bf16.msra.mxu0 %v4346_v3  ;;  %v4580_v10 = vld [vmem:[#allocation12 + $0x3b8] sm:$0xff]  ;;  %v4527_v3 = vpack.c.b16 %v8506_v43, %v8506_v43 }
 0xd3e   :  { %5109 = vmatpush3.bf16.msra.mxu1 %v4422_v45  ;;  %5088 = vmatprep.subr.bf16.mxu0 %v4355_v5  ;;  %v4603_v45 = vpack.c.b16 %v8514_v62, %v8514_v62 }
 0xd3f   :  { %5110 = vmatprep.subr.bf16.mxu1 %v4431_v6 }
 0xd41   :  { %5089 = vmatpush3.bf16.msra.mxu0 %v4347_v61 }
 0xd42   :  { %5111 = vmatpush3.bf16.msra.mxu1 %v4423_v2  ;;  %5090 = vmatprep.subr.bf16.mxu0 %v4356_v26 }
 0xd43   :  { %5112 = vmatprep.subr.bf16.mxu1 %v4432_v30 }
 0xd45   :  { %5091 = vmatpush3.bf16.msra.mxu0 %v4348_v36 }
 0xd46   :  { %5113 = vmatpush3.bf16.msra.mxu1 %v4424_v28  ;;  %5092 = vmatprep.subr.bf16.mxu0 %v4357_v8 }
 0xd47   :  { %5114 = vmatprep.subr.bf16.mxu1 %v4433_v57 }
 0xd49   :  { %5093 = vmatpush3.bf16.msra.mxu0 %v4349_v21 }
 0xd4a   :  { %5115 = vmatpush3.bf16.msra.mxu1 %v4425_v48  ;;  %5094 = vmatprep.subr.bf16.mxu0 %v4358_v52 }
 0xd4b   :  { %5116 = vmatprep.subr.bf16.mxu1 %v4434_v22 }
 0xd4d   :  { %5095 = vmatpush3.bf16.msra.mxu0 %v4350_v41 }
 0xd4e   :  { %5117 = vmatpush3.bf16.msra.mxu1 %v4426_v24  ;;  %5096 = vmatprep.subr.bf16.mxu0 %v4359_v55 }
 0xd4f   :  { %5118 = vmatprep.subr.bf16.mxu1 %v4435_v38 }
 0xd51   :  { %5097 = vmatpush3.bf16.msra.mxu0 %v4351_v18 }
 0xd52   :  { %5119 = vmatpush3.bf16.msra.mxu1 %v4427_v27  ;;  %5098 = vmatprep.subr.bf16.mxu0 %v4360_v13 }
 0xd53   :  { %5120 = vmatprep.subr.bf16.mxu1 %v4436_v23 }
 0xd55   :  { %5099 = vmatpush3.bf16.msra.mxu0 %v4352_v12 }
 0xd56   :  { %5121 = vmatpush3.bf16.msra.mxu1 %v4428_v15  ;;  %5128 = vmatprep.subr.bf16.mxu0 %v4505_v33 }
 0xd57   :  { %5150 = vmatprep.subr.bf16.mxu1 %v4581_v17 }
 0xd58   :  { %4412 = vmatmul.mubr.bf16.vlgmr.msra.gmra.mrb[104].mxu0 %v4375_v14 }
 0xd59   :  { %4488 = vmatmul.mubr.bf16.vlgmr.msra.gmra.mrb[104].mxu1 %v4451_v54  ;;  %5129 = vmatpush3.bf16.msra.mxu0 %v4497_v58 }
 0xd5a   :  { %5151 = vmatpush3.bf16.msra.mxu1 %v4573_v60  ;;  %5130 = vmatprep.subr.bf16.mxu0 %v4506_v46 }
 0xd5b   :  { %5152 = vmatprep.subr.bf16.mxu1 %v4582_v47  ;;  %4563 = vmatprep.mubr.bf16.mxu0 %v4528_v31 }
 0xd5c   :  { %4639 = vmatprep.mubr.bf16.mxu1 %v4604_v56 }
 0xd5d   :  { %5131 = vmatpush3.bf16.msra.mxu0 %v4498_v0 }
 0xd5e   :  { %5153 = vmatpush3.bf16.msra.mxu1 %v4574_v37  ;;  %5132 = vmatprep.subr.bf16.mxu0 %v4507_v53 }
 0xd5f   :  { %5154 = vmatprep.subr.bf16.mxu1 %v4583_v39 }
 0xd61   :  { %5133 = vmatpush3.bf16.msra.mxu0 %v4499_v32 }
 0xd62   :  { %5155 = vmatpush3.bf16.msra.mxu1 %v4575_v40  ;;  %5134 = vmatprep.subr.bf16.mxu0 %v4508_v44 }
 0xd63   :  { %5156 = vmatprep.subr.bf16.mxu1 %v4584_v4 }
 0xd65   :  { %5135 = vmatpush3.bf16.msra.mxu0 %v4500_v42 }
 0xd66   :  { %5157 = vmatpush3.bf16.msra.mxu1 %v4576_v25  ;;  %5136 = vmatprep.subr.bf16.mxu0 %v4509_v59  ;;  %v8898_v25 = vlaneseq }
 0xd67   :  { %5158 = vmatprep.subr.bf16.mxu1 %v4585_v9 }
 0xd68   :  { %v4657_v59 = vand.u32 127, %v8898_v25 }
 0xd69   :  { %5137 = vmatpush3.bf16.msra.mxu0 %v4501_v11  ;;  %v4980_v11 = vld [vmem:[#allocation22] ss:$0 sm:$0xff] }
 0xd6a   :  { %5159 = vmatpush3.bf16.msra.mxu1 %v4577_v63  ;;  %5138 = vmatprep.subr.bf16.mxu0 %v4510_v29  ;;  %vm4658_vm3 = vcmp.lt.s32.totalorder %v4657_v59, 35 }
 0xd6b   :  { %5160 = vmatprep.subr.bf16.mxu1 %v4586_v16 }
 0xd6d   :  { %5139 = vmatpush3.bf16.msra.mxu0 %v4502_v19 }
 0xd6e   :  { %5161 = vmatpush3.bf16.msra.mxu1 %v4578_v51  ;;  %5140 = vmatprep.subr.bf16.mxu0 %v4511_v34 }
 0xd6f   :  { %5162 = vmatprep.subr.bf16.mxu1 %v4587_v7 }
 0xd71   :  { %5141 = vmatpush3.bf16.msra.mxu0 %v4503_v35 }
 0xd72   :  { %5163 = vmatpush3.bf16.msra.mxu1 %v4579_v49  ;;  %5142 = vmatprep.subr.bf16.mxu0 %v4512_v20 }
 0xd73   :  { %5164 = vmatprep.subr.bf16.mxu1 %v4588_v50 }
 0xd75   :  { %5143 = vmatpush3.bf16.msra.mxu0 %v4504_v1 }
 0xd76   :  { %5165 = vmatpush3.bf16.msra.mxu1 %v4580_v10 }
 0xd78   :  { %4564 = vmatmul.mubr.bf16.vlgmr.msra.gmra.mrb[108].mxu0 %v4527_v3 }
 0xd79   :  { %4640 = vmatmul.mubr.bf16.vlgmr.msra.gmra.mrb[108].mxu1 %v4603_v45 }
 0xdeb   :  { %v5012_v5 = vpop.f32.mrb[96].mxu0 }
 0xdec   :  { %v5034_v6 = vpop.f32.mrb[96].mxu1  ;;  %v5013_v61 = vpop.f32.mrb[97].mxu0 }
 0xded   :  { %v5035_v2 = vpop.f32.mrb[97].mxu1  ;;  %v5014_v26 = vadd.f32 %v5013_v61, %v5012_v5  ;;  %v5015_v36 = vpop.f32.mrb[98].mxu0 }
 0xdee   :  { %v5036_v30 = vadd.f32 %v5035_v2, %v5034_v6  ;;  %v5037_v28 = vpop.f32.mrb[98].mxu1  ;;  %v5016_v8 = vpop.f32.mrb[99].mxu0 }
 0xdef   :  { %v5038_v57 = vpop.f32.mrb[99].mxu1 }
 0xdf0   :  { %v4191_v21 = vadd.f32 %v5036_v30, %v5014_v26 }
 0xe0b   :  { %v5056_v48 = vpop.f32.mrb[100].mxu0 }
 0xe0c   :  { %v5078_v43 = vpop.f32.mrb[100].mxu1  ;;  %v5057_v52 = vpop.f32.mrb[101].mxu0 }
 0xe0d   :  { %v5079_v22 = vpop.f32.mrb[101].mxu1  ;;  %v5058_v62 = vadd.f32 %v5057_v52, %v5056_v48  ;;  %v5059_v24 = vpop.f32.mrb[102].mxu0 }
 0xe0e   :  { %v5080_v41 = vadd.f32 %v5079_v22, %v5078_v43  ;;  %v5081_v55 = vpop.f32.mrb[102].mxu1  ;;  %v5060_v38 = vpop.f32.mrb[103].mxu0 }
 0xe0f   :  { %v5082_v18 = vpop.f32.mrb[103].mxu1  ;;  %v4269_v27 = vadd.f32 %v5058_v62, %v4191_v21 }
 0xe11   :  { %v4343_v13 = vadd.f32 %v5080_v41, %v4269_v27 }
 0xe2b   :  { %v5100_v23 = vpop.f32.mrb[104].mxu0 }
 0xe2c   :  { %v5122_v12 = vpop.f32.mrb[104].mxu1  ;;  %v5101_v15 = vpop.f32.mrb[105].mxu0 }
 0xe2d   :  { %v5123_v33 = vpop.f32.mrb[105].mxu1  ;;  %v5102_v17 = vadd.f32 %v5101_v15, %v5100_v23  ;;  %v5103_v54 = vpop.f32.mrb[106].mxu0 }
 0xe2e   :  { %v5124_v14 = vadd.f32 %v5123_v33, %v5122_v12  ;;  %v5125_v58 = vpop.f32.mrb[106].mxu1  ;;  %v5104_v60 = vpop.f32.mrb[107].mxu0 }
 0xe2f   :  { %v5126_v46 = vpop.f32.mrb[107].mxu1  ;;  %v4419_v47 = vadd.f32 %v5102_v17, %v4343_v13 }
 0xe31   :  { %v4495_v31 = vadd.f32 %v5124_v14, %v4419_v47 }
 0xe4b   :  { %v5144_v56 = vpop.f32.mrb[108].mxu0 }
 0xe4c   :  { %v5166_v0 = vpop.f32.mrb[108].mxu1  ;;  %v5145_v37 = vpop.f32.mrb[109].mxu0 }
 0xe4d   :  { %v5167_v53 = vpop.f32.mrb[109].mxu1  ;;  %v5146_v39 = vadd.f32 %v5145_v37, %v5144_v56  ;;  %v5147_v40 = vpop.f32.mrb[110].mxu0 }
 0xe4e   :  { %v5168_v32 = vadd.f32 %v5167_v53, %v5166_v0  ;;  %v5169_v44 = vpop.f32.mrb[110].mxu1  ;;  %v5148_v4 = vpop.f32.mrb[111].mxu0 }
 0xe4f   :  { %v5170_v42 = vpop.f32.mrb[111].mxu1  ;;  %v4571_v9 = vadd.f32 %v5146_v39, %v4495_v31 }
 0xe51   :  { %v4647_v63 = vadd.f32 %v5168_v32, %v4571_v9 }
 0xe53   :  { %v4655_v29 = vadd.f32 %v4980_v11, %v4647_v63 }
 0xe55   :  { %v4659_v16 = vsel %vm4658_vm3, %v4655_v29, -1e+30 }
 0xe56   :  { %v4661_v19 = vsel %vm4660_vm4, %v4659_v16, -inf }
 0xe57   :  { %4662 = vmax.xlane.f32.xlu0 %v4661_v19 }
 0xee4   :  { %v4663_v51 = vpop.xlane.xlu0 %4662 }
 0xee5   :  { %v4664_v34 = vsub.f32 %v4659_v16, %v4663_v51 }
 0xee7   :  { %v4665_v7 = vmul.f32 1.442695, %v4664_v34 }
 0xee9   :  { %5493 = vpow2.f32 %v4665_v7 }
 0xef3   :  { %v5494_v35 = vpop.eup %5493 }
 0xef4   :  { %v4667_v49 = vsel %vm4660_vm4, %v5494_v35, 0.0 }
 0xef5   :  { %4668 = vadd.xlane.f32.xlu0 %v4667_v49 }
 0xf82   :  { %v4669_v20 = vpop.xlane.xlu0 %4668 }
 0xf83   :  { %5495 = vrcp.f32 %v4669_v20 }
 0xf8d   :  { %v5496_v50 = vpop.eup %5495 }
 0xf8e   :  { %v4671_v1 = vmul.f32 %v5496_v50, %v5494_v35 }
 0xf90   :  { %4672 = vst [vmem:[#allocation23] sm:$0xf] %v4671_v1 }
 0xf91   :  { %6376 = shalt.err (!%p6373_p5)
}
 0xf92   :  { %s6377_s27 = scalar_lea.hbm %s8574_s12, 64 }
 0xf93   :  { %p6378_p6 = scmp.ne.s32.totalorder %s8574_s12, %s6377_s27  ;;  %p6381_p7 = scmp.lt.u32.totalorder %s6377_s27, %s8574_s12 }
 0xf95   :  { %p6383_p8 = pnand %p6381_p7, %p6378_p6 }
 0xf97   :  { %6386 = shalt.err (!%p6383_p8)
}
 0xf98   :  { %4682 = dma.vmem_to_hbm [thread:$0]  %s4680_s20, 64, %s8574_s12, [#allocation17]  }
 0xf99   :  { %6471 = dma.done.wait [#allocation17], 64  }
 0xf9a   :  { %6472 = vsyncadd [#allocation17], 4294967232 }
 0xf9b   :  { %4686 = vsyncpa [#allocation16], 1 }
 0xf9c   :  { %4687 = vsyncpa [#allocation21], 1 }
 0xf9d   :  { %4688 = vsyncpa [#allocation17], 1 }
 0xf9e   :  { %4689 = vsyncpa [#allocation18], 1 }
 0xf9f   :  { %4690 = vsyncmov [#allocation13] }
 0xfa2   :  { %s4691_s5 = vpop.sfrf %4690 }
 0xfa3   :  { %p4981_p9 = scmp.ne.s32.totalorder %s4691_s5, 0 }
 0xfa5   :  { %4695 = shalt.err (%p4981_p9)  }
 0xfa6   :  { %4697 = vsyncmov [#allocation13 + $0x1] }
 0xfa9   :  { %s4698_s16 = vpop.sfrf %4697 }
 0xfaa   :  { %p4982_p10 = scmp.ne.s32.totalorder %s4698_s16, 0 }
 0xfac   :  { %4702 = shalt.err (%p4982_p10)  }
 0xfad   :  { %4704 = vsyncmov [#allocation13 + $0x2] }
 0xfb0   :  { %s4705_s14 = vpop.sfrf %4704 }
 0xfb1   :  { %p4983_p11 = scmp.ne.s32.totalorder %s4705_s14, 0 }
 0xfb3   :  { %4709 = shalt.err (%p4983_p11)  }
 0xfb4   :  { %4711 = vsyncmov [#allocation13 + $0x3] }
 0xfb7   :  { %s4712_s12 = vpop.sfrf %4711 }
 0xfb8   :  { %p4984_p12 = scmp.ne.s32.totalorder %s4712_s12, 0 }
 0xfba   :  { %4716 = shalt.err (%p4984_p12)  }
 0xfbb   :  { %4718 = vsyncmov [#allocation13 + $0x4] }
 0xfbe   :  { %s4719_s29 = vpop.sfrf %4718 }
 0xfbf   :  { %p4985_p13 = scmp.ne.s32.totalorder %s4719_s29, 0 }
 0xfc1   :  { %4723 = shalt.err (%p4985_p13)  }
 0xfc2   :  { %4725 = vsyncmov [#allocation13 + $0x5] }
 0xfc5   :  { %s4726_s7 = vpop.sfrf %4725 }
 0xfc6   :  { %p4986_p0 = scmp.ne.s32.totalorder %s4726_s7, 0 }
 0xfc8   :  { %4730 = shalt.err (%p4986_p0)  }
 0xfc9   :  { %4732 = vsyncmov [#allocation13 + $0x6] }
 0xfcc   :  { %s4733_s26 = vpop.sfrf %4732 }
 0xfcd   :  { %p4987_p1 = scmp.ne.s32.totalorder %s4733_s26, 0 }
 0xfcf   :  { %4737 = shalt.err (%p4987_p1)  }
 0xfd0   :  { %4739 = vsyncmov [#allocation13 + $0x7] }
 0xfd3   :  { %s4740_s3 = vpop.sfrf %4739 }
 0xfd4   :  { %p4988_p2 = scmp.ne.s32.totalorder %s4740_s3, 0 }
 0xfd6   :  { %4744 = shalt.err (%p4988_p2)  }
 0xfd7   :  { %4745 = vsyncmov [#allocation14] }
 0xfda   :  { %s4746_s25 = vpop.sfrf %4745 }
 0xfdb   :  { %p4989_p3 = scmp.ne.s32.totalorder %s4746_s25, 0 }
 0xfdd   :  { %4750 = shalt.err (%p4989_p3)  }
 0xfde   :  { %4752 = vsyncmov [#allocation14 + $0x1] }
 0xfe1   :  { %s4753_s30 = vpop.sfrf %4752 }
 0xfe2   :  { %p4990_p4 = scmp.ne.s32.totalorder %s4753_s30, 0 }
 0xfe4   :  { %4757 = shalt.err (%p4990_p4)  }
 0xfe5   :  { %4759 = vsyncmov [#allocation14 + $0x2] }
 0xfe8   :  { %s4760_s13 = vpop.sfrf %4759 }
 0xfe9   :  { %p4991_p5 = scmp.ne.s32.totalorder %s4760_s13, 0 }
 0xfeb   :  { %4764 = shalt.err (%p4991_p5)  }
 0xfec   :  { %4766 = vsyncmov [#allocation14 + $0x3] }
 0xfef   :  { %s4767_s23 = vpop.sfrf %4766 }
 0xff0   :  { %p4992_p6 = scmp.ne.s32.totalorder %s4767_s23, 0 }
 0xff2   :  { %4771 = shalt.err (%p4992_p6)  }
 0xff3   :  { %4773 = vsyncmov [#allocation14 + $0x4] }
 0xff6   :  { %s4774_s17 = vpop.sfrf %4773 }
 0xff7   :  { %p4993_p7 = scmp.ne.s32.totalorder %s4774_s17, 0 }
 0xff9   :  { %4778 = shalt.err (%p4993_p7)  }
 0xffa   :  { %4780 = vsyncmov [#allocation14 + $0x5] }
 0xffd   :  { %s4781_s18 = vpop.sfrf %4780 }
 0xffe   :  { %p4994_p8 = scmp.ne.s32.totalorder %s4781_s18, 0 }
0x1000   :  { %4785 = shalt.err (%p4994_p8)  }
0x1001   :  { %4787 = vsyncmov [#allocation14 + $0x6] }
0x1004   :  { %s4788_s9 = vpop.sfrf %4787 }
0x1005   :  { %p4995_p9 = scmp.ne.s32.totalorder %s4788_s9, 0 }
0x1007   :  { %4792 = shalt.err (%p4995_p9)  }

</bundles_post_ra>
